<compile_context>
chip_gen: v7x
topology: tpu7x:2x2x1
jax: 0.10.0
libtpu: 0.0.40
codegen_flags: <defaults>
</compile_context>

<pallas_src>
import math
import functools

import jax
import jax.numpy as jnp
from jax.experimental import pallas as pl
from jax.experimental.pallas import tpu as pltpu

_EPS = 1e-5  # BatchNorm3d default eps


# =============================================================================
# Pallas kernels
# =============================================================================
def _conv_fused_kernel(x_ref, w_ref, m_ref, s_ref, t_ref, p_ref, b_ref, o_ref,
                       *, khw, kw, Wp, L):
    """Fused BN(eval) + PReLU + zero-pad mask + stride-1 conv tap accumulation.

    Per grid step (n, do, a) where a is the depth tap ('arbitrary' axis):
      x_ref : (1, 1, Cin, R_in)    padded input slab, spatial flattened to lanes
      w_ref : (1, khw, Cout, Cin)  one (Cout, Cin) weight matrix per (kh, kw) tap
      m_ref : (1, 1, R_in)         1.0 inside the valid volume, 0.0 in the halo
      s_ref, t_ref, p_ref : (Cin, 1)  BN scale / BN shift / PReLU alpha
      b_ref : (Cout, 1)            conv bias
      o_ref : (1, 1, Cout, L)      output slab (L = Ho*Wp), accumulated over a
    """
    a = pl.program_id(2)

    x = x_ref[0, 0]                                   # (Cin, R_in)
    x = x * s_ref[...] + t_ref[...]                   # BatchNorm (inference affine)
    x = jnp.where(x >= 0.0, x, p_ref[...] * x)        # PReLU
    x = x * m_ref[0]                                  # re-zero the padded halo

    @pl.when(a == 0)
    def _init():                                      # bias once, then accumulate
        o_ref[0, 0] = jnp.broadcast_to(b_ref[...], o_ref.shape[2:])

    acc = jnp.zeros(o_ref.shape[2:], jnp.float32)
    for t in range(khw):                              # static unroll over kh*kw taps
        off = (t // kw) * Wp + (t % kw)               # lane offset of this tap
        win = x[:, off:off + L]                       # (Cin, L)
        acc = acc + jnp.dot(w_ref[0, t], win, preferred_element_type=jnp.float32)
    o_ref[0, 0] += acc


def _matmul_cs_kernel(x_ref, w_ref, b_ref, o_ref):
    """Weight-stationary (R, K) @ (K, S) + bias with spatial S on the lane axis."""
    o_ref[0, 0] = (jnp.dot(w_ref[...], x_ref[0, 0],
                           preferred_element_type=jnp.float32) + b_ref[...])


# =============================================================================
# Conv wrappers
# =============================================================================
def conv3d_bn_prelu(x, w, b, bn, alpha, dim):
    """BatchNorm3d(eval) + PReLU + Conv3d (kernel 3 / [1,3,3], stride 1, same pad).

    x: (N, D, Cin, H, W); w: (kd, kh, kw, Cin, Cout); b: (Cout,).
    """
    N, D, Cin, H, W = x.shape
    kd, kh, kw, _, Cout = w.shape
    pd, ph, pw = (0, 1, 1) if dim == 2 else (1, 1, 1)

    gamma, beta, mean, var = bn
    scale = gamma / jnp.sqrt(var + _EPS)
    shift = beta - mean * scale

    Dp, Hp, Wp = D + 2 * pd, H + 2 * ph, W + 2 * pw
    Hp2 = Hp + 1                       # one extra zero row keeps all tap reads in range
    R_in = Hp2 * Wp                    # flattened padded spatial rows per depth slice
    L = H * Wp                         # output rows in padded-pitch coordinates

    xpad = jnp.pad(x, ((0, 0), (pd, pd), (0, 0), (ph, ph + 1), (pw, pw)))
    xflat = xpad.reshape(N, Dp, Cin, R_in)

    # validity mask (1 inside the original volume, 0 in the zero-padded halo); this
    # keeps the PyTorch semantics "conv zero-pads prelu(bn(x))" while BN/PReLU run
    # inside the kernel on the padded slab.
    hh, ww, ddp = jnp.arange(Hp2), jnp.arange(Wp), jnp.arange(Dp)
    row_ok = (((hh >= ph) & (hh < ph + H))[:, None]
              & ((ww >= pw) & (ww < pw + W))[None, :])
    d_ok = (ddp >= pd) & (ddp < pd + D)
    mask = (d_ok[:, None, None] & row_ok.reshape(1, 1, R_in)).astype(jnp.float32)

    wk = jnp.transpose(w, (0, 1, 2, 4, 3)).reshape(kd, kh * kw, Cout, Cin)

    kernel = functools.partial(_conv_fused_kernel, khw=kh * kw, kw=kw, Wp=Wp, L=L)
    out = pl.pallas_call(
        kernel,
        out_shape=jax.ShapeDtypeStruct((N, D, Cout, L), jnp.float32),
        grid=(N, D, kd),
        in_specs=[
            pl.BlockSpec((1, 1, Cin, R_in), lambda n, d, a: (n, d + a, 0, 0)),
            pl.BlockSpec((1, kh * kw, Cout, Cin), lambda n, d, a: (a, 0, 0, 0)),
            pl.BlockSpec((1, 1, R_in), lambda n, d, a: (d + a, 0, 0)),
            pl.BlockSpec((Cin, 1), lambda n, d, a: (0, 0)),
            pl.BlockSpec((Cin, 1), lambda n, d, a: (0, 0)),
            pl.BlockSpec((Cin, 1), lambda n, d, a: (0, 0)),
            pl.BlockSpec((Cout, 1), lambda n, d, a: (0, 0)),
        ],
        out_specs=pl.BlockSpec((1, 1, Cout, L), lambda n, d, a: (n, d, 0, 0)),
        compiler_params=pltpu.CompilerParams(
            dimension_semantics=("parallel", "parallel", "arbitrary")),
    )(xflat, wk, mask, scale.reshape(Cin, 1), shift.reshape(Cin, 1),
      jnp.full((Cin, 1), alpha, jnp.float32), b.reshape(Cout, 1))

    return out.reshape(N, D, Cout, H, Wp)[:, :, :, :, :W]


def _matmul_cs(xf, w2, b2):
    """out[n, d] = w2 @ xf[n, d] + b2 ; xf: (N, D, K, S) -> (N, D, R, S)."""
    N, D, K, S = xf.shape
    R = w2.shape[0]
    return pl.pallas_call(
        _matmul_cs_kernel,
        out_shape=jax.ShapeDtypeStruct((N, D, R, S), jnp.float32),
        grid=(N, D),
        in_specs=[
            pl.BlockSpec((1, 1, K, S), lambda n, d: (n, d, 0, 0)),
            pl.BlockSpec((R, K), lambda n, d: (0, 0)),
            pl.BlockSpec((R, 1), lambda n, d: (0, 0)),
        ],
        out_specs=pl.BlockSpec((1, 1, R, S), lambda n, d: (n, d, 0, 0)),
        compiler_params=pltpu.CompilerParams(
            dimension_semantics=("parallel", "parallel")),
    )(xf, w2, b2)


def downsample_conv(x, w, b, dim, bn, alpha):
    """Strided DownSample conv ([BN+PReLU] -> Conv3d stride 2 / [1,2,2]).

    Only 4 of these exist and their outputs are spatially decimated, so a small
    im2col (over the *output* size) is acceptable; BN/PReLU is applied in glue
    before zero-padding to keep the reference semantics.
    """
    N, D, Cin, H, W = x.shape
    kd, kh, kw, _, Cout = w.shape
    pd, ph, pw = (0, 1, 1) if dim == 2 else (1, 1, 1)
    sd, sh, sw = (1, 2, 2) if dim == 2 else (2, 2, 2)

    if bn is not None:
        gamma, beta, mean, var = bn
        sc = gamma / jnp.sqrt(var + _EPS)
        sh_ = beta - mean * sc
        y = x * sc.reshape(1, 1, Cin, 1, 1) + sh_.reshape(1, 1, Cin, 1, 1)
        x = jnp.where(y >= 0.0, y, alpha * y)

    xp = jnp.pad(x, ((0, 0), (pd, pd), (0, 0), (ph, ph), (pw, pw)))
    Do = (D + 2 * pd - kd) // sd + 1
    Ho = (H + 2 * ph - kh) // sh + 1
    Wo = (W + 2 * pw - kw) // sw + 1

    cols = []
    for a in range(kd):
        for bb in range(kh):
            for c in range(kw):
                cols.append(jax.lax.slice(
                    xp, (0, a, 0, bb, c),
                    (N, a + (Do - 1) * sd + 1, Cin,
                     bb + (Ho - 1) * sh + 1, c + (Wo - 1) * sw + 1),
                    (1, sd, 1, sh, sw)))
    K = kd * kh * kw * Cin
    xcol = jnp.concatenate(cols, axis=2).reshape(N, Do, K, Ho * Wo)
    w2 = jnp.transpose(w.reshape(K, Cout))              # (Cout, K)
    out = _matmul_cs(xcol, w2, b.reshape(Cout, 1))
    return out.reshape(N, Do, Cout, Ho, Wo)


def conv_transpose3d(x, w, b):
    """ConvTranspose3d with kernel_size == stride (no overlap).
    x: (N, D, Cin, H, W); w: (kd, kh, kw, Cin, Cout)."""
    N, D, Cin, H, W = x.shape
    kd, kh, kw, _, Cout = w.shape
    kvol = kd * kh * kw
    wr = jnp.transpose(w, (0, 1, 2, 4, 3)).reshape(kvol * Cout, Cin)
    br = jnp.tile(b, kvol).reshape(kvol * Cout, 1)
    xf = x.reshape(N, D, Cin, H * W)
    y = _matmul_cs(xf, wr, br)                           # (N, D, kvol*Cout, H*W)
    y = y.reshape(N, D, kd, kh, kw, Cout, H, W)
    y = jnp.transpose(y, (0, 1, 2, 5, 6, 3, 7, 4))       # -> (N,D,kd,Cout,H,kh,W,kw)
    return y.reshape(N, D * kd, Cout, H * kh, W * kw)


# =============================================================================
# Module building blocks
# =============================================================================
def conv_block_apply(x, p, dim):
    x = conv3d_bn_prelu(x, p['conv1'][0], p['conv1'][1], p['bn1'], p['alpha1'], dim)
    # nn.Dropout: identity at inference
    x = conv3d_bn_prelu(x, p['conv2'][0], p['conv2'][1], p['bn2'], p['alpha2'], dim)
    return x


def downsample_apply(x, p, dim, first):
    if first:
        return downsample_conv(x, p['conv'][0], p['conv'][1], dim, None, None)
    return downsample_conv(x, p['conv'][0], p['conv'][1], dim, p['bn'], p['alpha'])


def upcat_apply(x_l, x_h, p, conv_dim):
    up = conv_transpose3d(x_h, p['up_w'], p['up_b'])
    y = jnp.concatenate([x_l, up], axis=2)               # [low, upsampled(high)]
    return conv3d_bn_prelu(y, p['conv'][0], p['conv'][1], p['bn'], p['alpha'], conv_dim)


# =============================================================================
# Deterministic parameter initialization
# =============================================================================
def _key_stream(seed):
    key = jax.random.PRNGKey(seed)
    while True:
        key, sub = jax.random.split(key)
        yield sub


def make_conv(ks, cin, cout, dim):
    kd, kh, kw = (1, 3, 3) if dim == 2 else (3, 3, 3)
    fan = kd * kh * kw * cin
    w = jax.random.normal(next(ks), (kd, kh, kw, cin, cout), jnp.float32) / math.sqrt(fan)
    b = 0.01 * jax.random.normal(next(ks), (cout,), jnp.float32)
    return (w, b)


def make_bn(ks, c):
    gamma = 1.0 + 0.1 * jax.random.normal(next(ks), (c,), jnp.float32)
    beta = 0.1 * jax.random.normal(next(ks), (c,), jnp.float32)
    mean = 0.05 * jax.random.normal(next(ks), (c,), jnp.float32)
    var = 1.0 + 0.1 * jnp.abs(jax.random.normal(next(ks), (c,), jnp.float32))
    return (gamma, beta, mean, var)


def make_convblock(ks, cin, cout, dim):
    return dict(
        bn1=make_bn(ks, cin), alpha1=0.25,
        conv1=make_conv(ks, cin, cout, dim),
        bn2=make_bn(ks, cout), alpha2=0.25,
        conv2=make_conv(ks, cout, cout, dim),
    )


def make_downsample(ks, cin, cout, dim, first):
    p = dict(conv=make_conv(ks, cin, cout, dim))
    if not first:
        p['bn'] = make_bn(ks, cin)
        p['alpha'] = 0.25
    return p


def make_upcat(ks, chns_l, chns_h, up_dim, conv_dim):
    kd, kh, kw = (1, 2, 2) if up_dim == 2 else (2, 2, 2)
    fan = chns_h * kd * kh * kw
    up_w = jax.random.normal(next(ks), (kd, kh, kw, chns_h, chns_l), jnp.float32) / math.sqrt(fan)
    up_b = 0.01 * jax.random.normal(next(ks), (chns_l,), jnp.float32)
    return dict(up_w=up_w, up_b=up_b,
                bn=make_bn(ks, chns_l * 2), alpha=0.25,
                conv=make_conv(ks, chns_l * 2, chns_l, conv_dim))


def make_hiformer_params(seed, in_chns, class_num, ft_chns, down_dims, conv_dims):
    ks = _key_stream(seed)
    enc = dict(
        down1=make_downsample(ks, in_chns, ft_chns[0], down_dims[0], True),
        down2=make_downsample(ks, ft_chns[0], ft_chns[1], down_dims[1], False),
        down3=make_downsample(ks, ft_chns[1], ft_chns[2], down_dims[2], False),
        down4=make_downsample(ks, ft_chns[2], ft_chns[3], down_dims[3], False),
        conv1=make_convblock(ks, ft_chns[0], ft_chns[0], conv_dims[0]),
        conv2=make_convblock(ks, ft_chns[1], ft_chns[1], conv_dims[1]),
        conv_t2=make_convblock(ks, ft_chns[1], ft_chns[1], 3),
        conv_t3=make_convblock(ks, ft_chns[2], ft_chns[2], 3),
        conv_t4=make_convblock(ks, ft_chns[3], ft_chns[3], 3),
    )
    dec = dict(
        up1=make_upcat(ks, ft_chns[0], ft_chns[1], down_dims[1], conv_dims[0]),
        up2=make_upcat(ks, ft_chns[1], ft_chns[2], down_dims[2], conv_dims[1]),
        up3=make_upcat(ks, ft_chns[2], ft_chns[3], down_dims[3], conv_dims[2]),
        conv1=make_convblock(ks, ft_chns[0], ft_chns[0], conv_dims[0]),
        conv2=make_convblock(ks, ft_chns[1], ft_chns[1], 3),
        conv3=make_convblock(ks, ft_chns[2], ft_chns[2], 3),
    )
    kd, kh, kw = (1, 2, 2) if down_dims[0] == 2 else (2, 2, 2)
    fan = ft_chns[0] * kd * kh * kw
    dec['out_w'] = jax.random.normal(next(ks), (kd, kh, kw, ft_chns[0], class_num),
                                     jnp.float32) / math.sqrt(fan)
    dec['out_b'] = 0.01 * jax.random.normal(next(ks), (class_num,), jnp.float32)
    return dict(encoder=enc, decoder=dec)


# =============================================================================
# Full HiFormer_v3 forward (high_res=False, multiscale_pred=False)
# =============================================================================
def hiformer_v3_forward(x_ncdhw, params, down_dims, conv_dims):
    x = jnp.transpose(x_ncdhw, (0, 2, 1, 3, 4)).astype(jnp.float32)   # NCDHW -> NDCHW
    enc, dec = params['encoder'], params['decoder']

    # Encoder
    x1 = conv_block_apply(downsample_apply(x, enc['down1'], down_dims[0], True),
                          enc['conv1'], conv_dims[0])
    x2 = conv_block_apply(downsample_apply(x1, enc['down2'], down_dims[1], False),
                          enc['conv2'], conv_dims[1])
    x2 = conv_block_apply(x2, enc['conv_t2'], 3)
    x3 = conv_block_apply(downsample_apply(x2, enc['down3'], down_dims[2], False),
                          enc['conv_t3'], 3)
    x4 = conv_block_apply(downsample_apply(x3, enc['down4'], down_dims[3], False),
                          enc['conv_t4'], 3)

    # Decoder
    x_d3 = conv_block_apply(upcat_apply(x3, x4, dec['up3'], conv_dims[2]), dec['conv3'], 3)
    x_d2 = conv_block_apply(upcat_apply(x2, x_d3, dec['up2'], conv_dims[1]), dec['conv2'], 3)
    x_d1 = conv_block_apply(upcat_apply(x1, x_d2, dec['up1'], conv_dims[0]),
                            dec['conv1'], conv_dims[0])
    out = conv_transpose3d(x_d1, dec['out_w'], dec['out_b'])
    return jnp.transpose(out, (0, 2, 1, 3, 4))                        # NDCHW -> NCDHW


# =============================================================================
# Pure-JAX reference (used as a numerical sanity check in __main__)
# =============================================================================
def _bn_prelu_ref(x, bn, alpha):
    gamma, beta, mean, var = bn
    scale = gamma / jnp.sqrt(var + _EPS)
    shift = beta - mean * scale
    y = x * scale.reshape(1, 1, -1, 1, 1) + shift.reshape(1, 1, -1, 1, 1)
    return jnp.where(y >= 0.0, y, alpha * y)


def _conv3d_ref(x, w, b, stride, padding):
    N, D, C, H, W = x.shape
    kd, kh, kw, _, Co = w.shape
    sd, sh, sw = stride
    pd, ph, pw = padding
    xp = jnp.pad(x, ((0, 0), (pd, pd), (0, 0), (ph, ph), (pw, pw)))
    Do = (D + 2 * pd - kd) // sd + 1
    Ho = (H + 2 * ph - kh) // sh + 1
    Wo = (W + 2 * pw - kw) // sw + 1
    out = jnp.zeros((N, Do, Co, Ho, Wo), jnp.float32) + b.reshape(1, 1, Co, 1, 1)
    for a in range(kd):
        for bb in range(kh):
            for c in range(kw):
                sl = jax.lax.slice(
                    xp, (0, a, 0, bb, c),
                    (N, a + (Do - 1) * sd + 1, C,
                     bb + (Ho - 1) * sh + 1, c + (Wo - 1) * sw + 1),
                    (1, sd, 1, sh, sw))
                out = out + jnp.einsum('ndihw,io->ndohw', sl, w[a, bb, c],
                                       precision='highest')
    return out


def _conv_transpose_ref(x, w, b):
    N, D, Cin, H, W = x.shape
    kd, kh, kw, _, Co = w.shape
    y = jnp.einsum('ndihw,abcio->ndaohbwc', x, w, precision='highest')
    y = y + b.reshape(1, 1, 1, Co, 1, 1, 1, 1)
    return y.reshape(N, D * kd, Co, H * kh, W * kw)


def _conv_block_ref(x, p, dim):
    pad = (0, 1, 1) if dim == 2 else (1, 1, 1)
    y = _bn_prelu_ref(x, p['bn1'], p['alpha1'])
    y = _conv3d_ref(y, p['conv1'][0], p['conv1'][1], (1, 1, 1), pad)
    y = _bn_prelu_ref(y, p['bn2'], p['alpha2'])
    y = _conv3d_ref(y, p['conv2'][0], p['conv2'][1], (1, 1, 1), pad)
    return y


def _downsample_ref(x, p, dim, first):
    pad = (0, 1, 1) if dim == 2 else (1, 1, 1)
    st = (1, 2, 2) if dim == 2 else (2, 2, 2)
    if not first:
        x = _bn_prelu_ref(x, p['bn'], p['alpha'])
    return _conv3d_ref(x, p['conv'][0], p['conv'][1], st, pad)


def _upcat_ref(x_l, x_h, p, conv_dim):
    pad = (0, 1, 1) if conv_dim == 2 else (1, 1, 1)
    up = _conv_transpose_ref(x_h, p['up_w'], p['up_b'])
    y = jnp.concatenate([x_l, up], axis=2)
    y = _bn_prelu_ref(y, p['bn'], p['alpha'])
    return _conv3d_ref(y, p['conv'][0], p['conv'][1], (1, 1, 1), pad)


def hiformer_ref_forward(x_ncdhw, params, down_dims, conv_dims):
    x = jnp.transpose(x_ncdhw, (0, 2, 1, 3, 4)).astype(jnp.float32)
    enc, dec = params['encoder'], params['decoder']
    x1 = _conv_block_ref(_downsample_ref(x, enc['down1'], down_dims[0], True),
                         enc['conv1'], conv_dims[0])
    x2 = _conv_block_ref(_downsample_ref(x1, enc['down2'], down_dims[1], False),
                         enc['conv2'], conv_dims[1])
    x2 = _conv_block_ref(x2, enc['conv_t2'], 3)
    x3 = _conv_block_ref(_downsample_ref(x2, enc['down3'], down_dims[2], False),
                         enc['conv_t3'], 3)
    x4 = _conv_block_ref(_downsample_ref(x3, enc['down4'], down_dims[3], False),
                         enc['conv_t4'], 3)
    x_d3 = _conv_block_ref(_upcat_ref(x3, x4, dec['up3'], conv_dims[2]), dec['conv3'], 3)
    x_d2 = _conv_block_ref(_upcat_ref(x2, x_d3, dec['up2'], conv_dims[1]), dec['conv2'], 3)
    x_d1 = _conv_block_ref(_upcat_ref(x1, x_d2, dec['up1'], conv_dims[0]),
                           dec['conv1'], conv_dims[0])
    out = _conv_transpose_ref(x_d1, dec['out_w'], dec['out_b'])
    return jnp.transpose(out, (0, 2, 1, 3, 4))


# =============================================================================
if __name__ == "__main__":
    # Small deterministic configuration consistent with the module's defaults
    # (ConvTransBlock's transformer args are unused in the reference forward).
    in_chns, class_num = 1, 2
    input_size = [8, 16, 16]
    ft_chns = [8, 16, 32, 64]
    down_dims = [2, 2, 3, 3]
    conv_dims = [2, 3, 3, 3]

    params = make_hiformer_params(0, in_chns, class_num, ft_chns, down_dims, conv_dims)
    x = jax.random.normal(jax.random.PRNGKey(0), (2, in_chns, *input_size), jnp.float32)

    fwd = jax.jit(functools.partial(hiformer_v3_forward,
                                    down_dims=down_dims, conv_dims=conv_dims))
    out = jax.block_until_ready(fwd(x, params))

    expected = (2, class_num, *input_size)
    assert out.shape == expected, (out.shape, expected)
    assert bool(jnp.all(jnp.isfinite(out)))

    # Numerical sanity check against a pure-JAX reference of the same forward pass
    # (loose tolerance to allow for MXU / XLA matmul precision differences).
    ref = jax.block_until_ready(
        jax.jit(functools.partial(hiformer_ref_forward,
                                  down_dims=down_dims, conv_dims=conv_dims))(x, params))
    rel = float(jnp.max(jnp.abs(out - ref))) / (1e-6 + float(jnp.max(jnp.abs(ref))))
    assert rel < 1e-1, rel

    print("KERNEL_OK")
</pallas_src>

<mosaic_0001>
module attributes {stable_mosaic.version = 11 : i64} {
  func.func @_matmul_cs_kernel(%arg0: i32, %arg1: i32, %arg2: memref<1x1x9x64xf32, #tpu.memory_space<vmem>>, %arg3: memref<8x9xf32, #tpu.memory_space<vmem>>, %arg4: memref<8x1xf32, #tpu.memory_space<vmem>>, %arg5: memref<1x1x8x64xf32, #tpu.memory_space<vmem>>) attributes {dimension_semantics = [#tpu.dimension_semantics<parallel>, #tpu.dimension_semantics<parallel>], iteration_bounds = array<i64: 2, 8>, scalar_prefetch = 0 : i64, scratch_operands = 0 : i64, tpu.core_type = #tpu.core_type<tc>, window_params = [{transform_indices = @transform_0, window_bounds = array<i64: 1, 1, 9, 64>}, {pipeline_mode = #tpu.pipeline_mode<synchronous>, transform_indices = @transform_1, window_bounds = array<i64: 8, 9>}, {pipeline_mode = #tpu.pipeline_mode<synchronous>, transform_indices = @transform_2, window_bounds = array<i64: 8, 1>}, {transform_indices = @transform_3, window_bounds = array<i64: 1, 1, 8, 64>}]} {
    %c0 = arith.constant 0 : index
    %c0_0 = arith.constant 0 : index
    %0 = vector.load %arg3[%c0, %c0_0] : memref<8x9xf32, #tpu.memory_space<vmem>>, vector<8x9xf32>
    %c0_1 = arith.constant 0 : index
    %c0_2 = arith.constant 0 : index
    %c0_3 = arith.constant 0 : index
    %c0_4 = arith.constant 0 : index
    %1 = vector.load %arg2[%c0_1, %c0_2, %c0_3, %c0_4] : memref<1x1x9x64xf32, #tpu.memory_space<vmem>>, vector<1x1x9x64xf32>
    %2 = vector.shape_cast %1 : vector<1x1x9x64xf32> to vector<9x64xf32>
    %cst = arith.constant dense<0.000000e+00> : vector<8x64xf32>
    %3 = tpu.matmul %0, %2, %cst {dimension_numbers = #tpu.dot_dimension_numbers<[1], [0], [0], [1], [0, 0, 1, 1], [], []>} : vector<8x9xf32>, vector<9x64xf32>, vector<8x64xf32> -> vector<8x64xf32>
    %c0_5 = arith.constant 0 : index
    %c0_6 = arith.constant 0 : index
    %4 = vector.load %arg4[%c0_5, %c0_6] : memref<8x1xf32, #tpu.memory_space<vmem>>, vector<8x1xf32>
    %5 = vector.broadcast %4 : vector<8x1xf32> to vector<8x64xf32>
    %6 = arith.addf %3, %5 : vector<8x64xf32>
    %c0_7 = arith.constant 0 : index
    %c0_8 = arith.constant 0 : index
    %c0_9 = arith.constant 0 : index
    %c0_10 = arith.constant 0 : index
    %7 = vector.load %arg5[%c0_7, %c0_8, %c0_9, %c0_10] : memref<1x1x8x64xf32, #tpu.memory_space<vmem>>, vector<1x1x8x64xf32>
    %8 = vector.shape_cast %7 : vector<1x1x8x64xf32> to vector<8x64xf32>
    %9 = vector.shape_cast %6 : vector<8x64xf32> to vector<1x1x8x64xf32>
    tpu.vector_store %arg5[%c0_7, %c0_8, %c0_9, %c0_10], %9 {strides = array<i32>} : memref<1x1x8x64xf32, #tpu.memory_space<vmem>>, vector<1x1x8x64xf32>,
    return
  }
  func.func @transform_0(%arg0: i32, %arg1: i32) -> (i32, i32, i32, i32) {
    %c0_i32 = arith.constant 0 : i32
    %c0_i32_0 = arith.constant 0 : i32
    %c0_i32_1 = arith.constant 0 : i32
    return %arg0, %arg1, %c0_i32, %c0_i32_0 : i32, i32, i32, i32
  }
  func.func @transform_1(%arg0: i32, %arg1: i32) -> (i32, i32) {
    %c0_i32 = arith.constant 0 : i32
    %c0_i32_0 = arith.constant 0 : i32
    %c0_i32_1 = arith.constant 0 : i32
    return %c0_i32, %c0_i32_0 : i32, i32
  }
  func.func @transform_2(%arg0: i32, %arg1: i32) -> (i32, i32) {
    %c0_i32 = arith.constant 0 : i32
    %c0_i32_0 = arith.constant 0 : i32
    %c0_i32_1 = arith.constant 0 : i32
    return %c0_i32, %c0_i32_0 : i32, i32
  }
  func.func @transform_3(%arg0: i32, %arg1: i32) -> (i32, i32, i32, i32) {
    %c0_i32 = arith.constant 0 : i32
    %c0_i32_0 = arith.constant 0 : i32
    %c0_i32_1 = arith.constant 0 : i32
    return %arg0, %arg1, %c0_i32, %c0_i32_0 : i32, i32, i32, i32
  }
}

module attributes {stable_mosaic.version = 11 : i64} {
  func.func @_conv_fused_kernel(%arg0: i32, %arg1: i32, %arg2: i32, %arg3: memref<1x1x8x110xf32, #tpu.memory_space<vmem>>, %arg4: memref<1x9x8x8xf32, #tpu.memory_space<vmem>>, %arg5: memref<1x1x110xf32, #tpu.memory_space<vmem>>, %arg6: memref<8x1xf32, #tpu.memory_space<vmem>>, %arg7: memref<8x1xf32, #tpu.memory_space<vmem>>, %arg8: memref<8x1xf32, #tpu.memory_space<vmem>>, %arg9: memref<8x1xf32, #tpu.memory_space<vmem>>, %arg10: memref<1x1x8x80xf32, #tpu.memory_space<vmem>>) attributes {dimension_semantics = [#tpu.dimension_semantics<parallel>, #tpu.dimension_semantics<parallel>, #tpu.dimension_semantics<arbitrary>], iteration_bounds = array<i64: 2, 8, 1>, scalar_prefetch = 0 : i64, scratch_operands = 0 : i64, tpu.core_type = #tpu.core_type<tc>, window_params = [{transform_indices = @transform_0, window_bounds = array<i64: 1, 1, 8, 110>}, {transform_indices = @transform_1, window_bounds = array<i64: 1, 9, 8, 8>}, {transform_indices = @transform_2, window_bounds = array<i64: 1, 1, 110>}, {pipeline_mode = #tpu.pipeline_mode<synchronous>, transform_indices = @transform_3, window_bounds = array<i64: 8, 1>}, {pipeline_mode = #tpu.pipeline_mode<synchronous>, transform_indices = @transform_4, window_bounds = array<i64: 8, 1>}, {pipeline_mode = #tpu.pipeline_mode<synchronous>, transform_indices = @transform_5, window_bounds = array<i64: 8, 1>}, {pipeline_mode = #tpu.pipeline_mode<synchronous>, transform_indices = @transform_6, window_bounds = array<i64: 8, 1>}, {transform_indices = @transform_7, window_bounds = array<i64: 1, 1, 8, 80>}]} {
    %c0 = arith.constant 0 : index
    %c0_0 = arith.constant 0 : index
    %c0_1 = arith.constant 0 : index
    %c0_2 = arith.constant 0 : index
    %0 = vector.load %arg3[%c0, %c0_0, %c0_1, %c0_2] : memref<1x1x8x110xf32, #tpu.memory_space<vmem>>, vector<1x1x8x110xf32>
    %1 = vector.shape_cast %0 : vector<1x1x8x110xf32> to vector<8x110xf32>
    %c0_3 = arith.constant 0 : index
    %c0_4 = arith.constant 0 : index
    %2 = vector.load %arg6[%c0_3, %c0_4] : memref<8x1xf32, #tpu.memory_space<vmem>>, vector<8x1xf32>
    %3 = vector.broadcast %2 : vector<8x1xf32> to vector<8x110xf32>
    %4 = arith.mulf %1, %3 : vector<8x110xf32>
    %c0_5 = arith.constant 0 : index
    %c0_6 = arith.constant 0 : index
    %5 = vector.load %arg7[%c0_5, %c0_6] : memref<8x1xf32, #tpu.memory_space<vmem>>, vector<8x1xf32>
    %6 = vector.broadcast %5 : vector<8x1xf32> to vector<8x110xf32>
    %7 = arith.addf %4, %6 : vector<8x110xf32>
    %cst = arith.constant 0.000000e+00 : f32
    %8 = vector.broadcast %cst : f32 to vector<8x110xf32>
    %9 = arith.cmpf oge, %7, %8 : vector<8x110xf32>
    %c0_7 = arith.constant 0 : index
    %c0_8 = arith.constant 0 : index
    %10 = vector.load %arg8[%c0_7, %c0_8] : memref<8x1xf32, #tpu.memory_space<vmem>>, vector<8x1xf32>
    %11 = vector.broadcast %10 : vector<8x1xf32> to vector<8x110xf32>
    %12 = arith.mulf %11, %7 : vector<8x110xf32>
    %13 = arith.select %9, %7, %12 : vector<8x110xi1>, vector<8x110xf32>
    %c0_9 = arith.constant 0 : index
    %c0_10 = arith.constant 0 : index
    %c0_11 = arith.constant 0 : index
    %14 = vector.load %arg5[%c0_9, %c0_10, %c0_11] : memref<1x1x110xf32, #tpu.memory_space<vmem>>, vector<1x1x110xf32>
    %15 = vector.shape_cast %14 : vector<1x1x110xf32> to vector<1x110xf32>
    %16 = vector.broadcast %15 : vector<1x110xf32> to vector<8x110xf32>
    %17 = arith.mulf %13, %16 : vector<8x110xf32>
    %c0_i32 = arith.constant 0 : i32
    %18 = arith.cmpi eq, %arg2, %c0_i32 : i32
    %19 = arith.extui %18 : i1 to i32
    %c0_i32_12 = arith.constant 0 : i32
    %20 = arith.cmpi ne, %19, %c0_i32_12 : i32
    scf.if %20 {
      %c0_59 = arith.constant 0 : index
      %c0_60 = arith.constant 0 : index
      %73 = vector.load %arg9[%c0_59, %c0_60] : memref<8x1xf32, #tpu.memory_space<vmem>>, vector<8x1xf32>
      %74 = vector.shape_cast %73 : vector<8x1xf32> to vector<8x1xf32>
      %75 = vector.broadcast %74 : vector<8x1xf32> to vector<8x80xf32>
      %c0_61 = arith.constant 0 : index
      %c0_62 = arith.constant 0 : index
      %c0_63 = arith.constant 0 : index
      %c0_64 = arith.constant 0 : index
      %76 = vector.load %arg10[%c0_61, %c0_62, %c0_63, %c0_64] : memref<1x1x8x80xf32, #tpu.memory_space<vmem>>, vector<1x1x8x80xf32>
      %77 = vector.shape_cast %76 : vector<1x1x8x80xf32> to vector<8x80xf32>
      %78 = vector.shape_cast %75 : vector<8x80xf32> to vector<1x1x8x80xf32>
      tpu.vector_store %arg10[%c0_61, %c0_62, %c0_63, %c0_64], %78 {strides = array<i32>} : memref<1x1x8x80xf32, #tpu.memory_space<vmem>>, vector<1x1x8x80xf32>,
    } else {
    }
    %cst_13 = arith.constant 0.000000e+00 : f32
    %21 = vector.broadcast %cst_13 : f32 to vector<8x80xf32>
    %22 = vector.extract_strided_slice %17 {offsets = [0, 0], sizes = [8, 80], strides = [1, 1]} : vector<8x110xf32> to vector<8x80xf32>
    %c0_14 = arith.constant 0 : index
    %c0_15 = arith.constant 0 : index
    %c0_16 = arith.constant 0 : index
    %c0_17 = arith.constant 0 : index
    %23 = vector.load %arg4[%c0_14, %c0_15, %c0_16, %c0_17] : memref<1x9x8x8xf32, #tpu.memory_space<vmem>>, vector<1x1x8x8xf32>
    %24 = vector.shape_cast %23 : vector<1x1x8x8xf32> to vector<8x8xf32>
    %cst_18 = arith.constant dense<0.000000e+00> : vector<8x80xf32>
    %25 = tpu.matmul %24, %22, %cst_18 {dimension_numbers = #tpu.dot_dimension_numbers<[1], [0], [0], [1], [0, 0, 1, 1], [], []>} : vector<8x8xf32>, vector<8x80xf32>, vector<8x80xf32> -> vector<8x80xf32>
    %26 = arith.addf %21, %25 : vector<8x80xf32>
    %27 = vector.extract_strided_slice %17 {offsets = [0, 1], sizes = [8, 80], strides = [1, 1]} : vector<8x110xf32> to vector<8x80xf32>
    %c0_19 = arith.constant 0 : index
    %c1 = arith.constant 1 : index
    %c0_20 = arith.constant 0 : index
    %c0_21 = arith.constant 0 : index
    %28 = vector.load %arg4[%c0_19, %c1, %c0_20, %c0_21] : memref<1x9x8x8xf32, #tpu.memory_space<vmem>>, vector<1x1x8x8xf32>
    %29 = vector.shape_cast %28 : vector<1x1x8x8xf32> to vector<8x8xf32>
    %cst_22 = arith.constant dense<0.000000e+00> : vector<8x80xf32>
    %30 = tpu.matmul %29, %27, %cst_22 {dimension_numbers = #tpu.dot_dimension_numbers<[1], [0], [0], [1], [0, 0, 1, 1], [], []>} : vector<8x8xf32>, vector<8x80xf32>, vector<8x80xf32> -> vector<8x80xf32>
    %31 = arith.addf %26, %30 : vector<8x80xf32>
    %32 = vector.extract_strided_slice %17 {offsets = [0, 2], sizes = [8, 80], strides = [1, 1]} : vector<8x110xf32> to vector<8x80xf32>
    %c0_23 = arith.constant 0 : index
    %c2 = arith.constant 2 : index
    %c0_24 = arith.constant 0 : index
    %c0_25 = arith.constant 0 : index
    %33 = vector.load %arg4[%c0_23, %c2, %c0_24, %c0_25] : memref<1x9x8x8xf32, #tpu.memory_space<vmem>>, vector<1x1x8x8xf32>
    %34 = vector.shape_cast %33 : vector<1x1x8x8xf32> to vector<8x8xf32>
    %cst_26 = arith.constant dense<0.000000e+00> : vector<8x80xf32>
    %35 = tpu.matmul %34, %32, %cst_26 {dimension_numbers = #tpu.dot_dimension_numbers<[1], [0], [0], [1], [0, 0, 1, 1], [], []>} : vector<8x8xf32>, vector<8x80xf32>, vector<8x80xf32> -> vector<8x80xf32>
    %36 = arith.addf %31, %35 : vector<8x80xf32>
    %37 = vector.extract_strided_slice %17 {offsets = [0, 10], sizes = [8, 80], strides = [1, 1]} : vector<8x110xf32> to vector<8x80xf32>
    %c0_27 = arith.constant 0 : index
    %c3 = arith.constant 3 : index
    %c0_28 = arith.constant 0 : index
    %c0_29 = arith.constant 0 : index
    %38 = vector.load %arg4[%c0_27, %c3, %c0_28, %c0_29] : memref<1x9x8x8xf32, #tpu.memory_space<vmem>>, vector<1x1x8x8xf32>
    %39 = vector.shape_cast %38 : vector<1x1x8x8xf32> to vector<8x8xf32>
    %cst_30 = arith.constant dense<0.000000e+00> : vector<8x80xf32>
    %40 = tpu.matmul %39, %37, %cst_30 {dimension_numbers = #tpu.dot_dimension_numbers<[1], [0], [0], [1], [0, 0, 1, 1], [], []>} : vector<8x8xf32>, vector<8x80xf32>, vector<8x80xf32> -> vector<8x80xf32>
    %41 = arith.addf %36, %40 : vector<8x80xf32>
    %42 = vector.extract_strided_slice %17 {offsets = [0, 11], sizes = [8, 80], strides = [1, 1]} : vector<8x110xf32> to vector<8x80xf32>
    %c0_31 = arith.constant 0 : index
    %c4 = arith.constant 4 : index
    %c0_32 = arith.constant 0 : index
    %c0_33 = arith.constant 0 : index
    %43 = vector.load %arg4[%c0_31, %c4, %c0_32, %c0_33] : memref<1x9x8x8xf32, #tpu.memory_space<vmem>>, vector<1x1x8x8xf32>
    %44 = vector.shape_cast %43 : vector<1x1x8x8xf32> to vector<8x8xf32>
    %cst_34 = arith.constant dense<0.000000e+00> : vector<8x80xf32>
    %45 = tpu.matmul %44, %42, %cst_34 {dimension_numbers = #tpu.dot_dimension_numbers<[1], [0], [0], [1], [0, 0, 1, 1], [], []>} : vector<8x8xf32>, vector<8x80xf32>, vector<8x80xf32> -> vector<8x80xf32>
    %46 = arith.addf %41, %45 : vector<8x80xf32>
    %47 = vector.extract_strided_slice %17 {offsets = [0, 12], sizes = [8, 80], strides = [1, 1]} : vector<8x110xf32> to vector<8x80xf32>
    %c0_35 = arith.constant 0 : index
    %c5 = arith.constant 5 : index
    %c0_36 = arith.constant 0 : index
    %c0_37 = arith.constant 0 : index
    %48 = vector.load %arg4[%c0_35, %c5, %c0_36, %c0_37] : memref<1x9x8x8xf32, #tpu.memory_space<vmem>>, vector<1x1x8x8xf32>
    %49 = vector.shape_cast %48 : vector<1x1x8x8xf32> to vector<8x8xf32>
    %cst_38 = arith.constant dense<0.000000e+00> : vector<8x80xf32>
    %50 = tpu.matmul %49, %47, %cst_38 {dimension_numbers = #tpu.dot_dimension_numbers<[1], [0], [0], [1], [0, 0, 1, 1], [], []>} : vector<8x8xf32>, vector<8x80xf32>, vector<8x80xf32> -> vector<8x80xf32>
    %51 = arith.addf %46, %50 : vector<8x80xf32>
    %52 = vector.extract_strided_slice %17 {offsets = [0, 20], sizes = [8, 80], strides = [1, 1]} : vector<8x110xf32> to vector<8x80xf32>
    %c0_39 = arith.constant 0 : index
    %c6 = arith.constant 6 : index
    %c0_40 = arith.constant 0 : index
    %c0_41 = arith.constant 0 : index
    %53 = vector.load %arg4[%c0_39, %c6, %c0_40, %c0_41] : memref<1x9x8x8xf32, #tpu.memory_space<vmem>>, vector<1x1x8x8xf32>
    %54 = vector.shape_cast %53 : vector<1x1x8x8xf32> to vector<8x8xf32>
    %cst_42 = arith.constant dense<0.000000e+00> : vector<8x80xf32>
    %55 = tpu.matmul %54, %52, %cst_42 {dimension_numbers = #tpu.dot_dimension_numbers<[1], [0], [0], [1], [0, 0, 1, 1], [], []>} : vector<8x8xf32>, vector<8x80xf32>, vector<8x80xf32> -> vector<8x80xf32>
    %56 = arith.addf %51, %55 : vector<8x80xf32>
    %57 = vector.extract_strided_slice %17 {offsets = [0, 21], sizes = [8, 80], strides = [1, 1]} : vector<8x110xf32> to vector<8x80xf32>
    %c0_43 = arith.constant 0 : index
    %c7 = arith.constant 7 : index
    %c0_44 = arith.constant 0 : index
    %c0_45 = arith.constant 0 : index
    %58 = vector.load %arg4[%c0_43, %c7, %c0_44, %c0_45] : memref<1x9x8x8xf32, #tpu.memory_space<vmem>>, vector<1x1x8x8xf32>
    %59 = vector.shape_cast %58 : vector<1x1x8x8xf32> to vector<8x8xf32>
    %cst_46 = arith.constant dense<0.000000e+00> : vector<8x80xf32>
    %60 = tpu.matmul %59, %57, %cst_46 {dimension_numbers = #tpu.dot_dimension_numbers<[1], [0], [0], [1], [0, 0, 1, 1], [], []>} : vector<8x8xf32>, vector<8x80xf32>, vector<8x80xf32> -> vector<8x80xf32>
    %61 = arith.addf %56, %60 : vector<8x80xf32>
    %62 = vector.extract_strided_slice %17 {offsets = [0, 22], sizes = [8, 80], strides = [1, 1]} : vector<8x110xf32> to vector<8x80xf32>
    %c0_47 = arith.constant 0 : index
    %c8 = arith.constant 8 : index
    %c0_48 = arith.constant 0 : index
    %c0_49 = arith.constant 0 : index
    %63 = vector.load %arg4[%c0_47, %c8, %c0_48, %c0_49] : memref<1x9x8x8xf32, #tpu.memory_space<vmem>>, vector<1x1x8x8xf32>
    %64 = vector.shape_cast %63 : vector<1x1x8x8xf32> to vector<8x8xf32>
    %cst_50 = arith.constant dense<0.000000e+00> : vector<8x80xf32>
    %65 = tpu.matmul %64, %62, %cst_50 {dimension_numbers = #tpu.dot_dimension_numbers<[1], [0], [0], [1], [0, 0, 1, 1], [], []>} : vector<8x8xf32>, vector<8x80xf32>, vector<8x80xf32> -> vector<8x80xf32>
    %66 = arith.addf %61, %65 : vector<8x80xf32>
    %c0_51 = arith.constant 0 : index
    %c0_52 = arith.constant 0 : index
    %c0_53 = arith.constant 0 : index
    %c0_54 = arith.constant 0 : index
    %67 = vector.load %arg10[%c0_51, %c0_52, %c0_53, %c0_54] : memref<1x1x8x80xf32, #tpu.memory_space<vmem>>, vector<1x1x8x80xf32>
    %68 = vector.shape_cast %67 : vector<1x1x8x80xf32> to vector<8x80xf32>
    %69 = arith.addf %68, %66 : vector<8x80xf32>
    %c0_55 = arith.constant 0 : index
    %c0_56 = arith.constant 0 : index
    %c0_57 = arith.constant 0 : index
    %c0_58 = arith.constant 0 : index
    %70 = vector.load %arg10[%c0_55, %c0_56, %c0_57, %c0_58] : memref<1x1x8x80xf32, #tpu.memory_space<vmem>>, vector<1x1x8x80xf32>
    %71 = vector.shape_cast %70 : vector<1x1x8x80xf32> to vector<8x80xf32>
    %72 = vector.shape_cast %69 : vector<8x80xf32> to vector<1x1x8x80xf32>
    tpu.vector_store %arg10[%c0_55, %c0_56, %c0_57, %c0_58], %72 {strides = array<i32>} : memref<1x1x8x80xf32, #tpu.memory_space<vmem>>, vector<1x1x8x80xf32>,
    return
  }
  func.func @transform_0(%arg0: i32, %arg1: i32, %arg2: i32) -> (i32, i32, i32, i32) {
    %0 = arith.addi %arg1, %arg2 : i32
    %c0_i32 = arith.constant 0 : i32
    %c0_i32_0 = arith.constant 0 : i32
    %c0_i32_1 = arith.constant 0 : i32
    return %arg0, %0, %c0_i32, %c0_i32_0 : i32, i32, i32, i32
  }
  func.func @transform_1(%arg0: i32, %arg1: i32, %arg2: i32) -> (i32, i32, i32, i32) {
    %c0_i32 = arith.constant 0 : i32
    %c0_i32_0 = arith.constant 0 : i32
    %c0_i32_1 = arith.constant 0 : i32
    %c0_i32_2 = arith.constant 0 : i32
    return %arg2, %c0_i32, %c0_i32_0, %c0_i32_1 : i32, i32, i32, i32
  }
  func.func @transform_2(%arg0: i32, %arg1: i32, %arg2: i32) -> (i32, i32, i32) {
    %0 = arith.addi %arg1, %arg2 : i32
    %c0_i32 = arith.constant 0 : i32
    %c0_i32_0 = arith.constant 0 : i32
    %c0_i32_1 = arith.constant 0 : i32
    return %0, %c0_i32, %c0_i32_0 : i32, i32, i32
  }
  func.func @transform_3(%arg0: i32, %arg1: i32, %arg2: i32) -> (i32, i32) {
    %c0_i32 = arith.constant 0 : i32
    %c0_i32_0 = arith.constant 0 : i32
    %c0_i32_1 = arith.constant 0 : i32
    return %c0_i32, %c0_i32_0 : i32, i32
  }
  func.func @transform_4(%arg0: i32, %arg1: i32, %arg2: i32) -> (i32, i32) {
    %c0_i32 = arith.constant 0 : i32
    %c0_i32_0 = arith.constant 0 : i32
    %c0_i32_1 = arith.constant 0 : i32
    return %c0_i32, %c0_i32_0 : i32, i32
  }
  func.func @transform_5(%arg0: i32, %arg1: i32, %arg2: i32) -> (i32, i32) {
    %c0_i32 = arith.constant 0 : i32
    %c0_i32_0 = arith.constant 0 : i32
    %c0_i32_1 = arith.constant 0 : i32
    return %c0_i32, %c0_i32_0 : i32, i32
  }
  func.func @transform_6(%arg0: i32, %arg1: i32, %arg2: i32) -> (i32, i32) {
    %c0_i32 = arith.constant 0 : i32
    %c0_i32_0 = arith.constant 0 : i32
    %c0_i32_1 = arith.constant 0 : i32
    return %c0_i32, %c0_i32_0 : i32, i32
  }
  func.func @transform_7(%arg0: i32, %arg1: i32, %arg2: i32) -> (i32, i32, i32, i32) {
    %c0_i32 = arith.constant 0 : i32
    %c0_i32_0 = arith.constant 0 : i32
    %c0_i32_1 = arith.constant 0 : i32
    return %arg0, %arg1, %c0_i32, %c0_i32_0 : i32, i32, i32, i32
  }
}

module attributes {stable_mosaic.version = 11 : i64} {
  func.func @_matmul_cs_kernel(%arg0: i32, %arg1: i32, %arg2: memref<1x1x72x16xf32, #tpu.memory_space<vmem>>, %arg3: memref<16x72xf32, #tpu.memory_space<vmem>>, %arg4: memref<16x1xf32, #tpu.memory_space<vmem>>, %arg5: memref<1x1x16x16xf32, #tpu.memory_space<vmem>>) attributes {dimension_semantics = [#tpu.dimension_semantics<parallel>, #tpu.dimension_semantics<parallel>], iteration_bounds = array<i64: 2, 8>, scalar_prefetch = 0 : i64, scratch_operands = 0 : i64, tpu.core_type = #tpu.core_type<tc>, window_params = [{transform_indices = @transform_0, window_bounds = array<i64: 1, 1, 72, 16>}, {pipeline_mode = #tpu.pipeline_mode<synchronous>, transform_indices = @transform_1, window_bounds = array<i64: 16, 72>}, {pipeline_mode = #tpu.pipeline_mode<synchronous>, transform_indices = @transform_2, window_bounds = array<i64: 16, 1>}, {transform_indices = @transform_3, window_bounds = array<i64: 1, 1, 16, 16>}]} {
    %c0 = arith.constant 0 : index
    %c0_0 = arith.constant 0 : index
    %0 = vector.load %arg3[%c0, %c0_0] : memref<16x72xf32, #tpu.memory_space<vmem>>, vector<16x72xf32>
    %c0_1 = arith.constant 0 : index
    %c0_2 = arith.constant 0 : index
    %c0_3 = arith.constant 0 : index
    %c0_4 = arith.constant 0 : index
    %1 = vector.load %arg2[%c0_1, %c0_2, %c0_3, %c0_4] : memref<1x1x72x16xf32, #tpu.memory_space<vmem>>, vector<1x1x72x16xf32>
    %2 = vector.shape_cast %1 : vector<1x1x72x16xf32> to vector<72x16xf32>
    %cst = arith.constant dense<0.000000e+00> : vector<16x16xf32>
    %3 = tpu.matmul %0, %2, %cst {dimension_numbers = #tpu.dot_dimension_numbers<[1], [0], [0], [1], [0, 0, 1, 1], [], []>} : vector<16x72xf32>, vector<72x16xf32>, vector<16x16xf32> -> vector<16x16xf32>
    %c0_5 = arith.constant 0 : index
    %c0_6 = arith.constant 0 : index
    %4 = vector.load %arg4[%c0_5, %c0_6] : memref<16x1xf32, #tpu.memory_space<vmem>>, vector<16x1xf32>
    %5 = vector.broadcast %4 : vector<16x1xf32> to vector<16x16xf32>
    %6 = arith.addf %3, %5 : vector<16x16xf32>
    %c0_7 = arith.constant 0 : index
    %c0_8 = arith.constant 0 : index
    %c0_9 = arith.constant 0 : index
    %c0_10 = arith.constant 0 : index
    %7 = vector.load %arg5[%c0_7, %c0_8, %c0_9, %c0_10] : memref<1x1x16x16xf32, #tpu.memory_space<vmem>>, vector<1x1x16x16xf32>
    %8 = vector.shape_cast %7 : vector<1x1x16x16xf32> to vector<16x16xf32>
    %9 = vector.shape_cast %6 : vector<16x16xf32> to vector<1x1x16x16xf32>
    tpu.vector_store %arg5[%c0_7, %c0_8, %c0_9, %c0_10], %9 {strides = array<i32>} : memref<1x1x16x16xf32, #tpu.memory_space<vmem>>, vector<1x1x16x16xf32>,
    return
  }
  func.func @transform_0(%arg0: i32, %arg1: i32) -> (i32, i32, i32, i32) {
    %c0_i32 = arith.constant 0 : i32
    %c0_i32_0 = arith.constant 0 : i32
    %c0_i32_1 = arith.constant 0 : i32
    return %arg0, %arg1, %c0_i32, %c0_i32_0 : i32, i32, i32, i32
  }
  func.func @transform_1(%arg0: i32, %arg1: i32) -> (i32, i32) {
    %c0_i32 = arith.constant 0 : i32
    %c0_i32_0 = arith.constant 0 : i32
    %c0_i32_1 = arith.constant 0 : i32
    return %c0_i32, %c0_i32_0 : i32, i32
  }
  func.func @transform_2(%arg0: i32, %arg1: i32) -> (i32, i32) {
    %c0_i32 = arith.constant 0 : i32
    %c0_i32_0 = arith.constant 0 : i32
    %c0_i32_1 = arith.constant 0 : i32
    return %c0_i32, %c0_i32_0 : i32, i32
  }
  func.func @transform_3(%arg0: i32, %arg1: i32) -> (i32, i32, i32, i32) {
    %c0_i32 = arith.constant 0 : i32
    %c0_i32_0 = arith.constant 0 : i32
    %c0_i32_1 = arith.constant 0 : i32
    return %arg0, %arg1, %c0_i32, %c0_i32_0 : i32, i32, i32, i32
  }
}

module attributes {stable_mosaic.version = 11 : i64} {
  func.func @_conv_fused_kernel(%arg0: i32, %arg1: i32, %arg2: i32, %arg3: memref<1x1x16x42xf32, #tpu.memory_space<vmem>>, %arg4: memref<1x9x16x16xf32, #tpu.memory_space<vmem>>, %arg5: memref<1x1x42xf32, #tpu.memory_space<vmem>>, %arg6: memref<16x1xf32, #tpu.memory_space<vmem>>, %arg7: memref<16x1xf32, #tpu.memory_space<vmem>>, %arg8: memref<16x1xf32, #tpu.memory_space<vmem>>, %arg9: memref<16x1xf32, #tpu.memory_space<vmem>>, %arg10: memref<1x1x16x24xf32, #tpu.memory_space<vmem>>) attributes {dimension_semantics = [#tpu.dimension_semantics<parallel>, #tpu.dimension_semantics<parallel>, #tpu.dimension_semantics<arbitrary>], iteration_bounds = array<i64: 2, 8, 3>, scalar_prefetch = 0 : i64, scratch_operands = 0 : i64, tpu.core_type = #tpu.core_type<tc>, window_params = [{transform_indices = @transform_0, window_bounds = array<i64: 1, 1, 16, 42>}, {transform_indices = @transform_1, window_bounds = array<i64: 1, 9, 16, 16>}, {transform_indices = @transform_2, window_bounds = array<i64: 1, 1, 42>}, {pipeline_mode = #tpu.pipeline_mode<synchronous>, transform_indices = @transform_3, window_bounds = array<i64: 16, 1>}, {pipeline_mode = #tpu.pipeline_mode<synchronous>, transform_indices = @transform_4, window_bounds = array<i64: 16, 1>}, {pipeline_mode = #tpu.pipeline_mode<synchronous>, transform_indices = @transform_5, window_bounds = array<i64: 16, 1>}, {pipeline_mode = #tpu.pipeline_mode<synchronous>, transform_indices = @transform_6, window_bounds = array<i64: 16, 1>}, {transform_indices = @transform_7, window_bounds = array<i64: 1, 1, 16, 24>}]} {
    %c0 = arith.constant 0 : index
    %c0_0 = arith.constant 0 : index
    %c0_1 = arith.constant 0 : index
    %c0_2 = arith.constant 0 : index
    %0 = vector.load %arg3[%c0, %c0_0, %c0_1, %c0_2] : memref<1x1x16x42xf32, #tpu.memory_space<vmem>>, vector<1x1x16x42xf32>
    %1 = vector.shape_cast %0 : vector<1x1x16x42xf32> to vector<16x42xf32>
    %c0_3 = arith.constant 0 : index
    %c0_4 = arith.constant 0 : index
    %2 = vector.load %arg6[%c0_3, %c0_4] : memref<16x1xf32, #tpu.memory_space<vmem>>, vector<16x1xf32>
    %3 = vector.broadcast %2 : vector<16x1xf32> to vector<16x42xf32>
    %4 = arith.mulf %1, %3 : vector<16x42xf32>
    %c0_5 = arith.constant 0 : index
    %c0_6 = arith.constant 0 : index
    %5 = vector.load %arg7[%c0_5, %c0_6] : memref<16x1xf32, #tpu.memory_space<vmem>>, vector<16x1xf32>
    %6 = vector.broadcast %5 : vector<16x1xf32> to vector<16x42xf32>
    %7 = arith.addf %4, %6 : vector<16x42xf32>
    %cst = arith.constant 0.000000e+00 : f32
    %8 = vector.broadcast %cst : f32 to vector<16x42xf32>
    %9 = arith.cmpf oge, %7, %8 : vector<16x42xf32>
    %c0_7 = arith.constant 0 : index
    %c0_8 = arith.constant 0 : index
    %10 = vector.load %arg8[%c0_7, %c0_8] : memref<16x1xf32, #tpu.memory_space<vmem>>, vector<16x1xf32>
    %11 = vector.broadcast %10 : vector<16x1xf32> to vector<16x42xf32>
    %12 = arith.mulf %11, %7 : vector<16x42xf32>
    %13 = arith.select %9, %7, %12 : vector<16x42xi1>, vector<16x42xf32>
    %c0_9 = arith.constant 0 : index
    %c0_10 = arith.constant 0 : index
    %c0_11 = arith.constant 0 : index
    %14 = vector.load %arg5[%c0_9, %c0_10, %c0_11] : memref<1x1x42xf32, #tpu.memory_space<vmem>>, vector<1x1x42xf32>
    %15 = vector.shape_cast %14 : vector<1x1x42xf32> to vector<1x42xf32>
    %16 = vector.broadcast %15 : vector<1x42xf32> to vector<16x42xf32>
    %17 = arith.mulf %13, %16 : vector<16x42xf32>
    %c0_i32 = arith.constant 0 : i32
    %18 = arith.cmpi eq, %arg2, %c0_i32 : i32
    %19 = arith.extui %18 : i1 to i32
    %c0_i32_12 = arith.constant 0 : i32
    %20 = arith.cmpi ne, %19, %c0_i32_12 : i32
    scf.if %20 {
      %c0_59 = arith.constant 0 : index
      %c0_60 = arith.constant 0 : index
      %73 = vector.load %arg9[%c0_59, %c0_60] : memref<16x1xf32, #tpu.memory_space<vmem>>, vector<16x1xf32>
      %74 = vector.shape_cast %73 : vector<16x1xf32> to vector<16x1xf32>
      %75 = vector.broadcast %74 : vector<16x1xf32> to vector<16x24xf32>
      %c0_61 = arith.constant 0 : index
      %c0_62 = arith.constant 0 : index
      %c0_63 = arith.constant 0 : index
      %c0_64 = arith.constant 0 : index
      %76 = vector.load %arg10[%c0_61, %c0_62, %c0_63, %c0_64] : memref<1x1x16x24xf32, #tpu.memory_space<vmem>>, vector<1x1x16x24xf32>
      %77 = vector.shape_cast %76 : vector<1x1x16x24xf32> to vector<16x24xf32>
      %78 = vector.shape_cast %75 : vector<16x24xf32> to vector<1x1x16x24xf32>
      tpu.vector_store %arg10[%c0_61, %c0_62, %c0_63, %c0_64], %78 {strides = array<i32>} : memref<1x1x16x24xf32, #tpu.memory_space<vmem>>, vector<1x1x16x24xf32>,
    } else {
    }
    %cst_13 = arith.constant 0.000000e+00 : f32
    %21 = vector.broadcast %cst_13 : f32 to vector<16x24xf32>
    %22 = vector.extract_strided_slice %17 {offsets = [0, 0], sizes = [16, 24], strides = [1, 1]} : vector<16x42xf32> to vector<16x24xf32>
    %c0_14 = arith.constant 0 : index
    %c0_15 = arith.constant 0 : index
    %c0_16 = arith.constant 0 : index
    %c0_17 = arith.constant 0 : index
    %23 = vector.load %arg4[%c0_14, %c0_15, %c0_16, %c0_17] : memref<1x9x16x16xf32, #tpu.memory_space<vmem>>, vector<1x1x16x16xf32>
    %24 = vector.shape_cast %23 : vector<1x1x16x16xf32> to vector<16x16xf32>
    %cst_18 = arith.constant dense<0.000000e+00> : vector<16x24xf32>
    %25 = tpu.matmul %24, %22, %cst_18 {dimension_numbers = #tpu.dot_dimension_numbers<[1], [0], [0], [1], [0, 0, 1, 1], [], []>} : vector<16x16xf32>, vector<16x24xf32>, vector<16x24xf32> -> vector<16x24xf32>
    %26 = arith.addf %21, %25 : vector<16x24xf32>
    %27 = vector.extract_strided_slice %17 {offsets = [0, 1], sizes = [16, 24], strides = [1, 1]} : vector<16x42xf32> to vector<16x24xf32>
    %c0_19 = arith.constant 0 : index
    %c1 = arith.constant 1 : index
    %c0_20 = arith.constant 0 : index
    %c0_21 = arith.constant 0 : index
    %28 = vector.load %arg4[%c0_19, %c1, %c0_20, %c0_21] : memref<1x9x16x16xf32, #tpu.memory_space<vmem>>, vector<1x1x16x16xf32>
    %29 = vector.shape_cast %28 : vector<1x1x16x16xf32> to vector<16x16xf32>
    %cst_22 = arith.constant dense<0.000000e+00> : vector<16x24xf32>
    %30 = tpu.matmul %29, %27, %cst_22 {dimension_numbers = #tpu.dot_dimension_numbers<[1], [0], [0], [1], [0, 0, 1, 1], [], []>} : vector<16x16xf32>, vector<16x24xf32>, vector<16x24xf32> -> vector<16x24xf32>
    %31 = arith.addf %26, %30 : vector<16x24xf32>
    %32 = vector.extract_strided_slice %17 {offsets = [0, 2], sizes = [16, 24], strides = [1, 1]} : vector<16x42xf32> to vector<16x24xf32>
    %c0_23 = arith.constant 0 : index
    %c2 = arith.constant 2 : index
    %c0_24 = arith.constant 0 : index
    %c0_25 = arith.constant 0 : index
    %33 = vector.load %arg4[%c0_23, %c2, %c0_24, %c0_25] : memref<1x9x16x16xf32, #tpu.memory_space<vmem>>, vector<1x1x16x16xf32>
    %34 = vector.shape_cast %33 : vector<1x1x16x16xf32> to vector<16x16xf32>
    %cst_26 = arith.constant dense<0.000000e+00> : vector<16x24xf32>
    %35 = tpu.matmul %34, %32, %cst_26 {dimension_numbers = #tpu.dot_dimension_numbers<[1], [0], [0], [1], [0, 0, 1, 1], [], []>} : vector<16x16xf32>, vector<16x24xf32>, vector<16x24xf32> -> vector<16x24xf32>
    %36 = arith.addf %31, %35 : vector<16x24xf32>
    %37 = vector.extract_strided_slice %17 {offsets = [0, 6], sizes = [16, 24], strides = [1, 1]} : vector<16x42xf32> to vector<16x24xf32>
    %c0_27 = arith.constant 0 : index
    %c3 = arith.constant 3 : index
    %c0_28 = arith.constant 0 : index
    %c0_29 = arith.constant 0 : index
    %38 = vector.load %arg4[%c0_27, %c3, %c0_28, %c0_29] : memref<1x9x16x16xf32, #tpu.memory_space<vmem>>, vector<1x1x16x16xf32>
    %39 = vector.shape_cast %38 : vector<1x1x16x16xf32> to vector<16x16xf32>
    %cst_30 = arith.constant dense<0.000000e+00> : vector<16x24xf32>
    %40 = tpu.matmul %39, %37, %cst_30 {dimension_numbers = #tpu.dot_dimension_numbers<[1], [0], [0], [1], [0, 0, 1, 1], [], []>} : vector<16x16xf32>, vector<16x24xf32>, vector<16x24xf32> -> vector<16x24xf32>
    %41 = arith.addf %36, %40 : vector<16x24xf32>
    %42 = vector.extract_strided_slice %17 {offsets = [0, 7], sizes = [16, 24], strides = [1, 1]} : vector<16x42xf32> to vector<16x24xf32>
    %c0_31 = arith.constant 0 : index
    %c4 = arith.constant 4 : index
    %c0_32 = arith.constant 0 : index
    %c0_33 = arith.constant 0 : index
    %43 = vector.load %arg4[%c0_31, %c4, %c0_32, %c0_33] : memref<1x9x16x16xf32, #tpu.memory_space<vmem>>, vector<1x1x16x16xf32>
    %44 = vector.shape_cast %43 : vector<1x1x16x16xf32> to vector<16x16xf32>
    %cst_34 = arith.constant dense<0.000000e+00> : vector<16x24xf32>
    %45 = tpu.matmul %44, %42, %cst_34 {dimension_numbers = #tpu.dot_dimension_numbers<[1], [0], [0], [1], [0, 0, 1, 1], [], []>} : vector<16x16xf32>, vector<16x24xf32>, vector<16x24xf32> -> vector<16x24xf32>
    %46 = arith.addf %41, %45 : vector<16x24xf32>
    %47 = vector.extract_strided_slice %17 {offsets = [0, 8], sizes = [16, 24], strides = [1, 1]} : vector<16x42xf32> to vector<16x24xf32>
    %c0_35 = arith.constant 0 : index
    %c5 = arith.constant 5 : index
    %c0_36 = arith.constant 0 : index
    %c0_37 = arith.constant 0 : index
    %48 = vector.load %arg4[%c0_35, %c5, %c0_36, %c0_37] : memref<1x9x16x16xf32, #tpu.memory_space<vmem>>, vector<1x1x16x16xf32>
    %49 = vector.shape_cast %48 : vector<1x1x16x16xf32> to vector<16x16xf32>
    %cst_38 = arith.constant dense<0.000000e+00> : vector<16x24xf32>
    %50 = tpu.matmul %49, %47, %cst_38 {dimension_numbers = #tpu.dot_dimension_numbers<[1], [0], [0], [1], [0, 0, 1, 1], [], []>} : vector<16x16xf32>, vector<16x24xf32>, vector<16x24xf32> -> vector<16x24xf32>
    %51 = arith.addf %46, %50 : vector<16x24xf32>
    %52 = vector.extract_strided_slice %17 {offsets = [0, 12], sizes = [16, 24], strides = [1, 1]} : vector<16x42xf32> to vector<16x24xf32>
    %c0_39 = arith.constant 0 : index
    %c6 = arith.constant 6 : index
    %c0_40 = arith.constant 0 : index
    %c0_41 = arith.constant 0 : index
    %53 = vector.load %arg4[%c0_39, %c6, %c0_40, %c0_41] : memref<1x9x16x16xf32, #tpu.memory_space<vmem>>, vector<1x1x16x16xf32>
    %54 = vector.shape_cast %53 : vector<1x1x16x16xf32> to vector<16x16xf32>
    %cst_42 = arith.constant dense<0.000000e+00> : vector<16x24xf32>
    %55 = tpu.matmul %54, %52, %cst_42 {dimension_numbers = #tpu.dot_dimension_numbers<[1], [0], [0], [1], [0, 0, 1, 1], [], []>} : vector<16x16xf32>, vector<16x24xf32>, vector<16x24xf32> -> vector<16x24xf32>
    %56 = arith.addf %51, %55 : vector<16x24xf32>
    %57 = vector.extract_strided_slice %17 {offsets = [0, 13], sizes = [16, 24], strides = [1, 1]} : vector<16x42xf32> to vector<16x24xf32>
    %c0_43 = arith.constant 0 : index
    %c7 = arith.constant 7 : index
    %c0_44 = arith.constant 0 : index
    %c0_45 = arith.constant 0 : index
    %58 = vector.load %arg4[%c0_43, %c7, %c0_44, %c0_45] : memref<1x9x16x16xf32, #tpu.memory_space<vmem>>, vector<1x1x16x16xf32>
    %59 = vector.shape_cast %58 : vector<1x1x16x16xf32> to vector<16x16xf32>
    %cst_46 = arith.constant dense<0.000000e+00> : vector<16x24xf32>
    %60 = tpu.matmul %59, %57, %cst_46 {dimension_numbers = #tpu.dot_dimension_numbers<[1], [0], [0], [1], [0, 0, 1, 1], [], []>} : vector<16x16xf32>, vector<16x24xf32>, vector<16x24xf32> -> vector<16x24xf32>
    %61 = arith.addf %56, %60 : vector<16x24xf32>
    %62 = vector.extract_strided_slice %17 {offsets = [0, 14], sizes = [16, 24], strides = [1, 1]} : vector<16x42xf32> to vector<16x24xf32>
    %c0_47 = arith.constant 0 : index
    %c8 = arith.constant 8 : index
    %c0_48 = arith.constant 0 : index
    %c0_49 = arith.constant 0 : index
    %63 = vector.load %arg4[%c0_47, %c8, %c0_48, %c0_49] : memref<1x9x16x16xf32, #tpu.memory_space<vmem>>, vector<1x1x16x16xf32>
    %64 = vector.shape_cast %63 : vector<1x1x16x16xf32> to vector<16x16xf32>
    %cst_50 = arith.constant dense<0.000000e+00> : vector<16x24xf32>
    %65 = tpu.matmul %64, %62, %cst_50 {dimension_numbers = #tpu.dot_dimension_numbers<[1], [0], [0], [1], [0, 0, 1, 1], [], []>} : vector<16x16xf32>, vector<16x24xf32>, vector<16x24xf32> -> vector<16x24xf32>
    %66 = arith.addf %61, %65 : vector<16x24xf32>
    %c0_51 = arith.constant 0 : index
    %c0_52 = arith.constant 0 : index
    %c0_53 = arith.constant 0 : index
    %c0_54 = arith.constant 0 : index
    %67 = vector.load %arg10[%c0_51, %c0_52, %c0_53, %c0_54] : memref<1x1x16x24xf32, #tpu.memory_space<vmem>>, vector<1x1x16x24xf32>
    %68 = vector.shape_cast %67 : vector<1x1x16x24xf32> to vector<16x24xf32>
    %69 = arith.addf %68, %66 : vector<16x24xf32>
    %c0_55 = arith.constant 0 : index
    %c0_56 = arith.constant 0 : index
    %c0_57 = arith.constant 0 : index
    %c0_58 = arith.constant 0 : index
    %70 = vector.load %arg10[%c0_55, %c0_56, %c0_57, %c0_58] : memref<1x1x16x24xf32, #tpu.memory_space<vmem>>, vector<1x1x16x24xf32>
    %71 = vector.shape_cast %70 : vector<1x1x16x24xf32> to vector<16x24xf32>
    %72 = vector.shape_cast %69 : vector<16x24xf32> to vector<1x1x16x24xf32>
    tpu.vector_store %arg10[%c0_55, %c0_56, %c0_57, %c0_58], %72 {strides = array<i32>} : memref<1x1x16x24xf32, #tpu.memory_space<vmem>>, vector<1x1x16x24xf32>,
    return
  }
  func.func @transform_0(%arg0: i32, %arg1: i32, %arg2: i32) -> (i32, i32, i32, i32) {
    %0 = arith.addi %arg1, %arg2 : i32
    %c0_i32 = arith.constant 0 : i32
    %c0_i32_0 = arith.constant 0 : i32
    %c0_i32_1 = arith.constant 0 : i32
    return %arg0, %0, %c0_i32, %c0_i32_0 : i32, i32, i32, i32
  }
  func.func @transform_1(%arg0: i32, %arg1: i32, %arg2: i32) -> (i32, i32, i32, i32) {
    %c0_i32 = arith.constant 0 : i32
    %c0_i32_0 = arith.constant 0 : i32
    %c0_i32_1 = arith.constant 0 : i32
    %c0_i32_2 = arith.constant 0 : i32
    return %arg2, %c0_i32, %c0_i32_0, %c0_i32_1 : i32, i32, i32, i32
  }
  func.func @transform_2(%arg0: i32, %arg1: i32, %arg2: i32) -> (i32, i32, i32) {
    %0 = arith.addi %arg1, %arg2 : i32
    %c0_i32 = arith.constant 0 : i32
    %c0_i32_0 = arith.constant 0 : i32
    %c0_i32_1 = arith.constant 0 : i32
    return %0, %c0_i32, %c0_i32_0 : i32, i32, i32
  }
  func.func @transform_3(%arg0: i32, %arg1: i32, %arg2: i32) -> (i32, i32) {
    %c0_i32 = arith.constant 0 : i32
    %c0_i32_0 = arith.constant 0 : i32
    %c0_i32_1 = arith.constant 0 : i32
    return %c0_i32, %c0_i32_0 : i32, i32
  }
  func.func @transform_4(%arg0: i32, %arg1: i32, %arg2: i32) -> (i32, i32) {
    %c0_i32 = arith.constant 0 : i32
    %c0_i32_0 = arith.constant 0 : i32
    %c0_i32_1 = arith.constant 0 : i32
    return %c0_i32, %c0_i32_0 : i32, i32
  }
  func.func @transform_5(%arg0: i32, %arg1: i32, %arg2: i32) -> (i32, i32) {
    %c0_i32 = arith.constant 0 : i32
    %c0_i32_0 = arith.constant 0 : i32
    %c0_i32_1 = arith.constant 0 : i32
    return %c0_i32, %c0_i32_0 : i32, i32
  }
  func.func @transform_6(%arg0: i32, %arg1: i32, %arg2: i32) -> (i32, i32) {
    %c0_i32 = arith.constant 0 : i32
    %c0_i32_0 = arith.constant 0 : i32
    %c0_i32_1 = arith.constant 0 : i32
    return %c0_i32, %c0_i32_0 : i32, i32
  }
  func.func @transform_7(%arg0: i32, %arg1: i32, %arg2: i32) -> (i32, i32, i32, i32) {
    %c0_i32 = arith.constant 0 : i32
    %c0_i32_0 = arith.constant 0 : i32
    %c0_i32_1 = arith.constant 0 : i32
    return %arg0, %arg1, %c0_i32, %c0_i32_0 : i32, i32, i32, i32
  }
}

module attributes {stable_mosaic.version = 11 : i64} {
  func.func @_matmul_cs_kernel(%arg0: i32, %arg1: i32, %arg2: memref<1x1x432x4xf32, #tpu.memory_space<vmem>>, %arg3: memref<32x432xf32, #tpu.memory_space<vmem>>, %arg4: memref<32x1xf32, #tpu.memory_space<vmem>>, %arg5: memref<1x1x32x4xf32, #tpu.memory_space<vmem>>) attributes {dimension_semantics = [#tpu.dimension_semantics<parallel>, #tpu.dimension_semantics<parallel>], iteration_bounds = array<i64: 2, 4>, scalar_prefetch = 0 : i64, scratch_operands = 0 : i64, tpu.core_type = #tpu.core_type<tc>, window_params = [{transform_indices = @transform_0, window_bounds = array<i64: 1, 1, 432, 4>}, {pipeline_mode = #tpu.pipeline_mode<synchronous>, transform_indices = @transform_1, window_bounds = array<i64: 32, 432>}, {pipeline_mode = #tpu.pipeline_mode<synchronous>, transform_indices = @transform_2, window_bounds = array<i64: 32, 1>}, {transform_indices = @transform_3, window_bounds = array<i64: 1, 1, 32, 4>}]} {
    %c0 = arith.constant 0 : index
    %c0_0 = arith.constant 0 : index
    %0 = vector.load %arg3[%c0, %c0_0] : memref<32x432xf32, #tpu.memory_space<vmem>>, vector<32x432xf32>
    %c0_1 = arith.constant 0 : index
    %c0_2 = arith.constant 0 : index
    %c0_3 = arith.constant 0 : index
    %c0_4 = arith.constant 0 : index
    %1 = vector.load %arg2[%c0_1, %c0_2, %c0_3, %c0_4] : memref<1x1x432x4xf32, #tpu.memory_space<vmem>>, vector<1x1x432x4xf32>
    %2 = vector.shape_cast %1 : vector<1x1x432x4xf32> to vector<432x4xf32>
    %cst = arith.constant dense<0.000000e+00> : vector<32x4xf32>
    %3 = tpu.matmul %0, %2, %cst {dimension_numbers = #tpu.dot_dimension_numbers<[1], [0], [0], [1], [0, 0, 1, 1], [], []>} : vector<32x432xf32>, vector<432x4xf32>, vector<32x4xf32> -> vector<32x4xf32>
    %c0_5 = arith.constant 0 : index
    %c0_6 = arith.constant 0 : index
    %4 = vector.load %arg4[%c0_5, %c0_6] : memref<32x1xf32, #tpu.memory_space<vmem>>, vector<32x1xf32>
    %5 = vector.broadcast %4 : vector<32x1xf32> to vector<32x4xf32>
    %6 = arith.addf %3, %5 : vector<32x4xf32>
    %c0_7 = arith.constant 0 : index
    %c0_8 = arith.constant 0 : index
    %c0_9 = arith.constant 0 : index
    %c0_10 = arith.constant 0 : index
    %7 = vector.load %arg5[%c0_7, %c0_8, %c0_9, %c0_10] : memref<1x1x32x4xf32, #tpu.memory_space<vmem>>, vector<1x1x32x4xf32>
    %8 = vector.shape_cast %7 : vector<1x1x32x4xf32> to vector<32x4xf32>
    %9 = vector.shape_cast %6 : vector<32x4xf32> to vector<1x1x32x4xf32>
    tpu.vector_store %arg5[%c0_7, %c0_8, %c0_9, %c0_10], %9 {strides = array<i32>} : memref<1x1x32x4xf32, #tpu.memory_space<vmem>>, vector<1x1x32x4xf32>,
    return
  }
  func.func @transform_0(%arg0: i32, %arg1: i32) -> (i32, i32, i32, i32) {
    %c0_i32 = arith.constant 0 : i32
    %c0_i32_0 = arith.constant 0 : i32
    %c0_i32_1 = arith.constant 0 : i32
    return %arg0, %arg1, %c0_i32, %c0_i32_0 : i32, i32, i32, i32
  }
  func.func @transform_1(%arg0: i32, %arg1: i32) -> (i32, i32) {
    %c0_i32 = arith.constant 0 : i32
    %c0_i32_0 = arith.constant 0 : i32
    %c0_i32_1 = arith.constant 0 : i32
    return %c0_i32, %c0_i32_0 : i32, i32
  }
  func.func @transform_2(%arg0: i32, %arg1: i32) -> (i32, i32) {
    %c0_i32 = arith.constant 0 : i32
    %c0_i32_0 = arith.constant 0 : i32
    %c0_i32_1 = arith.constant 0 : i32
    return %c0_i32, %c0_i32_0 : i32, i32
  }
  func.func @transform_3(%arg0: i32, %arg1: i32) -> (i32, i32, i32, i32) {
    %c0_i32 = arith.constant 0 : i32
    %c0_i32_0 = arith.constant 0 : i32
    %c0_i32_1 = arith.constant 0 : i32
    return %arg0, %arg1, %c0_i32, %c0_i32_0 : i32, i32, i32, i32
  }
}

module attributes {stable_mosaic.version = 11 : i64} {
  func.func @_conv_fused_kernel(%arg0: i32, %arg1: i32, %arg2: i32, %arg3: memref<1x1x32x20xf32, #tpu.memory_space<vmem>>, %arg4: memref<1x9x32x32xf32, #tpu.memory_space<vmem>>, %arg5: memref<1x1x20xf32, #tpu.memory_space<vmem>>, %arg6: memref<32x1xf32, #tpu.memory_space<vmem>>, %arg7: memref<32x1xf32, #tpu.memory_space<vmem>>, %arg8: memref<32x1xf32, #tpu.memory_space<vmem>>, %arg9: memref<32x1xf32, #tpu.memory_space<vmem>>, %arg10: memref<1x1x32x8xf32, #tpu.memory_space<vmem>>) attributes {dimension_semantics = [#tpu.dimension_semantics<parallel>, #tpu.dimension_semantics<parallel>, #tpu.dimension_semantics<arbitrary>], iteration_bounds = array<i64: 2, 4, 3>, scalar_prefetch = 0 : i64, scratch_operands = 0 : i64, tpu.core_type = #tpu.core_type<tc>, window_params = [{transform_indices = @transform_0, window_bounds = array<i64: 1, 1, 32, 20>}, {transform_indices = @transform_1, window_bounds = array<i64: 1, 9, 32, 32>}, {transform_indices = @transform_2, window_bounds = array<i64: 1, 1, 20>}, {pipeline_mode = #tpu.pipeline_mode<synchronous>, transform_indices = @transform_3, window_bounds = array<i64: 32, 1>}, {pipeline_mode = #tpu.pipeline_mode<synchronous>, transform_indices = @transform_4, window_bounds = array<i64: 32, 1>}, {pipeline_mode = #tpu.pipeline_mode<synchronous>, transform_indices = @transform_5, window_bounds = array<i64: 32, 1>}, {pipeline_mode = #tpu.pipeline_mode<synchronous>, transform_indices = @transform_6, window_bounds = array<i64: 32, 1>}, {transform_indices = @transform_7, window_bounds = array<i64: 1, 1, 32, 8>}]} {
    %c0 = arith.constant 0 : index
    %c0_0 = arith.constant 0 : index
    %c0_1 = arith.constant 0 : index
    %c0_2 = arith.constant 0 : index
    %0 = vector.load %arg3[%c0, %c0_0, %c0_1, %c0_2] : memref<1x1x32x20xf32, #tpu.memory_space<vmem>>, vector<1x1x32x20xf32>
    %1 = vector.shape_cast %0 : vector<1x1x32x20xf32> to vector<32x20xf32>
    %c0_3 = arith.constant 0 : index
    %c0_4 = arith.constant 0 : index
    %2 = vector.load %arg6[%c0_3, %c0_4] : memref<32x1xf32, #tpu.memory_space<vmem>>, vector<32x1xf32>
    %3 = vector.broadcast %2 : vector<32x1xf32> to vector<32x20xf32>
    %4 = arith.mulf %1, %3 : vector<32x20xf32>
    %c0_5 = arith.constant 0 : index
    %c0_6 = arith.constant 0 : index
    %5 = vector.load %arg7[%c0_5, %c0_6] : memref<32x1xf32, #tpu.memory_space<vmem>>, vector<32x1xf32>
    %6 = vector.broadcast %5 : vector<32x1xf32> to vector<32x20xf32>
    %7 = arith.addf %4, %6 : vector<32x20xf32>
    %cst = arith.constant 0.000000e+00 : f32
    %8 = vector.broadcast %cst : f32 to vector<32x20xf32>
    %9 = arith.cmpf oge, %7, %8 : vector<32x20xf32>
    %c0_7 = arith.constant 0 : index
    %c0_8 = arith.constant 0 : index
    %10 = vector.load %arg8[%c0_7, %c0_8] : memref<32x1xf32, #tpu.memory_space<vmem>>, vector<32x1xf32>
    %11 = vector.broadcast %10 : vector<32x1xf32> to vector<32x20xf32>
    %12 = arith.mulf %11, %7 : vector<32x20xf32>
    %13 = arith.select %9, %7, %12 : vector<32x20xi1>, vector<32x20xf32>
    %c0_9 = arith.constant 0 : index
    %c0_10 = arith.constant 0 : index
    %c0_11 = arith.constant 0 : index
    %14 = vector.load %arg5[%c0_9, %c0_10, %c0_11] : memref<1x1x20xf32, #tpu.memory_space<vmem>>, vector<1x1x20xf32>
    %15 = vector.shape_cast %14 : vector<1x1x20xf32> to vector<1x20xf32>
    %16 = vector.broadcast %15 : vector<1x20xf32> to vector<32x20xf32>
    %17 = arith.mulf %13, %16 : vector<32x20xf32>
    %c0_i32 = arith.constant 0 : i32
    %18 = arith.cmpi eq, %arg2, %c0_i32 : i32
    %19 = arith.extui %18 : i1 to i32
    %c0_i32_12 = arith.constant 0 : i32
    %20 = arith.cmpi ne, %19, %c0_i32_12 : i32
    scf.if %20 {
      %c0_59 = arith.constant 0 : index
      %c0_60 = arith.constant 0 : index
      %73 = vector.load %arg9[%c0_59, %c0_60] : memref<32x1xf32, #tpu.memory_space<vmem>>, vector<32x1xf32>
      %74 = vector.shape_cast %73 : vector<32x1xf32> to vector<32x1xf32>
      %75 = vector.broadcast %74 : vector<32x1xf32> to vector<32x8xf32>
      %c0_61 = arith.constant 0 : index
      %c0_62 = arith.constant 0 : index
      %c0_63 = arith.constant 0 : index
      %c0_64 = arith.constant 0 : index
      %76 = vector.load %arg10[%c0_61, %c0_62, %c0_63, %c0_64] : memref<1x1x32x8xf32, #tpu.memory_space<vmem>>, vector<1x1x32x8xf32>
      %77 = vector.shape_cast %76 : vector<1x1x32x8xf32> to vector<32x8xf32>
      %78 = vector.shape_cast %75 : vector<32x8xf32> to vector<1x1x32x8xf32>
      tpu.vector_store %arg10[%c0_61, %c0_62, %c0_63, %c0_64], %78 {strides = array<i32>} : memref<1x1x32x8xf32, #tpu.memory_space<vmem>>, vector<1x1x32x8xf32>,
    } else {
    }
    %cst_13 = arith.constant 0.000000e+00 : f32
    %21 = vector.broadcast %cst_13 : f32 to vector<32x8xf32>
    %22 = vector.extract_strided_slice %17 {offsets = [0, 0], sizes = [32, 8], strides = [1, 1]} : vector<32x20xf32> to vector<32x8xf32>
    %c0_14 = arith.constant 0 : index
    %c0_15 = arith.constant 0 : index
    %c0_16 = arith.constant 0 : index
    %c0_17 = arith.constant 0 : index
    %23 = vector.load %arg4[%c0_14, %c0_15, %c0_16, %c0_17] : memref<1x9x32x32xf32, #tpu.memory_space<vmem>>, vector<1x1x32x32xf32>
    %24 = vector.shape_cast %23 : vector<1x1x32x32xf32> to vector<32x32xf32>
    %cst_18 = arith.constant dense<0.000000e+00> : vector<32x8xf32>
    %25 = tpu.matmul %24, %22, %cst_18 {dimension_numbers = #tpu.dot_dimension_numbers<[1], [0], [0], [1], [0, 0, 1, 1], [], []>} : vector<32x32xf32>, vector<32x8xf32>, vector<32x8xf32> -> vector<32x8xf32>
    %26 = arith.addf %21, %25 : vector<32x8xf32>
    %27 = vector.extract_strided_slice %17 {offsets = [0, 1], sizes = [32, 8], strides = [1, 1]} : vector<32x20xf32> to vector<32x8xf32>
    %c0_19 = arith.constant 0 : index
    %c1 = arith.constant 1 : index
    %c0_20 = arith.constant 0 : index
    %c0_21 = arith.constant 0 : index
    %28 = vector.load %arg4[%c0_19, %c1, %c0_20, %c0_21] : memref<1x9x32x32xf32, #tpu.memory_space<vmem>>, vector<1x1x32x32xf32>
    %29 = vector.shape_cast %28 : vector<1x1x32x32xf32> to vector<32x32xf32>
    %cst_22 = arith.constant dense<0.000000e+00> : vector<32x8xf32>
    %30 = tpu.matmul %29, %27, %cst_22 {dimension_numbers = #tpu.dot_dimension_numbers<[1], [0], [0], [1], [0, 0, 1, 1], [], []>} : vector<32x32xf32>, vector<32x8xf32>, vector<32x8xf32> -> vector<32x8xf32>
    %31 = arith.addf %26, %30 : vector<32x8xf32>
    %32 = vector.extract_strided_slice %17 {offsets = [0, 2], sizes = [32, 8], strides = [1, 1]} : vector<32x20xf32> to vector<32x8xf32>
    %c0_23 = arith.constant 0 : index
    %c2 = arith.constant 2 : index
    %c0_24 = arith.constant 0 : index
    %c0_25 = arith.constant 0 : index
    %33 = vector.load %arg4[%c0_23, %c2, %c0_24, %c0_25] : memref<1x9x32x32xf32, #tpu.memory_space<vmem>>, vector<1x1x32x32xf32>
    %34 = vector.shape_cast %33 : vector<1x1x32x32xf32> to vector<32x32xf32>
    %cst_26 = arith.constant dense<0.000000e+00> : vector<32x8xf32>
    %35 = tpu.matmul %34, %32, %cst_26 {dimension_numbers = #tpu.dot_dimension_numbers<[1], [0], [0], [1], [0, 0, 1, 1], [], []>} : vector<32x32xf32>, vector<32x8xf32>, vector<32x8xf32> -> vector<32x8xf32>
    %36 = arith.addf %31, %35 : vector<32x8xf32>
    %37 = vector.extract_strided_slice %17 {offsets = [0, 4], sizes = [32, 8], strides = [1, 1]} : vector<32x20xf32> to vector<32x8xf32>
    %c0_27 = arith.constant 0 : index
    %c3 = arith.constant 3 : index
    %c0_28 = arith.constant 0 : index
    %c0_29 = arith.constant 0 : index
    %38 = vector.load %arg4[%c0_27, %c3, %c0_28, %c0_29] : memref<1x9x32x32xf32, #tpu.memory_space<vmem>>, vector<1x1x32x32xf32>
    %39 = vector.shape_cast %38 : vector<1x1x32x32xf32> to vector<32x32xf32>
    %cst_30 = arith.constant dense<0.000000e+00> : vector<32x8xf32>
    %40 = tpu.matmul %39, %37, %cst_30 {dimension_numbers = #tpu.dot_dimension_numbers<[1], [0], [0], [1], [0, 0, 1, 1], [], []>} : vector<32x32xf32>, vector<32x8xf32>, vector<32x8xf32> -> vector<32x8xf32>
    %41 = arith.addf %36, %40 : vector<32x8xf32>
    %42 = vector.extract_strided_slice %17 {offsets = [0, 5], sizes = [32, 8], strides = [1, 1]} : vector<32x20xf32> to vector<32x8xf32>
    %c0_31 = arith.constant 0 : index
    %c4 = arith.constant 4 : index
    %c0_32 = arith.constant 0 : index
    %c0_33 = arith.constant 0 : index
    %43 = vector.load %arg4[%c0_31, %c4, %c0_32, %c0_33] : memref<1x9x32x32xf32, #tpu.memory_space<vmem>>, vector<1x1x32x32xf32>
    %44 = vector.shape_cast %43 : vector<1x1x32x32xf32> to vector<32x32xf32>
    %cst_34 = arith.constant dense<0.000000e+00> : vector<32x8xf32>
    %45 = tpu.matmul %44, %42, %cst_34 {dimension_numbers = #tpu.dot_dimension_numbers<[1], [0], [0], [1], [0, 0, 1, 1], [], []>} : vector<32x32xf32>, vector<32x8xf32>, vector<32x8xf32> -> vector<32x8xf32>
    %46 = arith.addf %41, %45 : vector<32x8xf32>
    %47 = vector.extract_strided_slice %17 {offsets = [0, 6], sizes = [32, 8], strides = [1, 1]} : vector<32x20xf32> to vector<32x8xf32>
    %c0_35 = arith.constant 0 : index
    %c5 = arith.constant 5 : index
    %c0_36 = arith.constant 0 : index
    %c0_37 = arith.constant 0 : index
    %48 = vector.load %arg4[%c0_35, %c5, %c0_36, %c0_37] : memref<1x9x32x32xf32, #tpu.memory_space<vmem>>, vector<1x1x32x32xf32>
    %49 = vector.shape_cast %48 : vector<1x1x32x32xf32> to vector<32x32xf32>
    %cst_38 = arith.constant dense<0.000000e+00> : vector<32x8xf32>
    %50 = tpu.matmul %49, %47, %cst_38 {dimension_numbers = #tpu.dot_dimension_numbers<[1], [0], [0], [1], [0, 0, 1, 1], [], []>} : vector<32x32xf32>, vector<32x8xf32>, vector<32x8xf32> -> vector<32x8xf32>
    %51 = arith.addf %46, %50 : vector<32x8xf32>
    %52 = vector.extract_strided_slice %17 {offsets = [0, 8], sizes = [32, 8], strides = [1, 1]} : vector<32x20xf32> to vector<32x8xf32>
    %c0_39 = arith.constant 0 : index
    %c6 = arith.constant 6 : index
    %c0_40 = arith.constant 0 : index
    %c0_41 = arith.constant 0 : index
    %53 = vector.load %arg4[%c0_39, %c6, %c0_40, %c0_41] : memref<1x9x32x32xf32, #tpu.memory_space<vmem>>, vector<1x1x32x32xf32>
    %54 = vector.shape_cast %53 : vector<1x1x32x32xf32> to vector<32x32xf32>
    %cst_42 = arith.constant dense<0.000000e+00> : vector<32x8xf32>
    %55 = tpu.matmul %54, %52, %cst_42 {dimension_numbers = #tpu.dot_dimension_numbers<[1], [0], [0], [1], [0, 0, 1, 1], [], []>} : vector<32x32xf32>, vector<32x8xf32>, vector<32x8xf32> -> vector<32x8xf32>
    %56 = arith.addf %51, %55 : vector<32x8xf32>
    %57 = vector.extract_strided_slice %17 {offsets = [0, 9], sizes = [32, 8], strides = [1, 1]} : vector<32x20xf32> to vector<32x8xf32>
    %c0_43 = arith.constant 0 : index
    %c7 = arith.constant 7 : index
    %c0_44 = arith.constant 0 : index
    %c0_45 = arith.constant 0 : index
    %58 = vector.load %arg4[%c0_43, %c7, %c0_44, %c0_45] : memref<1x9x32x32xf32, #tpu.memory_space<vmem>>, vector<1x1x32x32xf32>
    %59 = vector.shape_cast %58 : vector<1x1x32x32xf32> to vector<32x32xf32>
    %cst_46 = arith.constant dense<0.000000e+00> : vector<32x8xf32>
    %60 = tpu.matmul %59, %57, %cst_46 {dimension_numbers = #tpu.dot_dimension_numbers<[1], [0], [0], [1], [0, 0, 1, 1], [], []>} : vector<32x32xf32>, vector<32x8xf32>, vector<32x8xf32> -> vector<32x8xf32>
    %61 = arith.addf %56, %60 : vector<32x8xf32>
    %62 = vector.extract_strided_slice %17 {offsets = [0, 10], sizes = [32, 8], strides = [1, 1]} : vector<32x20xf32> to vector<32x8xf32>
    %c0_47 = arith.constant 0 : index
    %c8 = arith.constant 8 : index
    %c0_48 = arith.constant 0 : index
    %c0_49 = arith.constant 0 : index
    %63 = vector.load %arg4[%c0_47, %c8, %c0_48, %c0_49] : memref<1x9x32x32xf32, #tpu.memory_space<vmem>>, vector<1x1x32x32xf32>
    %64 = vector.shape_cast %63 : vector<1x1x32x32xf32> to vector<32x32xf32>
    %cst_50 = arith.constant dense<0.000000e+00> : vector<32x8xf32>
    %65 = tpu.matmul %64, %62, %cst_50 {dimension_numbers = #tpu.dot_dimension_numbers<[1], [0], [0], [1], [0, 0, 1, 1], [], []>} : vector<32x32xf32>, vector<32x8xf32>, vector<32x8xf32> -> vector<32x8xf32>
    %66 = arith.addf %61, %65 : vector<32x8xf32>
    %c0_51 = arith.constant 0 : index
    %c0_52 = arith.constant 0 : index
    %c0_53 = arith.constant 0 : index
    %c0_54 = arith.constant 0 : index
    %67 = vector.load %arg10[%c0_51, %c0_52, %c0_53, %c0_54] : memref<1x1x32x8xf32, #tpu.memory_space<vmem>>, vector<1x1x32x8xf32>
    %68 = vector.shape_cast %67 : vector<1x1x32x8xf32> to vector<32x8xf32>
    %69 = arith.addf %68, %66 : vector<32x8xf32>
    %c0_55 = arith.constant 0 : index
    %c0_56 = arith.constant 0 : index
    %c0_57 = arith.constant 0 : index
    %c0_58 = arith.constant 0 : index
    %70 = vector.load %arg10[%c0_55, %c0_56, %c0_57, %c0_58] : memref<1x1x32x8xf32, #tpu.memory_space<vmem>>, vector<1x1x32x8xf32>
    %71 = vector.shape_cast %70 : vector<1x1x32x8xf32> to vector<32x8xf32>
    %72 = vector.shape_cast %69 : vector<32x8xf32> to vector<1x1x32x8xf32>
    tpu.vector_store %arg10[%c0_55, %c0_56, %c0_57, %c0_58], %72 {strides = array<i32>} : memref<1x1x32x8xf32, #tpu.memory_space<vmem>>, vector<1x1x32x8xf32>,
    return
  }
  func.func @transform_0(%arg0: i32, %arg1: i32, %arg2: i32) -> (i32, i32, i32, i32) {
    %0 = arith.addi %arg1, %arg2 : i32
    %c0_i32 = arith.constant 0 : i32
    %c0_i32_0 = arith.constant 0 : i32
    %c0_i32_1 = arith.constant 0 : i32
    return %arg0, %0, %c0_i32, %c0_i32_0 : i32, i32, i32, i32
  }
  func.func @transform_1(%arg0: i32, %arg1: i32, %arg2: i32) -> (i32, i32, i32, i32) {
    %c0_i32 = arith.constant 0 : i32
    %c0_i32_0 = arith.constant 0 : i32
    %c0_i32_1 = arith.constant 0 : i32
    %c0_i32_2 = arith.constant 0 : i32
    return %arg2, %c0_i32, %c0_i32_0, %c0_i32_1 : i32, i32, i32, i32
  }
  func.func @transform_2(%arg0: i32, %arg1: i32, %arg2: i32) -> (i32, i32, i32) {
    %0 = arith.addi %arg1, %arg2 : i32
    %c0_i32 = arith.constant 0 : i32
    %c0_i32_0 = arith.constant 0 : i32
    %c0_i32_1 = arith.constant 0 : i32
    return %0, %c0_i32, %c0_i32_0 : i32, i32, i32
  }
  func.func @transform_3(%arg0: i32, %arg1: i32, %arg2: i32) -> (i32, i32) {
    %c0_i32 = arith.constant 0 : i32
    %c0_i32_0 = arith.constant 0 : i32
    %c0_i32_1 = arith.constant 0 : i32
    return %c0_i32, %c0_i32_0 : i32, i32
  }
  func.func @transform_4(%arg0: i32, %arg1: i32, %arg2: i32) -> (i32, i32) {
    %c0_i32 = arith.constant 0 : i32
    %c0_i32_0 = arith.constant 0 : i32
    %c0_i32_1 = arith.constant 0 : i32
    return %c0_i32, %c0_i32_0 : i32, i32
  }
  func.func @transform_5(%arg0: i32, %arg1: i32, %arg2: i32) -> (i32, i32) {
    %c0_i32 = arith.constant 0 : i32
    %c0_i32_0 = arith.constant 0 : i32
    %c0_i32_1 = arith.constant 0 : i32
    return %c0_i32, %c0_i32_0 : i32, i32
  }
  func.func @transform_6(%arg0: i32, %arg1: i32, %arg2: i32) -> (i32, i32) {
    %c0_i32 = arith.constant 0 : i32
    %c0_i32_0 = arith.constant 0 : i32
    %c0_i32_1 = arith.constant 0 : i32
    return %c0_i32, %c0_i32_0 : i32, i32
  }
  func.func @transform_7(%arg0: i32, %arg1: i32, %arg2: i32) -> (i32, i32, i32, i32) {
    %c0_i32 = arith.constant 0 : i32
    %c0_i32_0 = arith.constant 0 : i32
    %c0_i32_1 = arith.constant 0 : i32
    return %arg0, %arg1, %c0_i32, %c0_i32_0 : i32, i32, i32, i32
  }
}

module attributes {stable_mosaic.version = 11 : i64} {
  func.func @_matmul_cs_kernel(%arg0: i32, %arg1: i32, %arg2: memref<1x1x864x1xf32, #tpu.memory_space<vmem>>, %arg3: memref<64x864xf32, #tpu.memory_space<vmem>>, %arg4: memref<64x1xf32, #tpu.memory_space<vmem>>, %arg5: memref<1x1x64x1xf32, #tpu.memory_space<vmem>>) attributes {dimension_semantics = [#tpu.dimension_semantics<parallel>, #tpu.dimension_semantics<parallel>], iteration_bounds = array<i64: 2, 2>, scalar_prefetch = 0 : i64, scratch_operands = 0 : i64, tpu.core_type = #tpu.core_type<tc>, window_params = [{transform_indices = @transform_0, window_bounds = array<i64: 1, 1, 864, 1>}, {pipeline_mode = #tpu.pipeline_mode<synchronous>, transform_indices = @transform_1, window_bounds = array<i64: 64, 864>}, {pipeline_mode = #tpu.pipeline_mode<synchronous>, transform_indices = @transform_2, window_bounds = array<i64: 64, 1>}, {transform_indices = @transform_3, window_bounds = array<i64: 1, 1, 64, 1>}]} {
    %c0 = arith.constant 0 : index
    %c0_0 = arith.constant 0 : index
    %0 = vector.load %arg3[%c0, %c0_0] : memref<64x864xf32, #tpu.memory_space<vmem>>, vector<64x864xf32>
    %c0_1 = arith.constant 0 : index
    %c0_2 = arith.constant 0 : index
    %c0_3 = arith.constant 0 : index
    %c0_4 = arith.constant 0 : index
    %1 = vector.load %arg2[%c0_1, %c0_2, %c0_3, %c0_4] : memref<1x1x864x1xf32, #tpu.memory_space<vmem>>, vector<1x1x864x1xf32>
    %2 = vector.shape_cast %1 : vector<1x1x864x1xf32> to vector<864x1xf32>
    %cst = arith.constant dense<0.000000e+00> : vector<64x1xf32>
    %3 = tpu.matmul %0, %2, %cst {dimension_numbers = #tpu.dot_dimension_numbers<[1], [0], [0], [1], [0, 0, 1, 1], [], []>} : vector<64x864xf32>, vector<864x1xf32>, vector<64x1xf32> -> vector<64x1xf32>
    %c0_5 = arith.constant 0 : index
    %c0_6 = arith.constant 0 : index
    %4 = vector.load %arg4[%c0_5, %c0_6] : memref<64x1xf32, #tpu.memory_space<vmem>>, vector<64x1xf32>
    %5 = arith.addf %3, %4 : vector<64x1xf32>
    %c0_7 = arith.constant 0 : index
    %c0_8 = arith.constant 0 : index
    %c0_9 = arith.constant 0 : index
    %c0_10 = arith.constant 0 : index
    %6 = vector.load %arg5[%c0_7, %c0_8, %c0_9, %c0_10] : memref<1x1x64x1xf32, #tpu.memory_space<vmem>>, vector<1x1x64x1xf32>
    %7 = vector.shape_cast %6 : vector<1x1x64x1xf32> to vector<64x1xf32>
    %8 = vector.shape_cast %5 : vector<64x1xf32> to vector<1x1x64x1xf32>
    tpu.vector_store %arg5[%c0_7, %c0_8, %c0_9, %c0_10], %8 {strides = array<i32>} : memref<1x1x64x1xf32, #tpu.memory_space<vmem>>, vector<1x1x64x1xf32>,
    return
  }
  func.func @transform_0(%arg0: i32, %arg1: i32) -> (i32, i32, i32, i32) {
    %c0_i32 = arith.constant 0 : i32
    %c0_i32_0 = arith.constant 0 : i32
    %c0_i32_1 = arith.constant 0 : i32
    return %arg0, %arg1, %c0_i32, %c0_i32_0 : i32, i32, i32, i32
  }
  func.func @transform_1(%arg0: i32, %arg1: i32) -> (i32, i32) {
    %c0_i32 = arith.constant 0 : i32
    %c0_i32_0 = arith.constant 0 : i32
    %c0_i32_1 = arith.constant 0 : i32
    return %c0_i32, %c0_i32_0 : i32, i32
  }
  func.func @transform_2(%arg0: i32, %arg1: i32) -> (i32, i32) {
    %c0_i32 = arith.constant 0 : i32
    %c0_i32_0 = arith.constant 0 : i32
    %c0_i32_1 = arith.constant 0 : i32
    return %c0_i32, %c0_i32_0 : i32, i32
  }
  func.func @transform_3(%arg0: i32, %arg1: i32) -> (i32, i32, i32, i32) {
    %c0_i32 = arith.constant 0 : i32
    %c0_i32_0 = arith.constant 0 : i32
    %c0_i32_1 = arith.constant 0 : i32
    return %arg0, %arg1, %c0_i32, %c0_i32_0 : i32, i32, i32, i32
  }
}

module attributes {stable_mosaic.version = 11 : i64} {
  func.func @_conv_fused_kernel(%arg0: i32, %arg1: i32, %arg2: i32, %arg3: memref<1x1x64x12xf32, #tpu.memory_space<vmem>>, %arg4: memref<1x9x64x64xf32, #tpu.memory_space<vmem>>, %arg5: memref<1x1x12xf32, #tpu.memory_space<vmem>>, %arg6: memref<64x1xf32, #tpu.memory_space<vmem>>, %arg7: memref<64x1xf32, #tpu.memory_space<vmem>>, %arg8: memref<64x1xf32, #tpu.memory_space<vmem>>, %arg9: memref<64x1xf32, #tpu.memory_space<vmem>>, %arg10: memref<1x1x64x3xf32, #tpu.memory_space<vmem>>) attributes {dimension_semantics = [#tpu.dimension_semantics<parallel>, #tpu.dimension_semantics<parallel>, #tpu.dimension_semantics<arbitrary>], iteration_bounds = array<i64: 2, 2, 3>, scalar_prefetch = 0 : i64, scratch_operands = 0 : i64, tpu.core_type = #tpu.core_type<tc>, window_params = [{transform_indices = @transform_0, window_bounds = array<i64: 1, 1, 64, 12>}, {transform_indices = @transform_1, window_bounds = array<i64: 1, 9, 64, 64>}, {transform_indices = @transform_2, window_bounds = array<i64: 1, 1, 12>}, {pipeline_mode = #tpu.pipeline_mode<synchronous>, transform_indices = @transform_3, window_bounds = array<i64: 64, 1>}, {pipeline_mode = #tpu.pipeline_mode<synchronous>, transform_indices = @transform_4, window_bounds = array<i64: 64, 1>}, {pipeline_mode = #tpu.pipeline_mode<synchronous>, transform_indices = @transform_5, window_bounds = array<i64: 64, 1>}, {pipeline_mode = #tpu.pipeline_mode<synchronous>, transform_indices = @transform_6, window_bounds = array<i64: 64, 1>}, {transform_indices = @transform_7, window_bounds = array<i64: 1, 1, 64, 3>}]} {
    %c0 = arith.constant 0 : index
    %c0_0 = arith.constant 0 : index
    %c0_1 = arith.constant 0 : index
    %c0_2 = arith.constant 0 : index
    %0 = vector.load %arg3[%c0, %c0_0, %c0_1, %c0_2] : memref<1x1x64x12xf32, #tpu.memory_space<vmem>>, vector<1x1x64x12xf32>
    %1 = vector.shape_cast %0 : vector<1x1x64x12xf32> to vector<64x12xf32>
    %c0_3 = arith.constant 0 : index
    %c0_4 = arith.constant 0 : index
    %2 = vector.load %arg6[%c0_3, %c0_4] : memref<64x1xf32, #tpu.memory_space<vmem>>, vector<64x1xf32>
    %3 = vector.broadcast %2 : vector<64x1xf32> to vector<64x12xf32>
    %4 = arith.mulf %1, %3 : vector<64x12xf32>
    %c0_5 = arith.constant 0 : index
    %c0_6 = arith.constant 0 : index
    %5 = vector.load %arg7[%c0_5, %c0_6] : memref<64x1xf32, #tpu.memory_space<vmem>>, vector<64x1xf32>
    %6 = vector.broadcast %5 : vector<64x1xf32> to vector<64x12xf32>
    %7 = arith.addf %4, %6 : vector<64x12xf32>
    %cst = arith.constant 0.000000e+00 : f32
    %8 = vector.broadcast %cst : f32 to vector<64x12xf32>
    %9 = arith.cmpf oge, %7, %8 : vector<64x12xf32>
    %c0_7 = arith.constant 0 : index
    %c0_8 = arith.constant 0 : index
    %10 = vector.load %arg8[%c0_7, %c0_8] : memref<64x1xf32, #tpu.memory_space<vmem>>, vector<64x1xf32>
    %11 = vector.broadcast %10 : vector<64x1xf32> to vector<64x12xf32>
    %12 = arith.mulf %11, %7 : vector<64x12xf32>
    %13 = arith.select %9, %7, %12 : vector<64x12xi1>, vector<64x12xf32>
    %c0_9 = arith.constant 0 : index
    %c0_10 = arith.constant 0 : index
    %c0_11 = arith.constant 0 : index
    %14 = vector.load %arg5[%c0_9, %c0_10, %c0_11] : memref<1x1x12xf32, #tpu.memory_space<vmem>>, vector<1x1x12xf32>
    %15 = vector.shape_cast %14 : vector<1x1x12xf32> to vector<1x12xf32>
    %16 = vector.broadcast %15 : vector<1x12xf32> to vector<64x12xf32>
    %17 = arith.mulf %13, %16 : vector<64x12xf32>
    %c0_i32 = arith.constant 0 : i32
    %18 = arith.cmpi eq, %arg2, %c0_i32 : i32
    %19 = arith.extui %18 : i1 to i32
    %c0_i32_12 = arith.constant 0 : i32
    %20 = arith.cmpi ne, %19, %c0_i32_12 : i32
    scf.if %20 {
      %c0_59 = arith.constant 0 : index
      %c0_60 = arith.constant 0 : index
      %73 = vector.load %arg9[%c0_59, %c0_60] : memref<64x1xf32, #tpu.memory_space<vmem>>, vector<64x1xf32>
      %74 = vector.shape_cast %73 : vector<64x1xf32> to vector<64x1xf32>
      %75 = vector.broadcast %74 : vector<64x1xf32> to vector<64x3xf32>
      %c0_61 = arith.constant 0 : index
      %c0_62 = arith.constant 0 : index
      %c0_63 = arith.constant 0 : index
      %c0_64 = arith.constant 0 : index
      %76 = vector.load %arg10[%c0_61, %c0_62, %c0_63, %c0_64] : memref<1x1x64x3xf32, #tpu.memory_space<vmem>>, vector<1x1x64x3xf32>
      %77 = vector.shape_cast %76 : vector<1x1x64x3xf32> to vector<64x3xf32>
      %78 = vector.shape_cast %75 : vector<64x3xf32> to vector<1x1x64x3xf32>
      tpu.vector_store %arg10[%c0_61, %c0_62, %c0_63, %c0_64], %78 {strides = array<i32>} : memref<1x1x64x3xf32, #tpu.memory_space<vmem>>, vector<1x1x64x3xf32>,
    } else {
    }
    %cst_13 = arith.constant 0.000000e+00 : f32
    %21 = vector.broadcast %cst_13 : f32 to vector<64x3xf32>
    %22 = vector.extract_strided_slice %17 {offsets = [0, 0], sizes = [64, 3], strides = [1, 1]} : vector<64x12xf32> to vector<64x3xf32>
    %c0_14 = arith.constant 0 : index
    %c0_15 = arith.constant 0 : index
    %c0_16 = arith.constant 0 : index
    %c0_17 = arith.constant 0 : index
    %23 = vector.load %arg4[%c0_14, %c0_15, %c0_16, %c0_17] : memref<1x9x64x64xf32, #tpu.memory_space<vmem>>, vector<1x1x64x64xf32>
    %24 = vector.shape_cast %23 : vector<1x1x64x64xf32> to vector<64x64xf32>
    %cst_18 = arith.constant dense<0.000000e+00> : vector<64x3xf32>
    %25 = tpu.matmul %24, %22, %cst_18 {dimension_numbers = #tpu.dot_dimension_numbers<[1], [0], [0], [1], [0, 0, 1, 1], [], []>} : vector<64x64xf32>, vector<64x3xf32>, vector<64x3xf32> -> vector<64x3xf32>
    %26 = arith.addf %21, %25 : vector<64x3xf32>
    %27 = vector.extract_strided_slice %17 {offsets = [0, 1], sizes = [64, 3], strides = [1, 1]} : vector<64x12xf32> to vector<64x3xf32>
    %c0_19 = arith.constant 0 : index
    %c1 = arith.constant 1 : index
    %c0_20 = arith.constant 0 : index
    %c0_21 = arith.constant 0 : index
    %28 = vector.load %arg4[%c0_19, %c1, %c0_20, %c0_21] : memref<1x9x64x64xf32, #tpu.memory_space<vmem>>, vector<1x1x64x64xf32>
    %29 = vector.shape_cast %28 : vector<1x1x64x64xf32> to vector<64x64xf32>
    %cst_22 = arith.constant dense<0.000000e+00> : vector<64x3xf32>
    %30 = tpu.matmul %29, %27, %cst_22 {dimension_numbers = #tpu.dot_dimension_numbers<[1], [0], [0], [1], [0, 0, 1, 1], [], []>} : vector<64x64xf32>, vector<64x3xf32>, vector<64x3xf32> -> vector<64x3xf32>
    %31 = arith.addf %26, %30 : vector<64x3xf32>
    %32 = vector.extract_strided_slice %17 {offsets = [0, 2], sizes = [64, 3], strides = [1, 1]} : vector<64x12xf32> to vector<64x3xf32>
    %c0_23 = arith.constant 0 : index
    %c2 = arith.constant 2 : index
    %c0_24 = arith.constant 0 : index
    %c0_25 = arith.constant 0 : index
    %33 = vector.load %arg4[%c0_23, %c2, %c0_24, %c0_25] : memref<1x9x64x64xf32, #tpu.memory_space<vmem>>, vector<1x1x64x64xf32>
    %34 = vector.shape_cast %33 : vector<1x1x64x64xf32> to vector<64x64xf32>
    %cst_26 = arith.constant dense<0.000000e+00> : vector<64x3xf32>
    %35 = tpu.matmul %34, %32, %cst_26 {dimension_numbers = #tpu.dot_dimension_numbers<[1], [0], [0], [1], [0, 0, 1, 1], [], []>} : vector<64x64xf32>, vector<64x3xf32>, vector<64x3xf32> -> vector<64x3xf32>
    %36 = arith.addf %31, %35 : vector<64x3xf32>
    %37 = vector.extract_strided_slice %17 {offsets = [0, 3], sizes = [64, 3], strides = [1, 1]} : vector<64x12xf32> to vector<64x3xf32>
    %c0_27 = arith.constant 0 : index
    %c3 = arith.constant 3 : index
    %c0_28 = arith.constant 0 : index
    %c0_29 = arith.constant 0 : index
    %38 = vector.load %arg4[%c0_27, %c3, %c0_28, %c0_29] : memref<1x9x64x64xf32, #tpu.memory_space<vmem>>, vector<1x1x64x64xf32>
    %39 = vector.shape_cast %38 : vector<1x1x64x64xf32> to vector<64x64xf32>
    %cst_30 = arith.constant dense<0.000000e+00> : vector<64x3xf32>
    %40 = tpu.matmul %39, %37, %cst_30 {dimension_numbers = #tpu.dot_dimension_numbers<[1], [0], [0], [1], [0, 0, 1, 1], [], []>} : vector<64x64xf32>, vector<64x3xf32>, vector<64x3xf32> -> vector<64x3xf32>
    %41 = arith.addf %36, %40 : vector<64x3xf32>
    %42 = vector.extract_strided_slice %17 {offsets = [0, 4], sizes = [64, 3], strides = [1, 1]} : vector<64x12xf32> to vector<64x3xf32>
    %c0_31 = arith.constant 0 : index
    %c4 = arith.constant 4 : index
    %c0_32 = arith.constant 0 : index
    %c0_33 = arith.constant 0 : index
    %43 = vector.load %arg4[%c0_31, %c4, %c0_32, %c0_33] : memref<1x9x64x64xf32, #tpu.memory_space<vmem>>, vector<1x1x64x64xf32>
    %44 = vector.shape_cast %43 : vector<1x1x64x64xf32> to vector<64x64xf32>
    %cst_34 = arith.constant dense<0.000000e+00> : vector<64x3xf32>
    %45 = tpu.matmul %44, %42, %cst_34 {dimension_numbers = #tpu.dot_dimension_numbers<[1], [0], [0], [1], [0, 0, 1, 1], [], []>} : vector<64x64xf32>, vector<64x3xf32>, vector<64x3xf32> -> vector<64x3xf32>
    %46 = arith.addf %41, %45 : vector<64x3xf32>
    %47 = vector.extract_strided_slice %17 {offsets = [0, 5], sizes = [64, 3], strides = [1, 1]} : vector<64x12xf32> to vector<64x3xf32>
    %c0_35 = arith.constant 0 : index
    %c5 = arith.constant 5 : index
    %c0_36 = arith.constant 0 : index
    %c0_37 = arith.constant 0 : index
    %48 = vector.load %arg4[%c0_35, %c5, %c0_36, %c0_37] : memref<1x9x64x64xf32, #tpu.memory_space<vmem>>, vector<1x1x64x64xf32>
    %49 = vector.shape_cast %48 : vector<1x1x64x64xf32> to vector<64x64xf32>
    %cst_38 = arith.constant dense<0.000000e+00> : vector<64x3xf32>
    %50 = tpu.matmul %49, %47, %cst_38 {dimension_numbers = #tpu.dot_dimension_numbers<[1], [0], [0], [1], [0, 0, 1, 1], [], []>} : vector<64x64xf32>, vector<64x3xf32>, vector<64x3xf32> -> vector<64x3xf32>
    %51 = arith.addf %46, %50 : vector<64x3xf32>
    %52 = vector.extract_strided_slice %17 {offsets = [0, 6], sizes = [64, 3], strides = [1, 1]} : vector<64x12xf32> to vector<64x3xf32>
    %c0_39 = arith.constant 0 : index
    %c6 = arith.constant 6 : index
    %c0_40 = arith.constant 0 : index
    %c0_41 = arith.constant 0 : index
    %53 = vector.load %arg4[%c0_39, %c6, %c0_40, %c0_41] : memref<1x9x64x64xf32, #tpu.memory_space<vmem>>, vector<1x1x64x64xf32>
    %54 = vector.shape_cast %53 : vector<1x1x64x64xf32> to vector<64x64xf32>
    %cst_42 = arith.constant dense<0.000000e+00> : vector<64x3xf32>
    %55 = tpu.matmul %54, %52, %cst_42 {dimension_numbers = #tpu.dot_dimension_numbers<[1], [0], [0], [1], [0, 0, 1, 1], [], []>} : vector<64x64xf32>, vector<64x3xf32>, vector<64x3xf32> -> vector<64x3xf32>
    %56 = arith.addf %51, %55 : vector<64x3xf32>
    %57 = vector.extract_strided_slice %17 {offsets = [0, 7], sizes = [64, 3], strides = [1, 1]} : vector<64x12xf32> to vector<64x3xf32>
    %c0_43 = arith.constant 0 : index
    %c7 = arith.constant 7 : index
    %c0_44 = arith.constant 0 : index
    %c0_45 = arith.constant 0 : index
    %58 = vector.load %arg4[%c0_43, %c7, %c0_44, %c0_45] : memref<1x9x64x64xf32, #tpu.memory_space<vmem>>, vector<1x1x64x64xf32>
    %59 = vector.shape_cast %58 : vector<1x1x64x64xf32> to vector<64x64xf32>
    %cst_46 = arith.constant dense<0.000000e+00> : vector<64x3xf32>
    %60 = tpu.matmul %59, %57, %cst_46 {dimension_numbers = #tpu.dot_dimension_numbers<[1], [0], [0], [1], [0, 0, 1, 1], [], []>} : vector<64x64xf32>, vector<64x3xf32>, vector<64x3xf32> -> vector<64x3xf32>
    %61 = arith.addf %56, %60 : vector<64x3xf32>
    %62 = vector.extract_strided_slice %17 {offsets = [0, 8], sizes = [64, 3], strides = [1, 1]} : vector<64x12xf32> to vector<64x3xf32>
    %c0_47 = arith.constant 0 : index
    %c8 = arith.constant 8 : index
    %c0_48 = arith.constant 0 : index
    %c0_49 = arith.constant 0 : index
    %63 = vector.load %arg4[%c0_47, %c8, %c0_48, %c0_49] : memref<1x9x64x64xf32, #tpu.memory_space<vmem>>, vector<1x1x64x64xf32>
    %64 = vector.shape_cast %63 : vector<1x1x64x64xf32> to vector<64x64xf32>
    %cst_50 = arith.constant dense<0.000000e+00> : vector<64x3xf32>
    %65 = tpu.matmul %64, %62, %cst_50 {dimension_numbers = #tpu.dot_dimension_numbers<[1], [0], [0], [1], [0, 0, 1, 1], [], []>} : vector<64x64xf32>, vector<64x3xf32>, vector<64x3xf32> -> vector<64x3xf32>
    %66 = arith.addf %61, %65 : vector<64x3xf32>
    %c0_51 = arith.constant 0 : index
    %c0_52 = arith.constant 0 : index
    %c0_53 = arith.constant 0 : index
    %c0_54 = arith.constant 0 : index
    %67 = vector.load %arg10[%c0_51, %c0_52, %c0_53, %c0_54] : memref<1x1x64x3xf32, #tpu.memory_space<vmem>>, vector<1x1x64x3xf32>
    %68 = vector.shape_cast %67 : vector<1x1x64x3xf32> to vector<64x3xf32>
    %69 = arith.addf %68, %66 : vector<64x3xf32>
    %c0_55 = arith.constant 0 : index
    %c0_56 = arith.constant 0 : index
    %c0_57 = arith.constant 0 : index
    %c0_58 = arith.constant 0 : index
    %70 = vector.load %arg10[%c0_55, %c0_56, %c0_57, %c0_58] : memref<1x1x64x3xf32, #tpu.memory_space<vmem>>, vector<1x1x64x3xf32>
    %71 = vector.shape_cast %70 : vector<1x1x64x3xf32> to vector<64x3xf32>
    %72 = vector.shape_cast %69 : vector<64x3xf32> to vector<1x1x64x3xf32>
    tpu.vector_store %arg10[%c0_55, %c0_56, %c0_57, %c0_58], %72 {strides = array<i32>} : memref<1x1x64x3xf32, #tpu.memory_space<vmem>>, vector<1x1x64x3xf32>,
    return
  }
  func.func @transform_0(%arg0: i32, %arg1: i32, %arg2: i32) -> (i32, i32, i32, i32) {
    %0 = arith.addi %arg1, %arg2 : i32
    %c0_i32 = arith.constant 0 : i32
    %c0_i32_0 = arith.constant 0 : i32
    %c0_i32_1 = arith.constant 0 : i32
    return %arg0, %0, %c0_i32, %c0_i32_0 : i32, i32, i32, i32
  }
  func.func @transform_1(%arg0: i32, %arg1: i32, %arg2: i32) -> (i32, i32, i32, i32) {
    %c0_i32 = arith.constant 0 : i32
    %c0_i32_0 = arith.constant 0 : i32
    %c0_i32_1 = arith.constant 0 : i32
    %c0_i32_2 = arith.constant 0 : i32
    return %arg2, %c0_i32, %c0_i32_0, %c0_i32_1 : i32, i32, i32, i32
  }
  func.func @transform_2(%arg0: i32, %arg1: i32, %arg2: i32) -> (i32, i32, i32) {
    %0 = arith.addi %arg1, %arg2 : i32
    %c0_i32 = arith.constant 0 : i32
    %c0_i32_0 = arith.constant 0 : i32
    %c0_i32_1 = arith.constant 0 : i32
    return %0, %c0_i32, %c0_i32_0 : i32, i32, i32
  }
  func.func @transform_3(%arg0: i32, %arg1: i32, %arg2: i32) -> (i32, i32) {
    %c0_i32 = arith.constant 0 : i32
    %c0_i32_0 = arith.constant 0 : i32
    %c0_i32_1 = arith.constant 0 : i32
    return %c0_i32, %c0_i32_0 : i32, i32
  }
  func.func @transform_4(%arg0: i32, %arg1: i32, %arg2: i32) -> (i32, i32) {
    %c0_i32 = arith.constant 0 : i32
    %c0_i32_0 = arith.constant 0 : i32
    %c0_i32_1 = arith.constant 0 : i32
    return %c0_i32, %c0_i32_0 : i32, i32
  }
  func.func @transform_5(%arg0: i32, %arg1: i32, %arg2: i32) -> (i32, i32) {
    %c0_i32 = arith.constant 0 : i32
    %c0_i32_0 = arith.constant 0 : i32
    %c0_i32_1 = arith.constant 0 : i32
    return %c0_i32, %c0_i32_0 : i32, i32
  }
  func.func @transform_6(%arg0: i32, %arg1: i32, %arg2: i32) -> (i32, i32) {
    %c0_i32 = arith.constant 0 : i32
    %c0_i32_0 = arith.constant 0 : i32
    %c0_i32_1 = arith.constant 0 : i32
    return %c0_i32, %c0_i32_0 : i32, i32
  }
  func.func @transform_7(%arg0: i32, %arg1: i32, %arg2: i32) -> (i32, i32, i32, i32) {
    %c0_i32 = arith.constant 0 : i32
    %c0_i32_0 = arith.constant 0 : i32
    %c0_i32_1 = arith.constant 0 : i32
    return %arg0, %arg1, %c0_i32, %c0_i32_0 : i32, i32, i32, i32
  }
}

module attributes {stable_mosaic.version = 11 : i64} {
  func.func @_matmul_cs_kernel(%arg0: i32, %arg1: i32, %arg2: memref<1x1x64x1xf32, #tpu.memory_space<vmem>>, %arg3: memref<256x64xf32, #tpu.memory_space<vmem>>, %arg4: memref<256x1xf32, #tpu.memory_space<vmem>>, %arg5: memref<1x1x256x1xf32, #tpu.memory_space<vmem>>) attributes {dimension_semantics = [#tpu.dimension_semantics<parallel>, #tpu.dimension_semantics<parallel>], iteration_bounds = array<i64: 2, 2>, scalar_prefetch = 0 : i64, scratch_operands = 0 : i64, tpu.core_type = #tpu.core_type<tc>, window_params = [{transform_indices = @transform_0, window_bounds = array<i64: 1, 1, 64, 1>}, {pipeline_mode = #tpu.pipeline_mode<synchronous>, transform_indices = @transform_1, window_bounds = array<i64: 256, 64>}, {pipeline_mode = #tpu.pipeline_mode<synchronous>, transform_indices = @transform_2, window_bounds = array<i64: 256, 1>}, {transform_indices = @transform_3, window_bounds = array<i64: 1, 1, 256, 1>}]} {
    %c0 = arith.constant 0 : index
    %c0_0 = arith.constant 0 : index
    %0 = vector.load %arg3[%c0, %c0_0] : memref<256x64xf32, #tpu.memory_space<vmem>>, vector<256x64xf32>
    %c0_1 = arith.constant 0 : index
    %c0_2 = arith.constant 0 : index
    %c0_3 = arith.constant 0 : index
    %c0_4 = arith.constant 0 : index
    %1 = vector.load %arg2[%c0_1, %c0_2, %c0_3, %c0_4] : memref<1x1x64x1xf32, #tpu.memory_space<vmem>>, vector<1x1x64x1xf32>
    %2 = vector.shape_cast %1 : vector<1x1x64x1xf32> to vector<64x1xf32>
    %cst = arith.constant dense<0.000000e+00> : vector<256x1xf32>
    %3 = tpu.matmul %0, %2, %cst {dimension_numbers = #tpu.dot_dimension_numbers<[1], [0], [0], [1], [0, 0, 1, 1], [], []>} : vector<256x64xf32>, vector<64x1xf32>, vector<256x1xf32> -> vector<256x1xf32>
    %c0_5 = arith.constant 0 : index
    %c0_6 = arith.constant 0 : index
    %4 = vector.load %arg4[%c0_5, %c0_6] : memref<256x1xf32, #tpu.memory_space<vmem>>, vector<256x1xf32>
    %5 = arith.addf %3, %4 : vector<256x1xf32>
    %c0_7 = arith.constant 0 : index
    %c0_8 = arith.constant 0 : index
    %c0_9 = arith.constant 0 : index
    %c0_10 = arith.constant 0 : index
    %6 = vector.load %arg5[%c0_7, %c0_8, %c0_9, %c0_10] : memref<1x1x256x1xf32, #tpu.memory_space<vmem>>, vector<1x1x256x1xf32>
    %7 = vector.shape_cast %6 : vector<1x1x256x1xf32> to vector<256x1xf32>
    %8 = vector.shape_cast %5 : vector<256x1xf32> to vector<1x1x256x1xf32>
    tpu.vector_store %arg5[%c0_7, %c0_8, %c0_9, %c0_10], %8 {strides = array<i32>} : memref<1x1x256x1xf32, #tpu.memory_space<vmem>>, vector<1x1x256x1xf32>,
    return
  }
  func.func @transform_0(%arg0: i32, %arg1: i32) -> (i32, i32, i32, i32) {
    %c0_i32 = arith.constant 0 : i32
    %c0_i32_0 = arith.constant 0 : i32
    %c0_i32_1 = arith.constant 0 : i32
    return %arg0, %arg1, %c0_i32, %c0_i32_0 : i32, i32, i32, i32
  }
  func.func @transform_1(%arg0: i32, %arg1: i32) -> (i32, i32) {
    %c0_i32 = arith.constant 0 : i32
    %c0_i32_0 = arith.constant 0 : i32
    %c0_i32_1 = arith.constant 0 : i32
    return %c0_i32, %c0_i32_0 : i32, i32
  }
  func.func @transform_2(%arg0: i32, %arg1: i32) -> (i32, i32) {
    %c0_i32 = arith.constant 0 : i32
    %c0_i32_0 = arith.constant 0 : i32
    %c0_i32_1 = arith.constant 0 : i32
    return %c0_i32, %c0_i32_0 : i32, i32
  }
  func.func @transform_3(%arg0: i32, %arg1: i32) -> (i32, i32, i32, i32) {
    %c0_i32 = arith.constant 0 : i32
    %c0_i32_0 = arith.constant 0 : i32
    %c0_i32_1 = arith.constant 0 : i32
    return %arg0, %arg1, %c0_i32, %c0_i32_0 : i32, i32, i32, i32
  }
}

module attributes {stable_mosaic.version = 11 : i64} {
  func.func @_conv_fused_kernel(%arg0: i32, %arg1: i32, %arg2: i32, %arg3: memref<1x1x64x20xf32, #tpu.memory_space<vmem>>, %arg4: memref<1x9x32x64xf32, #tpu.memory_space<vmem>>, %arg5: memref<1x1x20xf32, #tpu.memory_space<vmem>>, %arg6: memref<64x1xf32, #tpu.memory_space<vmem>>, %arg7: memref<64x1xf32, #tpu.memory_space<vmem>>, %arg8: memref<64x1xf32, #tpu.memory_space<vmem>>, %arg9: memref<32x1xf32, #tpu.memory_space<vmem>>, %arg10: memref<1x1x32x8xf32, #tpu.memory_space<vmem>>) attributes {dimension_semantics = [#tpu.dimension_semantics<parallel>, #tpu.dimension_semantics<parallel>, #tpu.dimension_semantics<arbitrary>], iteration_bounds = array<i64: 2, 4, 3>, scalar_prefetch = 0 : i64, scratch_operands = 0 : i64, tpu.core_type = #tpu.core_type<tc>, window_params = [{transform_indices = @transform_0, window_bounds = array<i64: 1, 1, 64, 20>}, {transform_indices = @transform_1, window_bounds = array<i64: 1, 9, 32, 64>}, {transform_indices = @transform_2, window_bounds = array<i64: 1, 1, 20>}, {pipeline_mode = #tpu.pipeline_mode<synchronous>, transform_indices = @transform_3, window_bounds = array<i64: 64, 1>}, {pipeline_mode = #tpu.pipeline_mode<synchronous>, transform_indices = @transform_4, window_bounds = array<i64: 64, 1>}, {pipeline_mode = #tpu.pipeline_mode<synchronous>, transform_indices = @transform_5, window_bounds = array<i64: 64, 1>}, {pipeline_mode = #tpu.pipeline_mode<synchronous>, transform_indices = @transform_6, window_bounds = array<i64: 32, 1>}, {transform_indices = @transform_7, window_bounds = array<i64: 1, 1, 32, 8>}]} {
    %c0 = arith.constant 0 : index
    %c0_0 = arith.constant 0 : index
    %c0_1 = arith.constant 0 : index
    %c0_2 = arith.constant 0 : index
    %0 = vector.load %arg3[%c0, %c0_0, %c0_1, %c0_2] : memref<1x1x64x20xf32, #tpu.memory_space<vmem>>, vector<1x1x64x20xf32>
    %1 = vector.shape_cast %0 : vector<1x1x64x20xf32> to vector<64x20xf32>
    %c0_3 = arith.constant 0 : index
    %c0_4 = arith.constant 0 : index
    %2 = vector.load %arg6[%c0_3, %c0_4] : memref<64x1xf32, #tpu.memory_space<vmem>>, vector<64x1xf32>
    %3 = vector.broadcast %2 : vector<64x1xf32> to vector<64x20xf32>
    %4 = arith.mulf %1, %3 : vector<64x20xf32>
    %c0_5 = arith.constant 0 : index
    %c0_6 = arith.constant 0 : index
    %5 = vector.load %arg7[%c0_5, %c0_6] : memref<64x1xf32, #tpu.memory_space<vmem>>, vector<64x1xf32>
    %6 = vector.broadcast %5 : vector<64x1xf32> to vector<64x20xf32>
    %7 = arith.addf %4, %6 : vector<64x20xf32>
    %cst = arith.constant 0.000000e+00 : f32
    %8 = vector.broadcast %cst : f32 to vector<64x20xf32>
    %9 = arith.cmpf oge, %7, %8 : vector<64x20xf32>
    %c0_7 = arith.constant 0 : index
    %c0_8 = arith.constant 0 : index
    %10 = vector.load %arg8[%c0_7, %c0_8] : memref<64x1xf32, #tpu.memory_space<vmem>>, vector<64x1xf32>
    %11 = vector.broadcast %10 : vector<64x1xf32> to vector<64x20xf32>
    %12 = arith.mulf %11, %7 : vector<64x20xf32>
    %13 = arith.select %9, %7, %12 : vector<64x20xi1>, vector<64x20xf32>
    %c0_9 = arith.constant 0 : index
    %c0_10 = arith.constant 0 : index
    %c0_11 = arith.constant 0 : index
    %14 = vector.load %arg5[%c0_9, %c0_10, %c0_11] : memref<1x1x20xf32, #tpu.memory_space<vmem>>, vector<1x1x20xf32>
    %15 = vector.shape_cast %14 : vector<1x1x20xf32> to vector<1x20xf32>
    %16 = vector.broadcast %15 : vector<1x20xf32> to vector<64x20xf32>
    %17 = arith.mulf %13, %16 : vector<64x20xf32>
    %c0_i32 = arith.constant 0 : i32
    %18 = arith.cmpi eq, %arg2, %c0_i32 : i32
    %19 = arith.extui %18 : i1 to i32
    %c0_i32_12 = arith.constant 0 : i32
    %20 = arith.cmpi ne, %19, %c0_i32_12 : i32
    scf.if %20 {
      %c0_59 = arith.constant 0 : index
      %c0_60 = arith.constant 0 : index
      %73 = vector.load %arg9[%c0_59, %c0_60] : memref<32x1xf32, #tpu.memory_space<vmem>>, vector<32x1xf32>
      %74 = vector.shape_cast %73 : vector<32x1xf32> to vector<32x1xf32>
      %75 = vector.broadcast %74 : vector<32x1xf32> to vector<32x8xf32>
      %c0_61 = arith.constant 0 : index
      %c0_62 = arith.constant 0 : index
      %c0_63 = arith.constant 0 : index
      %c0_64 = arith.constant 0 : index
      %76 = vector.load %arg10[%c0_61, %c0_62, %c0_63, %c0_64] : memref<1x1x32x8xf32, #tpu.memory_space<vmem>>, vector<1x1x32x8xf32>
      %77 = vector.shape_cast %76 : vector<1x1x32x8xf32> to vector<32x8xf32>
      %78 = vector.shape_cast %75 : vector<32x8xf32> to vector<1x1x32x8xf32>
      tpu.vector_store %arg10[%c0_61, %c0_62, %c0_63, %c0_64], %78 {strides = array<i32>} : memref<1x1x32x8xf32, #tpu.memory_space<vmem>>, vector<1x1x32x8xf32>,
    } else {
    }
    %cst_13 = arith.constant 0.000000e+00 : f32
    %21 = vector.broadcast %cst_13 : f32 to vector<32x8xf32>
    %22 = vector.extract_strided_slice %17 {offsets = [0, 0], sizes = [64, 8], strides = [1, 1]} : vector<64x20xf32> to vector<64x8xf32>
    %c0_14 = arith.constant 0 : index
    %c0_15 = arith.constant 0 : index
    %c0_16 = arith.constant 0 : index
    %c0_17 = arith.constant 0 : index
    %23 = vector.load %arg4[%c0_14, %c0_15, %c0_16, %c0_17] : memref<1x9x32x64xf32, #tpu.memory_space<vmem>>, vector<1x1x32x64xf32>
    %24 = vector.shape_cast %23 : vector<1x1x32x64xf32> to vector<32x64xf32>
    %cst_18 = arith.constant dense<0.000000e+00> : vector<32x8xf32>
    %25 = tpu.matmul %24, %22, %cst_18 {dimension_numbers = #tpu.dot_dimension_numbers<[1], [0], [0], [1], [0, 0, 1, 1], [], []>} : vector<32x64xf32>, vector<64x8xf32>, vector<32x8xf32> -> vector<32x8xf32>
    %26 = arith.addf %21, %25 : vector<32x8xf32>
    %27 = vector.extract_strided_slice %17 {offsets = [0, 1], sizes = [64, 8], strides = [1, 1]} : vector<64x20xf32> to vector<64x8xf32>
    %c0_19 = arith.constant 0 : index
    %c1 = arith.constant 1 : index
    %c0_20 = arith.constant 0 : index
    %c0_21 = arith.constant 0 : index
    %28 = vector.load %arg4[%c0_19, %c1, %c0_20, %c0_21] : memref<1x9x32x64xf32, #tpu.memory_space<vmem>>, vector<1x1x32x64xf32>
    %29 = vector.shape_cast %28 : vector<1x1x32x64xf32> to vector<32x64xf32>
    %cst_22 = arith.constant dense<0.000000e+00> : vector<32x8xf32>
    %30 = tpu.matmul %29, %27, %cst_22 {dimension_numbers = #tpu.dot_dimension_numbers<[1], [0], [0], [1], [0, 0, 1, 1], [], []>} : vector<32x64xf32>, vector<64x8xf32>, vector<32x8xf32> -> vector<32x8xf32>
    %31 = arith.addf %26, %30 : vector<32x8xf32>
    %32 = vector.extract_strided_slice %17 {offsets = [0, 2], sizes = [64, 8], strides = [1, 1]} : vector<64x20xf32> to vector<64x8xf32>
    %c0_23 = arith.constant 0 : index
    %c2 = arith.constant 2 : index
    %c0_24 = arith.constant 0 : index
    %c0_25 = arith.constant 0 : index
    %33 = vector.load %arg4[%c0_23, %c2, %c0_24, %c0_25] : memref<1x9x32x64xf32, #tpu.memory_space<vmem>>, vector<1x1x32x64xf32>
    %34 = vector.shape_cast %33 : vector<1x1x32x64xf32> to vector<32x64xf32>
    %cst_26 = arith.constant dense<0.000000e+00> : vector<32x8xf32>
    %35 = tpu.matmul %34, %32, %cst_26 {dimension_numbers = #tpu.dot_dimension_numbers<[1], [0], [0], [1], [0, 0, 1, 1], [], []>} : vector<32x64xf32>, vector<64x8xf32>, vector<32x8xf32> -> vector<32x8xf32>
    %36 = arith.addf %31, %35 : vector<32x8xf32>
    %37 = vector.extract_strided_slice %17 {offsets = [0, 4], sizes = [64, 8], strides = [1, 1]} : vector<64x20xf32> to vector<64x8xf32>
    %c0_27 = arith.constant 0 : index
    %c3 = arith.constant 3 : index
    %c0_28 = arith.constant 0 : index
    %c0_29 = arith.constant 0 : index
    %38 = vector.load %arg4[%c0_27, %c3, %c0_28, %c0_29] : memref<1x9x32x64xf32, #tpu.memory_space<vmem>>, vector<1x1x32x64xf32>
    %39 = vector.shape_cast %38 : vector<1x1x32x64xf32> to vector<32x64xf32>
    %cst_30 = arith.constant dense<0.000000e+00> : vector<32x8xf32>
    %40 = tpu.matmul %39, %37, %cst_30 {dimension_numbers = #tpu.dot_dimension_numbers<[1], [0], [0], [1], [0, 0, 1, 1], [], []>} : vector<32x64xf32>, vector<64x8xf32>, vector<32x8xf32> -> vector<32x8xf32>
    %41 = arith.addf %36, %40 : vector<32x8xf32>
    %42 = vector.extract_strided_slice %17 {offsets = [0, 5], sizes = [64, 8], strides = [1, 1]} : vector<64x20xf32> to vector<64x8xf32>
    %c0_31 = arith.constant 0 : index
    %c4 = arith.constant 4 : index
    %c0_32 = arith.constant 0 : index
    %c0_33 = arith.constant 0 : index
    %43 = vector.load %arg4[%c0_31, %c4, %c0_32, %c0_33] : memref<1x9x32x64xf32, #tpu.memory_space<vmem>>, vector<1x1x32x64xf32>
    %44 = vector.shape_cast %43 : vector<1x1x32x64xf32> to vector<32x64xf32>
    %cst_34 = arith.constant dense<0.000000e+00> : vector<32x8xf32>
    %45 = tpu.matmul %44, %42, %cst_34 {dimension_numbers = #tpu.dot_dimension_numbers<[1], [0], [0], [1], [0, 0, 1, 1], [], []>} : vector<32x64xf32>, vector<64x8xf32>, vector<32x8xf32> -> vector<32x8xf32>
    %46 = arith.addf %41, %45 : vector<32x8xf32>
    %47 = vector.extract_strided_slice %17 {offsets = [0, 6], sizes = [64, 8], strides = [1, 1]} : vector<64x20xf32> to vector<64x8xf32>
    %c0_35 = arith.constant 0 : index
    %c5 = arith.constant 5 : index
    %c0_36 = arith.constant 0 : index
    %c0_37 = arith.constant 0 : index
    %48 = vector.load %arg4[%c0_35, %c5, %c0_36, %c0_37] : memref<1x9x32x64xf32, #tpu.memory_space<vmem>>, vector<1x1x32x64xf32>
    %49 = vector.shape_cast %48 : vector<1x1x32x64xf32> to vector<32x64xf32>
    %cst_38 = arith.constant dense<0.000000e+00> : vector<32x8xf32>
    %50 = tpu.matmul %49, %47, %cst_38 {dimension_numbers = #tpu.dot_dimension_numbers<[1], [0], [0], [1], [0, 0, 1, 1], [], []>} : vector<32x64xf32>, vector<64x8xf32>, vector<32x8xf32> -> vector<32x8xf32>
    %51 = arith.addf %46, %50 : vector<32x8xf32>
    %52 = vector.extract_strided_slice %17 {offsets = [0, 8], sizes = [64, 8], strides = [1, 1]} : vector<64x20xf32> to vector<64x8xf32>
    %c0_39 = arith.constant 0 : index
    %c6 = arith.constant 6 : index
    %c0_40 = arith.constant 0 : index
    %c0_41 = arith.constant 0 : index
    %53 = vector.load %arg4[%c0_39, %c6, %c0_40, %c0_41] : memref<1x9x32x64xf32, #tpu.memory_space<vmem>>, vector<1x1x32x64xf32>
    %54 = vector.shape_cast %53 : vector<1x1x32x64xf32> to vector<32x64xf32>
    %cst_42 = arith.constant dense<0.000000e+00> : vector<32x8xf32>
    %55 = tpu.matmul %54, %52, %cst_42 {dimension_numbers = #tpu.dot_dimension_numbers<[1], [0], [0], [1], [0, 0, 1, 1], [], []>} : vector<32x64xf32>, vector<64x8xf32>, vector<32x8xf32> -> vector<32x8xf32>
    %56 = arith.addf %51, %55 : vector<32x8xf32>
    %57 = vector.extract_strided_slice %17 {offsets = [0, 9], sizes = [64, 8], strides = [1, 1]} : vector<64x20xf32> to vector<64x8xf32>
    %c0_43 = arith.constant 0 : index
    %c7 = arith.constant 7 : index
    %c0_44 = arith.constant 0 : index
    %c0_45 = arith.constant 0 : index
    %58 = vector.load %arg4[%c0_43, %c7, %c0_44, %c0_45] : memref<1x9x32x64xf32, #tpu.memory_space<vmem>>, vector<1x1x32x64xf32>
    %59 = vector.shape_cast %58 : vector<1x1x32x64xf32> to vector<32x64xf32>
    %cst_46 = arith.constant dense<0.000000e+00> : vector<32x8xf32>
    %60 = tpu.matmul %59, %57, %cst_46 {dimension_numbers = #tpu.dot_dimension_numbers<[1], [0], [0], [1], [0, 0, 1, 1], [], []>} : vector<32x64xf32>, vector<64x8xf32>, vector<32x8xf32> -> vector<32x8xf32>
    %61 = arith.addf %56, %60 : vector<32x8xf32>
    %62 = vector.extract_strided_slice %17 {offsets = [0, 10], sizes = [64, 8], strides = [1, 1]} : vector<64x20xf32> to vector<64x8xf32>
    %c0_47 = arith.constant 0 : index
    %c8 = arith.constant 8 : index
    %c0_48 = arith.constant 0 : index
    %c0_49 = arith.constant 0 : index
    %63 = vector.load %arg4[%c0_47, %c8, %c0_48, %c0_49] : memref<1x9x32x64xf32, #tpu.memory_space<vmem>>, vector<1x1x32x64xf32>
    %64 = vector.shape_cast %63 : vector<1x1x32x64xf32> to vector<32x64xf32>
    %cst_50 = arith.constant dense<0.000000e+00> : vector<32x8xf32>
    %65 = tpu.matmul %64, %62, %cst_50 {dimension_numbers = #tpu.dot_dimension_numbers<[1], [0], [0], [1], [0, 0, 1, 1], [], []>} : vector<32x64xf32>, vector<64x8xf32>, vector<32x8xf32> -> vector<32x8xf32>
    %66 = arith.addf %61, %65 : vector<32x8xf32>
    %c0_51 = arith.constant 0 : index
    %c0_52 = arith.constant 0 : index
    %c0_53 = arith.constant 0 : index
    %c0_54 = arith.constant 0 : index
    %67 = vector.load %arg10[%c0_51, %c0_52, %c0_53, %c0_54] : memref<1x1x32x8xf32, #tpu.memory_space<vmem>>, vector<1x1x32x8xf32>
    %68 = vector.shape_cast %67 : vector<1x1x32x8xf32> to vector<32x8xf32>
    %69 = arith.addf %68, %66 : vector<32x8xf32>
    %c0_55 = arith.constant 0 : index
    %c0_56 = arith.constant 0 : index
    %c0_57 = arith.constant 0 : index
    %c0_58 = arith.constant 0 : index
    %70 = vector.load %arg10[%c0_55, %c0_56, %c0_57, %c0_58] : memref<1x1x32x8xf32, #tpu.memory_space<vmem>>, vector<1x1x32x8xf32>
    %71 = vector.shape_cast %70 : vector<1x1x32x8xf32> to vector<32x8xf32>
    %72 = vector.shape_cast %69 : vector<32x8xf32> to vector<1x1x32x8xf32>
    tpu.vector_store %arg10[%c0_55, %c0_56, %c0_57, %c0_58], %72 {strides = array<i32>} : memref<1x1x32x8xf32, #tpu.memory_space<vmem>>, vector<1x1x32x8xf32>,
    return
  }
  func.func @transform_0(%arg0: i32, %arg1: i32, %arg2: i32) -> (i32, i32, i32, i32) {
    %0 = arith.addi %arg1, %arg2 : i32
    %c0_i32 = arith.constant 0 : i32
    %c0_i32_0 = arith.constant 0 : i32
    %c0_i32_1 = arith.constant 0 : i32
    return %arg0, %0, %c0_i32, %c0_i32_0 : i32, i32, i32, i32
  }
  func.func @transform_1(%arg0: i32, %arg1: i32, %arg2: i32) -> (i32, i32, i32, i32) {
    %c0_i32 = arith.constant 0 : i32
    %c0_i32_0 = arith.constant 0 : i32
    %c0_i32_1 = arith.constant 0 : i32
    %c0_i32_2 = arith.constant 0 : i32
    return %arg2, %c0_i32, %c0_i32_0, %c0_i32_1 : i32, i32, i32, i32
  }
  func.func @transform_2(%arg0: i32, %arg1: i32, %arg2: i32) -> (i32, i32, i32) {
    %0 = arith.addi %arg1, %arg2 : i32
    %c0_i32 = arith.constant 0 : i32
    %c0_i32_0 = arith.constant 0 : i32
    %c0_i32_1 = arith.constant 0 : i32
    return %0, %c0_i32, %c0_i32_0 : i32, i32, i32
  }
  func.func @transform_3(%arg0: i32, %arg1: i32, %arg2: i32) -> (i32, i32) {
    %c0_i32 = arith.constant 0 : i32
    %c0_i32_0 = arith.constant 0 : i32
    %c0_i32_1 = arith.constant 0 : i32
    return %c0_i32, %c0_i32_0 : i32, i32
  }
  func.func @transform_4(%arg0: i32, %arg1: i32, %arg2: i32) -> (i32, i32) {
    %c0_i32 = arith.constant 0 : i32
    %c0_i32_0 = arith.constant 0 : i32
    %c0_i32_1 = arith.constant 0 : i32
    return %c0_i32, %c0_i32_0 : i32, i32
  }
  func.func @transform_5(%arg0: i32, %arg1: i32, %arg2: i32) -> (i32, i32) {
    %c0_i32 = arith.constant 0 : i32
    %c0_i32_0 = arith.constant 0 : i32
    %c0_i32_1 = arith.constant 0 : i32
    return %c0_i32, %c0_i32_0 : i32, i32
  }
  func.func @transform_6(%arg0: i32, %arg1: i32, %arg2: i32) -> (i32, i32) {
    %c0_i32 = arith.constant 0 : i32
    %c0_i32_0 = arith.constant 0 : i32
    %c0_i32_1 = arith.constant 0 : i32
    return %c0_i32, %c0_i32_0 : i32, i32
  }
  func.func @transform_7(%arg0: i32, %arg1: i32, %arg2: i32) -> (i32, i32, i32, i32) {
    %c0_i32 = arith.constant 0 : i32
    %c0_i32_0 = arith.constant 0 : i32
    %c0_i32_1 = arith.constant 0 : i32
    return %arg0, %arg1, %c0_i32, %c0_i32_0 : i32, i32, i32, i32
  }
}

module attributes {stable_mosaic.version = 11 : i64} {
  func.func @_matmul_cs_kernel(%arg0: i32, %arg1: i32, %arg2: memref<1x1x32x4xf32, #tpu.memory_space<vmem>>, %arg3: memref<128x32xf32, #tpu.memory_space<vmem>>, %arg4: memref<128x1xf32, #tpu.memory_space<vmem>>, %arg5: memref<1x1x128x4xf32, #tpu.memory_space<vmem>>) attributes {dimension_semantics = [#tpu.dimension_semantics<parallel>, #tpu.dimension_semantics<parallel>], iteration_bounds = array<i64: 2, 4>, scalar_prefetch = 0 : i64, scratch_operands = 0 : i64, tpu.core_type = #tpu.core_type<tc>, window_params = [{transform_indices = @transform_0, window_bounds = array<i64: 1, 1, 32, 4>}, {pipeline_mode = #tpu.pipeline_mode<synchronous>, transform_indices = @transform_1, window_bounds = array<i64: 128, 32>}, {pipeline_mode = #tpu.pipeline_mode<synchronous>, transform_indices = @transform_2, window_bounds = array<i64: 128, 1>}, {transform_indices = @transform_3, window_bounds = array<i64: 1, 1, 128, 4>}]} {
    %c0 = arith.constant 0 : index
    %c0_0 = arith.constant 0 : index
    %0 = vector.load %arg3[%c0, %c0_0] : memref<128x32xf32, #tpu.memory_space<vmem>>, vector<128x32xf32>
    %c0_1 = arith.constant 0 : index
    %c0_2 = arith.constant 0 : index
    %c0_3 = arith.constant 0 : index
    %c0_4 = arith.constant 0 : index
    %1 = vector.load %arg2[%c0_1, %c0_2, %c0_3, %c0_4] : memref<1x1x32x4xf32, #tpu.memory_space<vmem>>, vector<1x1x32x4xf32>
    %2 = vector.shape_cast %1 : vector<1x1x32x4xf32> to vector<32x4xf32>
    %cst = arith.constant dense<0.000000e+00> : vector<128x4xf32>
    %3 = tpu.matmul %0, %2, %cst {dimension_numbers = #tpu.dot_dimension_numbers<[1], [0], [0], [1], [0, 0, 1, 1], [], []>} : vector<128x32xf32>, vector<32x4xf32>, vector<128x4xf32> -> vector<128x4xf32>
    %c0_5 = arith.constant 0 : index
    %c0_6 = arith.constant 0 : index
    %4 = vector.load %arg4[%c0_5, %c0_6] : memref<128x1xf32, #tpu.memory_space<vmem>>, vector<128x1xf32>
    %5 = vector.broadcast %4 : vector<128x1xf32> to vector<128x4xf32>
    %6 = arith.addf %3, %5 : vector<128x4xf32>
    %c0_7 = arith.constant 0 : index
    %c0_8 = arith.constant 0 : index
    %c0_9 = arith.constant 0 : index
    %c0_10 = arith.constant 0 : index
    %7 = vector.load %arg5[%c0_7, %c0_8, %c0_9, %c0_10] : memref<1x1x128x4xf32, #tpu.memory_space<vmem>>, vector<1x1x128x4xf32>
    %8 = vector.shape_cast %7 : vector<1x1x128x4xf32> to vector<128x4xf32>
    %9 = vector.shape_cast %6 : vector<128x4xf32> to vector<1x1x128x4xf32>
    tpu.vector_store %arg5[%c0_7, %c0_8, %c0_9, %c0_10], %9 {strides = array<i32>} : memref<1x1x128x4xf32, #tpu.memory_space<vmem>>, vector<1x1x128x4xf32>,
    return
  }
  func.func @transform_0(%arg0: i32, %arg1: i32) -> (i32, i32, i32, i32) {
    %c0_i32 = arith.constant 0 : i32
    %c0_i32_0 = arith.constant 0 : i32
    %c0_i32_1 = arith.constant 0 : i32
    return %arg0, %arg1, %c0_i32, %c0_i32_0 : i32, i32, i32, i32
  }
  func.func @transform_1(%arg0: i32, %arg1: i32) -> (i32, i32) {
    %c0_i32 = arith.constant 0 : i32
    %c0_i32_0 = arith.constant 0 : i32
    %c0_i32_1 = arith.constant 0 : i32
    return %c0_i32, %c0_i32_0 : i32, i32
  }
  func.func @transform_2(%arg0: i32, %arg1: i32) -> (i32, i32) {
    %c0_i32 = arith.constant 0 : i32
    %c0_i32_0 = arith.constant 0 : i32
    %c0_i32_1 = arith.constant 0 : i32
    return %c0_i32, %c0_i32_0 : i32, i32
  }
  func.func @transform_3(%arg0: i32, %arg1: i32) -> (i32, i32, i32, i32) {
    %c0_i32 = arith.constant 0 : i32
    %c0_i32_0 = arith.constant 0 : i32
    %c0_i32_1 = arith.constant 0 : i32
    return %arg0, %arg1, %c0_i32, %c0_i32_0 : i32, i32, i32, i32
  }
}

module attributes {stable_mosaic.version = 11 : i64} {
  func.func @_conv_fused_kernel(%arg0: i32, %arg1: i32, %arg2: i32, %arg3: memref<1x1x32x42xf32, #tpu.memory_space<vmem>>, %arg4: memref<1x9x16x32xf32, #tpu.memory_space<vmem>>, %arg5: memref<1x1x42xf32, #tpu.memory_space<vmem>>, %arg6: memref<32x1xf32, #tpu.memory_space<vmem>>, %arg7: memref<32x1xf32, #tpu.memory_space<vmem>>, %arg8: memref<32x1xf32, #tpu.memory_space<vmem>>, %arg9: memref<16x1xf32, #tpu.memory_space<vmem>>, %arg10: memref<1x1x16x24xf32, #tpu.memory_space<vmem>>) attributes {dimension_semantics = [#tpu.dimension_semantics<parallel>, #tpu.dimension_semantics<parallel>, #tpu.dimension_semantics<arbitrary>], iteration_bounds = array<i64: 2, 8, 3>, scalar_prefetch = 0 : i64, scratch_operands = 0 : i64, tpu.core_type = #tpu.core_type<tc>, window_params = [{transform_indices = @transform_0, window_bounds = array<i64: 1, 1, 32, 42>}, {transform_indices = @transform_1, window_bounds = array<i64: 1, 9, 16, 32>}, {transform_indices = @transform_2, window_bounds = array<i64: 1, 1, 42>}, {pipeline_mode = #tpu.pipeline_mode<synchronous>, transform_indices = @transform_3, window_bounds = array<i64: 32, 1>}, {pipeline_mode = #tpu.pipeline_mode<synchronous>, transform_indices = @transform_4, window_bounds = array<i64: 32, 1>}, {pipeline_mode = #tpu.pipeline_mode<synchronous>, transform_indices = @transform_5, window_bounds = array<i64: 32, 1>}, {pipeline_mode = #tpu.pipeline_mode<synchronous>, transform_indices = @transform_6, window_bounds = array<i64: 16, 1>}, {transform_indices = @transform_7, window_bounds = array<i64: 1, 1, 16, 24>}]} {
    %c0 = arith.constant 0 : index
    %c0_0 = arith.constant 0 : index
    %c0_1 = arith.constant 0 : index
    %c0_2 = arith.constant 0 : index
    %0 = vector.load %arg3[%c0, %c0_0, %c0_1, %c0_2] : memref<1x1x32x42xf32, #tpu.memory_space<vmem>>, vector<1x1x32x42xf32>
    %1 = vector.shape_cast %0 : vector<1x1x32x42xf32> to vector<32x42xf32>
    %c0_3 = arith.constant 0 : index
    %c0_4 = arith.constant 0 : index
    %2 = vector.load %arg6[%c0_3, %c0_4] : memref<32x1xf32, #tpu.memory_space<vmem>>, vector<32x1xf32>
    %3 = vector.broadcast %2 : vector<32x1xf32> to vector<32x42xf32>
    %4 = arith.mulf %1, %3 : vector<32x42xf32>
    %c0_5 = arith.constant 0 : index
    %c0_6 = arith.constant 0 : index
    %5 = vector.load %arg7[%c0_5, %c0_6] : memref<32x1xf32, #tpu.memory_space<vmem>>, vector<32x1xf32>
    %6 = vector.broadcast %5 : vector<32x1xf32> to vector<32x42xf32>
    %7 = arith.addf %4, %6 : vector<32x42xf32>
    %cst = arith.constant 0.000000e+00 : f32
    %8 = vector.broadcast %cst : f32 to vector<32x42xf32>
    %9 = arith.cmpf oge, %7, %8 : vector<32x42xf32>
    %c0_7 = arith.constant 0 : index
    %c0_8 = arith.constant 0 : index
    %10 = vector.load %arg8[%c0_7, %c0_8] : memref<32x1xf32, #tpu.memory_space<vmem>>, vector<32x1xf32>
    %11 = vector.broadcast %10 : vector<32x1xf32> to vector<32x42xf32>
    %12 = arith.mulf %11, %7 : vector<32x42xf32>
    %13 = arith.select %9, %7, %12 : vector<32x42xi1>, vector<32x42xf32>
    %c0_9 = arith.constant 0 : index
    %c0_10 = arith.constant 0 : index
    %c0_11 = arith.constant 0 : index
    %14 = vector.load %arg5[%c0_9, %c0_10, %c0_11] : memref<1x1x42xf32, #tpu.memory_space<vmem>>, vector<1x1x42xf32>
    %15 = vector.shape_cast %14 : vector<1x1x42xf32> to vector<1x42xf32>
    %16 = vector.broadcast %15 : vector<1x42xf32> to vector<32x42xf32>
    %17 = arith.mulf %13, %16 : vector<32x42xf32>
    %c0_i32 = arith.constant 0 : i32
    %18 = arith.cmpi eq, %arg2, %c0_i32 : i32
    %19 = arith.extui %18 : i1 to i32
    %c0_i32_12 = arith.constant 0 : i32
    %20 = arith.cmpi ne, %19, %c0_i32_12 : i32
    scf.if %20 {
      %c0_59 = arith.constant 0 : index
      %c0_60 = arith.constant 0 : index
      %73 = vector.load %arg9[%c0_59, %c0_60] : memref<16x1xf32, #tpu.memory_space<vmem>>, vector<16x1xf32>
      %74 = vector.shape_cast %73 : vector<16x1xf32> to vector<16x1xf32>
      %75 = vector.broadcast %74 : vector<16x1xf32> to vector<16x24xf32>
      %c0_61 = arith.constant 0 : index
      %c0_62 = arith.constant 0 : index
      %c0_63 = arith.constant 0 : index
      %c0_64 = arith.constant 0 : index
      %76 = vector.load %arg10[%c0_61, %c0_62, %c0_63, %c0_64] : memref<1x1x16x24xf32, #tpu.memory_space<vmem>>, vector<1x1x16x24xf32>
      %77 = vector.shape_cast %76 : vector<1x1x16x24xf32> to vector<16x24xf32>
      %78 = vector.shape_cast %75 : vector<16x24xf32> to vector<1x1x16x24xf32>
      tpu.vector_store %arg10[%c0_61, %c0_62, %c0_63, %c0_64], %78 {strides = array<i32>} : memref<1x1x16x24xf32, #tpu.memory_space<vmem>>, vector<1x1x16x24xf32>,
    } else {
    }
    %cst_13 = arith.constant 0.000000e+00 : f32
    %21 = vector.broadcast %cst_13 : f32 to vector<16x24xf32>
    %22 = vector.extract_strided_slice %17 {offsets = [0, 0], sizes = [32, 24], strides = [1, 1]} : vector<32x42xf32> to vector<32x24xf32>
    %c0_14 = arith.constant 0 : index
    %c0_15 = arith.constant 0 : index
    %c0_16 = arith.constant 0 : index
    %c0_17 = arith.constant 0 : index
    %23 = vector.load %arg4[%c0_14, %c0_15, %c0_16, %c0_17] : memref<1x9x16x32xf32, #tpu.memory_space<vmem>>, vector<1x1x16x32xf32>
    %24 = vector.shape_cast %23 : vector<1x1x16x32xf32> to vector<16x32xf32>
    %cst_18 = arith.constant dense<0.000000e+00> : vector<16x24xf32>
    %25 = tpu.matmul %24, %22, %cst_18 {dimension_numbers = #tpu.dot_dimension_numbers<[1], [0], [0], [1], [0, 0, 1, 1], [], []>} : vector<16x32xf32>, vector<32x24xf32>, vector<16x24xf32> -> vector<16x24xf32>
    %26 = arith.addf %21, %25 : vector<16x24xf32>
    %27 = vector.extract_strided_slice %17 {offsets = [0, 1], sizes = [32, 24], strides = [1, 1]} : vector<32x42xf32> to vector<32x24xf32>
    %c0_19 = arith.constant 0 : index
    %c1 = arith.constant 1 : index
    %c0_20 = arith.constant 0 : index
    %c0_21 = arith.constant 0 : index
    %28 = vector.load %arg4[%c0_19, %c1, %c0_20, %c0_21] : memref<1x9x16x32xf32, #tpu.memory_space<vmem>>, vector<1x1x16x32xf32>
    %29 = vector.shape_cast %28 : vector<1x1x16x32xf32> to vector<16x32xf32>
    %cst_22 = arith.constant dense<0.000000e+00> : vector<16x24xf32>
    %30 = tpu.matmul %29, %27, %cst_22 {dimension_numbers = #tpu.dot_dimension_numbers<[1], [0], [0], [1], [0, 0, 1, 1], [], []>} : vector<16x32xf32>, vector<32x24xf32>, vector<16x24xf32> -> vector<16x24xf32>
    %31 = arith.addf %26, %30 : vector<16x24xf32>
    %32 = vector.extract_strided_slice %17 {offsets = [0, 2], sizes = [32, 24], strides = [1, 1]} : vector<32x42xf32> to vector<32x24xf32>
    %c0_23 = arith.constant 0 : index
    %c2 = arith.constant 2 : index
    %c0_24 = arith.constant 0 : index
    %c0_25 = arith.constant 0 : index
    %33 = vector.load %arg4[%c0_23, %c2, %c0_24, %c0_25] : memref<1x9x16x32xf32, #tpu.memory_space<vmem>>, vector<1x1x16x32xf32>
    %34 = vector.shape_cast %33 : vector<1x1x16x32xf32> to vector<16x32xf32>
    %cst_26 = arith.constant dense<0.000000e+00> : vector<16x24xf32>
    %35 = tpu.matmul %34, %32, %cst_26 {dimension_numbers = #tpu.dot_dimension_numbers<[1], [0], [0], [1], [0, 0, 1, 1], [], []>} : vector<16x32xf32>, vector<32x24xf32>, vector<16x24xf32> -> vector<16x24xf32>
    %36 = arith.addf %31, %35 : vector<16x24xf32>
    %37 = vector.extract_strided_slice %17 {offsets = [0, 6], sizes = [32, 24], strides = [1, 1]} : vector<32x42xf32> to vector<32x24xf32>
    %c0_27 = arith.constant 0 : index
    %c3 = arith.constant 3 : index
    %c0_28 = arith.constant 0 : index
    %c0_29 = arith.constant 0 : index
    %38 = vector.load %arg4[%c0_27, %c3, %c0_28, %c0_29] : memref<1x9x16x32xf32, #tpu.memory_space<vmem>>, vector<1x1x16x32xf32>
    %39 = vector.shape_cast %38 : vector<1x1x16x32xf32> to vector<16x32xf32>
    %cst_30 = arith.constant dense<0.000000e+00> : vector<16x24xf32>
    %40 = tpu.matmul %39, %37, %cst_30 {dimension_numbers = #tpu.dot_dimension_numbers<[1], [0], [0], [1], [0, 0, 1, 1], [], []>} : vector<16x32xf32>, vector<32x24xf32>, vector<16x24xf32> -> vector<16x24xf32>
    %41 = arith.addf %36, %40 : vector<16x24xf32>
    %42 = vector.extract_strided_slice %17 {offsets = [0, 7], sizes = [32, 24], strides = [1, 1]} : vector<32x42xf32> to vector<32x24xf32>
    %c0_31 = arith.constant 0 : index
    %c4 = arith.constant 4 : index
    %c0_32 = arith.constant 0 : index
    %c0_33 = arith.constant 0 : index
    %43 = vector.load %arg4[%c0_31, %c4, %c0_32, %c0_33] : memref<1x9x16x32xf32, #tpu.memory_space<vmem>>, vector<1x1x16x32xf32>
    %44 = vector.shape_cast %43 : vector<1x1x16x32xf32> to vector<16x32xf32>
    %cst_34 = arith.constant dense<0.000000e+00> : vector<16x24xf32>
    %45 = tpu.matmul %44, %42, %cst_34 {dimension_numbers = #tpu.dot_dimension_numbers<[1], [0], [0], [1], [0, 0, 1, 1], [], []>} : vector<16x32xf32>, vector<32x24xf32>, vector<16x24xf32> -> vector<16x24xf32>
    %46 = arith.addf %41, %45 : vector<16x24xf32>
    %47 = vector.extract_strided_slice %17 {offsets = [0, 8], sizes = [32, 24], strides = [1, 1]} : vector<32x42xf32> to vector<32x24xf32>
    %c0_35 = arith.constant 0 : index
    %c5 = arith.constant 5 : index
    %c0_36 = arith.constant 0 : index
    %c0_37 = arith.constant 0 : index
    %48 = vector.load %arg4[%c0_35, %c5, %c0_36, %c0_37] : memref<1x9x16x32xf32, #tpu.memory_space<vmem>>, vector<1x1x16x32xf32>
    %49 = vector.shape_cast %48 : vector<1x1x16x32xf32> to vector<16x32xf32>
    %cst_38 = arith.constant dense<0.000000e+00> : vector<16x24xf32>
    %50 = tpu.matmul %49, %47, %cst_38 {dimension_numbers = #tpu.dot_dimension_numbers<[1], [0], [0], [1], [0, 0, 1, 1], [], []>} : vector<16x32xf32>, vector<32x24xf32>, vector<16x24xf32> -> vector<16x24xf32>
    %51 = arith.addf %46, %50 : vector<16x24xf32>
    %52 = vector.extract_strided_slice %17 {offsets = [0, 12], sizes = [32, 24], strides = [1, 1]} : vector<32x42xf32> to vector<32x24xf32>
    %c0_39 = arith.constant 0 : index
    %c6 = arith.constant 6 : index
    %c0_40 = arith.constant 0 : index
    %c0_41 = arith.constant 0 : index
    %53 = vector.load %arg4[%c0_39, %c6, %c0_40, %c0_41] : memref<1x9x16x32xf32, #tpu.memory_space<vmem>>, vector<1x1x16x32xf32>
    %54 = vector.shape_cast %53 : vector<1x1x16x32xf32> to vector<16x32xf32>
    %cst_42 = arith.constant dense<0.000000e+00> : vector<16x24xf32>
    %55 = tpu.matmul %54, %52, %cst_42 {dimension_numbers = #tpu.dot_dimension_numbers<[1], [0], [0], [1], [0, 0, 1, 1], [], []>} : vector<16x32xf32>, vector<32x24xf32>, vector<16x24xf32> -> vector<16x24xf32>
    %56 = arith.addf %51, %55 : vector<16x24xf32>
    %57 = vector.extract_strided_slice %17 {offsets = [0, 13], sizes = [32, 24], strides = [1, 1]} : vector<32x42xf32> to vector<32x24xf32>
    %c0_43 = arith.constant 0 : index
    %c7 = arith.constant 7 : index
    %c0_44 = arith.constant 0 : index
    %c0_45 = arith.constant 0 : index
    %58 = vector.load %arg4[%c0_43, %c7, %c0_44, %c0_45] : memref<1x9x16x32xf32, #tpu.memory_space<vmem>>, vector<1x1x16x32xf32>
    %59 = vector.shape_cast %58 : vector<1x1x16x32xf32> to vector<16x32xf32>
    %cst_46 = arith.constant dense<0.000000e+00> : vector<16x24xf32>
    %60 = tpu.matmul %59, %57, %cst_46 {dimension_numbers = #tpu.dot_dimension_numbers<[1], [0], [0], [1], [0, 0, 1, 1], [], []>} : vector<16x32xf32>, vector<32x24xf32>, vector<16x24xf32> -> vector<16x24xf32>
    %61 = arith.addf %56, %60 : vector<16x24xf32>
    %62 = vector.extract_strided_slice %17 {offsets = [0, 14], sizes = [32, 24], strides = [1, 1]} : vector<32x42xf32> to vector<32x24xf32>
    %c0_47 = arith.constant 0 : index
    %c8 = arith.constant 8 : index
    %c0_48 = arith.constant 0 : index
    %c0_49 = arith.constant 0 : index
    %63 = vector.load %arg4[%c0_47, %c8, %c0_48, %c0_49] : memref<1x9x16x32xf32, #tpu.memory_space<vmem>>, vector<1x1x16x32xf32>
    %64 = vector.shape_cast %63 : vector<1x1x16x32xf32> to vector<16x32xf32>
    %cst_50 = arith.constant dense<0.000000e+00> : vector<16x24xf32>
    %65 = tpu.matmul %64, %62, %cst_50 {dimension_numbers = #tpu.dot_dimension_numbers<[1], [0], [0], [1], [0, 0, 1, 1], [], []>} : vector<16x32xf32>, vector<32x24xf32>, vector<16x24xf32> -> vector<16x24xf32>
    %66 = arith.addf %61, %65 : vector<16x24xf32>
    %c0_51 = arith.constant 0 : index
    %c0_52 = arith.constant 0 : index
    %c0_53 = arith.constant 0 : index
    %c0_54 = arith.constant 0 : index
    %67 = vector.load %arg10[%c0_51, %c0_52, %c0_53, %c0_54] : memref<1x1x16x24xf32, #tpu.memory_space<vmem>>, vector<1x1x16x24xf32>
    %68 = vector.shape_cast %67 : vector<1x1x16x24xf32> to vector<16x24xf32>
    %69 = arith.addf %68, %66 : vector<16x24xf32>
    %c0_55 = arith.constant 0 : index
    %c0_56 = arith.constant 0 : index
    %c0_57 = arith.constant 0 : index
    %c0_58 = arith.constant 0 : index
    %70 = vector.load %arg10[%c0_55, %c0_56, %c0_57, %c0_58] : memref<1x1x16x24xf32, #tpu.memory_space<vmem>>, vector<1x1x16x24xf32>
    %71 = vector.shape_cast %70 : vector<1x1x16x24xf32> to vector<16x24xf32>
    %72 = vector.shape_cast %69 : vector<16x24xf32> to vector<1x1x16x24xf32>
    tpu.vector_store %arg10[%c0_55, %c0_56, %c0_57, %c0_58], %72 {strides = array<i32>} : memref<1x1x16x24xf32, #tpu.memory_space<vmem>>, vector<1x1x16x24xf32>,
    return
  }
  func.func @transform_0(%arg0: i32, %arg1: i32, %arg2: i32) -> (i32, i32, i32, i32) {
    %0 = arith.addi %arg1, %arg2 : i32
    %c0_i32 = arith.constant 0 : i32
    %c0_i32_0 = arith.constant 0 : i32
    %c0_i32_1 = arith.constant 0 : i32
    return %arg0, %0, %c0_i32, %c0_i32_0 : i32, i32, i32, i32
  }
  func.func @transform_1(%arg0: i32, %arg1: i32, %arg2: i32) -> (i32, i32, i32, i32) {
    %c0_i32 = arith.constant 0 : i32
    %c0_i32_0 = arith.constant 0 : i32
    %c0_i32_1 = arith.constant 0 : i32
    %c0_i32_2 = arith.constant 0 : i32
    return %arg2, %c0_i32, %c0_i32_0, %c0_i32_1 : i32, i32, i32, i32
  }
  func.func @transform_2(%arg0: i32, %arg1: i32, %arg2: i32) -> (i32, i32, i32) {
    %0 = arith.addi %arg1, %arg2 : i32
    %c0_i32 = arith.constant 0 : i32
    %c0_i32_0 = arith.constant 0 : i32
    %c0_i32_1 = arith.constant 0 : i32
    return %0, %c0_i32, %c0_i32_0 : i32, i32, i32
  }
  func.func @transform_3(%arg0: i32, %arg1: i32, %arg2: i32) -> (i32, i32) {
    %c0_i32 = arith.constant 0 : i32
    %c0_i32_0 = arith.constant 0 : i32
    %c0_i32_1 = arith.constant 0 : i32
    return %c0_i32, %c0_i32_0 : i32, i32
  }
  func.func @transform_4(%arg0: i32, %arg1: i32, %arg2: i32) -> (i32, i32) {
    %c0_i32 = arith.constant 0 : i32
    %c0_i32_0 = arith.constant 0 : i32
    %c0_i32_1 = arith.constant 0 : i32
    return %c0_i32, %c0_i32_0 : i32, i32
  }
  func.func @transform_5(%arg0: i32, %arg1: i32, %arg2: i32) -> (i32, i32) {
    %c0_i32 = arith.constant 0 : i32
    %c0_i32_0 = arith.constant 0 : i32
    %c0_i32_1 = arith.constant 0 : i32
    return %c0_i32, %c0_i32_0 : i32, i32
  }
  func.func @transform_6(%arg0: i32, %arg1: i32, %arg2: i32) -> (i32, i32) {
    %c0_i32 = arith.constant 0 : i32
    %c0_i32_0 = arith.constant 0 : i32
    %c0_i32_1 = arith.constant 0 : i32
    return %c0_i32, %c0_i32_0 : i32, i32
  }
  func.func @transform_7(%arg0: i32, %arg1: i32, %arg2: i32) -> (i32, i32, i32, i32) {
    %c0_i32 = arith.constant 0 : i32
    %c0_i32_0 = arith.constant 0 : i32
    %c0_i32_1 = arith.constant 0 : i32
    return %arg0, %arg1, %c0_i32, %c0_i32_0 : i32, i32, i32, i32
  }
}

module attributes {stable_mosaic.version = 11 : i64} {
  func.func @_matmul_cs_kernel(%arg0: i32, %arg1: i32, %arg2: memref<1x1x16x16xf32, #tpu.memory_space<vmem>>, %arg3: memref<32x16xf32, #tpu.memory_space<vmem>>, %arg4: memref<32x1xf32, #tpu.memory_space<vmem>>, %arg5: memref<1x1x32x16xf32, #tpu.memory_space<vmem>>) attributes {dimension_semantics = [#tpu.dimension_semantics<parallel>, #tpu.dimension_semantics<parallel>], iteration_bounds = array<i64: 2, 8>, scalar_prefetch = 0 : i64, scratch_operands = 0 : i64, tpu.core_type = #tpu.core_type<tc>, window_params = [{transform_indices = @transform_0, window_bounds = array<i64: 1, 1, 16, 16>}, {pipeline_mode = #tpu.pipeline_mode<synchronous>, transform_indices = @transform_1, window_bounds = array<i64: 32, 16>}, {pipeline_mode = #tpu.pipeline_mode<synchronous>, transform_indices = @transform_2, window_bounds = array<i64: 32, 1>}, {transform_indices = @transform_3, window_bounds = array<i64: 1, 1, 32, 16>}]} {
    %c0 = arith.constant 0 : index
    %c0_0 = arith.constant 0 : index
    %0 = vector.load %arg3[%c0, %c0_0] : memref<32x16xf32, #tpu.memory_space<vmem>>, vector<32x16xf32>
    %c0_1 = arith.constant 0 : index
    %c0_2 = arith.constant 0 : index
    %c0_3 = arith.constant 0 : index
    %c0_4 = arith.constant 0 : index
    %1 = vector.load %arg2[%c0_1, %c0_2, %c0_3, %c0_4] : memref<1x1x16x16xf32, #tpu.memory_space<vmem>>, vector<1x1x16x16xf32>
    %2 = vector.shape_cast %1 : vector<1x1x16x16xf32> to vector<16x16xf32>
    %cst = arith.constant dense<0.000000e+00> : vector<32x16xf32>
    %3 = tpu.matmul %0, %2, %cst {dimension_numbers = #tpu.dot_dimension_numbers<[1], [0], [0], [1], [0, 0, 1, 1], [], []>} : vector<32x16xf32>, vector<16x16xf32>, vector<32x16xf32> -> vector<32x16xf32>
    %c0_5 = arith.constant 0 : index
    %c0_6 = arith.constant 0 : index
    %4 = vector.load %arg4[%c0_5, %c0_6] : memref<32x1xf32, #tpu.memory_space<vmem>>, vector<32x1xf32>
    %5 = vector.broadcast %4 : vector<32x1xf32> to vector<32x16xf32>
    %6 = arith.addf %3, %5 : vector<32x16xf32>
    %c0_7 = arith.constant 0 : index
    %c0_8 = arith.constant 0 : index
    %c0_9 = arith.constant 0 : index
    %c0_10 = arith.constant 0 : index
    %7 = vector.load %arg5[%c0_7, %c0_8, %c0_9, %c0_10] : memref<1x1x32x16xf32, #tpu.memory_space<vmem>>, vector<1x1x32x16xf32>
    %8 = vector.shape_cast %7 : vector<1x1x32x16xf32> to vector<32x16xf32>
    %9 = vector.shape_cast %6 : vector<32x16xf32> to vector<1x1x32x16xf32>
    tpu.vector_store %arg5[%c0_7, %c0_8, %c0_9, %c0_10], %9 {strides = array<i32>} : memref<1x1x32x16xf32, #tpu.memory_space<vmem>>, vector<1x1x32x16xf32>,
    return
  }
  func.func @transform_0(%arg0: i32, %arg1: i32) -> (i32, i32, i32, i32) {
    %c0_i32 = arith.constant 0 : i32
    %c0_i32_0 = arith.constant 0 : i32
    %c0_i32_1 = arith.constant 0 : i32
    return %arg0, %arg1, %c0_i32, %c0_i32_0 : i32, i32, i32, i32
  }
  func.func @transform_1(%arg0: i32, %arg1: i32) -> (i32, i32) {
    %c0_i32 = arith.constant 0 : i32
    %c0_i32_0 = arith.constant 0 : i32
    %c0_i32_1 = arith.constant 0 : i32
    return %c0_i32, %c0_i32_0 : i32, i32
  }
  func.func @transform_2(%arg0: i32, %arg1: i32) -> (i32, i32) {
    %c0_i32 = arith.constant 0 : i32
    %c0_i32_0 = arith.constant 0 : i32
    %c0_i32_1 = arith.constant 0 : i32
    return %c0_i32, %c0_i32_0 : i32, i32
  }
  func.func @transform_3(%arg0: i32, %arg1: i32) -> (i32, i32, i32, i32) {
    %c0_i32 = arith.constant 0 : i32
    %c0_i32_0 = arith.constant 0 : i32
    %c0_i32_1 = arith.constant 0 : i32
    return %arg0, %arg1, %c0_i32, %c0_i32_0 : i32, i32, i32, i32
  }
}

module attributes {stable_mosaic.version = 11 : i64} {
  func.func @_conv_fused_kernel(%arg0: i32, %arg1: i32, %arg2: i32, %arg3: memref<1x1x16x110xf32, #tpu.memory_space<vmem>>, %arg4: memref<1x9x8x16xf32, #tpu.memory_space<vmem>>, %arg5: memref<1x1x110xf32, #tpu.memory_space<vmem>>, %arg6: memref<16x1xf32, #tpu.memory_space<vmem>>, %arg7: memref<16x1xf32, #tpu.memory_space<vmem>>, %arg8: memref<16x1xf32, #tpu.memory_space<vmem>>, %arg9: memref<8x1xf32, #tpu.memory_space<vmem>>, %arg10: memref<1x1x8x80xf32, #tpu.memory_space<vmem>>) attributes {dimension_semantics = [#tpu.dimension_semantics<parallel>, #tpu.dimension_semantics<parallel>, #tpu.dimension_semantics<arbitrary>], iteration_bounds = array<i64: 2, 8, 1>, scalar_prefetch = 0 : i64, scratch_operands = 0 : i64, tpu.core_type = #tpu.core_type<tc>, window_params = [{transform_indices = @transform_0, window_bounds = array<i64: 1, 1, 16, 110>}, {transform_indices = @transform_1, window_bounds = array<i64: 1, 9, 8, 16>}, {transform_indices = @transform_2, window_bounds = array<i64: 1, 1, 110>}, {pipeline_mode = #tpu.pipeline_mode<synchronous>, transform_indices = @transform_3, window_bounds = array<i64: 16, 1>}, {pipeline_mode = #tpu.pipeline_mode<synchronous>, transform_indices = @transform_4, window_bounds = array<i64: 16, 1>}, {pipeline_mode = #tpu.pipeline_mode<synchronous>, transform_indices = @transform_5, window_bounds = array<i64: 16, 1>}, {pipeline_mode = #tpu.pipeline_mode<synchronous>, transform_indices = @transform_6, window_bounds = array<i64: 8, 1>}, {transform_indices = @transform_7, window_bounds = array<i64: 1, 1, 8, 80>}]} {
    %c0 = arith.constant 0 : index
    %c0_0 = arith.constant 0 : index
    %c0_1 = arith.constant 0 : index
    %c0_2 = arith.constant 0 : index
    %0 = vector.load %arg3[%c0, %c0_0, %c0_1, %c0_2] : memref<1x1x16x110xf32, #tpu.memory_space<vmem>>, vector<1x1x16x110xf32>
    %1 = vector.shape_cast %0 : vector<1x1x16x110xf32> to vector<16x110xf32>
    %c0_3 = arith.constant 0 : index
    %c0_4 = arith.constant 0 : index
    %2 = vector.load %arg6[%c0_3, %c0_4] : memref<16x1xf32, #tpu.memory_space<vmem>>, vector<16x1xf32>
    %3 = vector.broadcast %2 : vector<16x1xf32> to vector<16x110xf32>
    %4 = arith.mulf %1, %3 : vector<16x110xf32>
    %c0_5 = arith.constant 0 : index
    %c0_6 = arith.constant 0 : index
    %5 = vector.load %arg7[%c0_5, %c0_6] : memref<16x1xf32, #tpu.memory_space<vmem>>, vector<16x1xf32>
    %6 = vector.broadcast %5 : vector<16x1xf32> to vector<16x110xf32>
    %7 = arith.addf %4, %6 : vector<16x110xf32>
    %cst = arith.constant 0.000000e+00 : f32
    %8 = vector.broadcast %cst : f32 to vector<16x110xf32>
    %9 = arith.cmpf oge, %7, %8 : vector<16x110xf32>
    %c0_7 = arith.constant 0 : index
    %c0_8 = arith.constant 0 : index
    %10 = vector.load %arg8[%c0_7, %c0_8] : memref<16x1xf32, #tpu.memory_space<vmem>>, vector<16x1xf32>
    %11 = vector.broadcast %10 : vector<16x1xf32> to vector<16x110xf32>
    %12 = arith.mulf %11, %7 : vector<16x110xf32>
    %13 = arith.select %9, %7, %12 : vector<16x110xi1>, vector<16x110xf32>
    %c0_9 = arith.constant 0 : index
    %c0_10 = arith.constant 0 : index
    %c0_11 = arith.constant 0 : index
    %14 = vector.load %arg5[%c0_9, %c0_10, %c0_11] : memref<1x1x110xf32, #tpu.memory_space<vmem>>, vector<1x1x110xf32>
    %15 = vector.shape_cast %14 : vector<1x1x110xf32> to vector<1x110xf32>
    %16 = vector.broadcast %15 : vector<1x110xf32> to vector<16x110xf32>
    %17 = arith.mulf %13, %16 : vector<16x110xf32>
    %c0_i32 = arith.constant 0 : i32
    %18 = arith.cmpi eq, %arg2, %c0_i32 : i32
    %19 = arith.extui %18 : i1 to i32
    %c0_i32_12 = arith.constant 0 : i32
    %20 = arith.cmpi ne, %19, %c0_i32_12 : i32
    scf.if %20 {
      %c0_59 = arith.constant 0 : index
      %c0_60 = arith.constant 0 : index
      %73 = vector.load %arg9[%c0_59, %c0_60] : memref<8x1xf32, #tpu.memory_space<vmem>>, vector<8x1xf32>
      %74 = vector.shape_cast %73 : vector<8x1xf32> to vector<8x1xf32>
      %75 = vector.broadcast %74 : vector<8x1xf32> to vector<8x80xf32>
      %c0_61 = arith.constant 0 : index
      %c0_62 = arith.constant 0 : index
      %c0_63 = arith.constant 0 : index
      %c0_64 = arith.constant 0 : index
      %76 = vector.load %arg10[%c0_61, %c0_62, %c0_63, %c0_64] : memref<1x1x8x80xf32, #tpu.memory_space<vmem>>, vector<1x1x8x80xf32>
      %77 = vector.shape_cast %76 : vector<1x1x8x80xf32> to vector<8x80xf32>
      %78 = vector.shape_cast %75 : vector<8x80xf32> to vector<1x1x8x80xf32>
      tpu.vector_store %arg10[%c0_61, %c0_62, %c0_63, %c0_64], %78 {strides = array<i32>} : memref<1x1x8x80xf32, #tpu.memory_space<vmem>>, vector<1x1x8x80xf32>,
    } else {
    }
    %cst_13 = arith.constant 0.000000e+00 : f32
    %21 = vector.broadcast %cst_13 : f32 to vector<8x80xf32>
    %22 = vector.extract_strided_slice %17 {offsets = [0, 0], sizes = [16, 80], strides = [1, 1]} : vector<16x110xf32> to vector<16x80xf32>
    %c0_14 = arith.constant 0 : index
    %c0_15 = arith.constant 0 : index
    %c0_16 = arith.constant 0 : index
    %c0_17 = arith.constant 0 : index
    %23 = vector.load %arg4[%c0_14, %c0_15, %c0_16, %c0_17] : memref<1x9x8x16xf32, #tpu.memory_space<vmem>>, vector<1x1x8x16xf32>
    %24 = vector.shape_cast %23 : vector<1x1x8x16xf32> to vector<8x16xf32>
    %cst_18 = arith.constant dense<0.000000e+00> : vector<8x80xf32>
    %25 = tpu.matmul %24, %22, %cst_18 {dimension_numbers = #tpu.dot_dimension_numbers<[1], [0], [0], [1], [0, 0, 1, 1], [], []>} : vector<8x16xf32>, vector<16x80xf32>, vector<8x80xf32> -> vector<8x80xf32>
    %26 = arith.addf %21, %25 : vector<8x80xf32>
    %27 = vector.extract_strided_slice %17 {offsets = [0, 1], sizes = [16, 80], strides = [1, 1]} : vector<16x110xf32> to vector<16x80xf32>
    %c0_19 = arith.constant 0 : index
    %c1 = arith.constant 1 : index
    %c0_20 = arith.constant 0 : index
    %c0_21 = arith.constant 0 : index
    %28 = vector.load %arg4[%c0_19, %c1, %c0_20, %c0_21] : memref<1x9x8x16xf32, #tpu.memory_space<vmem>>, vector<1x1x8x16xf32>
    %29 = vector.shape_cast %28 : vector<1x1x8x16xf32> to vector<8x16xf32>
    %cst_22 = arith.constant dense<0.000000e+00> : vector<8x80xf32>
    %30 = tpu.matmul %29, %27, %cst_22 {dimension_numbers = #tpu.dot_dimension_numbers<[1], [0], [0], [1], [0, 0, 1, 1], [], []>} : vector<8x16xf32>, vector<16x80xf32>, vector<8x80xf32> -> vector<8x80xf32>
    %31 = arith.addf %26, %30 : vector<8x80xf32>
    %32 = vector.extract_strided_slice %17 {offsets = [0, 2], sizes = [16, 80], strides = [1, 1]} : vector<16x110xf32> to vector<16x80xf32>
    %c0_23 = arith.constant 0 : index
    %c2 = arith.constant 2 : index
    %c0_24 = arith.constant 0 : index
    %c0_25 = arith.constant 0 : index
    %33 = vector.load %arg4[%c0_23, %c2, %c0_24, %c0_25] : memref<1x9x8x16xf32, #tpu.memory_space<vmem>>, vector<1x1x8x16xf32>
    %34 = vector.shape_cast %33 : vector<1x1x8x16xf32> to vector<8x16xf32>
    %cst_26 = arith.constant dense<0.000000e+00> : vector<8x80xf32>
    %35 = tpu.matmul %34, %32, %cst_26 {dimension_numbers = #tpu.dot_dimension_numbers<[1], [0], [0], [1], [0, 0, 1, 1], [], []>} : vector<8x16xf32>, vector<16x80xf32>, vector<8x80xf32> -> vector<8x80xf32>
    %36 = arith.addf %31, %35 : vector<8x80xf32>
    %37 = vector.extract_strided_slice %17 {offsets = [0, 10], sizes = [16, 80], strides = [1, 1]} : vector<16x110xf32> to vector<16x80xf32>
    %c0_27 = arith.constant 0 : index
    %c3 = arith.constant 3 : index
    %c0_28 = arith.constant 0 : index
    %c0_29 = arith.constant 0 : index
    %38 = vector.load %arg4[%c0_27, %c3, %c0_28, %c0_29] : memref<1x9x8x16xf32, #tpu.memory_space<vmem>>, vector<1x1x8x16xf32>
    %39 = vector.shape_cast %38 : vector<1x1x8x16xf32> to vector<8x16xf32>
    %cst_30 = arith.constant dense<0.000000e+00> : vector<8x80xf32>
    %40 = tpu.matmul %39, %37, %cst_30 {dimension_numbers = #tpu.dot_dimension_numbers<[1], [0], [0], [1], [0, 0, 1, 1], [], []>} : vector<8x16xf32>, vector<16x80xf32>, vector<8x80xf32> -> vector<8x80xf32>
    %41 = arith.addf %36, %40 : vector<8x80xf32>
    %42 = vector.extract_strided_slice %17 {offsets = [0, 11], sizes = [16, 80], strides = [1, 1]} : vector<16x110xf32> to vector<16x80xf32>
    %c0_31 = arith.constant 0 : index
    %c4 = arith.constant 4 : index
    %c0_32 = arith.constant 0 : index
    %c0_33 = arith.constant 0 : index
    %43 = vector.load %arg4[%c0_31, %c4, %c0_32, %c0_33] : memref<1x9x8x16xf32, #tpu.memory_space<vmem>>, vector<1x1x8x16xf32>
    %44 = vector.shape_cast %43 : vector<1x1x8x16xf32> to vector<8x16xf32>
    %cst_34 = arith.constant dense<0.000000e+00> : vector<8x80xf32>
    %45 = tpu.matmul %44, %42, %cst_34 {dimension_numbers = #tpu.dot_dimension_numbers<[1], [0], [0], [1], [0, 0, 1, 1], [], []>} : vector<8x16xf32>, vector<16x80xf32>, vector<8x80xf32> -> vector<8x80xf32>
    %46 = arith.addf %41, %45 : vector<8x80xf32>
    %47 = vector.extract_strided_slice %17 {offsets = [0, 12], sizes = [16, 80], strides = [1, 1]} : vector<16x110xf32> to vector<16x80xf32>
    %c0_35 = arith.constant 0 : index
    %c5 = arith.constant 5 : index
    %c0_36 = arith.constant 0 : index
    %c0_37 = arith.constant 0 : index
    %48 = vector.load %arg4[%c0_35, %c5, %c0_36, %c0_37] : memref<1x9x8x16xf32, #tpu.memory_space<vmem>>, vector<1x1x8x16xf32>
    %49 = vector.shape_cast %48 : vector<1x1x8x16xf32> to vector<8x16xf32>
    %cst_38 = arith.constant dense<0.000000e+00> : vector<8x80xf32>
    %50 = tpu.matmul %49, %47, %cst_38 {dimension_numbers = #tpu.dot_dimension_numbers<[1], [0], [0], [1], [0, 0, 1, 1], [], []>} : vector<8x16xf32>, vector<16x80xf32>, vector<8x80xf32> -> vector<8x80xf32>
    %51 = arith.addf %46, %50 : vector<8x80xf32>
    %52 = vector.extract_strided_slice %17 {offsets = [0, 20], sizes = [16, 80], strides = [1, 1]} : vector<16x110xf32> to vector<16x80xf32>
    %c0_39 = arith.constant 0 : index
    %c6 = arith.constant 6 : index
    %c0_40 = arith.constant 0 : index
    %c0_41 = arith.constant 0 : index
    %53 = vector.load %arg4[%c0_39, %c6, %c0_40, %c0_41] : memref<1x9x8x16xf32, #tpu.memory_space<vmem>>, vector<1x1x8x16xf32>
    %54 = vector.shape_cast %53 : vector<1x1x8x16xf32> to vector<8x16xf32>
    %cst_42 = arith.constant dense<0.000000e+00> : vector<8x80xf32>
    %55 = tpu.matmul %54, %52, %cst_42 {dimension_numbers = #tpu.dot_dimension_numbers<[1], [0], [0], [1], [0, 0, 1, 1], [], []>} : vector<8x16xf32>, vector<16x80xf32>, vector<8x80xf32> -> vector<8x80xf32>
    %56 = arith.addf %51, %55 : vector<8x80xf32>
    %57 = vector.extract_strided_slice %17 {offsets = [0, 21], sizes = [16, 80], strides = [1, 1]} : vector<16x110xf32> to vector<16x80xf32>
    %c0_43 = arith.constant 0 : index
    %c7 = arith.constant 7 : index
    %c0_44 = arith.constant 0 : index
    %c0_45 = arith.constant 0 : index
    %58 = vector.load %arg4[%c0_43, %c7, %c0_44, %c0_45] : memref<1x9x8x16xf32, #tpu.memory_space<vmem>>, vector<1x1x8x16xf32>
    %59 = vector.shape_cast %58 : vector<1x1x8x16xf32> to vector<8x16xf32>
    %cst_46 = arith.constant dense<0.000000e+00> : vector<8x80xf32>
    %60 = tpu.matmul %59, %57, %cst_46 {dimension_numbers = #tpu.dot_dimension_numbers<[1], [0], [0], [1], [0, 0, 1, 1], [], []>} : vector<8x16xf32>, vector<16x80xf32>, vector<8x80xf32> -> vector<8x80xf32>
    %61 = arith.addf %56, %60 : vector<8x80xf32>
    %62 = vector.extract_strided_slice %17 {offsets = [0, 22], sizes = [16, 80], strides = [1, 1]} : vector<16x110xf32> to vector<16x80xf32>
    %c0_47 = arith.constant 0 : index
    %c8 = arith.constant 8 : index
    %c0_48 = arith.constant 0 : index
    %c0_49 = arith.constant 0 : index
    %63 = vector.load %arg4[%c0_47, %c8, %c0_48, %c0_49] : memref<1x9x8x16xf32, #tpu.memory_space<vmem>>, vector<1x1x8x16xf32>
    %64 = vector.shape_cast %63 : vector<1x1x8x16xf32> to vector<8x16xf32>
    %cst_50 = arith.constant dense<0.000000e+00> : vector<8x80xf32>
    %65 = tpu.matmul %64, %62, %cst_50 {dimension_numbers = #tpu.dot_dimension_numbers<[1], [0], [0], [1], [0, 0, 1, 1], [], []>} : vector<8x16xf32>, vector<16x80xf32>, vector<8x80xf32> -> vector<8x80xf32>
    %66 = arith.addf %61, %65 : vector<8x80xf32>
    %c0_51 = arith.constant 0 : index
    %c0_52 = arith.constant 0 : index
    %c0_53 = arith.constant 0 : index
    %c0_54 = arith.constant 0 : index
    %67 = vector.load %arg10[%c0_51, %c0_52, %c0_53, %c0_54] : memref<1x1x8x80xf32, #tpu.memory_space<vmem>>, vector<1x1x8x80xf32>
    %68 = vector.shape_cast %67 : vector<1x1x8x80xf32> to vector<8x80xf32>
    %69 = arith.addf %68, %66 : vector<8x80xf32>
    %c0_55 = arith.constant 0 : index
    %c0_56 = arith.constant 0 : index
    %c0_57 = arith.constant 0 : index
    %c0_58 = arith.constant 0 : index
    %70 = vector.load %arg10[%c0_55, %c0_56, %c0_57, %c0_58] : memref<1x1x8x80xf32, #tpu.memory_space<vmem>>, vector<1x1x8x80xf32>
    %71 = vector.shape_cast %70 : vector<1x1x8x80xf32> to vector<8x80xf32>
    %72 = vector.shape_cast %69 : vector<8x80xf32> to vector<1x1x8x80xf32>
    tpu.vector_store %arg10[%c0_55, %c0_56, %c0_57, %c0_58], %72 {strides = array<i32>} : memref<1x1x8x80xf32, #tpu.memory_space<vmem>>, vector<1x1x8x80xf32>,
    return
  }
  func.func @transform_0(%arg0: i32, %arg1: i32, %arg2: i32) -> (i32, i32, i32, i32) {
    %0 = arith.addi %arg1, %arg2 : i32
    %c0_i32 = arith.constant 0 : i32
    %c0_i32_0 = arith.constant 0 : i32
    %c0_i32_1 = arith.constant 0 : i32
    return %arg0, %0, %c0_i32, %c0_i32_0 : i32, i32, i32, i32
  }
  func.func @transform_1(%arg0: i32, %arg1: i32, %arg2: i32) -> (i32, i32, i32, i32) {
    %c0_i32 = arith.constant 0 : i32
    %c0_i32_0 = arith.constant 0 : i32
    %c0_i32_1 = arith.constant 0 : i32
    %c0_i32_2 = arith.constant 0 : i32
    return %arg2, %c0_i32, %c0_i32_0, %c0_i32_1 : i32, i32, i32, i32
  }
  func.func @transform_2(%arg0: i32, %arg1: i32, %arg2: i32) -> (i32, i32, i32) {
    %0 = arith.addi %arg1, %arg2 : i32
    %c0_i32 = arith.constant 0 : i32
    %c0_i32_0 = arith.constant 0 : i32
    %c0_i32_1 = arith.constant 0 : i32
    return %0, %c0_i32, %c0_i32_0 : i32, i32, i32
  }
  func.func @transform_3(%arg0: i32, %arg1: i32, %arg2: i32) -> (i32, i32) {
    %c0_i32 = arith.constant 0 : i32
    %c0_i32_0 = arith.constant 0 : i32
    %c0_i32_1 = arith.constant 0 : i32
    return %c0_i32, %c0_i32_0 : i32, i32
  }
  func.func @transform_4(%arg0: i32, %arg1: i32, %arg2: i32) -> (i32, i32) {
    %c0_i32 = arith.constant 0 : i32
    %c0_i32_0 = arith.constant 0 : i32
    %c0_i32_1 = arith.constant 0 : i32
    return %c0_i32, %c0_i32_0 : i32, i32
  }
  func.func @transform_5(%arg0: i32, %arg1: i32, %arg2: i32) -> (i32, i32) {
    %c0_i32 = arith.constant 0 : i32
    %c0_i32_0 = arith.constant 0 : i32
    %c0_i32_1 = arith.constant 0 : i32
    return %c0_i32, %c0_i32_0 : i32, i32
  }
  func.func @transform_6(%arg0: i32, %arg1: i32, %arg2: i32) -> (i32, i32) {
    %c0_i32 = arith.constant 0 : i32
    %c0_i32_0 = arith.constant 0 : i32
    %c0_i32_1 = arith.constant 0 : i32
    return %c0_i32, %c0_i32_0 : i32, i32
  }
  func.func @transform_7(%arg0: i32, %arg1: i32, %arg2: i32) -> (i32, i32, i32, i32) {
    %c0_i32 = arith.constant 0 : i32
    %c0_i32_0 = arith.constant 0 : i32
    %c0_i32_1 = arith.constant 0 : i32
    return %arg0, %arg1, %c0_i32, %c0_i32_0 : i32, i32, i32, i32
  }
}

module attributes {stable_mosaic.version = 11 : i64} {
  func.func @_matmul_cs_kernel(%arg0: i32, %arg1: i32, %arg2: memref<1x1x8x64xf32, #tpu.memory_space<vmem>>, %arg3: memref<8x8xf32, #tpu.memory_space<vmem>>, %arg4: memref<8x1xf32, #tpu.memory_space<vmem>>, %arg5: memref<1x1x8x64xf32, #tpu.memory_space<vmem>>) attributes {dimension_semantics = [#tpu.dimension_semantics<parallel>, #tpu.dimension_semantics<parallel>], iteration_bounds = array<i64: 2, 8>, scalar_prefetch = 0 : i64, scratch_operands = 0 : i64, tpu.core_type = #tpu.core_type<tc>, window_params = [{transform_indices = @transform_0, window_bounds = array<i64: 1, 1, 8, 64>}, {pipeline_mode = #tpu.pipeline_mode<synchronous>, transform_indices = @transform_1, window_bounds = array<i64: 8, 8>}, {pipeline_mode = #tpu.pipeline_mode<synchronous>, transform_indices = @transform_2, window_bounds = array<i64: 8, 1>}, {transform_indices = @transform_3, window_bounds = array<i64: 1, 1, 8, 64>}]} {
    %c0 = arith.constant 0 : index
    %c0_0 = arith.constant 0 : index
    %0 = vector.load %arg3[%c0, %c0_0] : memref<8x8xf32, #tpu.memory_space<vmem>>, vector<8x8xf32>
    %c0_1 = arith.constant 0 : index
    %c0_2 = arith.constant 0 : index
    %c0_3 = arith.constant 0 : index
    %c0_4 = arith.constant 0 : index
    %1 = vector.load %arg2[%c0_1, %c0_2, %c0_3, %c0_4] : memref<1x1x8x64xf32, #tpu.memory_space<vmem>>, vector<1x1x8x64xf32>
    %2 = vector.shape_cast %1 : vector<1x1x8x64xf32> to vector<8x64xf32>
    %cst = arith.constant dense<0.000000e+00> : vector<8x64xf32>
    %3 = tpu.matmul %0, %2, %cst {dimension_numbers = #tpu.dot_dimension_numbers<[1], [0], [0], [1], [0, 0, 1, 1], [], []>} : vector<8x8xf32>, vector<8x64xf32>, vector<8x64xf32> -> vector<8x64xf32>
    %c0_5 = arith.constant 0 : index
    %c0_6 = arith.constant 0 : index
    %4 = vector.load %arg4[%c0_5, %c0_6] : memref<8x1xf32, #tpu.memory_space<vmem>>, vector<8x1xf32>
    %5 = vector.broadcast %4 : vector<8x1xf32> to vector<8x64xf32>
    %6 = arith.addf %3, %5 : vector<8x64xf32>
    %c0_7 = arith.constant 0 : index
    %c0_8 = arith.constant 0 : index
    %c0_9 = arith.constant 0 : index
    %c0_10 = arith.constant 0 : index
    %7 = vector.load %arg5[%c0_7, %c0_8, %c0_9, %c0_10] : memref<1x1x8x64xf32, #tpu.memory_space<vmem>>, vector<1x1x8x64xf32>
    %8 = vector.shape_cast %7 : vector<1x1x8x64xf32> to vector<8x64xf32>
    %9 = vector.shape_cast %6 : vector<8x64xf32> to vector<1x1x8x64xf32>
    tpu.vector_store %arg5[%c0_7, %c0_8, %c0_9, %c0_10], %9 {strides = array<i32>} : memref<1x1x8x64xf32, #tpu.memory_space<vmem>>, vector<1x1x8x64xf32>,
    return
  }
  func.func @transform_0(%arg0: i32, %arg1: i32) -> (i32, i32, i32, i32) {
    %c0_i32 = arith.constant 0 : i32
    %c0_i32_0 = arith.constant 0 : i32
    %c0_i32_1 = arith.constant 0 : i32
    return %arg0, %arg1, %c0_i32, %c0_i32_0 : i32, i32, i32, i32
  }
  func.func @transform_1(%arg0: i32, %arg1: i32) -> (i32, i32) {
    %c0_i32 = arith.constant 0 : i32
    %c0_i32_0 = arith.constant 0 : i32
    %c0_i32_1 = arith.constant 0 : i32
    return %c0_i32, %c0_i32_0 : i32, i32
  }
  func.func @transform_2(%arg0: i32, %arg1: i32) -> (i32, i32) {
    %c0_i32 = arith.constant 0 : i32
    %c0_i32_0 = arith.constant 0 : i32
    %c0_i32_1 = arith.constant 0 : i32
    return %c0_i32, %c0_i32_0 : i32, i32
  }
  func.func @transform_3(%arg0: i32, %arg1: i32) -> (i32, i32, i32, i32) {
    %c0_i32 = arith.constant 0 : i32
    %c0_i32_0 = arith.constant 0 : i32
    %c0_i32_1 = arith.constant 0 : i32
    return %arg0, %arg1, %c0_i32, %c0_i32_0 : i32, i32, i32, i32
  }
}

</mosaic_0001>

<bundles_post_ra>
// kernel: hiformer_v3_forward.27
= control target key start
LH: loop header
LB: loop body
LE: loop exit
PB: predicated region body
PF: predicated region fallthrough
CT: control target
= control target key end

     0   :  { %s522_s12 = smov 0   ;;  %s524_s13 = smov 0   ;;  %s579_s0 = inlined_call_operand.vmem [shape: f32[2,8,9,64], index: 0, kind: input, shape index: {}]   ;;  %s580_s1 = inlined_call_operand.vmem [shape: f32[8,9], index: 1, kind: input, shape index: {}]   ;;  %s581_s2 = inlined_call_operand.vmem [shape: f32[8,1], index: 2, kind: input, shape index: {}]   ;;  %s582_s3 = inlined_call_operand.vmem [shape: f32[2,8,8,64], index: 3, kind: output, shape index: {}]  }
   0x1   :  { %s526_s14 = smov 0   ;;  %s528_s15 = smov 0  }
   0x2   :  { %s530_s16 = smov 0  }
   0x3 LB: > { %s22_s17 = sadd.s32 1, %s487_s14  ;;  %s25_s18 = sadd.s32 1, %s491_s15  ;;  %s495_s16 = sphi %s530_s16, %s13_s16   ;;  %s491_s15 = sphi %s528_s15, %s586_s15   ;;  %s487_s14 = sphi %s526_s14, %s585_s14   ;;  %s483_s13 = sphi %s524_s13, %s584_s13   ;;  %s479_s12 = sphi %s522_s12, %s583_s12  }
   0x4   : > { %p23_p0 = scmp.ge.s32.totalorder %s22_s17, 8  ;;  %p387_p1 = scmp.ge.s32.totalorder %s495_s16, 1 }
   0x5   : > { %p157_p2 = scmp.lt.s32.totalorder %s495_s16, 17 }
   0x6   : > { %s588_s17 = smov (%p23_p0, %s22_s17), 0  ;;  %s590_s18 = smov (!%p23_p0, %s25_s18), %s491_s15 }
   0x7   : > { %p158_p3 = pnand %p387_p1, %p157_p2  ;;  %p27_p4 = scmp.ge.s32.totalorder %s590_s18, 2 }
   0x8   : > { %p188_p5 = scmp.lt.s32.totalorder (!%p158_p3), %s483_s13, 1  ;;  %p190_p6 = scmp.lt.s32.totalorder (!%p158_p3), %s479_s12, 7  ;;  %v497_v0 = vmov (!%p158_p3), 0.0|0.0   ;;  %v208_v1 = vld [vmem:[%s581_s2] sm:$0xff] (!%p158_p3)  ;;  %vm498_vm0 = vmmov (!%p158_p3), 0   ;;  %v499_v2 = vmov (!%p158_p3), 0.0  }
   0x9   : > { %s592_s18 = smov (%p27_p4, %s590_s18), 0  ;;  %161 = sbr.rel (%p158_p3) target bundleno = 243 (0xf3), region = 32 }
   0xa   : > { %407 = vmatprep.subr.bf16.mxu0 (!%p158_p3), %v497_v0  ;;  %404 = vmatprep.mubr.msk.f32.mxu0 (!%p158_p3), %vm498_vm0, %v499_v2  ;;  %v500_v3 = vmov (!%p158_p3), 0   ;;  %vm218_vm1 = vcmask (!%p158_p3), 1040384   ;;  %vm501_vm2 = vmmov (!%p158_p3), 1   ;;  %v205_v7 = vld [vmem:[%s580_s1] sm:$0xff] (!%p158_p3)  ;;  %vm214_vm4 = vcmask (!%p158_p3), 72704  }
   0xb   : > { %456 = vset.pattern.permute.xlu0 (!%p158_p3), %v500_v3  ;;  %vm409_vm3 = vmpackc.low (!%p158_p3), %vm218_vm1, %vm501_vm2  ;;  %vm292_vm5 = vcmask (!%p158_p3), 523264  }
   0xc   : > { %211 = vperm.xlu0 (!%p158_p3), %456, %v208_v1  }
  0x10   : > { %s594_s13 = smov (!%p188_p5, %s483_s13), 1  ;;  %s596_s12 = smov (!%p190_p6, %s479_s12), 7 }
  0x11   : > { %s389_s21 = sshll.u32 %s594_s13, 4  ;;  %s391_s22 = sshll.u32 %s594_s13, 3 }
  0x12   : > { %s388_s23 = sshll.u32 %s596_s12, 1  ;;  %s202_s24 = sadd.s32 %s391_s22, %s596_s12 }
  0x13   : > { %s194_s25 = sadd.s32 %s389_s21, %s388_s23  ;;  %s392_s5 = sshll.u32 %s202_s24, 3 }
  0x14   : > { %s390_s26 = sshll.u32 %s194_s25, 3  ;;  %s204_s8 = scalar_lea.vmem %s582_s3, %s392_s5 }
  0x15   : > { %s196_s29 = scalar_lea.vmem %s579_s0, %s390_s26 }
  0x16   : > { %v206_v4 = vld [vmem:[%s196_s29] sm:$0xff]  ;;  %v207_v5 = vld [vmem:[%s196_s29 + $0x8] sm:$0x1] }
  0x17   : > { %v408_v6 = vpack.c.bf16 %v207_v5, %v206_v4 }
  0x19   : > { %410 = vmatpush3.bf16.msk.msra.mxu0 %vm409_vm3, %v408_v6 }
  0x1c   : > { %405 = vmatmul.mubr.msk.f32.vlgmr.msra.gmra.mrb[0].mxu0 %vm214_vm4, %v205_v7 }
  0x8b   : > { %v212_v8 = vpop.permute.xlu0 %211 }
  0xef   : > { %v288_v9 = vpop.f32.mrb[0].mxu0 }
  0xf0   : > { %v289_v10 = vadd.f32 %v288_v9, %v212_v8  ;;  %v406_v11 = vpop.f32.mrb[1].mxu0 }
  0xf2   : > { %293 = vst.msk [vmem:[%s204_s8] sm:$0xff] %vm292_vm5, %v289_v10 }
  0xf3 PF: > { %s13_s16 = sadd.s32 1, %s495_s16   ;;  %s583_s12 = smov %s487_s14 }
  0xf4   : > { %p10_p7 = scmp.ge.s32.totalorder %s13_s16, 18   ;;  %s584_s13 = smov %s491_s15 }
  0xf5   : > { %s585_s14 = smov %s588_s17  ;;  %s586_s15 = smov %s592_s18 }
  0xf6   :  { %12 = sbr.rel (!%p10_p7) target bundleno = 3 (0x3), region = 62 }

// kernel: hiformer_v3_forward.28
= control target key start
LH: loop header
LB: loop body
LE: loop exit
PB: predicated region body
PF: predicated region fallthrough
CT: control target
= control target key end

     0   :  { %s1471_s24 = smov 0   ;;  %s1473_s25 = smov 0   ;;  %s1618_s0 = inlined_call_operand.vmem [shape: f32[2,8,8,110], index: 0, kind: input, shape index: {}]   ;;  %s1619_s1 = inlined_call_operand.vmem [shape: f32[1,9,8,8], index: 1, kind: input, shape index: {}]   ;;  %s1620_s2 = inlined_call_operand.vmem [shape: f32[8,1,110], index: 2, kind: input, shape index: {}]   ;;  %s1621_s3 = inlined_call_operand.vmem [shape: f32[8,1], index: 3, kind: input, shape index: {}]   ;;  %s1622_s4 = inlined_call_operand.vmem [shape: f32[8,1], index: 4, kind: input, shape index: {}]   ;;  %s1623_s5 = inlined_call_operand.vmem [shape: f32[8,1], index: 5, kind: input, shape index: {}]   ;;  %s1624_s6 = inlined_call_operand.vmem [shape: f32[8,1], index: 6, kind: input, shape index: {}]   ;;  %s1625_s7 = inlined_call_operand.vmem [shape: f32[2,8,8,80], index: 7, kind: output, shape index: {}]  }
   0x1   :  { %s1475_s26 = smov 0   ;;  %s1477_s27 = smov 0  }
   0x2   :  { %s1479_s28 = smov 0  }
   0x3 LB: > { %s32_s29 = sadd.s32 1, %s1410_s26  ;;  %s36_s30 = sadd.s32 1, %s1414_s27  ;;  %s1418_s28 = sphi %s1479_s28, %s17_s28   ;;  %s1414_s27 = sphi %s1477_s27, %s1629_s27   ;;  %s1410_s26 = sphi %s1475_s26, %s1628_s26   ;;  %s1406_s25 = sphi %s1473_s25, %s1627_s25   ;;  %s1402_s24 = sphi %s1471_s24, %s1626_s24  }
   0x4   : > { %p34_p0 = scmp.ge.s32.totalorder %s32_s29, 8  ;;  %p1239_p1 = scmp.ge.s32.totalorder %s1418_s28, 1 }
   0x5   : > { %p289_p2 = scmp.lt.s32.totalorder %s1418_s28, 17 }
   0x6   : > { %s1631_s29 = smov (%p34_p0, %s32_s29), 0  ;;  %s1633_s30 = smov (!%p34_p0, %s36_s30), %s1414_s27 }
   0x7   : > { %p290_p3 = pnand %p1239_p1, %p289_p2  ;;  %p38_p4 = scmp.ge.s32.totalorder %s1633_s30, 2 }
   0x8   : > { %v366_v0 = vld [vmem:[%s1621_s3] sm:$0xff] (!%p290_p3)  ;;  %v1420_v2 = vmov (!%p290_p3), 0   ;;  %v1421_v4 = vmov (!%p290_p3), 0.0   ;;  %p338_p5 = scmp.lt.s32.totalorder (!%p290_p3), %s1406_s25, 1  ;;  %p340_p6 = scmp.lt.s32.totalorder (!%p290_p3), %s1402_s24, 7  ;;  %vm1422_vm0 = vmmov (!%p290_p3), 0  }
   0x9   : > { %s1635_s30 = smov (%p38_p4, %s1633_s30), 0  ;;  %293 = sbr.rel (%p290_p3) target bundleno = 499 (0x1f3), region = 48 }
   0xa   : > { %v381_v1 = vld [vmem:[%s1623_s5] sm:$0xff] (!%p290_p3)  ;;  %1378 = vset.pattern.permute.xlu0 (!%p290_p3), %v1420_v2  ;;  %1379 = vset.pattern.permute.xlu1 (!%p290_p3), %v1420_v2  ;;  %vm416_vm2 = vcmask (!%p290_p3), 64512   ;;  %s1423_s8 = smov (!%p290_p3), 126   ;;  %s1424_s9 = smov (!%p290_p3), 127   ;;  %v1245_v17 = vld [vmem:[%s1619_s1 + $0x8] sm:$0xff] (!%p290_p3)  ;;  %v1248_v20 = vld [vmem:[%s1619_s1 + $0x10] sm:$0xff] (!%p290_p3) }
   0xb   : > { %369 = vperm.xlu0 (!%p290_p3), %1378, %v366_v0   ;;  %384 = vperm.xlu1 (!%p290_p3), %1379, %v381_v1   ;;  %v373_v3 = vld [vmem:[%s1622_s4] sm:$0xff] (!%p290_p3)  ;;  %s1426_s10 = smov (!%p290_p3), 118   ;;  %s1427_s11 = smov (!%p290_p3), 108   ;;  %v1250_v21 = vld [vmem:[%s1619_s1 + $0x18] sm:$0xff] (!%p290_p3)  ;;  %v1254_v25 = vld [vmem:[%s1619_s1 + $0x28] sm:$0xff] (!%p290_p3)  ;;  %vm407_vm3 = vcmask (!%p290_p3), 654336  }
   0xc   : > { %1287 = vmatprep.subr.mxu1 (!%p290_p3), %v1421_v4  ;;  %1282 = vmatprep.subr.mxu0 (!%p290_p3), %v1421_v4  ;;  %v409_v15 = vld [vmem:[%s1619_s1] sm:$0xff] (!%p290_p3)  ;;  %s1428_s12 = smov (!%p290_p3), 116   ;;  %s1429_s13 = smov (!%p290_p3), 106   ;;  %v1256_v28 = vld [vmem:[%s1619_s1 + $0x30] sm:$0xff] (!%p290_p3)  ;;  %v1258_v29 = vld [vmem:[%s1619_s1 + $0x38] sm:$0xff] (!%p290_p3) }
   0xd   : > { %1284 = vmatprep.mubr.msk.f32.mxu0 (!%p290_p3), %vm1422_vm0, %v1421_v4  ;;  %1289 = vmatprep.mubr.msk.f32.mxu1 (!%p290_p3), %vm1422_vm0, %v1421_v4  ;;  %v401_v16 = vld [vmem:[%s1624_s6] sm:$0xff] (!%p290_p3) }
   0xe   : > { %v1252_v24 = vld [vmem:[%s1619_s1 + $0x20] sm:$0xff] (!%p290_p3) }
   0xf   : > { %376 = vperm.xlu0 (!%p290_p3), %1378, %v373_v3   ;;  %v1260_v32 = vld [vmem:[%s1619_s1 + $0x40] sm:$0xff] (!%p290_p3) }
  0x10   : > { %s1637_s25 = smov (!%p338_p5, %s1406_s25), 1  ;;  %s1639_s24 = smov (!%p340_p6, %s1402_s24), 7 }
  0x11   : > { %s1240_s14 = sshll.u32 %s1637_s25, 3  ;;  %s355_s22 = scalar_lea.vmem %s1620_s2, %s1639_s24 }
  0x12   : > { %s1516_s15 = sadd.s32 %s1240_s14, %s1639_s24  ;;  %v1244_v12 = vld [vmem:[%s355_s22] ss:$0 sm:$0xff]  ;;  %s1425_s24 = smov 117  }
  0x13   : > { %s1241_s16 = sshll.u32 %s1516_s15, 3  ;;  %s1430_s14 = smov 107  }
  0x14   : > { %s345_s19 = scalar_lea.vmem %s1618_s0, %s1241_s16  ;;  %s1596_s21 = scalar_lea.vmem %s1625_s7, %s1241_s16 }
  0x15   : > { %v365_v6 = vld [vmem:[%s345_s19] sm:$0xff] }
  0x8a   : > { %v370_v5 = vpop.permute.xlu0 %369  ;;  %v385_v9 = vpop.permute.xlu1 %384 }
  0x8b   : > { %v372_v7 = vmul.f32 %v370_v5, %v365_v6 }
  0x8e   : > { %v377_v8 = vpop.permute.xlu0 %376 }
  0x8f   : > { %v379_v10 = vadd.f32 %v377_v8, %v372_v7 }
  0x91   : > { %vm380_vm1 = vcmp.ge.f32.partialorder %v379_v10, 0.0  ;;  %v387_v11 = vmul.f32 %v385_v9, %v379_v10 }
  0x93   : > { %v388_v13 = vsel %vm380_vm1, %v379_v10, %v387_v11 }
  0x94   : > { %v396_v14 = vmul.f32 %v1244_v12, %v388_v13 }
  0x96   : > { %565 = vrot.lane.b32.xlu0 %v396_v14, %s1423_s8  ;;  %413 = vrot.lane.b32.xlu1 %v396_v14, %s1424_s9 }
  0x97   : > { %1288 = vmatpush3.msra.mxu1 %v396_v14 }
  0x98   : > { %1290 = vmatmul.mubr.msk.f32.vlgmr.msra.gmra.mrb[0].mxu1 %vm416_vm2, %v409_v15  ;;  %1297 = vmatprep.subr.mxu1 %v1421_v4 }
  0x99   : > { %1299 = vmatprep.mubr.msk.f32.mxu1 %vm1422_vm0, %v1421_v4 }
  0x9a   : > { %723 = vrot.lane.b32.xlu0 %v396_v14, %s1425_s24  ;;  %644 = vrot.lane.b32.xlu1 %v396_v14, %s1426_s10 }
  0x9e   : > { %881 = vrot.lane.b32.xlu0 %v396_v14, %s1427_s11  ;;  %802 = vrot.lane.b32.xlu1 %v396_v14, %s1428_s12 }
  0xa2   : > { %1039 = vrot.lane.b32.xlu0 %v396_v14, %s1429_s13  ;;  %960 = vrot.lane.b32.xlu1 %v396_v14, %s1430_s14 }
  0xa6   : > { %404 = vperm.xlu1 %1379, %v401_v16  }
 0x108   : > { %v566_v18 = vpop.permute.xlu0 %565  ;;  %v414_v19 = vpop.permute.xlu1 %413 }
 0x109   : > { %1283 = vmatpush3.msra.mxu0 %v414_v19 }
 0x10a   : > { %1285 = vmatmul.mubr.msk.f32.vlgmr.msra.gmra.mrb[0].mxu0 %vm416_vm2, %v1245_v17  ;;  %1292 = vmatprep.subr.mxu0 %v1421_v4 }
 0x10b   : > { %1293 = vmatpush3.msra.mxu0 %v566_v18  ;;  %1294 = vmatprep.mubr.msk.f32.mxu0 %vm1422_vm0, %v1421_v4 }
 0x10c   : > { %v724_v22 = vpop.permute.xlu0 %723  ;;  %v645_v23 = vpop.permute.xlu1 %644  ;;  %1302 = vmatprep.subr.mxu0 %v1421_v4 }
 0x10d   : > { %1298 = vmatpush3.msra.mxu1 %v645_v23 }
 0x10e   : > { %1295 = vmatmul.mubr.msk.f32.vlgmr.msra.gmra.mrb[2].mxu0 %vm416_vm2, %v1248_v20  ;;  %1300 = vmatmul.mubr.msk.f32.vlgmr.msra.gmra.mrb[2].mxu1 %vm416_vm2, %v1250_v21 }
 0x10f   : > { %1303 = vmatpush3.msra.mxu0 %v724_v22  ;;  %1307 = vmatprep.subr.mxu1 %v1421_v4 }
 0x110   : > { %v882_v26 = vpop.permute.xlu0 %881  ;;  %v803_v27 = vpop.permute.xlu1 %802  ;;  %1304 = vmatprep.mubr.msk.f32.mxu0 %vm1422_vm0, %v1421_v4  ;;  %1312 = vmatprep.subr.mxu0 %v1421_v4 }
 0x111   : > { %1308 = vmatpush3.msra.mxu1 %v803_v27  ;;  %1309 = vmatprep.mubr.msk.f32.mxu1 %vm1422_vm0, %v1421_v4 }
 0x112   : > { %1305 = vmatmul.mubr.msk.f32.vlgmr.msra.gmra.mrb[4].mxu0 %vm416_vm2, %v1252_v24  ;;  %1310 = vmatmul.mubr.msk.f32.vlgmr.msra.gmra.mrb[4].mxu1 %vm416_vm2, %v1254_v25 }
 0x113   : > { %1313 = vmatpush3.msra.mxu0 %v882_v26  ;;  %1317 = vmatprep.subr.mxu1 %v1421_v4 }
 0x114   : > { %v1040_v30 = vpop.permute.xlu0 %1039  ;;  %v961_v31 = vpop.permute.xlu1 %960  ;;  %1314 = vmatprep.mubr.msk.f32.mxu0 %vm1422_vm0, %v1421_v4  ;;  %1322 = vmatprep.subr.mxu0 %v1421_v4 }
 0x115   : > { %1318 = vmatpush3.msra.mxu1 %v961_v31  ;;  %1319 = vmatprep.mubr.msk.f32.mxu1 %vm1422_vm0, %v1421_v4 }
 0x116   : > { %1315 = vmatmul.mubr.msk.f32.vlgmr.msra.gmra.mrb[6].mxu0 %vm416_vm2, %v1256_v28  ;;  %1320 = vmatmul.mubr.msk.f32.vlgmr.msra.gmra.mrb[6].mxu1 %vm416_vm2, %v1258_v29 }
 0x117   : > { %1323 = vmatpush3.msra.mxu0 %v1040_v30  ;;  %1324 = vmatprep.mubr.msk.f32.mxu0 %vm1422_vm0, %v1421_v4 }
 0x11a   : > { %1325 = vmatmul.mubr.msk.f32.vlgmr.msra.gmra.mrb[8].mxu0 %vm416_vm2, %v1260_v32 }
 0x125   : > { %v405_v33 = vpop.permute.xlu1 %404 }
 0x126   : > { %408 = vst.msk [vmem:[%s1596_s21] sm:$0xff] %vm407_vm3, %v405_v33 }
 0x12d   : > { %v1116_v60 = vld [vmem:[%s1596_s21] sm:$0xff] }
 0x16b   : > { %v559_v34 = vpop.f32.mrb[0].mxu1 }
 0x16c   : > { %v1291_v35 = vpop.f32.mrb[1].mxu1 }
 0x1dd   : > { %v486_v36 = vpop.f32.mrb[0].mxu0 }
 0x1de   : > { %v1286_v37 = vpop.f32.mrb[1].mxu0  ;;  %v560_v38 = vadd.f32 %v559_v34, %v486_v36 }
 0x1e1   : > { %v637_v39 = vpop.f32.mrb[2].mxu0  ;;  %v716_v40 = vpop.f32.mrb[2].mxu1 }
 0x1e2   : > { %v641_v41 = vadd.f32 %v637_v39, %v560_v38  ;;  %v1296_v42 = vpop.f32.mrb[3].mxu0  ;;  %v1301_v43 = vpop.f32.mrb[3].mxu1 }
 0x1e4   : > { %v720_v44 = vadd.f32 %v716_v40, %v641_v41 }
 0x1e5   : > { %v795_v45 = vpop.f32.mrb[4].mxu0  ;;  %v874_v46 = vpop.f32.mrb[4].mxu1 }
 0x1e6   : > { %v799_v47 = vadd.f32 %v795_v45, %v720_v44  ;;  %v1306_v48 = vpop.f32.mrb[5].mxu0  ;;  %v1311_v49 = vpop.f32.mrb[5].mxu1 }
 0x1e8   : > { %v878_v50 = vadd.f32 %v874_v46, %v799_v47 }
 0x1e9   : > { %v953_v51 = vpop.f32.mrb[6].mxu0  ;;  %v1032_v52 = vpop.f32.mrb[6].mxu1 }
 0x1ea   : > { %v957_v53 = vadd.f32 %v953_v51, %v878_v50  ;;  %v1316_v54 = vpop.f32.mrb[7].mxu0  ;;  %v1321_v55 = vpop.f32.mrb[7].mxu1 }
 0x1ec   : > { %v1036_v56 = vadd.f32 %v1032_v52, %v957_v53 }
 0x1ed   : > { %v1111_v57 = vpop.f32.mrb[8].mxu0 }
 0x1ee   : > { %v1115_v58 = vadd.f32 %v1111_v57, %v1036_v56  ;;  %v1326_v59 = vpop.f32.mrb[9].mxu0 }
 0x1f0   : > { %v1117_v61 = vadd.f32 %v1116_v60, %v1115_v58 }
 0x1f2   : > { %1119 = vst.msk [vmem:[%s1596_s21] sm:$0xff] %vm407_vm3, %v1117_v61 }
 0x1f3 PF: > { %s17_s28 = sadd.s32 1, %s1418_s28   ;;  %s1626_s24 = smov %s1410_s26 }
 0x1f4   : > { %p14_p7 = scmp.ge.s32.totalorder %s17_s28, 18   ;;  %s1627_s25 = smov %s1414_s27 }
 0x1f5   : > { %s1628_s26 = smov %s1631_s29  ;;  %s1629_s27 = smov %s1635_s30 }
 0x1f6   :  { %16 = sbr.rel (!%p14_p7) target bundleno = 3 (0x3), region = 96 }

// kernel: hiformer_v3_forward.30
= control target key start
LH: loop header
LB: loop body
LE: loop exit
PB: predicated region body
PF: predicated region fallthrough
CT: control target
= control target key end

     0   :  { %s576_s12 = smov 0   ;;  %s578_s13 = smov 0   ;;  %s644_s0 = inlined_call_operand.vmem [shape: f32[2,8,72,16], index: 0, kind: input, shape index: {}]   ;;  %s645_s1 = inlined_call_operand.vmem [shape: f32[16,72], index: 1, kind: input, shape index: {}]   ;;  %s646_s2 = inlined_call_operand.vmem [shape: f32[16,1], index: 2, kind: input, shape index: {}]   ;;  %s647_s3 = inlined_call_operand.vmem [shape: f32[2,8,16,16], index: 3, kind: output, shape index: {}]  }
   0x1   :  { %s580_s14 = smov 0   ;;  %s582_s15 = smov 0  }
   0x2   :  { %s584_s16 = smov 0  }
   0x3 LB: > { %s22_s17 = sadd.s32 1, %s545_s14  ;;  %s25_s18 = sadd.s32 1, %s549_s15  ;;  %s553_s16 = sphi %s584_s16, %s13_s16   ;;  %s549_s15 = sphi %s582_s15, %s651_s15   ;;  %s545_s14 = sphi %s580_s14, %s650_s14   ;;  %s541_s13 = sphi %s578_s13, %s649_s13   ;;  %s537_s12 = sphi %s576_s12, %s648_s12  }
   0x4   : > { %p23_p0 = scmp.ge.s32.totalorder %s22_s17, 8  ;;  %p414_p1 = scmp.ge.s32.totalorder %s553_s16, 1 }
   0x5   : > { %p157_p2 = scmp.lt.s32.totalorder %s553_s16, 17 }
   0x6   : > { %s653_s17 = smov (%p23_p0, %s22_s17), 0  ;;  %s655_s18 = smov (!%p23_p0, %s25_s18), %s549_s15 }
   0x7   : > { %p158_p3 = pnand %p414_p1, %p157_p2  ;;  %p27_p4 = scmp.ge.s32.totalorder %s655_s18, 2 }
   0x8   : > { %p189_p5 = scmp.lt.s32.totalorder (!%p158_p3), %s541_s13, 1  ;;  %p191_p6 = scmp.lt.s32.totalorder (!%p158_p3), %s537_s12, 7  ;;  %v207_v0 = vld [vmem:[%s645_s1] sm:$0xff] (!%p158_p3)  ;;  %vm230_vm0 = vcmask (!%p158_p3), 588800   ;;  %v555_v1 = vmov (!%p158_p3), 0   ;;  %v219_v3 = vld [vmem:[%s646_s2 + $0x8] sm:$0xff] (!%p158_p3) }
   0x9   : > { %s657_s18 = smov (%p27_p4, %s655_s18), 0  ;;  %161 = sbr.rel (%p158_p3) target bundleno = 260 (0x104), region = 32 }
   0xa   : > { %452 = vmatprep.mubr.msk.f32.mxu0 (!%p158_p3), %vm230_vm0, %v207_v0  ;;  %514 = vset.pattern.permute.xlu0 (!%p158_p3), %v555_v1  ;;  %v218_v2 = vld [vmem:[%s646_s2] sm:$0xff] (!%p158_p3)  ;;  %v208_v17 = vld [vmem:[%s645_s1 + $0x8] sm:$0xff] (!%p158_p3)  ;;  %vm312_vm1 = vcmask (!%p158_p3), 130048  }
   0xb   : > { %222 = vperm.xlu0 (!%p158_p3), %514, %v218_v2  }
   0xf   : > { %227 = vperm.xlu0 (!%p158_p3), %514, %v219_v3  }
  0x10   : > { %s659_s13 = smov (!%p189_p5, %s541_s13), 1  ;;  %s661_s12 = smov (!%p191_p6, %s537_s12), 7 }
  0x11   : > { %s472_s25 = smul.u32 72, %s659_s13  ;;  %s416_s27 = sshll.u32 %s661_s12, 1 }
  0x12   : > { %s471_s26 = smul.u32 9, %s661_s12  ;;  %s417_s28 = sshll.u32 %s659_s13, 4 }
  0x13   : > { %s616_s30 = sadd.s32 %s417_s28, %s416_s27 }
  0x14   : > { %s195_s29 = sadd.s32 %s472_s25, %s471_s26  ;;  %s418_s10 = sshll.u32 %s616_s30, 3 }
  0x15   : > { %s415_s4 = sshll.u32 %s195_s29, 3  ;;  %s206_s13 = scalar_lea.vmem %s647_s3, %s418_s10 }
  0x16   : > { %s197_s7 = scalar_lea.vmem %s644_s0, %s415_s4 }
  0x17   : > { %v209_v4 = vld [vmem:[%s197_s7] sm:$0xff]  ;;  %v210_v5 = vld [vmem:[%s197_s7 + $0x8] sm:$0xff]  ;;  %v211_v6 = vld [vmem:[%s197_s7 + $0x10] sm:$0xff] }
  0x18   : > { %v455_v7 = vpack.c.bf16 %v210_v5, %v209_v4  ;;  %v212_v8 = vld [vmem:[%s197_s7 + $0x18] sm:$0xff]  ;;  %v213_v10 = vld [vmem:[%s197_s7 + $0x20] sm:$0xff]  ;;  %v214_v11 = vld [vmem:[%s197_s7 + $0x28] sm:$0xff] }
  0x19   : > { %v459_v9 = vpack.c.bf16 %v212_v8, %v211_v6  ;;  %v463_v12 = vpack.c.bf16 %v214_v11, %v213_v10  ;;  %v215_v13 = vld [vmem:[%s197_s7 + $0x30] sm:$0xff]  ;;  %v216_v14 = vld [vmem:[%s197_s7 + $0x38] sm:$0xff]  ;;  %v217_v16 = vld [vmem:[%s197_s7 + $0x40] sm:$0xff] }
  0x1a   : > { %456 = vmatprep.subr.bf16.mxu0 %v455_v7  ;;  %v467_v15 = vpack.c.bf16 %v216_v14, %v215_v13 }
  0x1b   : > { %458 = vmatpush3.bf16.msra.mxu0 %v455_v7 }
  0x1c   : > { %460 = vmatprep.subr.bf16.mxu0 %v459_v9 }
  0x1f   : > { %462 = vmatpush3.bf16.msra.mxu0 %v459_v9 }
  0x20   : > { %464 = vmatprep.subr.bf16.mxu0 %v463_v12 }
  0x23   : > { %466 = vmatpush3.bf16.msra.mxu0 %v463_v12 }
  0x24   : > { %468 = vmatprep.subr.bf16.mxu0 %v467_v15 }
  0x27   : > { %470 = vmatpush3.bf16.msra.mxu0 %v467_v15 }
  0x28   : > { %450 = vmatprep.subr.mxu0 %v217_v16 }
  0x2b   : > { %451 = vmatpush3.msra.mxu0 %v217_v16 }
  0x2c   : > { %453 = vmatmul.mubr.msk.f32.vlgmr.msra.gmra.mrb[0].mxu0 %vm230_vm0, %v208_v17 }
  0x8a   : > { %v223_v18 = vpop.permute.xlu0 %222 }
  0x8e   : > { %v228_v19 = vpop.permute.xlu0 %227 }
  0xff   : > { %v454_v20 = vpop.f32.mrb[0].mxu0 }
 0x100   : > { %v309_v21 = vadd.f32 %v454_v20, %v228_v19  ;;  %v303_v22 = vpop.f32.mrb[1].mxu0 }
 0x101   : > { %v304_v23 = vadd.f32 %v303_v22, %v223_v18 }
 0x102   : > { %314 = vst.msk [vmem:[%s206_s13 + $0x8] sm:$0xff] %vm312_vm1, %v309_v21 }
 0x103   : > { %313 = vst.msk [vmem:[%s206_s13] sm:$0xff] %vm312_vm1, %v304_v23 }
 0x104 PF: > { %s13_s16 = sadd.s32 1, %s553_s16   ;;  %s648_s12 = smov %s545_s14 }
 0x105   : > { %p10_p7 = scmp.ge.s32.totalorder %s13_s16, 18   ;;  %s649_s13 = smov %s549_s15 }
 0x106   : > { %s650_s14 = smov %s653_s17  ;;  %s651_s15 = smov %s657_s18 }
 0x107   :  { %12 = sbr.rel (!%p10_p7) target bundleno = 3 (0x3), region = 62 }

// kernel: hiformer_v3_forward.31
= control target key start
LH: loop header
LB: loop body
LE: loop exit
PB: predicated region body
PF: predicated region fallthrough
CT: control target
= control target key end

     0   :  { %s1812_s24 = smov 0   ;;  %s1814_s25 = smov 0   ;;  %s1972_s0 = inlined_call_operand.vmem [shape: f32[2,10,16,42], index: 0, kind: input, shape index: {}]   ;;  %s1973_s1 = inlined_call_operand.vmem [shape: f32[3,9,16,16], index: 1, kind: input, shape index: {}]   ;;  %s1974_s2 = inlined_call_operand.vmem [shape: f32[10,1,42], index: 2, kind: input, shape index: {}]   ;;  %s1975_s3 = inlined_call_operand.vmem [shape: f32[16,1], index: 3, kind: input, shape index: {}]   ;;  %s1976_s4 = inlined_call_operand.vmem [shape: f32[16,1], index: 4, kind: input, shape index: {}]   ;;  %s1977_s5 = inlined_call_operand.vmem [shape: f32[16,1], index: 5, kind: input, shape index: {}]   ;;  %s1978_s6 = inlined_call_operand.vmem [shape: f32[16,1], index: 6, kind: input, shape index: {}]   ;;  %s1979_s7 = inlined_call_operand.vmem [shape: f32[2,8,16,24], index: 7, kind: output, shape index: {}]  }
   0x1   :  { %1980 = sst [smem:[#allocation2_spill]] %s1975_s3  ;;  %s1816_s26 = smov 0  }
   0x2   :  { %1981 = sst [smem:[#allocation3_spill]] %s1976_s4  ;;  %s1818_s27 = smov 0  }
   0x3   :  { %1982 = sst [smem:[#allocation4_spill]] %s1977_s5  ;;  %s1820_s28 = smov 0  }
   0x4   :  { %s1822_s29 = smov 0   ;;  %s1824_s30 = smov 0  }
   0x5 LB: > { %s29_s8 = sadd.s32 1, %s1748_s27  ;;  %s32_s9 = sadd.s32 1, %s1752_s28  ;;  %s1760_s30 = sphi %s1824_s30, %s17_s30   ;;  %s1756_s29 = sphi %s1822_s29, %s1991_s29   ;;  %s1752_s28 = sphi %s1820_s28, %s1990_s28   ;;  %s1748_s27 = sphi %s1818_s27, %s1989_s27   ;;  %s1744_s26 = sphi %s1816_s26, %s1988_s26   ;;  %s1740_s25 = sphi %s1814_s25, %s1987_s25   ;;  %s1736_s24 = sphi %s1812_s24, %s1986_s24  }
   0x6   : > { %p30_p0 = scmp.ge.s32.totalorder %s29_s8, 3  ;;  %p1399_p1 = scmp.ge.s32.totalorder %s1760_s30, 1 }
   0x7   : > { %p290_p2 = scmp.lt.s32.totalorder %s1760_s30, 49  ;;  %s36_s10 = sadd.s32 1, %s1756_s29 }
   0x8   : > { %s1993_s8 = smov (%p30_p0, %s29_s8), 0  ;;  %s1995_s9 = smov (!%p30_p0, %s32_s9), %s1752_s28 }
   0x9   : > { %p291_p3 = pnand %p1399_p1, %p290_p2  ;;  %p34_p4 = scmp.ge.s32.totalorder %s1995_s9, 8 }
   0xa   : > { %s1983_s4 = sld [smem:[#allocation3_spill]] (!%p291_p3)  ;;  %s1984_s3 = sld [smem:[#allocation2_spill]] (!%p291_p3)  ;;  %v1762_v2 = vmov (!%p291_p3), 0  }
   0xb   : > { %s1997_s9 = smov (%p34_p4, %s1995_s9), 0  ;;  %s1999_s10 = smov (!%p34_p4, %s36_s10), %s1756_s29 }
   0xc   : > { %p38_p5 = scmp.ge.s32.totalorder %s1999_s10, 2  ;;  %294 = sbr.rel (%p291_p3) target bundleno = 539 (0x21b), region = 48  ;;  %1664 = vset.pattern.permute.xlu1 (!%p291_p3), %v1762_v2  ;;  %1663 = vset.pattern.permute.xlu0 (!%p291_p3), %v1762_v2 }
   0xd   : > { %p341_p6 = scmp.lt.s32.totalorder (!%p291_p3), %s1744_s26, 1  ;;  %p363_p7 = scmp.lt.s32.totalorder (!%p291_p3), %s1740_s25, 7 }
   0xe   : > { %s2001_s10 = smov (%p38_p5, %s1999_s10), 0  ;;  %s1985_s5 = sld [smem:[#allocation4_spill]] (!%p291_p3) }
   0xf   : > { %p351_p8 = scmp.lt.s32.totalorder (!%p291_p3), %s1736_s24, 2  ;;  %s340_s22 = sadd.s32 (!%p291_p3), %s1736_s24, %s1740_s25 }
  0x10   : > { %v386_v0 = vld [vmem:[%s1983_s4] sm:$0xff] (!%p291_p3)  ;;  %v387_v3 = vld [vmem:[%s1983_s4 + $0x8] sm:$0xff] (!%p291_p3)  ;;  %p343_p9 = scmp.lt.s32.totalorder (!%p291_p3), %s340_s22, 9  ;;  %p1407_p10 = scmp.ne.s32.totalorder (!%p291_p3), %s1736_s24, 0 }
  0x11   : > { %v372_v1 = vld [vmem:[%s1984_s3] sm:$0xff] (!%p291_p3)  ;;  %390 = vperm.xlu1 (!%p291_p3), %1664, %v386_v0   ;;  %v373_v4 = vld [vmem:[%s1984_s3 + $0x8] sm:$0xff] (!%p291_p3) }
  0x12   : > { %376 = vperm.xlu0 (!%p291_p3), %1663, %v372_v1  }
  0x13   : > { %s2003_s26 = smov (!%p341_p6, %s1744_s26), 1  ;;  %s2005_s22 = smov (!%p343_p9, %s340_s22), 9 }
  0x14   : > { %v403_v5 = vld [vmem:[%s1985_s5 + $0x8] sm:$0xff]  ;;  %v402_v6 = vld [vmem:[%s1985_s5] sm:$0xff]  ;;  %s1404_s23 = sshll.u32 %s2003_s26, 4  ;;  %s1595_s4 = smul.u32 20, %s2003_s26  ;;  %v1763_v27 = vmov (!%p1407_p10), 0   ;;  %vm443_vm2 = vcmask (!%p1407_p10), 195584  }
  0x15   : > { %395 = vperm.xlu1 %1664, %v387_v3   ;;  %s364_s11 = scalar_select %p363_p7, %s1740_s25, 7 }
  0x16   : > { %381 = vperm.xlu0 %1663, %v373_v4   ;;  %s352_s18 = scalar_select %p351_p8, %s1736_s24, 2 }
  0x17   : > { %s1403_s12 = sshll.u32 %s364_s11, 1  ;;  %s1400_s11 = sshll.u32 %s2005_s22, 1  ;;  %v431_v26 = vld [vmem:[%s1978_s6] sm:$0xff] (!%p1407_p10)  ;;  %v432_v28 = vld [vmem:[%s1978_s6 + $0x8] sm:$0xff] (!%p1407_p10) }
  0x18   : > { %s367_s13 = sadd.s32 %s1404_s23, %s1403_s12  ;;  %s1596_s19 = smul.u32 144, %s352_s18 }
  0x19   : > { %411 = vperm.xlu1 %1664, %v403_v5   ;;  %s1405_s14 = sshll.u32 %s367_s13, 3  ;;  %s347_s5 = sadd.s32 %s1595_s4, %s1400_s11 }
  0x1a   : > { %406 = vperm.xlu0 %1663, %v402_v6   ;;  %s1886_s17 = scalar_lea.vmem %s1979_s7, %s1405_s14  ;;  %s1892_s21 = scalar_lea.vmem %s1973_s1, %s1596_s19 }
  0x1b   : > { %s1401_s23 = sshll.u32 %s347_s5, 3  ;;  %s359_s26 = scalar_lea.vmem %s1974_s2, %s2005_s22 }
  0x1c   : > { %s349_s15 = scalar_lea.vmem %s1972_s0, %s1401_s23  ;;  %v1406_v20 = vld [vmem:[%s359_s26] ss:$0 sm:$0xff] }
  0x1d   : > { %v370_v7 = vld [vmem:[%s349_s15] sm:$0xff]  ;;  %v371_v11 = vld [vmem:[%s349_s15 + $0x8] sm:$0xff] }
  0x1e   : > { %1665 = vset.pattern.permute.xlu0 (!%p1407_p10), %v1763_v27 }
  0x1f   : > { %435 = vperm.xlu0 (!%p1407_p10), %1665, %v431_v26  }
  0x23   : > { %440 = vperm.xlu0 (!%p1407_p10), %1665, %v432_v28  }
  0x90   : > { %v391_v8 = vpop.permute.xlu1 %390 }
  0x91   : > { %v377_v9 = vpop.permute.xlu0 %376 }
  0x92   : > { %v384_v10 = vmul.f32 %v377_v9, %v370_v7 }
  0x94   : > { %v396_v12 = vpop.permute.xlu1 %395  ;;  %v398_v15 = vadd.f32 %v391_v8, %v384_v10 }
  0x95   : > { %v382_v13 = vpop.permute.xlu0 %381 }
  0x96   : > { %v385_v14 = vmul.f32 %v382_v13, %v371_v11  ;;  %vm400_vm1 = vcmp.ge.f32.partialorder %v398_v15, 0.0 }
  0x97   : > { %430 = sbr.rel (%p1407_p10) target bundleno = 164 (0xa4), region = 52 }
  0x98   : > { %v399_v16 = vadd.f32 %v396_v12, %v385_v14  ;;  %v412_v17 = vpop.permute.xlu1 %411 }
  0x99   : > { %v407_v18 = vpop.permute.xlu0 %406 }
  0x9a   : > { %vm401_vm0 = vcmp.ge.f32.partialorder %v399_v16, 0.0  ;;  %v415_v19 = vmul.f32 %v412_v17, %v399_v16  ;;  %v414_v21 = vmul.f32 %v407_v18, %v398_v15 }
  0x9c   : > { %v417_v22 = vsel %vm401_vm0, %v399_v16, %v415_v19  ;;  %v416_v23 = vsel %vm400_vm1, %v398_v15, %v414_v21 }
  0x9d   : > { %v426_v24 = vmul.f32 %v1406_v20, %v417_v22  ;;  %v425_v25 = vmul.f32 %v1406_v20, %v416_v23 }
  0x9e   : > { %v436_v29 = vpop.permute.xlu0 %435 }
  0x9f   : > { %444 = vst.msk [vmem:[%s1886_s17] sm:$0xff] %vm443_vm2, %v436_v29 }
  0xa2   : > { %v441_v30 = vpop.permute.xlu0 %440 }
  0xa3   : > { %445 = vst.msk [vmem:[%s1886_s17 + $0x8] sm:$0xff] %vm443_vm2, %v441_v30 }
  0xa4 PF: > { %v1666_v31 = vpack.i.bf16 %v426_v24, %v425_v25  ;;  %v1422_v32 = vld [vmem:[%s1892_s21 + $0x40] sm:$0xff]  ;;  %v1408_v33 = vld [vmem:[%s1892_s21 + $0x10] sm:$0xff]  ;;  %s1764_s24 = smov 121   ;;  %s1765_s18 = smov 120   ;;  %vm459_vm3 = vcmask 130048   ;;  %v1423_v48 = vld [vmem:[%s1892_s21 + $0x48] sm:$0xff]  ;;  %v1547_v52 = vpack.c.bf16 %v426_v24, %v425_v25 }
  0xa5   : > { %1512 = vmatprep.mubr.msk.f32.mxu0 %vm459_vm3, %v1422_v32  ;;  %1484 = vmatprep.mubr.msk.f32.mxu1 %vm459_vm3, %v1408_v33  ;;  %s1766_s19 = smov 127   ;;  %s1767_s20 = smov 116   ;;  %v1426_v51 = vld [vmem:[%s1892_s21 + $0x50] sm:$0xff]  ;;  %v1409_v57 = vld [vmem:[%s1892_s21 + $0x18] sm:$0xff]  ;;  %v446_v61 = vld [vmem:[%s1892_s21] sm:$0xff]  ;;  %vm1270_vm4 = vcmask 195584  }
  0xa6   : > { %1667 = vrot.lane.b32.xlu0 %v1666_v31, %s1764_s24  ;;  %1677 = vrot.lane.b32.xlu1 %v1666_v31, %s1765_s18  ;;  %s1768_s22 = smov 115   ;;  %s1769_s11 = smov 126   ;;  %v1427_v63 = vld [vmem:[%s1892_s21 + $0x58] sm:$0xff]  ;;  %v1430_v1 = vld [vmem:[%s1892_s21 + $0x60] sm:$0xff] }
  0xa7   : > { %s1770_s23 = smov 114   ;;  %s1771_s12 = smov 122   ;;  %v447_v5 = vld [vmem:[%s1892_s21 + $0x8] sm:$0xff]  ;;  %v1414_v9 = vld [vmem:[%s1892_s21 + $0x20] sm:$0xff]  ;;  %v1434_v12 = vld [vmem:[%s1892_s21 + $0x70] sm:$0xff] }
  0xa8   : > { %v1431_v10 = vld [vmem:[%s1892_s21 + $0x68] sm:$0xff]  ;;  %v1418_v14 = vld [vmem:[%s1892_s21 + $0x30] sm:$0xff]  ;;  %v1435_v15 = vld [vmem:[%s1892_s21 + $0x78] sm:$0xff] }
  0xa9   : > { %v1415_v13 = vld [vmem:[%s1892_s21 + $0x28] sm:$0xff]  ;;  %v1438_v16 = vld [vmem:[%s1892_s21 + $0x80] sm:$0xff]  ;;  %v1419_v17 = vld [vmem:[%s1892_s21 + $0x38] sm:$0xff] }
  0xaa   : > { %1672 = vrot.lane.b32.xlu0 %v1666_v31, %s1766_s19  ;;  %1682 = vrot.lane.b32.xlu1 %v1666_v31, %s1767_s20  ;;  %v1439_v18 = vld [vmem:[%s1892_s21 + $0x88] sm:$0xff]  ;;  %v1266_v25 = vld [vmem:[%s1886_s17] sm:$0xff] }
  0xab   : > { %v1267_v22 = vld [vmem:[%s1886_s17 + $0x8] sm:$0xff] }
  0xae   : > { %1692 = vrot.lane.b32.xlu1 %v1666_v31, %s1768_s22  ;;  %1687 = vrot.lane.b32.xlu0 %v1666_v31, %s1769_s11 }
  0xb2   : > { %1702 = vrot.lane.b32.xlu1 %v1666_v31, %s1770_s23  ;;  %1697 = vrot.lane.b32.xlu0 %v1666_v31, %s1771_s12 }
 0x118   : > { %v1668_v34 = vpop.permute.xlu0 %1667  ;;  %v1678_v35 = vpop.permute.xlu1 %1677 }
 0x119   : > { %v1670_v36 = vunpack.i.h.bf16 %v1668_v34  ;;  %v1669_v37 = vunpack.i.l.bf16 %v1668_v34  ;;  %v1680_v38 = vunpack.i.h.bf16 %v1678_v35  ;;  %v1679_v39 = vunpack.i.l.bf16 %v1678_v35 }
 0x11b   : > { %v1563_v40 = vpack.c.bf16 %v1680_v38, %v1679_v39  ;;  %v1559_v41 = vpack.c.bf16 %v1670_v36, %v1669_v37 }
 0x11c   : > { %v1673_v42 = vpop.permute.xlu0 %1672  ;;  %v1683_v43 = vpop.permute.xlu1 %1682 }
 0x11d   : > { %v1675_v44 = vunpack.i.h.bf16 %v1673_v42  ;;  %v1674_v45 = vunpack.i.l.bf16 %v1673_v42  ;;  %1560 = vmatprep.subr.bf16.mxu0 %v1559_v41  ;;  %v1685_v46 = vunpack.i.h.bf16 %v1683_v43  ;;  %v1684_v47 = vunpack.i.l.bf16 %v1683_v43 }
 0x11e   : > { %1562 = vmatpush3.bf16.msra.mxu0 %v1559_v41 }
 0x11f   : > { %v1543_v49 = vpack.c.bf16 %v1675_v44, %v1674_v45  ;;  %1564 = vmatprep.subr.bf16.mxu0 %v1563_v40  ;;  %v1567_v50 = vpack.c.bf16 %v1685_v46, %v1684_v47 }
 0x120   : > { %v1693_v53 = vpop.permute.xlu1 %1692  ;;  %v1688_v54 = vpop.permute.xlu0 %1687 }
 0x121   : > { %1544 = vmatprep.subr.bf16.mxu1 %v1543_v49  ;;  %1513 = vmatmul.mubr.msk.f32.vlgmr.msra.gmra.mrb[0].mxu0 %vm459_vm3, %v1423_v48  ;;  %v1690_v55 = vunpack.i.h.bf16 %v1688_v54  ;;  %v1689_v56 = vunpack.i.l.bf16 %v1688_v54  ;;  %v1695_v58 = vunpack.i.h.bf16 %v1693_v53  ;;  %v1694_v59 = vunpack.i.l.bf16 %v1693_v53 }
 0x122   : > { %1546 = vmatpush3.bf16.msra.mxu1 %v1543_v49  ;;  %1566 = vmatpush3.bf16.msra.mxu0 %v1563_v40 }
 0x123   : > { %1519 = vmatprep.mubr.msk.f32.mxu0 %vm459_vm3, %v1426_v51  ;;  %1568 = vmatprep.subr.bf16.mxu0 %v1567_v50  ;;  %v1551_v60 = vpack.c.bf16 %v1690_v55, %v1689_v56  ;;  %v1571_v0 = vpack.c.bf16 %v1695_v58, %v1694_v59 }
 0x124   : > { %1548 = vmatprep.subr.bf16.mxu1 %v1547_v52  ;;  %v1698_v62 = vpop.permute.xlu0 %1697  ;;  %v1703_v4 = vpop.permute.xlu1 %1702 }
 0x125   : > { %1485 = vmatmul.mubr.msk.f32.vlgmr.msra.gmra.mrb[0].mxu1 %vm459_vm3, %v1409_v57  ;;  %v1700_v2 = vunpack.i.h.bf16 %v1698_v62  ;;  %v1699_v3 = vunpack.i.l.bf16 %v1698_v62  ;;  %v1705_v6 = vunpack.i.h.bf16 %v1703_v4  ;;  %v1704_v7 = vunpack.i.l.bf16 %v1703_v4 }
 0x126   : > { %1550 = vmatpush3.bf16.msra.mxu1 %v1547_v52  ;;  %1491 = vmatprep.mubr.msk.f32.mxu1 %vm459_vm3, %v446_v61 }
 0x127   : > { %1552 = vmatprep.subr.bf16.mxu1 %v1551_v60  ;;  %v1555_v8 = vpack.c.bf16 %v1700_v2, %v1699_v3  ;;  %v1575_v11 = vpack.c.bf16 %v1705_v6, %v1704_v7 }
 0x129   : > { %1520 = vmatmul.mubr.msk.f32.vlgmr.msra.gmra.mrb[0].mxu0 %vm459_vm3, %v1427_v63 }
 0x12a   : > { %1570 = vmatpush3.bf16.msra.mxu0 %v1567_v50  ;;  %1526 = vmatprep.mubr.msk.f32.mxu0 %vm459_vm3, %v1430_v1 }
 0x12b   : > { %1572 = vmatprep.subr.bf16.mxu0 %v1571_v0 }
 0x12d   : > { %1492 = vmatmul.mubr.msk.f32.vlgmr.msra.gmra.mrb[0].mxu1 %vm459_vm3, %v447_v5 }
 0x12e   : > { %1554 = vmatpush3.bf16.msra.mxu1 %v1551_v60  ;;  %1498 = vmatprep.mubr.msk.f32.mxu1 %vm459_vm3, %v1414_v9 }
 0x12f   : > { %1556 = vmatprep.subr.bf16.mxu1 %v1555_v8 }
 0x131   : > { %1527 = vmatmul.mubr.msk.f32.vlgmr.msra.gmra.mrb[0].mxu0 %vm459_vm3, %v1431_v10 }
 0x132   : > { %1574 = vmatpush3.bf16.msra.mxu0 %v1571_v0  ;;  %1533 = vmatprep.mubr.msk.f32.mxu0 %vm459_vm3, %v1434_v12 }
 0x133   : > { %1576 = vmatprep.subr.bf16.mxu0 %v1575_v11 }
 0x135   : > { %1499 = vmatmul.mubr.msk.f32.vlgmr.msra.gmra.mrb[0].mxu1 %vm459_vm3, %v1415_v13 }
 0x136   : > { %1558 = vmatpush3.bf16.msra.mxu1 %v1555_v8  ;;  %1505 = vmatprep.mubr.msk.f32.mxu1 %vm459_vm3, %v1418_v14 }
 0x139   : > { %1534 = vmatmul.mubr.msk.f32.vlgmr.msra.gmra.mrb[0].mxu0 %vm459_vm3, %v1435_v15 }
 0x13a   : > { %1578 = vmatpush3.bf16.msra.mxu0 %v1575_v11  ;;  %1540 = vmatprep.mubr.msk.f32.mxu0 %vm459_vm3, %v1438_v16 }
 0x13d   : > { %1506 = vmatmul.mubr.msk.f32.vlgmr.msra.gmra.mrb[0].mxu1 %vm459_vm3, %v1419_v17 }
 0x141   : > { %1541 = vmatmul.mubr.msk.f32.vlgmr.msra.gmra.mrb[0].mxu0 %vm459_vm3, %v1439_v18 }
 0x210   : > { %v1507_v19 = vpop.f32.mrb[0].mxu1 }
 0x211   : > { %v795_v20 = vpop.f32.mrb[1].mxu1 }
 0x214   : > { %v1542_v21 = vpop.f32.mrb[0].mxu0 }
 0x215   : > { %v1579_v23 = vadd.f32 %v1542_v21, %v1507_v19  ;;  %v1255_v24 = vpop.f32.mrb[1].mxu0 }
 0x216   : > { %v1580_v26 = vadd.f32 %v1255_v24, %v795_v20 }
 0x217   : > { %v1269_v27 = vadd.f32 %v1579_v23, %v1267_v22 }
 0x218   : > { %v1268_v28 = vadd.f32 %v1580_v26, %v1266_v25 }
 0x219   : > { %1272 = vst.msk [vmem:[%s1886_s17 + $0x8] sm:$0xff] %vm1270_vm4, %v1269_v27 }
 0x21a   : > { %1271 = vst.msk [vmem:[%s1886_s17] sm:$0xff] %vm1270_vm4, %v1268_v28 }
 0x21b PF: > { %s17_s30 = sadd.s32 1, %s1760_s30   ;;  %s1986_s24 = smov %s1748_s27 }
 0x21c   : > { %p14_p11 = scmp.ge.s32.totalorder %s17_s30, 50   ;;  %s1987_s25 = smov %s1752_s28 }
 0x21d   : > { %s1988_s26 = smov %s1756_s29  ;;  %s1989_s27 = smov %s1993_s8 }
 0x21e   : > { %s1990_s28 = smov %s1997_s9  ;;  %s1991_s29 = smov %s2001_s10 }
 0x21f   :  { %16 = sbr.rel (!%p14_p11) target bundleno = 5 (0x5), region = 96 }

// kernel: hiformer_v3_forward.35
= control target key start
LH: loop header
LB: loop body
LE: loop exit
PB: predicated region body
PF: predicated region fallthrough
CT: control target
= control target key end

     0   :  { %s816_s12 = smov 0   ;;  %s818_s13 = smov 0   ;;  %s1010_s0 = inlined_call_operand.vmem [shape: f32[2,4,432,4], index: 0, kind: input, shape index: {}]   ;;  %s1011_s1 = inlined_call_operand.vmem [shape: f32[32,432], index: 1, kind: input, shape index: {}]   ;;  %s1012_s2 = inlined_call_operand.vmem [shape: f32[32,1], index: 2, kind: input, shape index: {}]   ;;  %s1013_s3 = inlined_call_operand.vmem [shape: f32[2,4,32,4], index: 3, kind: output, shape index: {}]  }
   0x1   :  { %s820_s14 = smov 0   ;;  %s822_s15 = smov 0  }
   0x2   :  { %s824_s16 = smov 0  }
   0x3 LB: > { %s22_s17 = sadd.s32 1, %s784_s14  ;;  %s25_s18 = sadd.s32 1, %s788_s15  ;;  %s792_s16 = sphi %s824_s16, %s13_s16   ;;  %s788_s15 = sphi %s822_s15, %s1017_s15   ;;  %s784_s14 = sphi %s820_s14, %s1016_s14   ;;  %s780_s13 = sphi %s818_s13, %s1015_s13   ;;  %s776_s12 = sphi %s816_s12, %s1014_s12  }
   0x4   : > { %p23_p0 = scmp.ge.s32.totalorder %s22_s17, 4  ;;  %p588_p1 = scmp.ge.s32.totalorder %s792_s16, 1 }
   0x5   : > { %p157_p2 = scmp.lt.s32.totalorder %s792_s16, 9 }
   0x6   : > { %s1019_s17 = smov (%p23_p0, %s22_s17), 0  ;;  %s1021_s18 = smov (!%p23_p0, %s25_s18), %s788_s15 }
   0x7   : > { %p158_p3 = pnand %p588_p1, %p157_p2  ;;  %p27_p4 = scmp.ge.s32.totalorder %s1021_s18, 2 }
   0x8   : > { %p189_p5 = scmp.lt.s32.totalorder (!%p158_p3), %s780_s13, 1  ;;  %p191_p6 = scmp.lt.s32.totalorder (!%p158_p3), %s776_s12, 3  ;;  %v208_v0 = vld [vmem:[%s1011_s1 + $0x8] sm:$0xff] (!%p158_p3)  ;;  %v794_v1 = vmov (!%p158_p3), 0.0|0.0   ;;  %vm301_vm0 = vcmask (!%p158_p3), 392192   ;;  %v210_v2 = vld [vmem:[%s1011_s1 + $0x18] sm:$0xff] (!%p158_p3) }
   0x9   : > { %s1023_s18 = smov (%p27_p4, %s1021_s18), 0  ;;  %161 = sbr.rel (%p158_p3) target bundleno = 296 (0x128), region = 32 }
   0xa   : > { %675 = vmatprep.subr.bf16.mxu1 (!%p158_p3), %v794_v1  ;;  %378 = vmatprep.mubr.f32.mxu0 (!%p158_p3), %v208_v0  ;;  %v795_v3 = vmov (!%p158_p3), 0   ;;  %v277_v4 = vld [vmem:[%s1012_s2] sm:$0xff] (!%p158_p3)  ;;  %v279_v5 = vld [vmem:[%s1012_s2 + $0x10] sm:$0xff] (!%p158_p3)  ;;  %v278_v6 = vld [vmem:[%s1012_s2 + $0x8] sm:$0xff] (!%p158_p3)  ;;  %vm484_vm1 = vcmask (!%p158_p3), 31744  }
   0xb   : > { %752 = vset.pattern.permute.xlu0 (!%p158_p3), %v795_v3  ;;  %753 = vset.pattern.permute.xlu1 (!%p158_p3), %v795_v3  ;;  %v280_v7 = vld [vmem:[%s1012_s2 + $0x18] sm:$0xff] (!%p158_p3) }
   0xc   : > { %593 = vmatprep.mubr.msk.f32.mxu1 (!%p158_p3), %vm301_vm0, %v210_v2  ;;  %283 = vperm.xlu0 (!%p158_p3), %752, %v277_v4  }
   0xd   : > { %293 = vperm.xlu1 (!%p158_p3), %753, %v279_v5  }
  0x10   : > { %s1025_s13 = smov (!%p189_p5, %s780_s13), 1  ;;  %s1027_s12 = smov (!%p191_p6, %s776_s12), 3  ;;  %288 = vperm.xlu0 %752, %v278_v6  }
  0x11   : > { %s709_s23 = smul.u32 216, %s1025_s13  ;;  %298 = vperm.xlu1 %753, %v280_v7   ;;  %s590_s26 = sshll.u32 %s1027_s12, 2 }
  0x12   : > { %s708_s24 = smul.u32 54, %s1027_s12  ;;  %s591_s27 = sshll.u32 %s1025_s13, 4 }
  0x13   : > { %s204_s28 = sadd.s32 %s591_s27, %s590_s26 }
  0x14   : > { %s195_s29 = sadd.s32 %s709_s23, %s708_s24 }
  0x15   : > { %s589_s5 = sshll.u32 %s195_s29, 3  ;;  %s592_s29 = sshll.u32 %s204_s28, 3 }
  0x16   : > { %s875_s10 = scalar_lea.vmem %s1010_s0, %s589_s5  ;;  %s206_s5 = scalar_lea.vmem %s1013_s3, %s592_s29 }
  0x17   : > { %v255_v8 = vld [vmem:[%s875_s10 + $0x100] sm:$0xff]  ;;  %v256_v9 = vld [vmem:[%s875_s10 + $0x108] sm:$0xff]  ;;  %v257_v17 = vld [vmem:[%s875_s10 + $0x110] sm:$0xff] }
  0x18   : > { %v239_v10 = vld [vmem:[%s875_s10 + $0x80] sm:$0xff]  ;;  %v676_v11 = vpack.c.bf16 %v256_v9, %v255_v8  ;;  %v240_v12 = vld [vmem:[%s875_s10 + $0x88] sm:$0xff]  ;;  %v258_v18 = vld [vmem:[%s875_s10 + $0x118] sm:$0xff] }
  0x19   : > { %v223_v13 = vld [vmem:[%s875_s10] sm:$0xff]  ;;  %v224_v14 = vld [vmem:[%s875_s10 + $0x8] sm:$0xff]  ;;  %v643_v15 = vpack.c.bf16 %v240_v12, %v239_v10  ;;  %v241_v19 = vld [vmem:[%s875_s10 + $0x90] sm:$0xff]  ;;  %v679_v20 = vpack.c.bf16 %v258_v18, %v257_v17 }
  0x1a   : > { %v645_v16 = vpack.c.bf16 %v224_v14, %v223_v13  ;;  %677 = vmatpush1.bf16.msra.mxu1 %v676_v11  ;;  %v242_v21 = vld [vmem:[%s875_s10 + $0x98] sm:$0xff]  ;;  %v225_v22 = vld [vmem:[%s875_s10 + $0x10] sm:$0xff]  ;;  %v259_v25 = vld [vmem:[%s875_s10 + $0x120] sm:$0xff] }
  0x1b   : > { %v226_v23 = vld [vmem:[%s875_s10 + $0x18] sm:$0xff]  ;;  %644 = vmatprep.subr.bf16.mxu0 %v643_v15  ;;  %678 = vmatprep.subr.bf16.mxu1 %v794_v1  ;;  %v647_v24 = vpack.c.bf16 %v242_v21, %v241_v19  ;;  %v260_v26 = vld [vmem:[%s875_s10 + $0x128] sm:$0xff]  ;;  %v243_v27 = vld [vmem:[%s875_s10 + $0xa0] sm:$0xff] }
  0x1c   : > { %646 = vmatpush3.bf16.msra.mxu0 %v645_v16  ;;  %v649_v28 = vpack.c.bf16 %v226_v23, %v225_v22  ;;  %v244_v29 = vld [vmem:[%s875_s10 + $0xa8] sm:$0xff]  ;;  %v227_v31 = vld [vmem:[%s875_s10 + $0x20] sm:$0xff]  ;;  %v682_v33 = vpack.c.bf16 %v260_v26, %v259_v25  ;;  %v245_v34 = vld [vmem:[%s875_s10 + $0xb0] sm:$0xff] }
  0x1d   : > { %648 = vmatprep.subr.bf16.mxu0 %v647_v24  ;;  %v651_v30 = vpack.c.bf16 %v244_v29, %v243_v27  ;;  %v228_v32 = vld [vmem:[%s875_s10 + $0x28] sm:$0xff]  ;;  %v246_v35 = vld [vmem:[%s875_s10 + $0xb8] sm:$0xff]  ;;  %v261_v36 = vld [vmem:[%s875_s10 + $0x130] sm:$0xff] }
  0x1e   : > { %680 = vmatpush1.bf16.msra.mxu1 %v679_v20  ;;  %v262_v37 = vld [vmem:[%s875_s10 + $0x138] sm:$0xff]  ;;  %v653_v38 = vpack.c.bf16 %v228_v32, %v227_v31  ;;  %v655_v39 = vpack.c.bf16 %v246_v35, %v245_v34  ;;  %v229_v40 = vld [vmem:[%s875_s10 + $0x30] sm:$0xff]  ;;  %v247_v43 = vld [vmem:[%s875_s10 + $0xc0] sm:$0xff] }
  0x1f   : > { %681 = vmatprep.subr.bf16.mxu1 %v794_v1  ;;  %v230_v41 = vld [vmem:[%s875_s10 + $0x38] sm:$0xff]  ;;  %v685_v42 = vpack.c.bf16 %v262_v37, %v261_v36  ;;  %v248_v44 = vld [vmem:[%s875_s10 + $0xc8] sm:$0xff]  ;;  %v263_v45 = vld [vmem:[%s875_s10 + $0x140] sm:$0xff] }
  0x20   : > { %650 = vmatpush3.bf16.msra.mxu0 %v649_v28  ;;  %v264_v46 = vld [vmem:[%s875_s10 + $0x148] sm:$0xff]  ;;  %v657_v47 = vpack.c.bf16 %v230_v41, %v229_v40  ;;  %v659_v48 = vpack.c.bf16 %v248_v44, %v247_v43  ;;  %v231_v49 = vld [vmem:[%s875_s10 + $0x40] sm:$0xff]  ;;  %v249_v52 = vld [vmem:[%s875_s10 + $0xd0] sm:$0xff] }
  0x21   : > { %652 = vmatprep.subr.bf16.mxu0 %v651_v30  ;;  %v232_v50 = vld [vmem:[%s875_s10 + $0x48] sm:$0xff]  ;;  %v688_v51 = vpack.c.bf16 %v264_v46, %v263_v45  ;;  %v250_v53 = vld [vmem:[%s875_s10 + $0xd8] sm:$0xff]  ;;  %v265_v54 = vld [vmem:[%s875_s10 + $0x150] sm:$0xff] }
  0x22   : > { %683 = vmatpush1.bf16.msra.mxu1 %v682_v33  ;;  %v266_v55 = vld [vmem:[%s875_s10 + $0x158] sm:$0xff]  ;;  %v661_v56 = vpack.c.bf16 %v232_v50, %v231_v49  ;;  %v663_v57 = vpack.c.bf16 %v250_v53, %v249_v52  ;;  %v233_v58 = vld [vmem:[%s875_s10 + $0x50] sm:$0xff]  ;;  %v251_v61 = vld [vmem:[%s875_s10 + $0xe0] sm:$0xff] }
  0x23   : > { %684 = vmatprep.subr.bf16.mxu1 %v794_v1  ;;  %v234_v59 = vld [vmem:[%s875_s10 + $0x58] sm:$0xff]  ;;  %v691_v60 = vpack.c.bf16 %v266_v55, %v265_v54  ;;  %v252_v62 = vld [vmem:[%s875_s10 + $0xe8] sm:$0xff]  ;;  %v267_v63 = vld [vmem:[%s875_s10 + $0x160] sm:$0xff] }
  0x24   : > { %654 = vmatpush3.bf16.msra.mxu0 %v653_v38  ;;  %v268_v0 = vld [vmem:[%s875_s10 + $0x168] sm:$0xff]  ;;  %v665_v2 = vpack.c.bf16 %v234_v59, %v233_v58  ;;  %v667_v3 = vpack.c.bf16 %v252_v62, %v251_v61  ;;  %v235_v4 = vld [vmem:[%s875_s10 + $0x60] sm:$0xff]  ;;  %v253_v7 = vld [vmem:[%s875_s10 + $0xf0] sm:$0xff] }
  0x25   : > { %656 = vmatprep.subr.bf16.mxu0 %v655_v39  ;;  %v236_v5 = vld [vmem:[%s875_s10 + $0x68] sm:$0xff]  ;;  %v694_v6 = vpack.c.bf16 %v268_v0, %v267_v63  ;;  %v254_v8 = vld [vmem:[%s875_s10 + $0xf8] sm:$0xff]  ;;  %v269_v9 = vld [vmem:[%s875_s10 + $0x170] sm:$0xff] }
  0x26   : > { %686 = vmatpush1.bf16.msra.mxu1 %v685_v42  ;;  %v270_v10 = vld [vmem:[%s875_s10 + $0x178] sm:$0xff]  ;;  %v669_v11 = vpack.c.bf16 %v236_v5, %v235_v4  ;;  %v671_v12 = vpack.c.bf16 %v254_v8, %v253_v7  ;;  %v237_v13 = vld [vmem:[%s875_s10 + $0x70] sm:$0xff]  ;;  %v271_v16 = vld [vmem:[%s875_s10 + $0x180] sm:$0xff] }
  0x27   : > { %687 = vmatprep.subr.bf16.mxu1 %v794_v1  ;;  %v238_v14 = vld [vmem:[%s875_s10 + $0x78] sm:$0xff]  ;;  %v697_v15 = vpack.c.bf16 %v270_v10, %v269_v9  ;;  %v272_v17 = vld [vmem:[%s875_s10 + $0x188] sm:$0xff]  ;;  %v273_v20 = vld [vmem:[%s875_s10 + $0x190] sm:$0xff] }
  0x28   : > { %658 = vmatpush3.bf16.msra.mxu0 %v657_v47  ;;  %v673_v18 = vpack.c.bf16 %v238_v14, %v237_v13  ;;  %v700_v19 = vpack.c.bf16 %v272_v17, %v271_v16  ;;  %v274_v21 = vld [vmem:[%s875_s10 + $0x198] sm:$0xff]  ;;  %v207_v22 = vld [vmem:[%s1011_s1] sm:$0xff]  ;;  %v212_v23 = vld [vmem:[%s1011_s1 + $0x28] sm:$0xff] }
  0x29   : > { %660 = vmatprep.subr.bf16.mxu0 %v659_v48  ;;  %v703_v24 = vpack.c.bf16 %v274_v21, %v273_v20  ;;  %v275_v25 = vld [vmem:[%s875_s10 + $0x1a0] sm:$0xff]  ;;  %v276_v26 = vld [vmem:[%s875_s10 + $0x1a8] sm:$0xff]  ;;  %v209_v32 = vld [vmem:[%s1011_s1 + $0x10] sm:$0xff] }
  0x2a   : > { %689 = vmatpush1.bf16.msra.mxu1 %v688_v51  ;;  %v211_v27 = vld [vmem:[%s1011_s1 + $0x20] sm:$0xff]  ;;  %v216_v28 = vld [vmem:[%s1011_s1 + $0x48] sm:$0xff]  ;;  %v706_v29 = vpack.c.bf16 %v276_v26, %v275_v25  ;;  %v214_v33 = vld [vmem:[%s1011_s1 + $0x38] sm:$0xff] }
  0x2b   : > { %690 = vmatprep.subr.bf16.mxu1 %v794_v1  ;;  %v215_v30 = vld [vmem:[%s1011_s1 + $0x40] sm:$0xff]  ;;  %v220_v31 = vld [vmem:[%s1011_s1 + $0x68] sm:$0xff]  ;;  %v213_v34 = vld [vmem:[%s1011_s1 + $0x30] sm:$0xff] }
  0x2c   : > { %662 = vmatpush3.bf16.msra.mxu0 %v661_v56  ;;  %v218_v35 = vld [vmem:[%s1011_s1 + $0x58] sm:$0xff]  ;;  %v217_v36 = vld [vmem:[%s1011_s1 + $0x50] sm:$0xff] }
  0x2d   : > { %664 = vmatprep.subr.bf16.mxu0 %v663_v57  ;;  %v222_v37 = vld [vmem:[%s1011_s1 + $0x78] sm:$0xff]  ;;  %v221_v38 = vld [vmem:[%s1011_s1 + $0x70] sm:$0xff] }
  0x2e   : > { %692 = vmatpush1.bf16.msra.mxu1 %v691_v60 }
  0x2f   : > { %693 = vmatprep.subr.bf16.mxu1 %v794_v1 }
  0x30   : > { %666 = vmatpush3.bf16.msra.mxu0 %v665_v2 }
  0x31   : > { %668 = vmatprep.subr.bf16.mxu0 %v667_v3 }
  0x32   : > { %695 = vmatpush1.bf16.msra.mxu1 %v694_v6 }
  0x33   : > { %696 = vmatprep.subr.bf16.mxu1 %v794_v1 }
  0x34   : > { %670 = vmatpush3.bf16.msra.mxu0 %v669_v11 }
  0x35   : > { %672 = vmatprep.subr.bf16.mxu0 %v671_v12 }
  0x36   : > { %698 = vmatpush1.bf16.msra.mxu1 %v697_v15 }
  0x37   : > { %699 = vmatprep.subr.bf16.mxu1 %v794_v1 }
  0x38   : > { %674 = vmatpush3.bf16.msra.mxu0 %v673_v18 }
  0x3a   : > { %701 = vmatpush1.bf16.msra.mxu1 %v700_v19 }
  0x3b   : > { %379 = vmatmul.mubr.f32.vlgmr.msra.gmra.mrb[0].mxu0 %v207_v22  ;;  %702 = vmatprep.subr.bf16.mxu1 %v794_v1 }
  0x3c   : > { %383 = vmatprep.mubr.f32.mxu0 %v212_v23 }
  0x3e   : > { %704 = vmatpush1.bf16.msra.mxu1 %v703_v24 }
  0x3f   : > { %384 = vmatmul.mubr.f32.gmra.mrb[2].mxu0 %v211_v27  ;;  %705 = vmatprep.subr.bf16.mxu1 %v794_v1  ;;  %v219_v1 = vld [vmem:[%s1011_s1 + $0x60] sm:$0xff] }
  0x40   : > { %388 = vmatprep.mubr.f32.mxu0 %v216_v28 }
  0x42   : > { %707 = vmatpush1.bf16.msra.mxu1 %v706_v29 }
  0x43   : > { %389 = vmatmul.mubr.f32.gmra.mrb[4].mxu0 %v215_v30 }
  0x44   : > { %393 = vmatprep.mubr.f32.mxu0 %v220_v31 }
  0x45   : > { %464 = vmatmul.mubr.f32.vlgmr.msra.gmra.mrb[0].mxu1 %v209_v32 }
  0x46   : > { %594 = vmatprep.mubr.msk.f32.mxu1 %vm301_vm0, %v214_v33 }
  0x47   : > { %394 = vmatmul.mubr.f32.gmra.mrb[6].mxu0 %v219_v1 }
  0x49   : > { %469 = vmatmul.mubr.f32.gmra.mrb[2].mxu1 %v213_v34 }
  0x4a   : > { %595 = vmatprep.mubr.msk.f32.mxu1 %vm301_vm0, %v218_v35 }
  0x4d   : > { %474 = vmatmul.mubr.f32.gmra.mrb[4].mxu1 %v217_v36 }
  0x4e   : > { %596 = vmatprep.mubr.msk.f32.mxu1 %vm301_vm0, %v222_v37 }
  0x51   : > { %479 = vmatmul.mubr.f32.gmra.mrb[6].mxu1 %v221_v38 }
  0x8b   : > { %v284_v42 = vpop.permute.xlu0 %283 }
  0x8c   : > { %v294_v55 = vpop.permute.xlu1 %293 }
  0x8f   : > { %v289_v47 = vpop.permute.xlu0 %288 }
  0x90   : > { %v299_v63 = vpop.permute.xlu1 %298 }
 0x10e   : > { %v631_v39 = vpop.f32.mrb[0].mxu0 }
 0x10f   : > { %v632_v40 = vpop.f32.mrb[1].mxu0 }
 0x110   : > { %v633_v41 = vadd.f32 %v632_v40, %v631_v39 }
 0x112   : > { %v634_v43 = vpop.f32.mrb[2].mxu0  ;;  %v381_v46 = vadd.f32 %v633_v41, %v284_v42 }
 0x113   : > { %v635_v44 = vpop.f32.mrb[3].mxu0 }
 0x114   : > { %v636_v45 = vadd.f32 %v635_v44, %v634_v43 }
 0x116   : > { %v637_v48 = vpop.f32.mrb[4].mxu0  ;;  %v386_v53 = vadd.f32 %v636_v45, %v289_v47 }
 0x117   : > { %v638_v49 = vpop.f32.mrb[5].mxu0 }
 0x118   : > { %v465_v50 = vpop.f32.mrb[0].mxu1  ;;  %v639_v51 = vadd.f32 %v638_v49, %v637_v48 }
 0x119   : > { %v466_v52 = vadd.f32 %v465_v50, %v381_v46  ;;  %v467_v54 = vpop.f32.mrb[1].mxu1 }
 0x11a   : > { %v640_v56 = vpop.f32.mrb[6].mxu0  ;;  %v391_v62 = vadd.f32 %v639_v51, %v294_v55 }
 0x11b   : > { %485 = vst.msk [vmem:[%s206_s5] sm:$0xff] %vm484_vm1, %v466_v52  ;;  %v641_v57 = vpop.f32.mrb[7].mxu0 }
 0x11c   : > { %v642_v58 = vadd.f32 %v641_v57, %v640_v56  ;;  %v470_v59 = vpop.f32.mrb[2].mxu1 }
 0x11d   : > { %v471_v60 = vadd.f32 %v470_v59, %v386_v53  ;;  %v472_v61 = vpop.f32.mrb[3].mxu1 }
 0x11e   : > { %v396_v4 = vadd.f32 %v642_v58, %v299_v63 }
 0x11f   : > { %486 = vst.msk [vmem:[%s206_s5 + $0x8] sm:$0xff] %vm484_vm1, %v471_v60 }
 0x120   : > { %v475_v0 = vpop.f32.mrb[4].mxu1 }
 0x121   : > { %v476_v2 = vadd.f32 %v475_v0, %v391_v62  ;;  %v477_v3 = vpop.f32.mrb[5].mxu1 }
 0x123   : > { %487 = vst.msk [vmem:[%s206_s5 + $0x10] sm:$0xff] %vm484_vm1, %v476_v2 }
 0x124   : > { %v480_v5 = vpop.f32.mrb[6].mxu1 }
 0x125   : > { %v481_v6 = vadd.f32 %v480_v5, %v396_v4  ;;  %v482_v7 = vpop.f32.mrb[7].mxu1 }
 0x127   : > { %488 = vst.msk [vmem:[%s206_s5 + $0x18] sm:$0xff] %vm484_vm1, %v481_v6 }
 0x128 PF: > { %s13_s16 = sadd.s32 1, %s792_s16   ;;  %s1014_s12 = smov %s784_s14 }
 0x129   : > { %p10_p7 = scmp.ge.s32.totalorder %s13_s16, 10   ;;  %s1015_s13 = smov %s788_s15 }
 0x12a   : > { %s1016_s14 = smov %s1019_s17  ;;  %s1017_s15 = smov %s1023_s18 }
 0x12b   :  { %12 = sbr.rel (!%p10_p7) target bundleno = 3 (0x3), region = 62 }

// kernel: hiformer_v3_forward.36
= control target key start
LH: loop header
LB: loop body
LE: loop exit
PB: predicated region body
PF: predicated region fallthrough
CT: control target
= control target key end

     0   :  { %s2338_s24 = smov 0   ;;  %s2340_s25 = smov 0   ;;  %s2584_s0 = inlined_call_operand.vmem [shape: f32[2,6,32,20], index: 0, kind: input, shape index: {}]   ;;  %s2585_s1 = inlined_call_operand.vmem [shape: f32[3,9,32,32], index: 1, kind: input, shape index: {}]   ;;  %s2586_s2 = inlined_call_operand.vmem [shape: f32[6,1,20], index: 2, kind: input, shape index: {}]   ;;  %s2587_s3 = inlined_call_operand.vmem [shape: f32[32,1], index: 3, kind: input, shape index: {}]   ;;  %s2588_s4 = inlined_call_operand.vmem [shape: f32[32,1], index: 4, kind: input, shape index: {}]   ;;  %s2589_s5 = inlined_call_operand.vmem [shape: f32[32,1], index: 5, kind: input, shape index: {}]   ;;  %s2590_s6 = inlined_call_operand.vmem [shape: f32[32,1], index: 6, kind: input, shape index: {}]   ;;  %s2591_s7 = inlined_call_operand.vmem [shape: f32[2,4,32,8], index: 7, kind: output, shape index: {}]  }
   0x1   :  { %s2342_s26 = smov 0   ;;  %s2344_s27 = smov 0  }
   0x2   :  { %s2346_s28 = smov 0   ;;  %s2348_s29 = smov 0  }
   0x3   :  { %s2350_s30 = smov 0  }
   0x4 LB: > { %s29_s8 = sadd.s32 1, %s2274_s27  ;;  %s32_s9 = sadd.s32 1, %s2278_s28  ;;  %s2286_s30 = sphi %s2350_s30, %s17_s30   ;;  %s2282_s29 = sphi %s2348_s29, %s2597_s29   ;;  %s2278_s28 = sphi %s2346_s28, %s2596_s28   ;;  %s2274_s27 = sphi %s2344_s27, %s2595_s27   ;;  %s2270_s26 = sphi %s2342_s26, %s2594_s26   ;;  %s2266_s25 = sphi %s2340_s25, %s2593_s25   ;;  %s2262_s24 = sphi %s2338_s24, %s2592_s24  }
   0x5   : > { %p30_p0 = scmp.ge.s32.totalorder %s29_s8, 3  ;;  %p1695_p1 = scmp.ge.s32.totalorder %s2286_s30, 1 }
   0x6   : > { %p290_p2 = scmp.lt.s32.totalorder %s2286_s30, 25  ;;  %s36_s10 = sadd.s32 1, %s2282_s29 }
   0x7   : > { %s2599_s8 = smov (%p30_p0, %s29_s8), 0  ;;  %s2601_s9 = smov (!%p30_p0, %s32_s9), %s2278_s28 }
   0x8   : > { %p291_p3 = pnand %p1695_p1, %p290_p2  ;;  %p34_p4 = scmp.ge.s32.totalorder %s2601_s9, 4 }
   0x9   : > { %v376_v0 = vld [vmem:[%s2587_s3 + $0x10] sm:$0xff] (!%p291_p3)  ;;  %v374_v1 = vld [vmem:[%s2587_s3] sm:$0xff] (!%p291_p3)  ;;  %v2288_v2 = vmov (!%p291_p3), 0   ;;  %p341_p6 = scmp.lt.s32.totalorder (!%p291_p3), %s2270_s26, 1  ;;  %v377_v3 = vld [vmem:[%s2587_s3 + $0x18] sm:$0xff] (!%p291_p3)  ;;  %p363_p7 = scmp.lt.s32.totalorder (!%p291_p3), %s2266_s25, 3 }
   0xa   : > { %s2603_s9 = smov (%p34_p4, %s2601_s9), 0  ;;  %s2605_s10 = smov (!%p34_p4, %s36_s10), %s2282_s29 }
   0xb   : > { %p38_p5 = scmp.ge.s32.totalorder %s2605_s10, 2  ;;  %294 = sbr.rel (%p291_p3) target bundleno = 553 (0x229), region = 48  ;;  %2149 = vset.pattern.permute.xlu1 (!%p291_p3), %v2288_v2  ;;  %2148 = vset.pattern.permute.xlu0 (!%p291_p3), %v2288_v2  ;;  %v375_v4 = vld [vmem:[%s2587_s3 + $0x8] sm:$0xff] (!%p291_p3)  ;;  %v402_v6 = vld [vmem:[%s2588_s4] sm:$0xff] (!%p291_p3)  ;;  %v405_v7 = vld [vmem:[%s2588_s4 + $0x18] sm:$0xff] (!%p291_p3) }
   0xc   : > { %390 = vperm.xlu1 (!%p291_p3), %2149, %v376_v0   ;;  %380 = vperm.xlu0 (!%p291_p3), %2148, %v374_v1   ;;  %v403_v5 = vld [vmem:[%s2588_s4 + $0x8] sm:$0xff] (!%p291_p3)  ;;  %v404_v8 = vld [vmem:[%s2588_s4 + $0x10] sm:$0xff] (!%p291_p3)  ;;  %v434_v10 = vld [vmem:[%s2589_s5] sm:$0xff] (!%p291_p3)  ;;  %p351_p8 = scmp.lt.s32.totalorder (!%p291_p3), %s2262_s24, 2  ;;  %s340_s12 = sadd.s32 (!%p291_p3), %s2262_s24, %s2266_s25 }
   0xd   : > { %s2607_s10 = smov (%p38_p5, %s2605_s10), 0  ;;  %v435_v9 = vld [vmem:[%s2589_s5 + $0x8] sm:$0xff] (!%p291_p3)  ;;  %v437_v11 = vld [vmem:[%s2589_s5 + $0x18] sm:$0xff] (!%p291_p3)  ;;  %v436_v12 = vld [vmem:[%s2589_s5 + $0x10] sm:$0xff] (!%p291_p3)  ;;  %p343_p9 = scmp.lt.s32.totalorder (!%p291_p3), %s340_s12, 5 }
   0xe   : > { %p1703_p10 = scmp.ne.s32.totalorder (!%p291_p3), %s2262_s24, 0 }
  0x10   : > { %395 = vperm.xlu1 (!%p291_p3), %2149, %v377_v3   ;;  %385 = vperm.xlu0 (!%p291_p3), %2148, %v375_v4  }
  0x12   : > { %s2609_s26 = smov (!%p341_p6, %s2270_s26), 1  ;;  %s2611_s12 = smov (!%p343_p9, %s340_s12), 5 }
  0x13   : > { %s1700_s23 = sshll.u32 %s2609_s26, 4  ;;  %s2080_s13 = smul.u32 24, %s2609_s26  ;;  %v483_v50 = vld [vmem:[%s2590_s6 + $0x10] sm:$0xff] (!%p1703_p10)  ;;  %v481_v51 = vld [vmem:[%s2590_s6] sm:$0xff] (!%p1703_p10)  ;;  %v2289_v52 = vmov (!%p1703_p10), 0   ;;  %v484_v53 = vld [vmem:[%s2590_s6 + $0x18] sm:$0xff] (!%p1703_p10) }
  0x14   : > { %s364_s11 = scalar_select %p363_p7, %s2266_s25, 3  ;;  %413 = vperm.xlu1 %2149, %v403_v5   ;;  %408 = vperm.xlu0 %2148, %v402_v6  }
  0x15   : > { %s1696_s14 = sshll.u32 %s2611_s12, 2  ;;  %v482_v54 = vld [vmem:[%s2590_s6 + $0x8] sm:$0xff] (!%p1703_p10)  ;;  %vm505_vm4 = vcmask (!%p1703_p10), 64512  }
  0x16   : > { %s1699_s16 = sshll.u32 %s364_s11, 2 }
  0x17   : > { %s367_s17 = sadd.s32 %s1700_s23, %s1699_s16  ;;  %s347_s23 = sadd.s32 %s2080_s13, %s1696_s14 }
  0x18   : > { %s1701_s18 = sshll.u32 %s367_s17, 3  ;;  %423 = vperm.xlu1 %2149, %v405_v7   ;;  %418 = vperm.xlu0 %2148, %v404_v8   ;;  %s1697_s11 = sshll.u32 %s347_s23, 3 }
  0x19   : > { %s2420_s21 = scalar_lea.vmem %s2591_s7, %s1701_s18 }
  0x1a   : > { %s352_s17 = scalar_select %p351_p8, %s2262_s24, 2 }
  0x1c   : > { %445 = vperm.xlu1 %2149, %v435_v9   ;;  %440 = vperm.xlu0 %2148, %v434_v10   ;;  %s2081_s18 = smul.u32 288, %s352_s17  ;;  %s349_s17 = scalar_lea.vmem %s2584_s0, %s1697_s11 }
  0x1d   : > { %v370_v19 = vld [vmem:[%s349_s17] sm:$0xff]  ;;  %v371_v20 = vld [vmem:[%s349_s17 + $0x8] sm:$0xff]  ;;  %v372_v25 = vld [vmem:[%s349_s17 + $0x10] sm:$0xff] }
  0x1e   : > { %s2439_s22 = scalar_lea.vmem %s2585_s1, %s2081_s18  ;;  %v373_v26 = vld [vmem:[%s349_s17 + $0x18] sm:$0xff]  ;;  %s359_s18 = scalar_lea.vmem %s2586_s2, %s2611_s12 }
  0x1f   : > { %v1702_v34 = vld [vmem:[%s359_s18] ss:$0 sm:$0xff] }
  0x20   : > { %455 = vperm.xlu1 %2149, %v437_v11   ;;  %450 = vperm.xlu0 %2148, %v436_v12  }
  0x24   : > { %2151 = vset.pattern.permute.xlu1 (!%p1703_p10), %v2289_v52  ;;  %2150 = vset.pattern.permute.xlu0 (!%p1703_p10), %v2289_v52 }
  0x25   : > { %497 = vperm.xlu1 (!%p1703_p10), %2151, %v483_v50   ;;  %487 = vperm.xlu0 (!%p1703_p10), %2150, %v481_v51  }
  0x29   : > { %502 = vperm.xlu1 (!%p1703_p10), %2151, %v484_v53   ;;  %492 = vperm.xlu0 (!%p1703_p10), %2150, %v482_v54  }
  0x8b   : > { %v391_v13 = vpop.permute.xlu1 %390  ;;  %v381_v14 = vpop.permute.xlu0 %380 }
  0x8c   : > { %v398_v21 = vmul.f32 %v381_v14, %v370_v19  ;;  %v400_v29 = vmul.f32 %v391_v13, %v372_v25 }
  0x8f   : > { %v396_v15 = vpop.permute.xlu1 %395  ;;  %v386_v16 = vpop.permute.xlu0 %385 }
  0x90   : > { %v399_v22 = vmul.f32 %v386_v16, %v371_v20  ;;  %v401_v30 = vmul.f32 %v396_v15, %v373_v26 }
  0x93   : > { %v414_v17 = vpop.permute.xlu1 %413  ;;  %v409_v18 = vpop.permute.xlu0 %408 }
  0x94   : > { %v427_v27 = vadd.f32 %v414_v17, %v399_v22  ;;  %v426_v28 = vadd.f32 %v409_v18, %v398_v21 }
  0x96   : > { %vm431_vm0 = vcmp.ge.f32.partialorder %v427_v27, 0.0  ;;  %vm430_vm1 = vcmp.ge.f32.partialorder %v426_v28, 0.0 }
  0x97   : > { %v424_v23 = vpop.permute.xlu1 %423  ;;  %v419_v24 = vpop.permute.xlu0 %418 }
  0x98   : > { %v429_v36 = vadd.f32 %v424_v23, %v401_v30  ;;  %v428_v37 = vadd.f32 %v419_v24, %v400_v29 }
  0x9a   : > { %vm433_vm2 = vcmp.ge.f32.partialorder %v429_v36, 0.0  ;;  %vm432_vm3 = vcmp.ge.f32.partialorder %v428_v37, 0.0 }
  0x9b   : > { %v446_v31 = vpop.permute.xlu1 %445  ;;  %v441_v32 = vpop.permute.xlu0 %440 }
  0x9c   : > { %v459_v33 = vmul.f32 %v446_v31, %v427_v27  ;;  %v458_v35 = vmul.f32 %v441_v32, %v426_v28 }
  0x9d   : > { %480 = sbr.rel (%p1703_p10) target bundleno = 170 (0xaa), region = 52 }
  0x9e   : > { %v463_v38 = vsel %vm431_vm0, %v427_v27, %v459_v33  ;;  %v462_v39 = vsel %vm430_vm1, %v426_v28, %v458_v35 }
  0x9f   : > { %v2450_v40 = vmul.f32 %v1702_v34, %v463_v38  ;;  %v2452_v41 = vmul.f32 %v1702_v34, %v462_v39  ;;  %v456_v42 = vpop.permute.xlu1 %455  ;;  %v451_v43 = vpop.permute.xlu0 %450 }
  0xa0   : > { %v461_v44 = vmul.f32 %v456_v42, %v429_v36  ;;  %v460_v45 = vmul.f32 %v451_v43, %v428_v37 }
  0xa2   : > { %v465_v46 = vsel %vm433_vm2, %v429_v36, %v461_v44  ;;  %v464_v47 = vsel %vm432_vm3, %v428_v37, %v460_v45 }
  0xa3   : > { %v2454_v48 = vmul.f32 %v1702_v34, %v465_v46  ;;  %v2456_v49 = vmul.f32 %v1702_v34, %v464_v47 }
  0xa4   : > { %v498_v55 = vpop.permute.xlu1 %497  ;;  %v488_v56 = vpop.permute.xlu0 %487 }
  0xa5   : > { %508 = vst.msk [vmem:[%s2420_s21 + $0x10] sm:$0xff] %vm505_vm4, %v498_v55  ;;  %506 = vst.msk [vmem:[%s2420_s21] sm:$0xff] %vm505_vm4, %v488_v56 }
  0xa8   : > { %v503_v57 = vpop.permute.xlu1 %502  ;;  %v493_v58 = vpop.permute.xlu0 %492 }
  0xa9   : > { %509 = vst.msk [vmem:[%s2420_s21 + $0x18] sm:$0xff] %vm505_vm4, %v503_v57  ;;  %507 = vst.msk [vmem:[%s2420_s21 + $0x8] sm:$0xff] %vm505_vm4, %v493_v58 }
  0xaa PF: > { %v2152_v59 = vpack.i.bf16 %v2450_v40, %v2452_v41  ;;  %v2162_v60 = vpack.i.bf16 %v2454_v48, %v2456_v49  ;;  %v1704_v61 = vld [vmem:[%s2439_s22 + $0x20] sm:$0xff]  ;;  %s2290_s15 = smov 127   ;;  %vm535_vm5 = vcmask 261120   ;;  %s2291_s16 = smov 123   ;;  %v1980_v15 = vpack.c.bf16 %v2450_v40, %v2452_v41  ;;  %v1705_v20 = vld [vmem:[%s2439_s22 + $0x28] sm:$0xff]  ;;  %v1706_v26 = vld [vmem:[%s2439_s22 + $0x30] sm:$0xff] }
  0xab   : > { %v1732_v62 = vld [vmem:[%s2439_s22 + $0x80] sm:$0xff]  ;;  %1854 = vmatprep.mubr.msk.f32.mxu1 %vm535_vm5, %v1704_v61  ;;  %s2292_s17 = smov 122   ;;  %s2293_s25 = smov 126   ;;  %v1984_v21 = vpack.c.bf16 %v2454_v48, %v2456_v49  ;;  %v1707_v30 = vld [vmem:[%s2439_s22 + $0x38] sm:$0xff]  ;;  %v1733_v31 = vld [vmem:[%s2439_s22 + $0x88] sm:$0xff]  ;;  %vm1564_vm6 = vcmask 64512  }
  0xac   : > { %2153 = vrot.lane.b32.xlu0 %v2152_v59, %s2290_s15  ;;  %2163 = vrot.lane.b32.xlu1 %v2162_v60, %s2290_s15  ;;  %s2294_s26 = smov 120   ;;  %s2295_s18 = smov 124   ;;  %v510_v37 = vld [vmem:[%s2439_s22] sm:$0xff]  ;;  %v1734_v38 = vld [vmem:[%s2439_s22 + $0x90] sm:$0xff] }
  0xad   : > { %1910 = vmatprep.mubr.msk.f32.mxu0 %vm535_vm5, %v1732_v62  ;;  %s2296_s19 = smov 119   ;;  %s2297_s20 = smov 118   ;;  %v511_v42 = vld [vmem:[%s2439_s22 + $0x8] sm:$0xff]  ;;  %v1735_v43 = vld [vmem:[%s2439_s22 + $0x98] sm:$0xff]  ;;  %v512_v49 = vld [vmem:[%s2439_s22 + $0x10] sm:$0xff] }
  0xae   : > { %v1740_v50 = vld [vmem:[%s2439_s22 + $0xa0] sm:$0xff]  ;;  %v513_v54 = vld [vmem:[%s2439_s22 + $0x18] sm:$0xff]  ;;  %v1741_v55 = vld [vmem:[%s2439_s22 + $0xa8] sm:$0xff] }
  0xaf   : > { %v1716_v61 = vld [vmem:[%s2439_s22 + $0x40] sm:$0xff]  ;;  %v1742_v62 = vld [vmem:[%s2439_s22 + $0xb0] sm:$0xff] }
  0xb0   : > { %2158 = vrot.lane.b32.xlu0 %v2152_v59, %s2291_s16  ;;  %2168 = vrot.lane.b32.xlu1 %v2162_v60, %s2291_s16 }
  0xb4   : > { %2173 = vrot.lane.b32.xlu0 %v2152_v59, %s2292_s17  ;;  %2178 = vrot.lane.b32.xlu1 %v2162_v60, %s2292_s17 }
  0xb8   : > { %2183 = vrot.lane.b32.xlu0 %v2152_v59, %s2293_s25  ;;  %2188 = vrot.lane.b32.xlu1 %v2152_v59, %s2294_s26 }
  0xbc   : > { %2193 = vrot.lane.b32.xlu0 %v2162_v60, %s2293_s25  ;;  %2198 = vrot.lane.b32.xlu1 %v2162_v60, %s2294_s26 }
  0xc0   : > { %2203 = vrot.lane.b32.xlu0 %v2152_v59, %s2295_s18  ;;  %2208 = vrot.lane.b32.xlu1 %v2152_v59, %s2296_s19 }
  0xc4   : > { %2213 = vrot.lane.b32.xlu0 %v2162_v60, %s2295_s18  ;;  %2218 = vrot.lane.b32.xlu1 %v2162_v60, %s2296_s19 }
  0xc8   : > { %2223 = vrot.lane.b32.xlu0 %v2152_v59, %s2297_s20  ;;  %2228 = vrot.lane.b32.xlu1 %v2162_v60, %s2297_s20 }
 0x11e   : > { %v2154_v63 = vpop.permute.xlu0 %2153  ;;  %v2164_v0 = vpop.permute.xlu1 %2163 }
 0x11f   : > { %v2156_v1 = vunpack.i.h.bf16 %v2154_v63  ;;  %v2155_v2 = vunpack.i.l.bf16 %v2154_v63  ;;  %v2166_v3 = vunpack.i.h.bf16 %v2164_v0  ;;  %v2165_v4 = vunpack.i.l.bf16 %v2164_v0 }
 0x121   : > { %v1976_v5 = vpack.c.bf16 %v2166_v3, %v2165_v4  ;;  %v1972_v6 = vpack.c.bf16 %v2156_v1, %v2155_v2  ;;  %v1717_v2 = vld [vmem:[%s2439_s22 + $0x48] sm:$0xff]  ;;  %v1743_v3 = vld [vmem:[%s2439_s22 + $0xb8] sm:$0xff] }
 0x122   : > { %v2159_v7 = vpop.permute.xlu0 %2158  ;;  %v2169_v8 = vpop.permute.xlu1 %2168 }
 0x123   : > { %v2161_v9 = vunpack.i.h.bf16 %v2159_v7  ;;  %v2160_v10 = vunpack.i.l.bf16 %v2159_v7  ;;  %1973 = vmatprep.subr.bf16.mxu1 %v1972_v6  ;;  %v2171_v11 = vunpack.i.h.bf16 %v2169_v8  ;;  %v2170_v12 = vunpack.i.l.bf16 %v2169_v8  ;;  %v1718_v8 = vld [vmem:[%s2439_s22 + $0x50] sm:$0xff] }
 0x124   : > { %1975 = vmatpush3.bf16.msra.mxu1 %v1972_v6 }
 0x125   : > { %v2008_v13 = vpack.c.bf16 %v2171_v11, %v2170_v12  ;;  %1977 = vmatprep.subr.bf16.mxu1 %v1976_v5  ;;  %v2004_v14 = vpack.c.bf16 %v2161_v9, %v2160_v10  ;;  %v1748_v9 = vld [vmem:[%s2439_s22 + $0xc0] sm:$0xff] }
 0x126   : > { %v2174_v16 = vpop.permute.xlu0 %2173  ;;  %v2179_v17 = vpop.permute.xlu1 %2178 }
 0x127   : > { %2005 = vmatprep.subr.bf16.mxu0 %v2004_v14  ;;  %v2176_v18 = vunpack.i.h.bf16 %v2174_v16  ;;  %v2175_v19 = vunpack.i.l.bf16 %v2174_v16  ;;  %v2181_v23 = vunpack.i.h.bf16 %v2179_v17  ;;  %v2180_v24 = vunpack.i.l.bf16 %v2179_v17 }
 0x128   : > { %1979 = vmatpush3.bf16.msra.mxu1 %v1976_v5  ;;  %2007 = vmatpush3.bf16.msra.mxu0 %v2004_v14  ;;  %v1719_v14 = vld [vmem:[%s2439_s22 + $0x58] sm:$0xff] }
 0x129   : > { %1981 = vmatprep.subr.bf16.mxu1 %v1980_v15  ;;  %2009 = vmatprep.subr.bf16.mxu0 %v2008_v13  ;;  %v2012_v22 = vpack.c.bf16 %v2176_v18, %v2175_v19  ;;  %v2016_v32 = vpack.c.bf16 %v2181_v23, %v2180_v24  ;;  %v1724_v18 = vld [vmem:[%s2439_s22 + $0x60] sm:$0xff]  ;;  %v1750_v19 = vld [vmem:[%s2439_s22 + $0xd0] sm:$0xff]  ;;  %v1751_v23 = vld [vmem:[%s2439_s22 + $0xd8] sm:$0xff] }
 0x12a   : > { %v2184_v25 = vpop.permute.xlu0 %2183  ;;  %v2189_v27 = vpop.permute.xlu1 %2188  ;;  %v1726_v24 = vld [vmem:[%s2439_s22 + $0x70] sm:$0xff] }
 0x12b   : > { %1855 = vmatmul.mubr.msk.f32.vlgmr.msra.gmra.mrb[0].mxu1 %vm535_vm5, %v1705_v20  ;;  %v2186_v28 = vunpack.i.h.bf16 %v2184_v25  ;;  %v2185_v29 = vunpack.i.l.bf16 %v2184_v25  ;;  %v2191_v34 = vunpack.i.h.bf16 %v2189_v27  ;;  %v2190_v35 = vunpack.i.l.bf16 %v2189_v27  ;;  %v1727_v27 = vld [vmem:[%s2439_s22 + $0x78] sm:$0xff] }
 0x12c   : > { %1983 = vmatpush3.bf16.msra.mxu1 %v1980_v15  ;;  %2011 = vmatpush3.bf16.msra.mxu0 %v2008_v13  ;;  %v1749_v15 = vld [vmem:[%s2439_s22 + $0xc8] sm:$0xff] }
 0x12d   : > { %1857 = vmatprep.mubr.msk.f32.mxu1 %vm535_vm5, %v1706_v26  ;;  %1985 = vmatprep.subr.bf16.mxu1 %v1984_v21  ;;  %v1988_v33 = vpack.c.bf16 %v2186_v28, %v2185_v29  ;;  %v2020_v44 = vpack.c.bf16 %v2191_v34, %v2190_v35  ;;  %v1756_v26 = vld [vmem:[%s2439_s22 + $0xe0] sm:$0xff]  ;;  %v1757_v28 = vld [vmem:[%s2439_s22 + $0xe8] sm:$0xff]  ;;  %v1758_v29 = vld [vmem:[%s2439_s22 + $0xf0] sm:$0xff] }
 0x12e   : > { %2013 = vmatprep.subr.bf16.mxu0 %v2012_v22  ;;  %v2194_v36 = vpop.permute.xlu0 %2193  ;;  %v2199_v39 = vpop.permute.xlu1 %2198  ;;  %v1765_v34 = vld [vmem:[%s2439_s22 + $0x108] sm:$0xff] }
 0x12f   : > { %1858 = vmatmul.mubr.msk.f32.gmra.mrb[2].mxu1 %vm535_vm5, %v1707_v30  ;;  %1911 = vmatmul.mubr.msk.f32.vlgmr.msra.gmra.mrb[0].mxu0 %vm535_vm5, %v1733_v31  ;;  %v2196_v40 = vunpack.i.h.bf16 %v2194_v36  ;;  %v2195_v41 = vunpack.i.l.bf16 %v2194_v36  ;;  %v2201_v46 = vunpack.i.h.bf16 %v2199_v39  ;;  %v2200_v47 = vunpack.i.l.bf16 %v2199_v39  ;;  %v1766_v30 = vld [vmem:[%s2439_s22 + $0x110] sm:$0xff]  ;;  %v1759_v31 = vld [vmem:[%s2439_s22 + $0xf8] sm:$0xff] }
 0x130   : > { %1987 = vmatpush3.bf16.msra.mxu1 %v1984_v21  ;;  %2015 = vmatpush3.bf16.msra.mxu0 %v2012_v22  ;;  %v1725_v22 = vld [vmem:[%s2439_s22 + $0x68] sm:$0xff] }
 0x131   : > { %1868 = vmatprep.mubr.msk.f32.mxu1 %vm535_vm5, %v510_v37  ;;  %1913 = vmatprep.mubr.msk.f32.mxu0 %vm535_vm5, %v1734_v38  ;;  %v1992_v45 = vpack.c.bf16 %v2196_v40, %v2195_v41  ;;  %v2024_v56 = vpack.c.bf16 %v2201_v46, %v2200_v47  ;;  %v1558_v47 = vld [vmem:[%s2420_s21 + $0x10] sm:$0xff] }
 0x132   : > { %1989 = vmatprep.subr.bf16.mxu1 %v1988_v33  ;;  %2017 = vmatprep.subr.bf16.mxu0 %v2016_v32  ;;  %v2204_v48 = vpop.permute.xlu0 %2203  ;;  %v2209_v51 = vpop.permute.xlu1 %2208 }
 0x133   : > { %1869 = vmatmul.mubr.msk.f32.vlgmr.msra.gmra.mrb[0].mxu1 %vm535_vm5, %v511_v42  ;;  %1914 = vmatmul.mubr.msk.f32.gmra.mrb[2].mxu0 %vm535_vm5, %v1735_v43  ;;  %v2206_v52 = vunpack.i.h.bf16 %v2204_v48  ;;  %v2205_v53 = vunpack.i.l.bf16 %v2204_v48  ;;  %v2211_v58 = vunpack.i.h.bf16 %v2209_v51  ;;  %v2210_v59 = vunpack.i.l.bf16 %v2209_v51 }
 0x134   : > { %1991 = vmatpush3.bf16.msra.mxu1 %v1988_v33  ;;  %2019 = vmatpush3.bf16.msra.mxu0 %v2016_v32  ;;  %v1767_v32 = vld [vmem:[%s2439_s22 + $0x118] sm:$0xff]  ;;  %v1764_v33 = vld [vmem:[%s2439_s22 + $0x100] sm:$0xff] }
 0x135   : > { %1871 = vmatprep.mubr.msk.f32.mxu1 %vm535_vm5, %v512_v49  ;;  %1924 = vmatprep.mubr.msk.f32.mxu0 %vm535_vm5, %v1740_v50  ;;  %v1996_v57 = vpack.c.bf16 %v2206_v52, %v2205_v53  ;;  %v2028_v4 = vpack.c.bf16 %v2211_v58, %v2210_v59  ;;  %v1557_v50 = vld [vmem:[%s2420_s21 + $0x8] sm:$0xff] }
 0x136   : > { %1993 = vmatprep.subr.bf16.mxu1 %v1992_v45  ;;  %2021 = vmatprep.subr.bf16.mxu0 %v2020_v44  ;;  %v2214_v60 = vpop.permute.xlu0 %2213  ;;  %v2219_v1 = vpop.permute.xlu1 %2218 }
 0x137   : > { %1872 = vmatmul.mubr.msk.f32.gmra.mrb[2].mxu1 %vm535_vm5, %v513_v54  ;;  %1925 = vmatmul.mubr.msk.f32.vlgmr.msra.gmra.mrb[0].mxu0 %vm535_vm5, %v1741_v55  ;;  %v2216_v63 = vunpack.i.h.bf16 %v2214_v60  ;;  %v2215_v0 = vunpack.i.l.bf16 %v2214_v60  ;;  %v2221_v6 = vunpack.i.h.bf16 %v2219_v1  ;;  %v2220_v7 = vunpack.i.l.bf16 %v2219_v1  ;;  %v1556_v54 = vld [vmem:[%s2420_s21] sm:$0xff] }
 0x138   : > { %1995 = vmatpush3.bf16.msra.mxu1 %v1992_v45  ;;  %2023 = vmatpush3.bf16.msra.mxu0 %v2020_v44  ;;  %v1559_v44 = vld [vmem:[%s2420_s21 + $0x18] sm:$0xff] }
 0x139   : > { %1882 = vmatprep.mubr.msk.f32.mxu1 %vm535_vm5, %v1716_v61  ;;  %1927 = vmatprep.mubr.msk.f32.mxu0 %vm535_vm5, %v1742_v62  ;;  %v2000_v5 = vpack.c.bf16 %v2216_v63, %v2215_v0  ;;  %v2032_v16 = vpack.c.bf16 %v2221_v6, %v2220_v7 }
 0x13a   : > { %1997 = vmatprep.subr.bf16.mxu1 %v1996_v57  ;;  %2025 = vmatprep.subr.bf16.mxu0 %v2024_v56  ;;  %v2224_v10 = vpop.permute.xlu0 %2223  ;;  %v2229_v13 = vpop.permute.xlu1 %2228 }
 0x13b   : > { %1883 = vmatmul.mubr.msk.f32.vlgmr.msra.gmra.mrb[0].mxu1 %vm535_vm5, %v1717_v2  ;;  %1928 = vmatmul.mubr.msk.f32.gmra.mrb[2].mxu0 %vm535_vm5, %v1743_v3  ;;  %v2226_v11 = vunpack.i.h.bf16 %v2224_v10  ;;  %v2225_v12 = vunpack.i.l.bf16 %v2224_v10  ;;  %v2231_v20 = vunpack.i.h.bf16 %v2229_v13  ;;  %v2230_v21 = vunpack.i.l.bf16 %v2229_v13 }
 0x13c   : > { %1999 = vmatpush3.bf16.msra.mxu1 %v1996_v57  ;;  %2027 = vmatpush3.bf16.msra.mxu0 %v2024_v56 }
 0x13d   : > { %1885 = vmatprep.mubr.msk.f32.mxu1 %vm535_vm5, %v1718_v8  ;;  %1938 = vmatprep.mubr.msk.f32.mxu0 %vm535_vm5, %v1748_v9  ;;  %v2036_v17 = vpack.c.bf16 %v2226_v11, %v2225_v12  ;;  %v2040_v25 = vpack.c.bf16 %v2231_v20, %v2230_v21 }
 0x13e   : > { %2001 = vmatprep.subr.bf16.mxu1 %v2000_v5  ;;  %2029 = vmatprep.subr.bf16.mxu0 %v2028_v4 }
 0x13f   : > { %1886 = vmatmul.mubr.msk.f32.gmra.mrb[2].mxu1 %vm535_vm5, %v1719_v14  ;;  %1939 = vmatmul.mubr.msk.f32.vlgmr.msra.gmra.mrb[0].mxu0 %vm535_vm5, %v1749_v15 }
 0x140   : > { %2003 = vmatpush3.bf16.msra.mxu1 %v2000_v5  ;;  %2031 = vmatpush3.bf16.msra.mxu0 %v2028_v4 }
 0x141   : > { %1896 = vmatprep.mubr.msk.f32.mxu1 %vm535_vm5, %v1724_v18  ;;  %1941 = vmatprep.mubr.msk.f32.mxu0 %vm535_vm5, %v1750_v19 }
 0x142   : > { %2033 = vmatprep.subr.bf16.mxu0 %v2032_v16  ;;  %2044 = vmatprep.subr.bf16.mxu1 %v2036_v17 }
 0x143   : > { %1897 = vmatmul.mubr.msk.f32.vlgmr.msra.gmra.mrb[0].mxu1 %vm535_vm5, %v1725_v22  ;;  %1942 = vmatmul.mubr.msk.f32.gmra.mrb[2].mxu0 %vm535_vm5, %v1751_v23 }
 0x144   : > { %2035 = vmatpush3.bf16.msra.mxu0 %v2032_v16  ;;  %1899 = vmatprep.mubr.msk.f32.mxu1 %vm535_vm5, %v1726_v24 }
 0x145   : > { %1952 = vmatprep.mubr.msk.f32.mxu0 %vm535_vm5, %v1756_v26  ;;  %2046 = vmatpush3.bf16.msra.mxu1 %v2036_v17 }
 0x146   : > { %2037 = vmatprep.subr.bf16.mxu0 %v2036_v17  ;;  %2045 = vmatprep.subr.bf16.mxu1 %v2040_v25 }
 0x147   : > { %1900 = vmatmul.mubr.msk.f32.gmra.mrb[2].mxu1 %vm535_vm5, %v1727_v27  ;;  %1953 = vmatmul.mubr.msk.f32.vlgmr.msra.gmra.mrb[0].mxu0 %vm535_vm5, %v1757_v28 }
 0x148   : > { %2039 = vmatpush3.bf16.msra.mxu0 %v2036_v17  ;;  %1955 = vmatprep.mubr.msk.f32.mxu0 %vm535_vm5, %v1758_v29 }
 0x149   : > { %2047 = vmatpush3.bf16.msra.mxu1 %v2040_v25  ;;  %2041 = vmatprep.subr.bf16.mxu0 %v2040_v25 }
 0x14a   : > { %1969 = vmatprep.mubr.msk.f32.mxu1 %vm535_vm5, %v1766_v30 }
 0x14b   : > { %1956 = vmatmul.mubr.msk.f32.gmra.mrb[2].mxu0 %vm535_vm5, %v1759_v31 }
 0x14c   : > { %2043 = vmatpush3.bf16.msra.mxu0 %v2040_v25  ;;  %1970 = vmatmul.mubr.msk.f32.vlgmr.msra.gmra.mrb[4].mxu1 %vm535_vm5, %v1767_v32 }
 0x14d   : > { %1966 = vmatprep.mubr.msk.f32.mxu0 %vm535_vm5, %v1764_v33 }
 0x14f   : > { %1967 = vmatmul.mubr.msk.f32.vlgmr.msra.gmra.mrb[0].mxu0 %vm535_vm5, %v1765_v34 }
 0x216   : > { %v1898_v35 = vpop.f32.mrb[0].mxu1 }
 0x217   : > { %v943_v36 = vpop.f32.mrb[1].mxu1 }
 0x21a   : > { %v1901_v37 = vpop.f32.mrb[2].mxu1 }
 0x21b   : > { %v953_v38 = vpop.f32.mrb[3].mxu1 }
 0x21e   : > { %v1957_v39 = vpop.f32.mrb[2].mxu0 }
 0x21f   : > { %v2050_v40 = vadd.f32 %v1957_v39, %v1901_v37  ;;  %v1425_v41 = vpop.f32.mrb[3].mxu0  ;;  %v1971_v42 = vpop.f32.mrb[4].mxu1 }
 0x220   : > { %v2052_v43 = vadd.f32 %v1425_v41, %v953_v38  ;;  %v1543_v45 = vpop.f32.mrb[5].mxu1 }
 0x221   : > { %v2051_v46 = vadd.f32 %v2050_v40, %v1971_v42 }
 0x222   : > { %v2053_v48 = vadd.f32 %v2052_v43, %v1543_v45  ;;  %v1968_v49 = vpop.f32.mrb[0].mxu0 }
 0x223   : > { %v1563_v51 = vadd.f32 %v2051_v46, %v1559_v44  ;;  %v2048_v52 = vadd.f32 %v1968_v49, %v1898_v35  ;;  %v1533_v53 = vpop.f32.mrb[1].mxu0 }
 0x224   : > { %v1562_v55 = vadd.f32 %v2053_v48, %v1558_v47  ;;  %v2049_v56 = vadd.f32 %v1533_v53, %v943_v36 }
 0x225   : > { %1568 = vst.msk [vmem:[%s2420_s21 + $0x18] sm:$0xff] %vm1564_vm6, %v1563_v51  ;;  %v1561_v57 = vadd.f32 %v2048_v52, %v1557_v50 }
 0x226   : > { %1567 = vst.msk [vmem:[%s2420_s21 + $0x10] sm:$0xff] %vm1564_vm6, %v1562_v55  ;;  %v1560_v58 = vadd.f32 %v2049_v56, %v1556_v54 }
 0x227   : > { %1566 = vst.msk [vmem:[%s2420_s21 + $0x8] sm:$0xff] %vm1564_vm6, %v1561_v57 }
 0x228   : > { %1565 = vst.msk [vmem:[%s2420_s21] sm:$0xff] %vm1564_vm6, %v1560_v58 }
 0x229 PF: > { %s17_s30 = sadd.s32 1, %s2286_s30   ;;  %s2592_s24 = smov %s2274_s27 }
 0x22a   : > { %p14_p11 = scmp.ge.s32.totalorder %s17_s30, 26   ;;  %s2593_s25 = smov %s2278_s28 }
 0x22b   : > { %s2594_s26 = smov %s2282_s29  ;;  %s2595_s27 = smov %s2599_s8 }
 0x22c   : > { %s2596_s28 = smov %s2603_s9  ;;  %s2597_s29 = smov %s2607_s10 }
 0x22d   :  { %16 = sbr.rel (!%p14_p11) target bundleno = 4 (0x4), region = 96 }

// kernel: tile.23
= control target key start
LH: loop header
LB: loop body
LE: loop exit
PB: predicated region body
PF: predicated region fallthrough
CT: control target
= control target key end

     0   :  { %s22_s0 = inlined_call_operand.vmem [shape: f32[32], index: 0, kind: input, shape index: {}]   ;;  %s23_s1 = inlined_call_operand.vmem [shape: f32[8,32], index: 1, kind: output, shape index: {}]  }
   0x1   :  { %v4_v0 = vld [vmem:[%s22_s0] ss:$0 sm:$0xff] }
   0x2   :  { %5 = vst [vmem:[%s23_s1] sm:$0xff] %v4_v0 }

// kernel: hiformer_v3_forward.38
= control target key start
LH: loop header
LB: loop body
LE: loop exit
PB: predicated region body
PF: predicated region fallthrough
CT: control target
= control target key end

     0   :  { %s1393_s12 = smov 0   ;;  %s1395_s13 = smov 0   ;;  %s1795_s0 = inlined_call_operand.vmem [shape: f32[2,2,864,1], index: 0, kind: input, shape index: {}]   ;;  %s1796_s1 = inlined_call_operand.vmem [shape: f32[64,864], index: 1, kind: input, shape index: {}]   ;;  %s1797_s2 = inlined_call_operand.vmem [shape: f32[64,1], index: 2, kind: input, shape index: {}]   ;;  %s1798_s3 = inlined_call_operand.vmem [shape: f32[2,2,64,1], index: 3, kind: output, shape index: {}]  }
   0x1   :  { %s1397_s14 = smov 0   ;;  %s1399_s15 = smov 0  }
   0x2   :  { %s1401_s16 = smov 0  }
   0x3 LB: > { %s22_s17 = sadd.s32 1, %s1363_s14  ;;  %s25_s18 = sadd.s32 1, %s1367_s15  ;;  %s1371_s16 = sphi %s1401_s16, %s13_s16   ;;  %s1367_s15 = sphi %s1399_s15, %s1802_s15   ;;  %s1363_s14 = sphi %s1397_s14, %s1801_s14   ;;  %s1359_s13 = sphi %s1395_s13, %s1800_s13   ;;  %s1355_s12 = sphi %s1393_s12, %s1799_s12  }
   0x4   : > { %p23_p0 = scmp.ge.s32.totalorder %s22_s17, 2  ;;  %p932_p1 = scmp.ge.s32.totalorder %s1371_s16, 1 }
   0x5   : > { %p157_p2 = scmp.lt.s32.totalorder %s1371_s16, 5 }
   0x6   : > { %s1804_s17 = smov (%p23_p0, %s22_s17), 0  ;;  %s1806_s18 = smov (!%p23_p0, %s25_s18), %s1367_s15 }
   0x7   : > { %p158_p3 = pnand %p932_p1, %p157_p2  ;;  %p27_p4 = scmp.ge.s32.totalorder %s1806_s18, 2 }
   0x8   : > { %p189_p5 = scmp.lt.s32.totalorder (!%p158_p3), %s1359_s13, 1  ;;  %p191_p6 = scmp.lt.s32.totalorder (!%p158_p3), %s1355_s12, 1  ;;  %v208_v0 = vld [vmem:[%s1796_s1 + $0x8] sm:$0xff] (!%p158_p3)  ;;  %v210_v1 = vld [vmem:[%s1796_s1 + $0x18] sm:$0xff] (!%p158_p3)  ;;  %vm379_vm0 = vcmask (!%p158_p3), 785408   ;;  %vm824_vm1 = vcmask (!%p158_p3), 7168  }
   0x9   : > { %s1808_s18 = smov (%p27_p4, %s1806_s18), 0  ;;  %161 = sbr.rel (%p158_p3) target bundleno = 338 (0x152), region = 32 }
   0xa   : > { %468 = vmatprep.mubr.f32.mxu0 (!%p158_p3), %v208_v0  ;;  %573 = vmatprep.mubr.f32.mxu1 (!%p158_p3), %v210_v1 }
  0x10   : > { %s1810_s13 = smov (!%p189_p5, %s1359_s13), 1  ;;  %s1812_s12 = smov (!%p191_p6, %s1355_s12), 1 }
  0x11   : > { %s1292_s23 = smul.u32 216, %s1810_s13  ;;  %s934_s7 = sshll.u32 %s1812_s12, 3 }
  0x12   : > { %s1291_s24 = smul.u32 108, %s1812_s12  ;;  %s935_s8 = sshll.u32 %s1810_s13, 4 }
  0x13   : > { %s204_s11 = sadd.s32 %s935_s8, %s934_s7 }
  0x14   : > { %s195_s25 = sadd.s32 %s1292_s23, %s1291_s24  ;;  %s936_s19 = sshll.u32 %s204_s11, 3 }
  0x15   : > { %s933_s26 = sshll.u32 %s195_s25, 3  ;;  %s1758_s20 = scalar_lea.vmem %s1798_s3, %s936_s19 }
  0x16   : > { %s1438_s29 = scalar_lea.vmem %s1795_s0, %s933_s26 }
  0x17   : > { %v279_v2 = vld [vmem:[%s1438_s29 + $0x80] sm:$0xff]  ;;  %v280_v3 = vld [vmem:[%s1438_s29 + $0x88] sm:$0xff]  ;;  %v281_v13 = vld [vmem:[%s1438_s29 + $0x90] sm:$0xff] }
  0x18   : > { %v263_v4 = vld [vmem:[%s1438_s29] sm:$0xff]  ;;  %v1171_v5 = vpack.c.bf16 %v280_v3, %v279_v2  ;;  %v264_v6 = vld [vmem:[%s1438_s29 + $0x8] sm:$0xff]  ;;  %v282_v15 = vld [vmem:[%s1438_s29 + $0x98] sm:$0xff] }
  0x19   : > { %v311_v7 = vld [vmem:[%s1438_s29 + $0x180] sm:$0xff]  ;;  %v312_v8 = vld [vmem:[%s1438_s29 + $0x188] sm:$0xff]  ;;  %v1173_v9 = vpack.c.bf16 %v264_v6, %v263_v4  ;;  %v265_v16 = vld [vmem:[%s1438_s29 + $0x10] sm:$0xff]  ;;  %v1175_v18 = vpack.c.bf16 %v282_v15, %v281_v13 }
  0x1a   : > { %v1203_v10 = vpack.c.bf16 %v312_v8, %v311_v7  ;;  %v295_v11 = vld [vmem:[%s1438_s29 + $0x100] sm:$0xff]  ;;  %v296_v12 = vld [vmem:[%s1438_s29 + $0x108] sm:$0xff]  ;;  %1172 = vmatprep.subr.bf16.mxu0 %v1171_v5  ;;  %v266_v17 = vld [vmem:[%s1438_s29 + $0x18] sm:$0xff] }
  0x1b   : > { %v1205_v14 = vpack.c.bf16 %v296_v12, %v295_v11  ;;  %1174 = vmatpush3.bf16.msra.mxu0 %v1173_v9  ;;  %v1177_v19 = vpack.c.bf16 %v266_v17, %v265_v16  ;;  %v313_v20 = vld [vmem:[%s1438_s29 + $0x190] sm:$0xff]  ;;  %v314_v21 = vld [vmem:[%s1438_s29 + $0x198] sm:$0xff]  ;;  %v283_v25 = vld [vmem:[%s1438_s29 + $0xa0] sm:$0xff] }
  0x1c   : > { %1204 = vmatprep.subr.bf16.mxu1 %v1203_v10  ;;  %v297_v22 = vld [vmem:[%s1438_s29 + $0x110] sm:$0xff]  ;;  %v1207_v23 = vpack.c.bf16 %v314_v21, %v313_v20  ;;  %v298_v24 = vld [vmem:[%s1438_s29 + $0x118] sm:$0xff]  ;;  %v284_v26 = vld [vmem:[%s1438_s29 + $0xa8] sm:$0xff]  ;;  %1176 = vmatprep.subr.bf16.mxu0 %v1175_v18 }
  0x1d   : > { %1206 = vmatpush3.bf16.msra.mxu1 %v1205_v14  ;;  %v1209_v27 = vpack.c.bf16 %v298_v24, %v297_v22  ;;  %v1179_v28 = vpack.c.bf16 %v284_v26, %v283_v25  ;;  %v267_v29 = vld [vmem:[%s1438_s29 + $0x20] sm:$0xff]  ;;  %v268_v30 = vld [vmem:[%s1438_s29 + $0x28] sm:$0xff]  ;;  %v285_v37 = vld [vmem:[%s1438_s29 + $0xb0] sm:$0xff] }
  0x1e   : > { %v315_v31 = vld [vmem:[%s1438_s29 + $0x1a0] sm:$0xff]  ;;  %1208 = vmatprep.subr.bf16.mxu1 %v1207_v23  ;;  %v316_v32 = vld [vmem:[%s1438_s29 + $0x1a8] sm:$0xff]  ;;  %v1181_v35 = vpack.c.bf16 %v268_v30, %v267_v29  ;;  %v286_v38 = vld [vmem:[%s1438_s29 + $0xb8] sm:$0xff] }
  0x1f   : > { %v299_v33 = vld [vmem:[%s1438_s29 + $0x120] sm:$0xff]  ;;  %v300_v34 = vld [vmem:[%s1438_s29 + $0x128] sm:$0xff]  ;;  %1178 = vmatpush3.bf16.msra.mxu0 %v1177_v19  ;;  %v1211_v36 = vpack.c.bf16 %v316_v32, %v315_v31  ;;  %v269_v39 = vld [vmem:[%s1438_s29 + $0x30] sm:$0xff]  ;;  %v1183_v41 = vpack.c.bf16 %v286_v38, %v285_v37 }
  0x20   : > { %1180 = vmatprep.subr.bf16.mxu0 %v1179_v28  ;;  %v1213_v40 = vpack.c.bf16 %v300_v34, %v299_v33  ;;  %v270_v42 = vld [vmem:[%s1438_s29 + $0x38] sm:$0xff]  ;;  %v317_v43 = vld [vmem:[%s1438_s29 + $0x1b0] sm:$0xff]  ;;  %v287_v48 = vld [vmem:[%s1438_s29 + $0xc0] sm:$0xff] }
  0x21   : > { %1210 = vmatpush3.bf16.msra.mxu1 %v1209_v27  ;;  %v318_v44 = vld [vmem:[%s1438_s29 + $0x1b8] sm:$0xff]  ;;  %v301_v46 = vld [vmem:[%s1438_s29 + $0x130] sm:$0xff]  ;;  %v288_v49 = vld [vmem:[%s1438_s29 + $0xc8] sm:$0xff]  ;;  %v1185_v50 = vpack.c.bf16 %v270_v42, %v269_v39 }
  0x22   : > { %1212 = vmatprep.subr.bf16.mxu1 %v1211_v36  ;;  %v1215_v45 = vpack.c.bf16 %v318_v44, %v317_v43  ;;  %v302_v47 = vld [vmem:[%s1438_s29 + $0x138] sm:$0xff]  ;;  %v319_v51 = vld [vmem:[%s1438_s29 + $0x1c0] sm:$0xff]  ;;  %v320_v52 = vld [vmem:[%s1438_s29 + $0x1c8] sm:$0xff]  ;;  %v1187_v54 = vpack.c.bf16 %v288_v49, %v287_v48 }
  0x23   : > { %1182 = vmatpush3.bf16.msra.mxu0 %v1181_v35  ;;  %v1217_v53 = vpack.c.bf16 %v302_v47, %v301_v46  ;;  %v271_v55 = vld [vmem:[%s1438_s29 + $0x40] sm:$0xff]  ;;  %v272_v56 = vld [vmem:[%s1438_s29 + $0x48] sm:$0xff]  ;;  %v1219_v58 = vpack.c.bf16 %v320_v52, %v319_v51  ;;  %v289_v60 = vld [vmem:[%s1438_s29 + $0xd0] sm:$0xff] }
  0x24   : > { %1184 = vmatprep.subr.bf16.mxu0 %v1183_v41  ;;  %v303_v57 = vld [vmem:[%s1438_s29 + $0x140] sm:$0xff]  ;;  %v304_v59 = vld [vmem:[%s1438_s29 + $0x148] sm:$0xff]  ;;  %v290_v61 = vld [vmem:[%s1438_s29 + $0xd8] sm:$0xff]  ;;  %v1189_v0 = vpack.c.bf16 %v272_v56, %v271_v55 }
  0x25   : > { %1214 = vmatpush3.bf16.msra.mxu1 %v1213_v40  ;;  %v321_v62 = vld [vmem:[%s1438_s29 + $0x1d0] sm:$0xff]  ;;  %v322_v63 = vld [vmem:[%s1438_s29 + $0x1d8] sm:$0xff]  ;;  %v1221_v1 = vpack.c.bf16 %v304_v59, %v303_v57  ;;  %v1191_v2 = vpack.c.bf16 %v290_v61, %v289_v60  ;;  %v291_v8 = vld [vmem:[%s1438_s29 + $0xe0] sm:$0xff] }
  0x26   : > { %1216 = vmatprep.subr.bf16.mxu1 %v1215_v45  ;;  %v273_v3 = vld [vmem:[%s1438_s29 + $0x50] sm:$0xff]  ;;  %v274_v4 = vld [vmem:[%s1438_s29 + $0x58] sm:$0xff]  ;;  %v1223_v6 = vpack.c.bf16 %v322_v63, %v321_v62  ;;  %v292_v9 = vld [vmem:[%s1438_s29 + $0xe8] sm:$0xff] }
  0x27   : > { %1186 = vmatpush3.bf16.msra.mxu0 %v1185_v50  ;;  %v305_v5 = vld [vmem:[%s1438_s29 + $0x150] sm:$0xff]  ;;  %v306_v7 = vld [vmem:[%s1438_s29 + $0x158] sm:$0xff]  ;;  %v323_v10 = vld [vmem:[%s1438_s29 + $0x1e0] sm:$0xff]  ;;  %v1193_v12 = vpack.c.bf16 %v274_v4, %v273_v3  ;;  %v1195_v14 = vpack.c.bf16 %v292_v9, %v291_v8 }
  0x28   : > { %1188 = vmatprep.subr.bf16.mxu0 %v1187_v54  ;;  %v324_v11 = vld [vmem:[%s1438_s29 + $0x1e8] sm:$0xff]  ;;  %v1225_v13 = vpack.c.bf16 %v306_v7, %v305_v5  ;;  %v275_v15 = vld [vmem:[%s1438_s29 + $0x60] sm:$0xff]  ;;  %v293_v20 = vld [vmem:[%s1438_s29 + $0xf0] sm:$0xff] }
  0x29   : > { %1218 = vmatpush3.bf16.msra.mxu1 %v1217_v53  ;;  %v276_v16 = vld [vmem:[%s1438_s29 + $0x68] sm:$0xff]  ;;  %v307_v17 = vld [vmem:[%s1438_s29 + $0x160] sm:$0xff]  ;;  %v1227_v18 = vpack.c.bf16 %v324_v11, %v323_v10  ;;  %v294_v21 = vld [vmem:[%s1438_s29 + $0xf8] sm:$0xff] }
  0x2a   : > { %1220 = vmatprep.subr.bf16.mxu1 %v1219_v58  ;;  %v308_v19 = vld [vmem:[%s1438_s29 + $0x168] sm:$0xff]  ;;  %v325_v22 = vld [vmem:[%s1438_s29 + $0x1f0] sm:$0xff]  ;;  %v326_v23 = vld [vmem:[%s1438_s29 + $0x1f8] sm:$0xff]  ;;  %v1197_v24 = vpack.c.bf16 %v276_v16, %v275_v15  ;;  %v1199_v26 = vpack.c.bf16 %v294_v21, %v293_v20 }
  0x2b   : > { %1190 = vmatpush3.bf16.msra.mxu0 %v1189_v0  ;;  %v1229_v25 = vpack.c.bf16 %v308_v19, %v307_v17  ;;  %v277_v27 = vld [vmem:[%s1438_s29 + $0x70] sm:$0xff]  ;;  %v278_v28 = vld [vmem:[%s1438_s29 + $0x78] sm:$0xff]  ;;  %v1231_v30 = vpack.c.bf16 %v326_v23, %v325_v22  ;;  %v343_v32 = vld [vmem:[%s1438_s29 + $0x280] sm:$0xff] }
  0x2c   : > { %1192 = vmatprep.subr.bf16.mxu0 %v1191_v2  ;;  %v309_v29 = vld [vmem:[%s1438_s29 + $0x170] sm:$0xff]  ;;  %v310_v31 = vld [vmem:[%s1438_s29 + $0x178] sm:$0xff]  ;;  %v344_v33 = vld [vmem:[%s1438_s29 + $0x288] sm:$0xff]  ;;  %v1201_v36 = vpack.c.bf16 %v278_v28, %v277_v27 }
  0x2d   : > { %1222 = vmatpush3.bf16.msra.mxu1 %v1221_v1  ;;  %v359_v34 = vld [vmem:[%s1438_s29 + $0x300] sm:$0xff]  ;;  %v360_v35 = vld [vmem:[%s1438_s29 + $0x308] sm:$0xff]  ;;  %v1233_v37 = vpack.c.bf16 %v310_v31, %v309_v29  ;;  %v1235_v38 = vpack.c.bf16 %v344_v33, %v343_v32  ;;  %v345_v41 = vld [vmem:[%s1438_s29 + $0x290] sm:$0xff] }
  0x2e   : > { %1224 = vmatprep.subr.bf16.mxu1 %v1223_v6  ;;  %v327_v39 = vld [vmem:[%s1438_s29 + $0x200] sm:$0xff]  ;;  %v328_v40 = vld [vmem:[%s1438_s29 + $0x208] sm:$0xff]  ;;  %v346_v42 = vld [vmem:[%s1438_s29 + $0x298] sm:$0xff]  ;;  %v1267_v43 = vpack.c.bf16 %v360_v35, %v359_v34 }
  0x2f   : > { %1194 = vmatpush3.bf16.msra.mxu0 %v1193_v12  ;;  %v207_v44 = vld [vmem:[%s1796_s1] sm:$0xff]  ;;  %v1237_v45 = vpack.c.bf16 %v328_v40, %v327_v39  ;;  %v361_v46 = vld [vmem:[%s1438_s29 + $0x310] sm:$0xff]  ;;  %v362_v47 = vld [vmem:[%s1438_s29 + $0x318] sm:$0xff]  ;;  %v1239_v49 = vpack.c.bf16 %v346_v42, %v345_v41 }
  0x30   : > { %1196 = vmatprep.subr.bf16.mxu0 %v1195_v14  ;;  %v209_v48 = vld [vmem:[%s1796_s1 + $0x10] sm:$0xff]  ;;  %v330_v51 = vld [vmem:[%s1438_s29 + $0x218] sm:$0xff]  ;;  %v215_v52 = vld [vmem:[%s1796_s1 + $0x40] sm:$0xff]  ;;  %v1271_v56 = vpack.c.bf16 %v362_v47, %v361_v46 }
  0x31   : > { %1226 = vmatpush3.bf16.msra.mxu1 %v1225_v13  ;;  %v329_v50 = vld [vmem:[%s1438_s29 + $0x210] sm:$0xff]  ;;  %v347_v53 = vld [vmem:[%s1438_s29 + $0x2a0] sm:$0xff]  ;;  %v348_v54 = vld [vmem:[%s1438_s29 + $0x2a8] sm:$0xff] }
  0x32   : > { %1228 = vmatprep.subr.bf16.mxu1 %v1227_v18  ;;  %v217_v55 = vld [vmem:[%s1796_s1 + $0x50] sm:$0xff]  ;;  %v214_v57 = vld [vmem:[%s1796_s1 + $0x38] sm:$0xff]  ;;  %v1241_v58 = vpack.c.bf16 %v330_v51, %v329_v50  ;;  %v363_v59 = vld [vmem:[%s1438_s29 + $0x320] sm:$0xff]  ;;  %v1243_v62 = vpack.c.bf16 %v348_v54, %v347_v53 }
  0x33   : > { %1198 = vmatpush3.bf16.msra.mxu0 %v1197_v24  ;;  %v364_v60 = vld [vmem:[%s1438_s29 + $0x328] sm:$0xff]  ;;  %v331_v63 = vld [vmem:[%s1438_s29 + $0x220] sm:$0xff]  ;;  %v222_v1 = vld [vmem:[%s1796_s1 + $0x78] sm:$0xff] }
  0x34   : > { %1200 = vmatprep.subr.bf16.mxu0 %v1199_v26  ;;  %v216_v61 = vld [vmem:[%s1796_s1 + $0x48] sm:$0xff]  ;;  %v349_v2 = vld [vmem:[%s1438_s29 + $0x2b0] sm:$0xff]  ;;  %v350_v3 = vld [vmem:[%s1438_s29 + $0x2b8] sm:$0xff]  ;;  %v1275_v5 = vpack.c.bf16 %v364_v60, %v363_v59 }
  0x35   : > { %1230 = vmatpush3.bf16.msra.mxu1 %v1229_v25  ;;  %v332_v0 = vld [vmem:[%s1438_s29 + $0x228] sm:$0xff]  ;;  %v221_v6 = vld [vmem:[%s1796_s1 + $0x70] sm:$0xff]  ;;  %v366_v9 = vld [vmem:[%s1438_s29 + $0x338] sm:$0xff]  ;;  %v1247_v11 = vpack.c.bf16 %v350_v3, %v349_v2 }
  0x36   : > { %1232 = vmatprep.subr.bf16.mxu1 %v1231_v30  ;;  %v224_v4 = vld [vmem:[%s1796_s1 + $0x88] sm:$0xff]  ;;  %v1245_v7 = vpack.c.bf16 %v332_v0, %v331_v63  ;;  %v365_v8 = vld [vmem:[%s1438_s29 + $0x330] sm:$0xff]  ;;  %v223_v10 = vld [vmem:[%s1796_s1 + $0x80] sm:$0xff] }
  0x37   : > { %1202 = vmatpush3.bf16.msra.mxu0 %v1201_v36  ;;  %v333_v12 = vld [vmem:[%s1438_s29 + $0x230] sm:$0xff]  ;;  %v334_v13 = vld [vmem:[%s1438_s29 + $0x238] sm:$0xff]  ;;  %v351_v15 = vld [vmem:[%s1438_s29 + $0x2c0] sm:$0xff]  ;;  %v1279_v18 = vpack.c.bf16 %v366_v9, %v365_v8 }
  0x38   : > { %1236 = vmatprep.subr.bf16.mxu0 %v1235_v38  ;;  %v229_v14 = vld [vmem:[%s1796_s1 + $0xb0] sm:$0xff]  ;;  %v352_v16 = vld [vmem:[%s1438_s29 + $0x2c8] sm:$0xff]  ;;  %v231_v17 = vld [vmem:[%s1796_s1 + $0xc0] sm:$0xff]  ;;  %v1249_v20 = vpack.c.bf16 %v334_v13, %v333_v12 }
  0x39   : > { %1234 = vmatpush3.bf16.msra.mxu1 %v1233_v37  ;;  %v228_v19 = vld [vmem:[%s1796_s1 + $0xa8] sm:$0xff]  ;;  %v367_v21 = vld [vmem:[%s1438_s29 + $0x340] sm:$0xff]  ;;  %v230_v23 = vld [vmem:[%s1796_s1 + $0xb8] sm:$0xff]  ;;  %v1251_v24 = vpack.c.bf16 %v352_v16, %v351_v15 }
  0x3a   : > { %1268 = vmatprep.subr.bf16.mxu1 %v1267_v43  ;;  %469 = vmatmul.mubr.f32.vlgmr.msra.gmra.mrb[0].mxu0 %v207_v44  ;;  %v368_v22 = vld [vmem:[%s1438_s29 + $0x348] sm:$0xff]  ;;  %v335_v25 = vld [vmem:[%s1438_s29 + $0x240] sm:$0xff]  ;;  %v353_v28 = vld [vmem:[%s1438_s29 + $0x2d0] sm:$0xff] }
  0x3b   : > { %1238 = vmatpush3.bf16.msra.mxu0 %v1237_v45  ;;  %473 = vmatprep.mubr.f32.mxu0 %v215_v52  ;;  %v336_v26 = vld [vmem:[%s1438_s29 + $0x248] sm:$0xff]  ;;  %v354_v29 = vld [vmem:[%s1438_s29 + $0x2d8] sm:$0xff]  ;;  %v1283_v31 = vpack.c.bf16 %v368_v22, %v367_v21  ;;  %v235_v32 = vld [vmem:[%s1796_s1 + $0xe0] sm:$0xff] }
  0x3c   : > { %574 = vmatmul.mubr.f32.vlgmr.msra.gmra.mrb[0].mxu1 %v209_v48  ;;  %1240 = vmatprep.subr.bf16.mxu0 %v1239_v49  ;;  %v236_v27 = vld [vmem:[%s1796_s1 + $0xe8] sm:$0xff]  ;;  %v238_v30 = vld [vmem:[%s1796_s1 + $0xf8] sm:$0xff]  ;;  %v1253_v33 = vpack.c.bf16 %v336_v26, %v335_v25  ;;  %v369_v34 = vld [vmem:[%s1438_s29 + $0x350] sm:$0xff]  ;;  %v1255_v37 = vpack.c.bf16 %v354_v29, %v353_v28 }
  0x3d   : > { %578 = vmatprep.mubr.f32.mxu1 %v217_v55  ;;  %1270 = vmatpush3.bf16.msra.mxu1 %v1267_v43  ;;  %v370_v35 = vld [vmem:[%s1438_s29 + $0x358] sm:$0xff]  ;;  %v237_v36 = vld [vmem:[%s1796_s1 + $0xf0] sm:$0xff]  ;;  %v243_v40 = vld [vmem:[%s1796_s1 + $0x120] sm:$0xff] }
  0x3e   : > { %474 = vmatmul.mubr.f32.gmra.mrb[2].mxu0 %v214_v57  ;;  %1272 = vmatprep.subr.bf16.mxu1 %v1271_v56  ;;  %v337_v38 = vld [vmem:[%s1438_s29 + $0x250] sm:$0xff]  ;;  %v338_v39 = vld [vmem:[%s1438_s29 + $0x258] sm:$0xff]  ;;  %v355_v41 = vld [vmem:[%s1438_s29 + $0x2e0] sm:$0xff]  ;;  %v1287_v44 = vpack.c.bf16 %v370_v35, %v369_v34 }
  0x3f   : > { %1242 = vmatpush3.bf16.msra.mxu0 %v1241_v58  ;;  %478 = vmatprep.mubr.f32.mxu0 %v222_v1  ;;  %v356_v42 = vld [vmem:[%s1438_s29 + $0x2e8] sm:$0xff]  ;;  %v245_v43 = vld [vmem:[%s1796_s1 + $0x130] sm:$0xff]  ;;  %v242_v45 = vld [vmem:[%s1796_s1 + $0x118] sm:$0xff]  ;;  %v1257_v46 = vpack.c.bf16 %v338_v39, %v337_v38 }
  0x40   : > { %579 = vmatmul.mubr.f32.gmra.mrb[2].mxu1 %v216_v61  ;;  %1244 = vmatprep.subr.bf16.mxu0 %v1243_v62  ;;  %v244_v47 = vld [vmem:[%s1796_s1 + $0x128] sm:$0xff]  ;;  %v1259_v48 = vpack.c.bf16 %v356_v42, %v355_v41  ;;  %v339_v49 = vld [vmem:[%s1438_s29 + $0x260] sm:$0xff]  ;;  %v250_v51 = vld [vmem:[%s1796_s1 + $0x158] sm:$0xff] }
  0x41   : > { %583 = vmatprep.mubr.f32.mxu1 %v224_v4  ;;  %1274 = vmatpush3.bf16.msra.mxu1 %v1271_v56  ;;  %v340_v50 = vld [vmem:[%s1438_s29 + $0x268] sm:$0xff]  ;;  %v357_v52 = vld [vmem:[%s1438_s29 + $0x2f0] sm:$0xff]  ;;  %v358_v53 = vld [vmem:[%s1438_s29 + $0x2f8] sm:$0xff] }
  0x42   : > { %479 = vmatmul.mubr.f32.gmra.mrb[4].mxu0 %v221_v6  ;;  %1276 = vmatprep.subr.bf16.mxu1 %v1275_v5  ;;  %v252_v54 = vld [vmem:[%s1796_s1 + $0x168] sm:$0xff]  ;;  %v249_v55 = vld [vmem:[%s1796_s1 + $0x150] sm:$0xff]  ;;  %v1261_v56 = vpack.c.bf16 %v340_v50, %v339_v49  ;;  %v251_v57 = vld [vmem:[%s1796_s1 + $0x160] sm:$0xff]  ;;  %v1263_v58 = vpack.c.bf16 %v358_v53, %v357_v52 }
  0x43   : > { %1246 = vmatpush3.bf16.msra.mxu0 %v1245_v7  ;;  %483 = vmatprep.mubr.f32.mxu0 %v229_v14  ;;  %v341_v59 = vld [vmem:[%s1438_s29 + $0x270] sm:$0xff]  ;;  %v342_v60 = vld [vmem:[%s1438_s29 + $0x278] sm:$0xff]  ;;  %v259_v62 = vld [vmem:[%s1796_s1 + $0x1a0] sm:$0xff] }
  0x44   : > { %584 = vmatmul.mubr.f32.gmra.mrb[4].mxu1 %v223_v10  ;;  %1248 = vmatprep.subr.bf16.mxu0 %v1247_v11  ;;  %v257_v61 = vld [vmem:[%s1796_s1 + $0x190] sm:$0xff]  ;;  %v256_v63 = vld [vmem:[%s1796_s1 + $0x188] sm:$0xff]  ;;  %v1265_v0 = vpack.c.bf16 %v342_v60, %v341_v59  ;;  %v258_v1 = vld [vmem:[%s1796_s1 + $0x198] sm:$0xff] }
  0x45   : > { %588 = vmatprep.mubr.f32.mxu1 %v231_v17  ;;  %1278 = vmatpush3.bf16.msra.mxu1 %v1275_v5  ;;  %v212_v2 = vld [vmem:[%s1796_s1 + $0x28] sm:$0xff]  ;;  %v213_v3 = vld [vmem:[%s1796_s1 + $0x30] sm:$0xff]  ;;  %v211_v4 = vld [vmem:[%s1796_s1 + $0x20] sm:$0xff] }
  0x46   : > { %484 = vmatmul.mubr.f32.gmra.mrb[6].mxu0 %v228_v19  ;;  %1280 = vmatprep.subr.bf16.mxu1 %v1279_v18  ;;  %v219_v5 = vld [vmem:[%s1796_s1 + $0x60] sm:$0xff]  ;;  %v220_v6 = vld [vmem:[%s1796_s1 + $0x68] sm:$0xff]  ;;  %v218_v8 = vld [vmem:[%s1796_s1 + $0x58] sm:$0xff] }
  0x47   : > { %1250 = vmatpush3.bf16.msra.mxu0 %v1249_v20  ;;  %488 = vmatprep.mubr.f32.mxu0 %v236_v27  ;;  %v227_v7 = vld [vmem:[%s1796_s1 + $0xa0] sm:$0xff]  ;;  %v226_v9 = vld [vmem:[%s1796_s1 + $0x98] sm:$0xff]  ;;  %v241_v11 = vld [vmem:[%s1796_s1 + $0x110] sm:$0xff] }
  0x48   : > { %589 = vmatmul.mubr.f32.gmra.mrb[6].mxu1 %v230_v23  ;;  %1252 = vmatprep.subr.bf16.mxu0 %v1251_v24  ;;  %v234_v10 = vld [vmem:[%s1796_s1 + $0xd8] sm:$0xff]  ;;  %v225_v12 = vld [vmem:[%s1796_s1 + $0x90] sm:$0xff]  ;;  %v248_v14 = vld [vmem:[%s1796_s1 + $0x148] sm:$0xff] }
  0x49   : > { %593 = vmatprep.mubr.f32.mxu1 %v238_v30  ;;  %1282 = vmatpush3.bf16.msra.mxu1 %v1279_v18  ;;  %v233_v13 = vld [vmem:[%s1796_s1 + $0xd0] sm:$0xff]  ;;  %v255_v15 = vld [vmem:[%s1796_s1 + $0x180] sm:$0xff]  ;;  %v232_v16 = vld [vmem:[%s1796_s1 + $0xc8] sm:$0xff] }
  0x4a   : > { %489 = vmatmul.mubr.f32.gmra.mrb[8].mxu0 %v235_v32  ;;  %1284 = vmatprep.subr.bf16.mxu1 %v1283_v31  ;;  %v240_v17 = vld [vmem:[%s1796_s1 + $0x108] sm:$0xff]  ;;  %v262_v18 = vld [vmem:[%s1796_s1 + $0x1b8] sm:$0xff]  ;;  %v239_v19 = vld [vmem:[%s1796_s1 + $0x100] sm:$0xff] }
  0x4b   : > { %1254 = vmatpush3.bf16.msra.mxu0 %v1253_v33  ;;  %493 = vmatprep.mubr.f32.mxu0 %v243_v40  ;;  %v247_v20 = vld [vmem:[%s1796_s1 + $0x140] sm:$0xff]  ;;  %v246_v21 = vld [vmem:[%s1796_s1 + $0x138] sm:$0xff]  ;;  %v253_v23 = vld [vmem:[%s1796_s1 + $0x170] sm:$0xff] }
  0x4c   : > { %594 = vmatmul.mubr.f32.gmra.mrb[8].mxu1 %v237_v36  ;;  %1256 = vmatprep.subr.bf16.mxu0 %v1255_v37  ;;  %v254_v22 = vld [vmem:[%s1796_s1 + $0x178] sm:$0xff]  ;;  %v261_v24 = vld [vmem:[%s1796_s1 + $0x1b0] sm:$0xff]  ;;  %v260_v25 = vld [vmem:[%s1796_s1 + $0x1a8] sm:$0xff] }
  0x4d   : > { %598 = vmatprep.mubr.f32.mxu1 %v245_v43  ;;  %1286 = vmatpush3.bf16.msra.mxu1 %v1283_v31  ;;  %v371_v27 = vld [vmem:[%s1797_s2] sm:$0xff]  ;;  %v372_v35 = vld [vmem:[%s1797_s2 + $0x8] sm:$0xff]  ;;  %v374_v53 = vld [vmem:[%s1797_s2 + $0x18] sm:$0xff] }
  0x4e   : > { %494 = vmatmul.mubr.f32.gmra.mrb[10].mxu0 %v242_v45  ;;  %1288 = vmatprep.subr.bf16.mxu1 %v1287_v44 }
  0x4f   : > { %1258 = vmatpush3.bf16.msra.mxu0 %v1257_v46  ;;  %498 = vmatprep.mubr.f32.mxu0 %v250_v51 }
  0x50   : > { %599 = vmatmul.mubr.f32.gmra.mrb[10].mxu1 %v244_v47  ;;  %1260 = vmatprep.subr.bf16.mxu0 %v1259_v48 }
  0x51   : > { %603 = vmatprep.mubr.f32.mxu1 %v252_v54  ;;  %1290 = vmatpush3.bf16.msra.mxu1 %v1287_v44  ;;  %v373_v44 = vld [vmem:[%s1797_s2 + $0x10] sm:$0xff] }
  0x52   : > { %499 = vmatmul.mubr.f32.gmra.mrb[12].mxu0 %v249_v55 }
  0x53   : > { %1262 = vmatpush3.bf16.msra.mxu0 %v1261_v56  ;;  %503 = vmatprep.mubr.f32.mxu0 %v257_v61 }
  0x54   : > { %604 = vmatmul.mubr.f32.gmra.mrb[12].mxu1 %v251_v57  ;;  %1264 = vmatprep.subr.bf16.mxu0 %v1263_v58 }
  0x55   : > { %608 = vmatprep.mubr.f32.mxu1 %v259_v62  ;;  %v375_v62 = vld [vmem:[%s1797_s2 + $0x20] sm:$0xff] }
  0x56   : > { %504 = vmatmul.mubr.f32.gmra.mrb[14].mxu0 %v256_v63 }
  0x57   : > { %1266 = vmatpush3.bf16.msra.mxu0 %v1265_v0  ;;  %678 = vmatprep.mubr.f32.mxu0 %v212_v2 }
  0x58   : > { %609 = vmatmul.mubr.f32.gmra.mrb[14].mxu1 %v258_v1 }
  0x59   : > { %1159 = vmatprep.mubr.msk.f32.mxu1 %vm379_vm0, %v213_v3 }
  0x5a   : > { %679 = vmatmul.mubr.f32.vlgmr.msra.gmra.mrb[16].mxu0 %v211_v4 }
  0x5b   : > { %683 = vmatprep.mubr.f32.mxu0 %v219_v5 }
  0x5c   : > { %1160 = vmatmul.mubr.msk.f32.vlgmr.msra.gmra.mrb[16].mxu1 %vm379_vm0, %v220_v6 }
  0x5d   : > { %1162 = vmatprep.mubr.msk.f32.mxu1 %vm379_vm0, %v227_v7  ;;  %v376_v7 = vld [vmem:[%s1797_s2 + $0x28] sm:$0xff] }
  0x5e   : > { %684 = vmatmul.mubr.f32.gmra.mrb[18].mxu0 %v218_v8 }
  0x5f   : > { %688 = vmatprep.mubr.f32.mxu0 %v226_v9 }
  0x60   : > { %1163 = vmatmul.mubr.msk.f32.gmra.mrb[18].mxu1 %vm379_vm0, %v234_v10 }
  0x61   : > { %1165 = vmatprep.mubr.msk.f32.mxu1 %vm379_vm0, %v241_v11 }
  0x62   : > { %689 = vmatmul.mubr.f32.gmra.mrb[20].mxu0 %v225_v12 }
  0x63   : > { %693 = vmatprep.mubr.f32.mxu0 %v233_v13 }
  0x64   : > { %1166 = vmatmul.mubr.msk.f32.gmra.mrb[20].mxu1 %vm379_vm0, %v248_v14 }
  0x65   : > { %1168 = vmatprep.mubr.msk.f32.mxu1 %vm379_vm0, %v255_v15 }
  0x66   : > { %694 = vmatmul.mubr.f32.gmra.mrb[22].mxu0 %v232_v16  ;;  %v377_v16 = vld [vmem:[%s1797_s2 + $0x30] sm:$0xff] }
  0x67   : > { %698 = vmatprep.mubr.f32.mxu0 %v240_v17 }
  0x68   : > { %1169 = vmatmul.mubr.msk.f32.gmra.mrb[22].mxu1 %vm379_vm0, %v262_v18 }
  0x6a   : > { %699 = vmatmul.mubr.f32.gmra.mrb[24].mxu0 %v239_v19 }
  0x6b   : > { %703 = vmatprep.mubr.f32.mxu0 %v247_v20 }
  0x6e   : > { %704 = vmatmul.mubr.f32.gmra.mrb[26].mxu0 %v246_v21 }
  0x6f   : > { %708 = vmatprep.mubr.f32.mxu0 %v254_v22 }
  0x72   : > { %709 = vmatmul.mubr.f32.gmra.mrb[28].mxu0 %v253_v23 }
  0x73   : > { %713 = vmatprep.mubr.f32.mxu0 %v261_v24 }
  0x76   : > { %714 = vmatmul.mubr.f32.gmra.mrb[30].mxu0 %v260_v25  ;;  %v378_v25 = vld [vmem:[%s1797_s2 + $0x38] sm:$0xff] }
 0x10d   : > { %v979_v26 = vpop.f32.mrb[0].mxu0 }
 0x10e   : > { %v980_v28 = vpop.f32.mrb[1].mxu0 }
 0x10f   : > { %v1035_v29 = vpop.f32.mrb[0].mxu1  ;;  %v981_v30 = vadd.f32 %v980_v28, %v979_v26 }
 0x110   : > { %v1036_v31 = vpop.f32.mrb[1].mxu1 }
 0x111   : > { %v1037_v32 = vadd.f32 %v1036_v31, %v1035_v29  ;;  %v471_v33 = vadd.f32 %v981_v30, %v371_v27  ;;  %v982_v34 = vpop.f32.mrb[2].mxu0 }
 0x112   : > { %v983_v36 = vpop.f32.mrb[3].mxu0 }
 0x113   : > { %v1038_v37 = vpop.f32.mrb[2].mxu1  ;;  %v1724_v38 = vadd.f32 %v1037_v32, %v471_v33  ;;  %v984_v39 = vadd.f32 %v983_v36, %v982_v34 }
 0x114   : > { %v1039_v40 = vpop.f32.mrb[3].mxu1 }
 0x115   : > { %v1040_v41 = vadd.f32 %v1039_v40, %v1038_v37  ;;  %v476_v42 = vadd.f32 %v984_v39, %v372_v35  ;;  %v985_v43 = vpop.f32.mrb[4].mxu0 }
 0x116   : > { %v986_v45 = vpop.f32.mrb[5].mxu0 }
 0x117   : > { %v1041_v46 = vpop.f32.mrb[4].mxu1  ;;  %v1729_v47 = vadd.f32 %v1040_v41, %v476_v42  ;;  %v987_v48 = vadd.f32 %v986_v45, %v985_v43 }
 0x118   : > { %v1042_v49 = vpop.f32.mrb[5].mxu1 }
 0x119   : > { %v1043_v50 = vadd.f32 %v1042_v49, %v1041_v46  ;;  %v481_v51 = vadd.f32 %v987_v48, %v373_v44  ;;  %v988_v52 = vpop.f32.mrb[6].mxu0 }
 0x11a   : > { %v989_v54 = vpop.f32.mrb[7].mxu0 }
 0x11b   : > { %v1044_v55 = vpop.f32.mrb[6].mxu1  ;;  %v1734_v56 = vadd.f32 %v1043_v50, %v481_v51  ;;  %v990_v57 = vadd.f32 %v989_v54, %v988_v52 }
 0x11c   : > { %v1045_v58 = vpop.f32.mrb[7].mxu1 }
 0x11d   : > { %v1046_v59 = vadd.f32 %v1045_v58, %v1044_v55  ;;  %v486_v60 = vadd.f32 %v990_v57, %v374_v53  ;;  %v991_v61 = vpop.f32.mrb[8].mxu0 }
 0x11e   : > { %v992_v63 = vpop.f32.mrb[9].mxu0 }
 0x11f   : > { %v1047_v0 = vpop.f32.mrb[8].mxu1  ;;  %v1739_v1 = vadd.f32 %v1046_v59, %v486_v60  ;;  %v993_v2 = vadd.f32 %v992_v63, %v991_v61 }
 0x120   : > { %v1048_v3 = vpop.f32.mrb[9].mxu1 }
 0x121   : > { %v1049_v4 = vadd.f32 %v1048_v3, %v1047_v0  ;;  %v491_v5 = vadd.f32 %v993_v2, %v375_v62  ;;  %v994_v6 = vpop.f32.mrb[10].mxu0 }
 0x122   : > { %v995_v8 = vpop.f32.mrb[11].mxu0 }
 0x123   : > { %v1050_v9 = vpop.f32.mrb[10].mxu1  ;;  %v1744_v10 = vadd.f32 %v1049_v4, %v491_v5  ;;  %v996_v11 = vadd.f32 %v995_v8, %v994_v6 }
 0x124   : > { %v1051_v12 = vpop.f32.mrb[11].mxu1 }
 0x125   : > { %v1052_v13 = vadd.f32 %v1051_v12, %v1050_v9  ;;  %v496_v14 = vadd.f32 %v996_v11, %v376_v7  ;;  %v997_v15 = vpop.f32.mrb[12].mxu0 }
 0x126   : > { %v998_v17 = vpop.f32.mrb[13].mxu0 }
 0x127   : > { %v1053_v18 = vpop.f32.mrb[12].mxu1  ;;  %v601_v19 = vadd.f32 %v1052_v13, %v496_v14  ;;  %v999_v20 = vadd.f32 %v998_v17, %v997_v15 }
 0x128   : > { %v1054_v21 = vpop.f32.mrb[13].mxu1 }
 0x129   : > { %v1055_v22 = vadd.f32 %v1054_v21, %v1053_v18  ;;  %v501_v23 = vadd.f32 %v999_v20, %v377_v16  ;;  %v1000_v24 = vpop.f32.mrb[14].mxu0 }
 0x12a   : > { %v1001_v26 = vpop.f32.mrb[15].mxu0 }
 0x12b   : > { %v1056_v27 = vpop.f32.mrb[14].mxu1  ;;  %v606_v28 = vadd.f32 %v1055_v22, %v501_v23  ;;  %v1002_v29 = vadd.f32 %v1001_v26, %v1000_v24 }
 0x12c   : > { %v1057_v30 = vpop.f32.mrb[15].mxu1 }
 0x12d   : > { %v1058_v31 = vadd.f32 %v1057_v30, %v1056_v27  ;;  %v506_v32 = vadd.f32 %v1002_v29, %v378_v25  ;;  %v1091_v33 = vpop.f32.mrb[16].mxu0 }
 0x12e   : > { %v1092_v34 = vpop.f32.mrb[17].mxu0 }
 0x12f   : > { %v1161_v35 = vpop.f32.mrb[16].mxu1  ;;  %v611_v36 = vadd.f32 %v1058_v31, %v506_v32  ;;  %v1093_v37 = vadd.f32 %v1092_v34, %v1091_v33 }
 0x130   : > { %v785_v39 = vpop.f32.mrb[17].mxu1 }
 0x131   : > { %v1094_v40 = vpop.f32.mrb[18].mxu0  ;;  %v681_v41 = vadd.f32 %v1093_v37, %v1724_v38 }
 0x132   : > { %v1095_v42 = vpop.f32.mrb[19].mxu0 }
 0x133   : > { %v1164_v43 = vpop.f32.mrb[18].mxu1  ;;  %v1096_v44 = vadd.f32 %v1095_v42, %v1094_v40  ;;  %v786_v45 = vadd.f32 %v785_v39, %v681_v41 }
 0x134   : > { %v795_v46 = vpop.f32.mrb[19].mxu1 }
 0x135   : > { %v686_v48 = vadd.f32 %v1096_v44, %v1729_v47  ;;  %825 = vst.msk [vmem:[%s1758_s20] sm:$0xff] %vm824_vm1, %v786_v45  ;;  %v1097_v49 = vpop.f32.mrb[20].mxu0 }
 0x136   : > { %v1098_v38 = vpop.f32.mrb[21].mxu0 }
 0x137   : > { %v1167_v50 = vpop.f32.mrb[20].mxu1  ;;  %v791_v51 = vadd.f32 %v1161_v35, %v686_v48  ;;  %v1099_v52 = vadd.f32 %v1098_v38, %v1097_v49 }
 0x138   : > { %v805_v53 = vpop.f32.mrb[21].mxu1 }
 0x139   : > { %826 = vst.msk [vmem:[%s1758_s20 + $0x8] sm:$0xff] %vm824_vm1, %v791_v51  ;;  %v1100_v54 = vpop.f32.mrb[22].mxu0  ;;  %v691_v55 = vadd.f32 %v1099_v52, %v1734_v56 }
 0x13a   : > { %v1101_v57 = vpop.f32.mrb[23].mxu0 }
 0x13b   : > { %v1170_v58 = vpop.f32.mrb[22].mxu1  ;;  %v1102_v59 = vadd.f32 %v1101_v57, %v1100_v54  ;;  %v796_v47 = vadd.f32 %v795_v46, %v691_v55 }
 0x13c   : > { %v815_v60 = vpop.f32.mrb[23].mxu1 }
 0x13d   : > { %v696_v61 = vadd.f32 %v1102_v59, %v1739_v1  ;;  %827 = vst.msk [vmem:[%s1758_s20 + $0x10] sm:$0xff] %vm824_vm1, %v796_v47  ;;  %v1103_v62 = vpop.f32.mrb[24].mxu0 }
 0x13e   : > { %v1104_v63 = vpop.f32.mrb[25].mxu0 }
 0x13f   : > { %v801_v0 = vadd.f32 %v1164_v43, %v696_v61  ;;  %v1105_v2 = vadd.f32 %v1104_v63, %v1103_v62 }
 0x141   : > { %828 = vst.msk [vmem:[%s1758_s20 + $0x18] sm:$0xff] %vm824_vm1, %v801_v0  ;;  %v1106_v3 = vpop.f32.mrb[26].mxu0  ;;  %v701_v56 = vadd.f32 %v1105_v2, %v1744_v10 }
 0x142   : > { %v1107_v4 = vpop.f32.mrb[27].mxu0 }
 0x143   : > { %v1108_v5 = vadd.f32 %v1107_v4, %v1106_v3  ;;  %v806_v6 = vadd.f32 %v805_v53, %v701_v56 }
 0x145   : > { %v706_v7 = vadd.f32 %v1108_v5, %v601_v19  ;;  %829 = vst.msk [vmem:[%s1758_s20 + $0x20] sm:$0xff] %vm824_vm1, %v806_v6  ;;  %v1109_v1 = vpop.f32.mrb[28].mxu0 }
 0x146   : > { %v1110_v8 = vpop.f32.mrb[29].mxu0 }
 0x147   : > { %v811_v9 = vadd.f32 %v1167_v50, %v706_v7  ;;  %v1111_v11 = vadd.f32 %v1110_v8, %v1109_v1 }
 0x149   : > { %830 = vst.msk [vmem:[%s1758_s20 + $0x28] sm:$0xff] %vm824_vm1, %v811_v9  ;;  %v1112_v12 = vpop.f32.mrb[30].mxu0  ;;  %v711_v13 = vadd.f32 %v1111_v11, %v606_v28 }
 0x14a   : > { %v1113_v14 = vpop.f32.mrb[31].mxu0 }
 0x14b   : > { %v1114_v15 = vadd.f32 %v1113_v14, %v1112_v12  ;;  %v816_v16 = vadd.f32 %v815_v60, %v711_v13 }
 0x14d   : > { %v716_v10 = vadd.f32 %v1114_v15, %v611_v36  ;;  %831 = vst.msk [vmem:[%s1758_s20 + $0x30] sm:$0xff] %vm824_vm1, %v816_v16 }
 0x14f   : > { %v821_v17 = vadd.f32 %v1170_v58, %v716_v10 }
 0x151   : > { %832 = vst.msk [vmem:[%s1758_s20 + $0x38] sm:$0xff] %vm824_vm1, %v821_v17 }
 0x152 PF: > { %s13_s16 = sadd.s32 1, %s1371_s16   ;;  %s1799_s12 = smov %s1363_s14 }
 0x153   : > { %p10_p7 = scmp.ge.s32.totalorder %s13_s16, 6   ;;  %s1800_s13 = smov %s1367_s15 }
 0x154   : > { %s1801_s14 = smov %s1804_s17  ;;  %s1802_s15 = smov %s1808_s18 }
 0x155   :  { %12 = sbr.rel (!%p10_p7) target bundleno = 3 (0x3), region = 62 }

// kernel: tile.0
= control target key start
LH: loop header
LB: loop body
LE: loop exit
PB: predicated region body
PF: predicated region fallthrough
CT: control target
= control target key end

     0   :  { %vm3_vm0 = vcmask 7168   ;;  %s926_s8 = smov 125   ;;  %s927_s25 = smov 126   ;;  %s2034_s0 = inlined_call_operand.vmem [shape: f32[8,32], index: 0, kind: input, shape index: {}]   ;;  %s2035_s1 = inlined_call_operand.vmem [shape: f32[256,1], index: 1, kind: output, shape index: {}]  }
   0x1   :  { %v969_v0 = vld [vmem:[%s2034_s0] sm:$0xff]   ;;  %s925_s0 = smov 127   ;;  %s928_s26 = smov 124  }
   0x2   :  { %20 = vrot.lane.b32.xlu0 %v969_v0, %s925_s0  ;;  %60 = vrot.lane.b32.xlu1 %v969_v0, %s926_s8  ;;  %4 = vst.msk [vmem:[%s2035_s1] sm:$0x1] %vm3_vm0, %v969_v0   ;;  %639 = vst.msk [vmem:[%s2035_s1 + $0x1f] sm:$0x2] %vm3_vm0, %v969_v0   ;;  %s929_s27 = smov 123   ;;  %s930_s28 = smov 122  }
   0x3   :  { %640 = vst.msk [vmem:[%s2035_s1 + $0x3e] sm:$0x4] %vm3_vm0, %v969_v0   ;;  %641 = vst.msk [vmem:[%s2035_s1 + $0x5d] sm:$0x8] %vm3_vm0, %v969_v0   ;;  %s931_s29 = smov 121   ;;  %s932_s30 = smov 120  }
   0x4   :  { %642 = vst.msk [vmem:[%s2035_s1 + $0x7c] sm:$0x10] %vm3_vm0, %v969_v0   ;;  %643 = vst.msk [vmem:[%s2035_s1 + $0x9b] sm:$0x20] %vm3_vm0, %v969_v0   ;;  %s933_s2 = smov 119   ;;  %s934_s3 = smov 118  }
   0x5   :  { %644 = vst.msk [vmem:[%s2035_s1 + $0xba] sm:$0x40] %vm3_vm0, %v969_v0   ;;  %645 = vst.msk [vmem:[%s2035_s1 + $0xd9] sm:$0x80] %vm3_vm0, %v969_v0   ;;  %s935_s4 = smov 117   ;;  %s936_s5 = smov 116  }
   0x6   :  { %40 = vrot.lane.b32.xlu0 %v969_v0, %s927_s25  ;;  %80 = vrot.lane.b32.xlu1 %v969_v0, %s928_s26  ;;  %s937_s6 = smov 115   ;;  %s938_s7 = smov 114  }
   0x7   :  { %s939_s0 = smov 113   ;;  %s940_s8 = smov 112  }
   0x8   :  { %s941_s9 = smov 111   ;;  %s942_s10 = smov 110  }
   0x9   :  { %s943_s11 = smov 109   ;;  %s944_s12 = smov 108  }
   0xa   :  { %100 = vrot.lane.b32.xlu0 %v969_v0, %s929_s27  ;;  %120 = vrot.lane.b32.xlu1 %v969_v0, %s930_s28  ;;  %s945_s13 = smov 107   ;;  %s946_s14 = smov 106  }
   0xb   :  { %s947_s15 = smov 105   ;;  %s948_s16 = smov 104  }
   0xc   :  { %s949_s17 = smov 103   ;;  %s950_s18 = smov 102  }
   0xd   :  { %s951_s19 = smov 101   ;;  %s952_s20 = smov 100  }
   0xe   :  { %140 = vrot.lane.b32.xlu0 %v969_v0, %s931_s29  ;;  %160 = vrot.lane.b32.xlu1 %v969_v0, %s932_s30  ;;  %s953_s21 = smov 99   ;;  %s954_s22 = smov 98  }
   0xf   :  { %s955_s23 = smov 97  }
  0x12   :  { %180 = vrot.lane.b32.xlu0 %v969_v0, %s933_s2  ;;  %200 = vrot.lane.b32.xlu1 %v969_v0, %s934_s3 }
  0x16   :  { %220 = vrot.lane.b32.xlu0 %v969_v0, %s935_s4  ;;  %240 = vrot.lane.b32.xlu1 %v969_v0, %s936_s5 }
  0x1a   :  { %260 = vrot.lane.b32.xlu0 %v969_v0, %s937_s6  ;;  %280 = vrot.lane.b32.xlu1 %v969_v0, %s938_s7 }
  0x1e   :  { %300 = vrot.lane.b32.xlu0 %v969_v0, %s939_s0  ;;  %320 = vrot.lane.b32.xlu1 %v969_v0, %s940_s8 }
  0x22   :  { %340 = vrot.lane.b32.xlu0 %v969_v0, %s941_s9  ;;  %360 = vrot.lane.b32.xlu1 %v969_v0, %s942_s10 }
  0x26   :  { %380 = vrot.lane.b32.xlu0 %v969_v0, %s943_s11  ;;  %400 = vrot.lane.b32.xlu1 %v969_v0, %s944_s12 }
  0x2a   :  { %420 = vrot.lane.b32.xlu0 %v969_v0, %s945_s13  ;;  %440 = vrot.lane.b32.xlu1 %v969_v0, %s946_s14 }
  0x2e   :  { %460 = vrot.lane.b32.xlu0 %v969_v0, %s947_s15  ;;  %480 = vrot.lane.b32.xlu1 %v969_v0, %s948_s16 }
  0x32   :  { %500 = vrot.lane.b32.xlu0 %v969_v0, %s949_s17  ;;  %520 = vrot.lane.b32.xlu1 %v969_v0, %s950_s18 }
  0x36   :  { %540 = vrot.lane.b32.xlu0 %v969_v0, %s951_s19  ;;  %560 = vrot.lane.b32.xlu1 %v969_v0, %s952_s20 }
  0x3a   :  { %580 = vrot.lane.b32.xlu0 %v969_v0, %s953_s21  ;;  %600 = vrot.lane.b32.xlu1 %v969_v0, %s954_s22 }
  0x3e   :  { %620 = vrot.lane.b32.xlu0 %v969_v0, %s955_s23 }
  0x74   :  { %v21_v1 = vpop.permute.xlu0 %20   ;;  %v61_v2 = vpop.permute.xlu1 %60  }
  0x75   :  { %646 = vst.msk [vmem:[%s2035_s1 + $0x1] sm:$0x1] %vm3_vm0, %v21_v1   ;;  %647 = vst.msk [vmem:[%s2035_s1 + $0x20] sm:$0x2] %vm3_vm0, %v21_v1  }
  0x76   :  { %648 = vst.msk [vmem:[%s2035_s1 + $0x3f] sm:$0x4] %vm3_vm0, %v21_v1   ;;  %649 = vst.msk [vmem:[%s2035_s1 + $0x5e] sm:$0x8] %vm3_vm0, %v21_v1  }
  0x77   :  { %650 = vst.msk [vmem:[%s2035_s1 + $0x7d] sm:$0x10] %vm3_vm0, %v21_v1   ;;  %651 = vst.msk [vmem:[%s2035_s1 + $0x9c] sm:$0x20] %vm3_vm0, %v21_v1  }
  0x78   :  { %652 = vst.msk [vmem:[%s2035_s1 + $0xbb] sm:$0x40] %vm3_vm0, %v21_v1   ;;  %653 = vst.msk [vmem:[%s2035_s1 + $0xda] sm:$0x80] %vm3_vm0, %v21_v1   ;;  %v41_v3 = vpop.permute.xlu0 %40   ;;  %v81_v4 = vpop.permute.xlu1 %80  }
  0x79   :  { %662 = vst.msk [vmem:[%s2035_s1 + $0x3] sm:$0x1] %vm3_vm0, %v61_v2   ;;  %663 = vst.msk [vmem:[%s2035_s1 + $0x22] sm:$0x2] %vm3_vm0, %v61_v2  }
  0x7a   :  { %664 = vst.msk [vmem:[%s2035_s1 + $0x41] sm:$0x4] %vm3_vm0, %v61_v2   ;;  %665 = vst.msk [vmem:[%s2035_s1 + $0x60] sm:$0x8] %vm3_vm0, %v61_v2  }
  0x7b   :  { %666 = vst.msk [vmem:[%s2035_s1 + $0x7f] sm:$0x10] %vm3_vm0, %v61_v2   ;;  %667 = vst.msk [vmem:[%s2035_s1 + $0x9e] sm:$0x20] %vm3_vm0, %v61_v2  }
  0x7c   :  { %668 = vst.msk [vmem:[%s2035_s1 + $0xbd] sm:$0x40] %vm3_vm0, %v61_v2   ;;  %669 = vst.msk [vmem:[%s2035_s1 + $0xdc] sm:$0x80] %vm3_vm0, %v61_v2   ;;  %v101_v5 = vpop.permute.xlu0 %100   ;;  %v121_v6 = vpop.permute.xlu1 %120  }
  0x7d   :  { %654 = vst.msk [vmem:[%s2035_s1 + $0x2] sm:$0x1] %vm3_vm0, %v41_v3   ;;  %655 = vst.msk [vmem:[%s2035_s1 + $0x21] sm:$0x2] %vm3_vm0, %v41_v3  }
  0x7e   :  { %656 = vst.msk [vmem:[%s2035_s1 + $0x40] sm:$0x4] %vm3_vm0, %v41_v3   ;;  %657 = vst.msk [vmem:[%s2035_s1 + $0x5f] sm:$0x8] %vm3_vm0, %v41_v3  }
  0x7f   :  { %658 = vst.msk [vmem:[%s2035_s1 + $0x7e] sm:$0x10] %vm3_vm0, %v41_v3   ;;  %659 = vst.msk [vmem:[%s2035_s1 + $0x9d] sm:$0x20] %vm3_vm0, %v41_v3  }
  0x80   :  { %660 = vst.msk [vmem:[%s2035_s1 + $0xbc] sm:$0x40] %vm3_vm0, %v41_v3   ;;  %661 = vst.msk [vmem:[%s2035_s1 + $0xdb] sm:$0x80] %vm3_vm0, %v41_v3   ;;  %v141_v7 = vpop.permute.xlu0 %140   ;;  %v161_v8 = vpop.permute.xlu1 %160  }
  0x81   :  { %670 = vst.msk [vmem:[%s2035_s1 + $0x4] sm:$0x1] %vm3_vm0, %v81_v4   ;;  %671 = vst.msk [vmem:[%s2035_s1 + $0x23] sm:$0x2] %vm3_vm0, %v81_v4  }
  0x82   :  { %672 = vst.msk [vmem:[%s2035_s1 + $0x42] sm:$0x4] %vm3_vm0, %v81_v4   ;;  %673 = vst.msk [vmem:[%s2035_s1 + $0x61] sm:$0x8] %vm3_vm0, %v81_v4  }
  0x83   :  { %674 = vst.msk [vmem:[%s2035_s1 + $0x80] sm:$0x10] %vm3_vm0, %v81_v4   ;;  %675 = vst.msk [vmem:[%s2035_s1 + $0x9f] sm:$0x20] %vm3_vm0, %v81_v4  }
  0x84   :  { %676 = vst.msk [vmem:[%s2035_s1 + $0xbe] sm:$0x40] %vm3_vm0, %v81_v4   ;;  %677 = vst.msk [vmem:[%s2035_s1 + $0xdd] sm:$0x80] %vm3_vm0, %v81_v4   ;;  %v181_v9 = vpop.permute.xlu0 %180   ;;  %v201_v10 = vpop.permute.xlu1 %200  }
  0x85   :  { %678 = vst.msk [vmem:[%s2035_s1 + $0x5] sm:$0x1] %vm3_vm0, %v101_v5   ;;  %679 = vst.msk [vmem:[%s2035_s1 + $0x24] sm:$0x2] %vm3_vm0, %v101_v5  }
  0x86   :  { %680 = vst.msk [vmem:[%s2035_s1 + $0x43] sm:$0x4] %vm3_vm0, %v101_v5   ;;  %681 = vst.msk [vmem:[%s2035_s1 + $0x62] sm:$0x8] %vm3_vm0, %v101_v5  }
  0x87   :  { %682 = vst.msk [vmem:[%s2035_s1 + $0x81] sm:$0x10] %vm3_vm0, %v101_v5   ;;  %683 = vst.msk [vmem:[%s2035_s1 + $0xa0] sm:$0x20] %vm3_vm0, %v101_v5  }
  0x88   :  { %684 = vst.msk [vmem:[%s2035_s1 + $0xbf] sm:$0x40] %vm3_vm0, %v101_v5   ;;  %685 = vst.msk [vmem:[%s2035_s1 + $0xde] sm:$0x80] %vm3_vm0, %v101_v5   ;;  %v221_v11 = vpop.permute.xlu0 %220   ;;  %v241_v12 = vpop.permute.xlu1 %240  }
  0x89   :  { %686 = vst.msk [vmem:[%s2035_s1 + $0x6] sm:$0x1] %vm3_vm0, %v121_v6   ;;  %687 = vst.msk [vmem:[%s2035_s1 + $0x25] sm:$0x2] %vm3_vm0, %v121_v6  }
  0x8a   :  { %688 = vst.msk [vmem:[%s2035_s1 + $0x44] sm:$0x4] %vm3_vm0, %v121_v6   ;;  %689 = vst.msk [vmem:[%s2035_s1 + $0x63] sm:$0x8] %vm3_vm0, %v121_v6  }
  0x8b   :  { %690 = vst.msk [vmem:[%s2035_s1 + $0x82] sm:$0x10] %vm3_vm0, %v121_v6   ;;  %691 = vst.msk [vmem:[%s2035_s1 + $0xa1] sm:$0x20] %vm3_vm0, %v121_v6  }
  0x8c   :  { %692 = vst.msk [vmem:[%s2035_s1 + $0xc0] sm:$0x40] %vm3_vm0, %v121_v6   ;;  %693 = vst.msk [vmem:[%s2035_s1 + $0xdf] sm:$0x80] %vm3_vm0, %v121_v6   ;;  %v261_v13 = vpop.permute.xlu0 %260   ;;  %v281_v14 = vpop.permute.xlu1 %280  }
  0x8d   :  { %694 = vst.msk [vmem:[%s2035_s1 + $0x7] sm:$0x1] %vm3_vm0, %v141_v7   ;;  %695 = vst.msk [vmem:[%s2035_s1 + $0x26] sm:$0x2] %vm3_vm0, %v141_v7  }
  0x8e   :  { %696 = vst.msk [vmem:[%s2035_s1 + $0x45] sm:$0x4] %vm3_vm0, %v141_v7   ;;  %697 = vst.msk [vmem:[%s2035_s1 + $0x64] sm:$0x8] %vm3_vm0, %v141_v7  }
  0x8f   :  { %698 = vst.msk [vmem:[%s2035_s1 + $0x83] sm:$0x10] %vm3_vm0, %v141_v7   ;;  %699 = vst.msk [vmem:[%s2035_s1 + $0xa2] sm:$0x20] %vm3_vm0, %v141_v7  }
  0x90   :  { %700 = vst.msk [vmem:[%s2035_s1 + $0xc1] sm:$0x40] %vm3_vm0, %v141_v7   ;;  %701 = vst.msk [vmem:[%s2035_s1 + $0xe0] sm:$0x80] %vm3_vm0, %v141_v7   ;;  %v301_v15 = vpop.permute.xlu0 %300   ;;  %v321_v16 = vpop.permute.xlu1 %320  }
  0x91   :  { %702 = vst.msk [vmem:[%s2035_s1 + $0x8] sm:$0x1] %vm3_vm0, %v161_v8   ;;  %703 = vst.msk [vmem:[%s2035_s1 + $0x27] sm:$0x2] %vm3_vm0, %v161_v8  }
  0x92   :  { %704 = vst.msk [vmem:[%s2035_s1 + $0x46] sm:$0x4] %vm3_vm0, %v161_v8   ;;  %705 = vst.msk [vmem:[%s2035_s1 + $0x65] sm:$0x8] %vm3_vm0, %v161_v8  }
  0x93   :  { %706 = vst.msk [vmem:[%s2035_s1 + $0x84] sm:$0x10] %vm3_vm0, %v161_v8   ;;  %707 = vst.msk [vmem:[%s2035_s1 + $0xa3] sm:$0x20] %vm3_vm0, %v161_v8  }
  0x94   :  { %708 = vst.msk [vmem:[%s2035_s1 + $0xc2] sm:$0x40] %vm3_vm0, %v161_v8   ;;  %709 = vst.msk [vmem:[%s2035_s1 + $0xe1] sm:$0x80] %vm3_vm0, %v161_v8   ;;  %v341_v17 = vpop.permute.xlu0 %340   ;;  %v361_v18 = vpop.permute.xlu1 %360  }
  0x95   :  { %710 = vst.msk [vmem:[%s2035_s1 + $0x9] sm:$0x1] %vm3_vm0, %v181_v9   ;;  %711 = vst.msk [vmem:[%s2035_s1 + $0x28] sm:$0x2] %vm3_vm0, %v181_v9  }
  0x96   :  { %712 = vst.msk [vmem:[%s2035_s1 + $0x47] sm:$0x4] %vm3_vm0, %v181_v9   ;;  %713 = vst.msk [vmem:[%s2035_s1 + $0x66] sm:$0x8] %vm3_vm0, %v181_v9  }
  0x97   :  { %714 = vst.msk [vmem:[%s2035_s1 + $0x85] sm:$0x10] %vm3_vm0, %v181_v9   ;;  %715 = vst.msk [vmem:[%s2035_s1 + $0xa4] sm:$0x20] %vm3_vm0, %v181_v9  }
  0x98   :  { %716 = vst.msk [vmem:[%s2035_s1 + $0xc3] sm:$0x40] %vm3_vm0, %v181_v9   ;;  %717 = vst.msk [vmem:[%s2035_s1 + $0xe2] sm:$0x80] %vm3_vm0, %v181_v9   ;;  %v381_v19 = vpop.permute.xlu0 %380   ;;  %v401_v20 = vpop.permute.xlu1 %400  }
  0x99   :  { %718 = vst.msk [vmem:[%s2035_s1 + $0xa] sm:$0x1] %vm3_vm0, %v201_v10   ;;  %719 = vst.msk [vmem:[%s2035_s1 + $0x29] sm:$0x2] %vm3_vm0, %v201_v10  }
  0x9a   :  { %720 = vst.msk [vmem:[%s2035_s1 + $0x48] sm:$0x4] %vm3_vm0, %v201_v10   ;;  %721 = vst.msk [vmem:[%s2035_s1 + $0x67] sm:$0x8] %vm3_vm0, %v201_v10  }
  0x9b   :  { %722 = vst.msk [vmem:[%s2035_s1 + $0x86] sm:$0x10] %vm3_vm0, %v201_v10   ;;  %723 = vst.msk [vmem:[%s2035_s1 + $0xa5] sm:$0x20] %vm3_vm0, %v201_v10  }
  0x9c   :  { %724 = vst.msk [vmem:[%s2035_s1 + $0xc4] sm:$0x40] %vm3_vm0, %v201_v10   ;;  %725 = vst.msk [vmem:[%s2035_s1 + $0xe3] sm:$0x80] %vm3_vm0, %v201_v10   ;;  %v421_v21 = vpop.permute.xlu0 %420   ;;  %v441_v22 = vpop.permute.xlu1 %440  }
  0x9d   :  { %726 = vst.msk [vmem:[%s2035_s1 + $0xb] sm:$0x1] %vm3_vm0, %v221_v11   ;;  %727 = vst.msk [vmem:[%s2035_s1 + $0x2a] sm:$0x2] %vm3_vm0, %v221_v11  }
  0x9e   :  { %728 = vst.msk [vmem:[%s2035_s1 + $0x49] sm:$0x4] %vm3_vm0, %v221_v11   ;;  %729 = vst.msk [vmem:[%s2035_s1 + $0x68] sm:$0x8] %vm3_vm0, %v221_v11  }
  0x9f   :  { %730 = vst.msk [vmem:[%s2035_s1 + $0x87] sm:$0x10] %vm3_vm0, %v221_v11   ;;  %731 = vst.msk [vmem:[%s2035_s1 + $0xa6] sm:$0x20] %vm3_vm0, %v221_v11  }
  0xa0   :  { %732 = vst.msk [vmem:[%s2035_s1 + $0xc5] sm:$0x40] %vm3_vm0, %v221_v11   ;;  %733 = vst.msk [vmem:[%s2035_s1 + $0xe4] sm:$0x80] %vm3_vm0, %v221_v11   ;;  %v461_v23 = vpop.permute.xlu0 %460   ;;  %v481_v24 = vpop.permute.xlu1 %480  }
  0xa1   :  { %734 = vst.msk [vmem:[%s2035_s1 + $0xc] sm:$0x1] %vm3_vm0, %v241_v12   ;;  %735 = vst.msk [vmem:[%s2035_s1 + $0x2b] sm:$0x2] %vm3_vm0, %v241_v12  }
  0xa2   :  { %736 = vst.msk [vmem:[%s2035_s1 + $0x4a] sm:$0x4] %vm3_vm0, %v241_v12   ;;  %737 = vst.msk [vmem:[%s2035_s1 + $0x69] sm:$0x8] %vm3_vm0, %v241_v12  }
  0xa3   :  { %738 = vst.msk [vmem:[%s2035_s1 + $0x88] sm:$0x10] %vm3_vm0, %v241_v12   ;;  %739 = vst.msk [vmem:[%s2035_s1 + $0xa7] sm:$0x20] %vm3_vm0, %v241_v12  }
  0xa4   :  { %740 = vst.msk [vmem:[%s2035_s1 + $0xc6] sm:$0x40] %vm3_vm0, %v241_v12   ;;  %741 = vst.msk [vmem:[%s2035_s1 + $0xe5] sm:$0x80] %vm3_vm0, %v241_v12   ;;  %v501_v25 = vpop.permute.xlu0 %500   ;;  %v521_v26 = vpop.permute.xlu1 %520  }
  0xa5   :  { %742 = vst.msk [vmem:[%s2035_s1 + $0xd] sm:$0x1] %vm3_vm0, %v261_v13   ;;  %743 = vst.msk [vmem:[%s2035_s1 + $0x2c] sm:$0x2] %vm3_vm0, %v261_v13  }
  0xa6   :  { %744 = vst.msk [vmem:[%s2035_s1 + $0x4b] sm:$0x4] %vm3_vm0, %v261_v13   ;;  %745 = vst.msk [vmem:[%s2035_s1 + $0x6a] sm:$0x8] %vm3_vm0, %v261_v13  }
  0xa7   :  { %746 = vst.msk [vmem:[%s2035_s1 + $0x89] sm:$0x10] %vm3_vm0, %v261_v13   ;;  %747 = vst.msk [vmem:[%s2035_s1 + $0xa8] sm:$0x20] %vm3_vm0, %v261_v13  }
  0xa8   :  { %748 = vst.msk [vmem:[%s2035_s1 + $0xc7] sm:$0x40] %vm3_vm0, %v261_v13   ;;  %749 = vst.msk [vmem:[%s2035_s1 + $0xe6] sm:$0x80] %vm3_vm0, %v261_v13   ;;  %v541_v27 = vpop.permute.xlu0 %540   ;;  %v561_v28 = vpop.permute.xlu1 %560  }
  0xa9   :  { %750 = vst.msk [vmem:[%s2035_s1 + $0xe] sm:$0x1] %vm3_vm0, %v281_v14   ;;  %751 = vst.msk [vmem:[%s2035_s1 + $0x2d] sm:$0x2] %vm3_vm0, %v281_v14  }
  0xaa   :  { %752 = vst.msk [vmem:[%s2035_s1 + $0x4c] sm:$0x4] %vm3_vm0, %v281_v14   ;;  %753 = vst.msk [vmem:[%s2035_s1 + $0x6b] sm:$0x8] %vm3_vm0, %v281_v14  }
  0xab   :  { %754 = vst.msk [vmem:[%s2035_s1 + $0x8a] sm:$0x10] %vm3_vm0, %v281_v14   ;;  %755 = vst.msk [vmem:[%s2035_s1 + $0xa9] sm:$0x20] %vm3_vm0, %v281_v14  }
  0xac   :  { %756 = vst.msk [vmem:[%s2035_s1 + $0xc8] sm:$0x40] %vm3_vm0, %v281_v14   ;;  %757 = vst.msk [vmem:[%s2035_s1 + $0xe7] sm:$0x80] %vm3_vm0, %v281_v14   ;;  %v581_v29 = vpop.permute.xlu0 %580   ;;  %v601_v30 = vpop.permute.xlu1 %600  }
  0xad   :  { %758 = vst.msk [vmem:[%s2035_s1 + $0xf] sm:$0x1] %vm3_vm0, %v301_v15   ;;  %759 = vst.msk [vmem:[%s2035_s1 + $0x2e] sm:$0x2] %vm3_vm0, %v301_v15  }
  0xae   :  { %760 = vst.msk [vmem:[%s2035_s1 + $0x4d] sm:$0x4] %vm3_vm0, %v301_v15   ;;  %761 = vst.msk [vmem:[%s2035_s1 + $0x6c] sm:$0x8] %vm3_vm0, %v301_v15  }
  0xaf   :  { %762 = vst.msk [vmem:[%s2035_s1 + $0x8b] sm:$0x10] %vm3_vm0, %v301_v15   ;;  %763 = vst.msk [vmem:[%s2035_s1 + $0xaa] sm:$0x20] %vm3_vm0, %v301_v15  }
  0xb0   :  { %764 = vst.msk [vmem:[%s2035_s1 + $0xc9] sm:$0x40] %vm3_vm0, %v301_v15   ;;  %765 = vst.msk [vmem:[%s2035_s1 + $0xe8] sm:$0x80] %vm3_vm0, %v301_v15   ;;  %v621_v31 = vpop.permute.xlu0 %620  }
  0xb1   :  { %766 = vst.msk [vmem:[%s2035_s1 + $0x10] sm:$0x1] %vm3_vm0, %v321_v16   ;;  %767 = vst.msk [vmem:[%s2035_s1 + $0x2f] sm:$0x2] %vm3_vm0, %v321_v16  }
  0xb2   :  { %768 = vst.msk [vmem:[%s2035_s1 + $0x4e] sm:$0x4] %vm3_vm0, %v321_v16   ;;  %769 = vst.msk [vmem:[%s2035_s1 + $0x6d] sm:$0x8] %vm3_vm0, %v321_v16  }
  0xb3   :  { %770 = vst.msk [vmem:[%s2035_s1 + $0x8c] sm:$0x10] %vm3_vm0, %v321_v16   ;;  %771 = vst.msk [vmem:[%s2035_s1 + $0xab] sm:$0x20] %vm3_vm0, %v321_v16  }
  0xb4   :  { %772 = vst.msk [vmem:[%s2035_s1 + $0xca] sm:$0x40] %vm3_vm0, %v321_v16   ;;  %773 = vst.msk [vmem:[%s2035_s1 + $0xe9] sm:$0x80] %vm3_vm0, %v321_v16  }
  0xb5   :  { %774 = vst.msk [vmem:[%s2035_s1 + $0x11] sm:$0x1] %vm3_vm0, %v341_v17   ;;  %775 = vst.msk [vmem:[%s2035_s1 + $0x30] sm:$0x2] %vm3_vm0, %v341_v17  }
  0xb6   :  { %776 = vst.msk [vmem:[%s2035_s1 + $0x4f] sm:$0x4] %vm3_vm0, %v341_v17   ;;  %777 = vst.msk [vmem:[%s2035_s1 + $0x6e] sm:$0x8] %vm3_vm0, %v341_v17  }
  0xb7   :  { %778 = vst.msk [vmem:[%s2035_s1 + $0x8d] sm:$0x10] %vm3_vm0, %v341_v17   ;;  %779 = vst.msk [vmem:[%s2035_s1 + $0xac] sm:$0x20] %vm3_vm0, %v341_v17  }
  0xb8   :  { %780 = vst.msk [vmem:[%s2035_s1 + $0xcb] sm:$0x40] %vm3_vm0, %v341_v17   ;;  %781 = vst.msk [vmem:[%s2035_s1 + $0xea] sm:$0x80] %vm3_vm0, %v341_v17  }
  0xb9   :  { %782 = vst.msk [vmem:[%s2035_s1 + $0x12] sm:$0x1] %vm3_vm0, %v361_v18   ;;  %783 = vst.msk [vmem:[%s2035_s1 + $0x31] sm:$0x2] %vm3_vm0, %v361_v18  }
  0xba   :  { %784 = vst.msk [vmem:[%s2035_s1 + $0x50] sm:$0x4] %vm3_vm0, %v361_v18   ;;  %785 = vst.msk [vmem:[%s2035_s1 + $0x6f] sm:$0x8] %vm3_vm0, %v361_v18  }
  0xbb   :  { %786 = vst.msk [vmem:[%s2035_s1 + $0x8e] sm:$0x10] %vm3_vm0, %v361_v18   ;;  %787 = vst.msk [vmem:[%s2035_s1 + $0xad] sm:$0x20] %vm3_vm0, %v361_v18  }
  0xbc   :  { %788 = vst.msk [vmem:[%s2035_s1 + $0xcc] sm:$0x40] %vm3_vm0, %v361_v18   ;;  %789 = vst.msk [vmem:[%s2035_s1 + $0xeb] sm:$0x80] %vm3_vm0, %v361_v18  }
  0xbd   :  { %790 = vst.msk [vmem:[%s2035_s1 + $0x13] sm:$0x1] %vm3_vm0, %v381_v19   ;;  %791 = vst.msk [vmem:[%s2035_s1 + $0x32] sm:$0x2] %vm3_vm0, %v381_v19  }
  0xbe   :  { %792 = vst.msk [vmem:[%s2035_s1 + $0x51] sm:$0x4] %vm3_vm0, %v381_v19   ;;  %793 = vst.msk [vmem:[%s2035_s1 + $0x70] sm:$0x8] %vm3_vm0, %v381_v19  }
  0xbf   :  { %794 = vst.msk [vmem:[%s2035_s1 + $0x8f] sm:$0x10] %vm3_vm0, %v381_v19   ;;  %795 = vst.msk [vmem:[%s2035_s1 + $0xae] sm:$0x20] %vm3_vm0, %v381_v19  }
  0xc0   :  { %796 = vst.msk [vmem:[%s2035_s1 + $0xcd] sm:$0x40] %vm3_vm0, %v381_v19   ;;  %797 = vst.msk [vmem:[%s2035_s1 + $0xec] sm:$0x80] %vm3_vm0, %v381_v19  }
  0xc1   :  { %798 = vst.msk [vmem:[%s2035_s1 + $0x14] sm:$0x1] %vm3_vm0, %v401_v20   ;;  %799 = vst.msk [vmem:[%s2035_s1 + $0x33] sm:$0x2] %vm3_vm0, %v401_v20  }
  0xc2   :  { %800 = vst.msk [vmem:[%s2035_s1 + $0x52] sm:$0x4] %vm3_vm0, %v401_v20   ;;  %801 = vst.msk [vmem:[%s2035_s1 + $0x71] sm:$0x8] %vm3_vm0, %v401_v20  }
  0xc3   :  { %802 = vst.msk [vmem:[%s2035_s1 + $0x90] sm:$0x10] %vm3_vm0, %v401_v20   ;;  %803 = vst.msk [vmem:[%s2035_s1 + $0xaf] sm:$0x20] %vm3_vm0, %v401_v20  }
  0xc4   :  { %804 = vst.msk [vmem:[%s2035_s1 + $0xce] sm:$0x40] %vm3_vm0, %v401_v20   ;;  %805 = vst.msk [vmem:[%s2035_s1 + $0xed] sm:$0x80] %vm3_vm0, %v401_v20  }
  0xc5   :  { %806 = vst.msk [vmem:[%s2035_s1 + $0x15] sm:$0x1] %vm3_vm0, %v421_v21   ;;  %807 = vst.msk [vmem:[%s2035_s1 + $0x34] sm:$0x2] %vm3_vm0, %v421_v21  }
  0xc6   :  { %808 = vst.msk [vmem:[%s2035_s1 + $0x53] sm:$0x4] %vm3_vm0, %v421_v21   ;;  %809 = vst.msk [vmem:[%s2035_s1 + $0x72] sm:$0x8] %vm3_vm0, %v421_v21  }
  0xc7   :  { %810 = vst.msk [vmem:[%s2035_s1 + $0x91] sm:$0x10] %vm3_vm0, %v421_v21   ;;  %811 = vst.msk [vmem:[%s2035_s1 + $0xb0] sm:$0x20] %vm3_vm0, %v421_v21  }
  0xc8   :  { %812 = vst.msk [vmem:[%s2035_s1 + $0xcf] sm:$0x40] %vm3_vm0, %v421_v21   ;;  %813 = vst.msk [vmem:[%s2035_s1 + $0xee] sm:$0x80] %vm3_vm0, %v421_v21  }
  0xc9   :  { %814 = vst.msk [vmem:[%s2035_s1 + $0x16] sm:$0x1] %vm3_vm0, %v441_v22   ;;  %815 = vst.msk [vmem:[%s2035_s1 + $0x35] sm:$0x2] %vm3_vm0, %v441_v22  }
  0xca   :  { %816 = vst.msk [vmem:[%s2035_s1 + $0x54] sm:$0x4] %vm3_vm0, %v441_v22   ;;  %817 = vst.msk [vmem:[%s2035_s1 + $0x73] sm:$0x8] %vm3_vm0, %v441_v22  }
  0xcb   :  { %818 = vst.msk [vmem:[%s2035_s1 + $0x92] sm:$0x10] %vm3_vm0, %v441_v22   ;;  %819 = vst.msk [vmem:[%s2035_s1 + $0xb1] sm:$0x20] %vm3_vm0, %v441_v22  }
  0xcc   :  { %820 = vst.msk [vmem:[%s2035_s1 + $0xd0] sm:$0x40] %vm3_vm0, %v441_v22   ;;  %821 = vst.msk [vmem:[%s2035_s1 + $0xef] sm:$0x80] %vm3_vm0, %v441_v22  }
  0xcd   :  { %822 = vst.msk [vmem:[%s2035_s1 + $0x17] sm:$0x1] %vm3_vm0, %v461_v23   ;;  %823 = vst.msk [vmem:[%s2035_s1 + $0x36] sm:$0x2] %vm3_vm0, %v461_v23  }
  0xce   :  { %824 = vst.msk [vmem:[%s2035_s1 + $0x55] sm:$0x4] %vm3_vm0, %v461_v23   ;;  %825 = vst.msk [vmem:[%s2035_s1 + $0x74] sm:$0x8] %vm3_vm0, %v461_v23  }
  0xcf   :  { %826 = vst.msk [vmem:[%s2035_s1 + $0x93] sm:$0x10] %vm3_vm0, %v461_v23   ;;  %827 = vst.msk [vmem:[%s2035_s1 + $0xb2] sm:$0x20] %vm3_vm0, %v461_v23  }
  0xd0   :  { %828 = vst.msk [vmem:[%s2035_s1 + $0xd1] sm:$0x40] %vm3_vm0, %v461_v23   ;;  %829 = vst.msk [vmem:[%s2035_s1 + $0xf0] sm:$0x80] %vm3_vm0, %v461_v23  }
  0xd1   :  { %830 = vst.msk [vmem:[%s2035_s1 + $0x18] sm:$0x1] %vm3_vm0, %v481_v24   ;;  %831 = vst.msk [vmem:[%s2035_s1 + $0x37] sm:$0x2] %vm3_vm0, %v481_v24  }
  0xd2   :  { %832 = vst.msk [vmem:[%s2035_s1 + $0x56] sm:$0x4] %vm3_vm0, %v481_v24   ;;  %833 = vst.msk [vmem:[%s2035_s1 + $0x75] sm:$0x8] %vm3_vm0, %v481_v24  }
  0xd3   :  { %834 = vst.msk [vmem:[%s2035_s1 + $0x94] sm:$0x10] %vm3_vm0, %v481_v24   ;;  %835 = vst.msk [vmem:[%s2035_s1 + $0xb3] sm:$0x20] %vm3_vm0, %v481_v24  }
  0xd4   :  { %836 = vst.msk [vmem:[%s2035_s1 + $0xd2] sm:$0x40] %vm3_vm0, %v481_v24   ;;  %837 = vst.msk [vmem:[%s2035_s1 + $0xf1] sm:$0x80] %vm3_vm0, %v481_v24  }
  0xd5   :  { %838 = vst.msk [vmem:[%s2035_s1 + $0x19] sm:$0x1] %vm3_vm0, %v501_v25   ;;  %839 = vst.msk [vmem:[%s2035_s1 + $0x38] sm:$0x2] %vm3_vm0, %v501_v25  }
  0xd6   :  { %840 = vst.msk [vmem:[%s2035_s1 + $0x57] sm:$0x4] %vm3_vm0, %v501_v25   ;;  %841 = vst.msk [vmem:[%s2035_s1 + $0x76] sm:$0x8] %vm3_vm0, %v501_v25  }
  0xd7   :  { %842 = vst.msk [vmem:[%s2035_s1 + $0x95] sm:$0x10] %vm3_vm0, %v501_v25   ;;  %843 = vst.msk [vmem:[%s2035_s1 + $0xb4] sm:$0x20] %vm3_vm0, %v501_v25  }
  0xd8   :  { %844 = vst.msk [vmem:[%s2035_s1 + $0xd3] sm:$0x40] %vm3_vm0, %v501_v25   ;;  %845 = vst.msk [vmem:[%s2035_s1 + $0xf2] sm:$0x80] %vm3_vm0, %v501_v25  }
  0xd9   :  { %846 = vst.msk [vmem:[%s2035_s1 + $0x1a] sm:$0x1] %vm3_vm0, %v521_v26   ;;  %847 = vst.msk [vmem:[%s2035_s1 + $0x39] sm:$0x2] %vm3_vm0, %v521_v26  }
  0xda   :  { %848 = vst.msk [vmem:[%s2035_s1 + $0x58] sm:$0x4] %vm3_vm0, %v521_v26   ;;  %849 = vst.msk [vmem:[%s2035_s1 + $0x77] sm:$0x8] %vm3_vm0, %v521_v26  }
  0xdb   :  { %850 = vst.msk [vmem:[%s2035_s1 + $0x96] sm:$0x10] %vm3_vm0, %v521_v26   ;;  %851 = vst.msk [vmem:[%s2035_s1 + $0xb5] sm:$0x20] %vm3_vm0, %v521_v26  }
  0xdc   :  { %852 = vst.msk [vmem:[%s2035_s1 + $0xd4] sm:$0x40] %vm3_vm0, %v521_v26   ;;  %853 = vst.msk [vmem:[%s2035_s1 + $0xf3] sm:$0x80] %vm3_vm0, %v521_v26  }
  0xdd   :  { %854 = vst.msk [vmem:[%s2035_s1 + $0x1b] sm:$0x1] %vm3_vm0, %v541_v27   ;;  %855 = vst.msk [vmem:[%s2035_s1 + $0x3a] sm:$0x2] %vm3_vm0, %v541_v27  }
  0xde   :  { %856 = vst.msk [vmem:[%s2035_s1 + $0x59] sm:$0x4] %vm3_vm0, %v541_v27   ;;  %857 = vst.msk [vmem:[%s2035_s1 + $0x78] sm:$0x8] %vm3_vm0, %v541_v27  }
  0xdf   :  { %858 = vst.msk [vmem:[%s2035_s1 + $0x97] sm:$0x10] %vm3_vm0, %v541_v27   ;;  %859 = vst.msk [vmem:[%s2035_s1 + $0xb6] sm:$0x20] %vm3_vm0, %v541_v27  }
  0xe0   :  { %860 = vst.msk [vmem:[%s2035_s1 + $0xd5] sm:$0x40] %vm3_vm0, %v541_v27   ;;  %861 = vst.msk [vmem:[%s2035_s1 + $0xf4] sm:$0x80] %vm3_vm0, %v541_v27  }
  0xe1   :  { %862 = vst.msk [vmem:[%s2035_s1 + $0x1c] sm:$0x1] %vm3_vm0, %v561_v28   ;;  %863 = vst.msk [vmem:[%s2035_s1 + $0x3b] sm:$0x2] %vm3_vm0, %v561_v28  }
  0xe2   :  { %864 = vst.msk [vmem:[%s2035_s1 + $0x5a] sm:$0x4] %vm3_vm0, %v561_v28   ;;  %865 = vst.msk [vmem:[%s2035_s1 + $0x79] sm:$0x8] %vm3_vm0, %v561_v28  }
  0xe3   :  { %866 = vst.msk [vmem:[%s2035_s1 + $0x98] sm:$0x10] %vm3_vm0, %v561_v28   ;;  %867 = vst.msk [vmem:[%s2035_s1 + $0xb7] sm:$0x20] %vm3_vm0, %v561_v28  }
  0xe4   :  { %868 = vst.msk [vmem:[%s2035_s1 + $0xd6] sm:$0x40] %vm3_vm0, %v561_v28   ;;  %869 = vst.msk [vmem:[%s2035_s1 + $0xf5] sm:$0x80] %vm3_vm0, %v561_v28  }
  0xe5   :  { %870 = vst.msk [vmem:[%s2035_s1 + $0x1d] sm:$0x1] %vm3_vm0, %v581_v29   ;;  %871 = vst.msk [vmem:[%s2035_s1 + $0x3c] sm:$0x2] %vm3_vm0, %v581_v29  }
  0xe6   :  { %872 = vst.msk [vmem:[%s2035_s1 + $0x5b] sm:$0x4] %vm3_vm0, %v581_v29   ;;  %873 = vst.msk [vmem:[%s2035_s1 + $0x7a] sm:$0x8] %vm3_vm0, %v581_v29  }
  0xe7   :  { %874 = vst.msk [vmem:[%s2035_s1 + $0x99] sm:$0x10] %vm3_vm0, %v581_v29   ;;  %875 = vst.msk [vmem:[%s2035_s1 + $0xb8] sm:$0x20] %vm3_vm0, %v581_v29  }
  0xe8   :  { %876 = vst.msk [vmem:[%s2035_s1 + $0xd7] sm:$0x40] %vm3_vm0, %v581_v29   ;;  %877 = vst.msk [vmem:[%s2035_s1 + $0xf6] sm:$0x80] %vm3_vm0, %v581_v29  }
  0xe9   :  { %878 = vst.msk [vmem:[%s2035_s1 + $0x1e] sm:$0x1] %vm3_vm0, %v601_v30   ;;  %879 = vst.msk [vmem:[%s2035_s1 + $0x3d] sm:$0x2] %vm3_vm0, %v601_v30  }
  0xea   :  { %880 = vst.msk [vmem:[%s2035_s1 + $0x5c] sm:$0x4] %vm3_vm0, %v601_v30   ;;  %881 = vst.msk [vmem:[%s2035_s1 + $0x7b] sm:$0x8] %vm3_vm0, %v601_v30  }
  0xeb   :  { %882 = vst.msk [vmem:[%s2035_s1 + $0x9a] sm:$0x10] %vm3_vm0, %v601_v30   ;;  %883 = vst.msk [vmem:[%s2035_s1 + $0xb9] sm:$0x20] %vm3_vm0, %v601_v30  }
  0xec   :  { %884 = vst.msk [vmem:[%s2035_s1 + $0xd8] sm:$0x40] %vm3_vm0, %v601_v30   ;;  %885 = vst.msk [vmem:[%s2035_s1 + $0xf7] sm:$0x80] %vm3_vm0, %v601_v30  }
  0xed   :  { %886 = vst.msk [vmem:[%s2035_s1 + $0x1f] sm:$0x1] %vm3_vm0, %v621_v31   ;;  %887 = vst.msk [vmem:[%s2035_s1 + $0x3e] sm:$0x2] %vm3_vm0, %v621_v31  }
  0xee   :  { %888 = vst.msk [vmem:[%s2035_s1 + $0x5d] sm:$0x4] %vm3_vm0, %v621_v31   ;;  %889 = vst.msk [vmem:[%s2035_s1 + $0x7c] sm:$0x8] %vm3_vm0, %v621_v31  }
  0xef   :  { %890 = vst.msk [vmem:[%s2035_s1 + $0x9b] sm:$0x10] %vm3_vm0, %v621_v31   ;;  %891 = vst.msk [vmem:[%s2035_s1 + $0xba] sm:$0x20] %vm3_vm0, %v621_v31  }
  0xf0   :  { %892 = vst.msk [vmem:[%s2035_s1 + $0xd9] sm:$0x40] %vm3_vm0, %v621_v31   ;;  %893 = vst.msk [vmem:[%s2035_s1 + $0xf8] sm:$0x80] %vm3_vm0, %v621_v31  }

// kernel: hiformer_v3_forward.41
= control target key start
LH: loop header
LB: loop body
LE: loop exit
PB: predicated region body
PF: predicated region fallthrough
CT: control target
= control target key end

     0   :  { %s1002_s12 = smov 0   ;;  %s1004_s13 = smov 0   ;;  %s1346_s0 = inlined_call_operand.vmem [shape: f32[2,2,64,1], index: 0, kind: input, shape index: {}]   ;;  %s1347_s1 = inlined_call_operand.vmem [shape: f32[256,64], index: 1, kind: input, shape index: {}]   ;;  %s1348_s2 = inlined_call_operand.vmem [shape: f32[256,1], index: 2, kind: input, shape index: {}]   ;;  %s1349_s3 = inlined_call_operand.vmem [shape: f32[2,2,256,1], index: 3, kind: output, shape index: {}]  }
   0x1   :  { %s1006_s14 = smov 0   ;;  %s1008_s15 = smov 0  }
   0x2   :  { %s1010_s16 = smov 0  }
   0x3 LB: > { %s22_s17 = sadd.s32 1, %s972_s14  ;;  %s25_s18 = sadd.s32 1, %s976_s15  ;;  %s980_s16 = sphi %s1010_s16, %s13_s16   ;;  %s976_s15 = sphi %s1008_s15, %s1353_s15   ;;  %s972_s14 = sphi %s1006_s14, %s1352_s14   ;;  %s968_s13 = sphi %s1004_s13, %s1351_s13   ;;  %s964_s12 = sphi %s1002_s12, %s1350_s12  }
   0x4   : > { %p23_p0 = scmp.ge.s32.totalorder %s22_s17, 2  ;;  %p733_p1 = scmp.ge.s32.totalorder %s980_s16, 1 }
   0x5   : > { %p157_p2 = scmp.lt.s32.totalorder %s980_s16, 5 }
   0x6   : > { %s1355_s17 = smov (%p23_p0, %s22_s17), 0  ;;  %s1357_s18 = smov (!%p23_p0, %s25_s18), %s976_s15 }
   0x7   : > { %p158_p3 = pnand %p733_p1, %p157_p2  ;;  %p27_p4 = scmp.ge.s32.totalorder %s1357_s18, 2 }
   0x8   : > { %p189_p5 = scmp.lt.s32.totalorder (!%p158_p3), %s968_s13, 1  ;;  %p191_p6 = scmp.lt.s32.totalorder (!%p158_p3), %s964_s12, 1  ;;  %v207_v0 = vld [vmem:[%s1347_s1] sm:$0xff] (!%p158_p3)  ;;  %vm279_vm0 = vcmask (!%p158_p3), 523264   ;;  %v208_v14 = vld [vmem:[%s1347_s1 + $0x8] sm:$0xff] (!%p158_p3)  ;;  %v209_v16 = vld [vmem:[%s1347_s1 + $0x10] sm:$0xff] (!%p158_p3) }
   0x9   : > { %s1359_s18 = smov (%p27_p4, %s1357_s18), 0  ;;  %161 = sbr.rel (%p158_p3) target bundleno = 285 (0x11d), region = 32 }
   0xa   : > { %v223_v1 = vld [vmem:[%s1347_s1 + $0x80] sm:$0xff] (!%p158_p3)  ;;  %830 = vmatprep.mubr.msk.f32.mxu0 (!%p158_p3), %vm279_vm0, %v207_v0  ;;  %v224_v15 = vld [vmem:[%s1347_s1 + $0x88] sm:$0xff] (!%p158_p3)  ;;  %v225_v17 = vld [vmem:[%s1347_s1 + $0x90] sm:$0xff] (!%p158_p3)  ;;  %vm601_vm1 = vcmask (!%p158_p3), 7168  }
   0xb   : > { %854 = vmatprep.mubr.msk.f32.mxu1 (!%p158_p3), %vm279_vm0, %v223_v1  ;;  %v210_v18 = vld [vmem:[%s1347_s1 + $0x18] sm:$0xff] (!%p158_p3)  ;;  %v211_v20 = vld [vmem:[%s1347_s1 + $0x20] sm:$0xff] (!%p158_p3)  ;;  %v212_v22 = vld [vmem:[%s1347_s1 + $0x28] sm:$0xff] (!%p158_p3) }
   0xc   : > { %v226_v19 = vld [vmem:[%s1347_s1 + $0x98] sm:$0xff] (!%p158_p3)  ;;  %v227_v21 = vld [vmem:[%s1347_s1 + $0xa0] sm:$0xff] (!%p158_p3)  ;;  %v228_v23 = vld [vmem:[%s1347_s1 + $0xa8] sm:$0xff] (!%p158_p3) }
   0xd   : > { %v213_v24 = vld [vmem:[%s1347_s1 + $0x30] sm:$0xff] (!%p158_p3)  ;;  %v214_v26 = vld [vmem:[%s1347_s1 + $0x38] sm:$0xff] (!%p158_p3)  ;;  %v215_v28 = vld [vmem:[%s1347_s1 + $0x40] sm:$0xff] (!%p158_p3) }
   0xe   : > { %v229_v25 = vld [vmem:[%s1347_s1 + $0xb0] sm:$0xff] (!%p158_p3)  ;;  %v230_v27 = vld [vmem:[%s1347_s1 + $0xb8] sm:$0xff] (!%p158_p3)  ;;  %v231_v29 = vld [vmem:[%s1347_s1 + $0xc0] sm:$0xff] (!%p158_p3) }
   0xf   : > { %v216_v30 = vld [vmem:[%s1347_s1 + $0x48] sm:$0xff] (!%p158_p3)  ;;  %v217_v32 = vld [vmem:[%s1347_s1 + $0x50] sm:$0xff] (!%p158_p3)  ;;  %v218_v34 = vld [vmem:[%s1347_s1 + $0x58] sm:$0xff] (!%p158_p3) }
  0x10   : > { %s1361_s13 = smov (!%p189_p5, %s968_s13), 1  ;;  %s1363_s12 = smov (!%p191_p6, %s964_s12), 1  ;;  %v232_v31 = vld [vmem:[%s1347_s1 + $0xc8] sm:$0xff]  ;;  %v233_v33 = vld [vmem:[%s1347_s1 + $0xd0] sm:$0xff]  ;;  %v234_v35 = vld [vmem:[%s1347_s1 + $0xd8] sm:$0xff] }
  0x11   : > { %s735_s23 = sshll.u32 %s1361_s13, 4  ;;  %s738_s24 = sshll.u32 %s1361_s13, 6  ;;  %v219_v36 = vld [vmem:[%s1347_s1 + $0x60] sm:$0xff]  ;;  %v220_v38 = vld [vmem:[%s1347_s1 + $0x68] sm:$0xff]  ;;  %v221_v40 = vld [vmem:[%s1347_s1 + $0x70] sm:$0xff] }
  0x12   : > { %s734_s25 = sshll.u32 %s1363_s12, 3  ;;  %s737_s26 = sshll.u32 %s1363_s12, 5  ;;  %v235_v37 = vld [vmem:[%s1347_s1 + $0xe0] sm:$0xff]  ;;  %v236_v39 = vld [vmem:[%s1347_s1 + $0xe8] sm:$0xff]  ;;  %v237_v41 = vld [vmem:[%s1347_s1 + $0xf0] sm:$0xff] }
  0x13   : > { %s195_s27 = sadd.s32 %s735_s23, %s734_s25  ;;  %s1040_s28 = sadd.s32 %s738_s24, %s737_s26  ;;  %v222_v42 = vld [vmem:[%s1347_s1 + $0x78] sm:$0xff]  ;;  %v248_v44 = vld [vmem:[%s1348_s2 + $0x8] sm:$0xff]  ;;  %v247_v46 = vld [vmem:[%s1348_s2] sm:$0xff] }
  0x14   : > { %s736_s29 = sshll.u32 %s195_s27, 3  ;;  %v238_v43 = vld [vmem:[%s1347_s1 + $0xf8] sm:$0xff]  ;;  %s739_s30 = sshll.u32 %s1040_s28, 3  ;;  %v264_v45 = vld [vmem:[%s1348_s2 + $0x88] sm:$0xff]  ;;  %v263_v47 = vld [vmem:[%s1348_s2 + $0x80] sm:$0xff] }
  0x15   : > { %s197_s5 = scalar_lea.vmem %s1346_s0, %s736_s29  ;;  %s1181_s28 = scalar_lea.vmem %s1349_s3, %s739_s30  ;;  %v250_v56 = vld [vmem:[%s1348_s2 + $0x18] sm:$0xff]  ;;  %v249_v58 = vld [vmem:[%s1348_s2 + $0x10] sm:$0xff] }
  0x16   : > { %v239_v2 = vld [vmem:[%s197_s5] sm:$0xff]  ;;  %v240_v3 = vld [vmem:[%s197_s5 + $0x8] sm:$0xff]  ;;  %v241_v4 = vld [vmem:[%s197_s5 + $0x10] sm:$0xff] }
  0x17   : > { %v878_v5 = vpack.c.bf16 %v240_v3, %v239_v2  ;;  %v242_v6 = vld [vmem:[%s197_s5 + $0x18] sm:$0xff]  ;;  %v243_v8 = vld [vmem:[%s197_s5 + $0x20] sm:$0xff]  ;;  %v244_v9 = vld [vmem:[%s197_s5 + $0x28] sm:$0xff] }
  0x18   : > { %v882_v7 = vpack.c.bf16 %v242_v6, %v241_v4  ;;  %v886_v10 = vpack.c.bf16 %v244_v9, %v243_v8  ;;  %v245_v11 = vld [vmem:[%s197_s5 + $0x30] sm:$0xff]  ;;  %v246_v12 = vld [vmem:[%s197_s5 + $0x38] sm:$0xff]  ;;  %v252_v4 = vld [vmem:[%s1348_s2 + $0x28] sm:$0xff] }
  0x19   : > { %879 = vmatprep.subr.bf16.mxu0 %v878_v5  ;;  %894 = vmatprep.subr.bf16.mxu1 %v878_v5  ;;  %v890_v13 = vpack.c.bf16 %v246_v12, %v245_v11  ;;  %v266_v57 = vld [vmem:[%s1348_s2 + $0x98] sm:$0xff]  ;;  %v265_v59 = vld [vmem:[%s1348_s2 + $0x90] sm:$0xff]  ;;  %v251_v6 = vld [vmem:[%s1348_s2 + $0x20] sm:$0xff] }
  0x1a   : > { %881 = vmatpush3.bf16.msra.mxu0 %v878_v5  ;;  %898 = vmatpush3.bf16.msra.mxu1 %v878_v5  ;;  %v268_v5 = vld [vmem:[%s1348_s2 + $0xa8] sm:$0xff] }
  0x1b   : > { %883 = vmatprep.subr.bf16.mxu0 %v882_v7  ;;  %895 = vmatprep.subr.bf16.mxu1 %v882_v7 }
  0x1e   : > { %885 = vmatpush3.bf16.msra.mxu0 %v882_v7  ;;  %899 = vmatpush3.bf16.msra.mxu1 %v882_v7  ;;  %v267_v7 = vld [vmem:[%s1348_s2 + $0xa0] sm:$0xff] }
  0x1f   : > { %887 = vmatprep.subr.bf16.mxu0 %v886_v10  ;;  %896 = vmatprep.subr.bf16.mxu1 %v886_v10 }
  0x22   : > { %889 = vmatpush3.bf16.msra.mxu0 %v886_v10  ;;  %900 = vmatpush3.bf16.msra.mxu1 %v886_v10 }
  0x23   : > { %891 = vmatprep.subr.bf16.mxu0 %v890_v13  ;;  %897 = vmatprep.subr.bf16.mxu1 %v890_v13 }
  0x26   : > { %893 = vmatpush3.bf16.msra.mxu0 %v890_v13  ;;  %901 = vmatpush3.bf16.msra.mxu1 %v890_v13 }
  0x29   : > { %831 = vmatmul.mubr.msk.f32.vlgmr.msra.gmra.mrb[0].mxu0 %vm279_vm0, %v208_v14  ;;  %855 = vmatmul.mubr.msk.f32.vlgmr.msra.gmra.mrb[0].mxu1 %vm279_vm0, %v224_v15 }
  0x2a   : > { %833 = vmatprep.mubr.msk.f32.mxu0 %vm279_vm0, %v209_v16  ;;  %857 = vmatprep.mubr.msk.f32.mxu1 %vm279_vm0, %v225_v17  ;;  %v254_v16 = vld [vmem:[%s1348_s2 + $0x38] sm:$0xff] }
  0x2b   : > { %v270_v17 = vld [vmem:[%s1348_s2 + $0xb8] sm:$0xff] }
  0x2d   : > { %834 = vmatmul.mubr.msk.f32.gmra.mrb[2].mxu0 %vm279_vm0, %v210_v18  ;;  %858 = vmatmul.mubr.msk.f32.gmra.mrb[2].mxu1 %vm279_vm0, %v226_v19  ;;  %v253_v18 = vld [vmem:[%s1348_s2 + $0x30] sm:$0xff] }
  0x2e   : > { %836 = vmatprep.mubr.msk.f32.mxu0 %vm279_vm0, %v211_v20  ;;  %860 = vmatprep.mubr.msk.f32.mxu1 %vm279_vm0, %v227_v21  ;;  %v269_v19 = vld [vmem:[%s1348_s2 + $0xb0] sm:$0xff] }
  0x31   : > { %837 = vmatmul.mubr.msk.f32.gmra.mrb[4].mxu0 %vm279_vm0, %v212_v22  ;;  %861 = vmatmul.mubr.msk.f32.gmra.mrb[4].mxu1 %vm279_vm0, %v228_v23 }
  0x32   : > { %839 = vmatprep.mubr.msk.f32.mxu0 %vm279_vm0, %v213_v24  ;;  %863 = vmatprep.mubr.msk.f32.mxu1 %vm279_vm0, %v229_v25 }
  0x35   : > { %840 = vmatmul.mubr.msk.f32.gmra.mrb[6].mxu0 %vm279_vm0, %v214_v26  ;;  %864 = vmatmul.mubr.msk.f32.gmra.mrb[6].mxu1 %vm279_vm0, %v230_v27 }
  0x36   : > { %842 = vmatprep.mubr.msk.f32.mxu0 %vm279_vm0, %v215_v28  ;;  %866 = vmatprep.mubr.msk.f32.mxu1 %vm279_vm0, %v231_v29  ;;  %v256_v28 = vld [vmem:[%s1348_s2 + $0x48] sm:$0xff] }
  0x37   : > { %v272_v29 = vld [vmem:[%s1348_s2 + $0xc8] sm:$0xff] }
  0x39   : > { %843 = vmatmul.mubr.msk.f32.gmra.mrb[8].mxu0 %vm279_vm0, %v216_v30  ;;  %867 = vmatmul.mubr.msk.f32.gmra.mrb[8].mxu1 %vm279_vm0, %v232_v31  ;;  %v255_v30 = vld [vmem:[%s1348_s2 + $0x40] sm:$0xff] }
  0x3a   : > { %845 = vmatprep.mubr.msk.f32.mxu0 %vm279_vm0, %v217_v32  ;;  %869 = vmatprep.mubr.msk.f32.mxu1 %vm279_vm0, %v233_v33  ;;  %v271_v31 = vld [vmem:[%s1348_s2 + $0xc0] sm:$0xff] }
  0x3d   : > { %846 = vmatmul.mubr.msk.f32.gmra.mrb[10].mxu0 %vm279_vm0, %v218_v34  ;;  %870 = vmatmul.mubr.msk.f32.gmra.mrb[10].mxu1 %vm279_vm0, %v234_v35 }
  0x3e   : > { %848 = vmatprep.mubr.msk.f32.mxu0 %vm279_vm0, %v219_v36  ;;  %872 = vmatprep.mubr.msk.f32.mxu1 %vm279_vm0, %v235_v37 }
  0x41   : > { %849 = vmatmul.mubr.msk.f32.gmra.mrb[12].mxu0 %vm279_vm0, %v220_v38  ;;  %873 = vmatmul.mubr.msk.f32.gmra.mrb[12].mxu1 %vm279_vm0, %v236_v39 }
  0x42   : > { %851 = vmatprep.mubr.msk.f32.mxu0 %vm279_vm0, %v221_v40  ;;  %875 = vmatprep.mubr.msk.f32.mxu1 %vm279_vm0, %v237_v41  ;;  %v258_v40 = vld [vmem:[%s1348_s2 + $0x58] sm:$0xff] }
  0x43   : > { %v274_v41 = vld [vmem:[%s1348_s2 + $0xd8] sm:$0xff] }
  0x45   : > { %852 = vmatmul.mubr.msk.f32.gmra.mrb[14].mxu0 %vm279_vm0, %v222_v42  ;;  %876 = vmatmul.mubr.msk.f32.gmra.mrb[14].mxu1 %vm279_vm0, %v238_v43  ;;  %v257_v42 = vld [vmem:[%s1348_s2 + $0x50] sm:$0xff] }
  0x46   : > { %v273_v43 = vld [vmem:[%s1348_s2 + $0xd0] sm:$0xff] }
  0xfc   : > { %v832_v48 = vpop.f32.mrb[0].mxu0  ;;  %v856_v49 = vpop.f32.mrb[0].mxu1 }
  0xfd   : > { %v448_v50 = vadd.f32 %v832_v48, %v248_v44  ;;  %v528_v51 = vadd.f32 %v856_v49, %v264_v45  ;;  %v442_v52 = vpop.f32.mrb[1].mxu0  ;;  %v522_v53 = vpop.f32.mrb[1].mxu1 }
  0xfe   : > { %v443_v54 = vadd.f32 %v442_v52, %v247_v46  ;;  %v523_v55 = vadd.f32 %v522_v53, %v263_v47  ;;  %v260_v52 = vld [vmem:[%s1348_s2 + $0x68] sm:$0xff] }
  0xff   : > { %603 = vst.msk [vmem:[%s1181_s28 + $0x8] sm:$0xff] %vm601_vm1, %v448_v50  ;;  %619 = vst.msk [vmem:[%s1181_s28 + $0x88] sm:$0xff] %vm601_vm1, %v528_v51  ;;  %v276_v53 = vld [vmem:[%s1348_s2 + $0xe8] sm:$0xff] }
 0x100   : > { %602 = vst.msk [vmem:[%s1181_s28] sm:$0xff] %vm601_vm1, %v443_v54  ;;  %618 = vst.msk [vmem:[%s1181_s28 + $0x80] sm:$0xff] %vm601_vm1, %v523_v55  ;;  %v835_v60 = vpop.f32.mrb[2].mxu0  ;;  %v859_v61 = vpop.f32.mrb[2].mxu1  ;;  %v259_v54 = vld [vmem:[%s1348_s2 + $0x60] sm:$0xff] }
 0x101   : > { %v458_v62 = vadd.f32 %v835_v60, %v250_v56  ;;  %v538_v63 = vadd.f32 %v859_v61, %v266_v57  ;;  %v452_v0 = vpop.f32.mrb[3].mxu0  ;;  %v532_v1 = vpop.f32.mrb[3].mxu1  ;;  %v275_v55 = vld [vmem:[%s1348_s2 + $0xe0] sm:$0xff] }
 0x102   : > { %v453_v2 = vadd.f32 %v452_v0, %v249_v58  ;;  %v533_v3 = vadd.f32 %v532_v1, %v265_v59  ;;  %v262_v0 = vld [vmem:[%s1348_s2 + $0x78] sm:$0xff] }
 0x103   : > { %605 = vst.msk [vmem:[%s1181_s28 + $0x18] sm:$0xff] %vm601_vm1, %v458_v62  ;;  %621 = vst.msk [vmem:[%s1181_s28 + $0x98] sm:$0xff] %vm601_vm1, %v538_v63  ;;  %v278_v1 = vld [vmem:[%s1348_s2 + $0xf8] sm:$0xff] }
 0x104   : > { %604 = vst.msk [vmem:[%s1181_s28 + $0x10] sm:$0xff] %vm601_vm1, %v453_v2  ;;  %620 = vst.msk [vmem:[%s1181_s28 + $0x90] sm:$0xff] %vm601_vm1, %v533_v3  ;;  %v838_v8 = vpop.f32.mrb[4].mxu0  ;;  %v862_v9 = vpop.f32.mrb[4].mxu1  ;;  %v261_v2 = vld [vmem:[%s1348_s2 + $0x70] sm:$0xff] }
 0x105   : > { %v468_v10 = vadd.f32 %v838_v8, %v252_v4  ;;  %v548_v11 = vadd.f32 %v862_v9, %v268_v5  ;;  %v462_v12 = vpop.f32.mrb[5].mxu0  ;;  %v542_v13 = vpop.f32.mrb[5].mxu1  ;;  %v277_v3 = vld [vmem:[%s1348_s2 + $0xf0] sm:$0xff] }
 0x106   : > { %v463_v14 = vadd.f32 %v462_v12, %v251_v6  ;;  %v543_v15 = vadd.f32 %v542_v13, %v267_v7 }
 0x107   : > { %607 = vst.msk [vmem:[%s1181_s28 + $0x28] sm:$0xff] %vm601_vm1, %v468_v10  ;;  %623 = vst.msk [vmem:[%s1181_s28 + $0xa8] sm:$0xff] %vm601_vm1, %v548_v11 }
 0x108   : > { %606 = vst.msk [vmem:[%s1181_s28 + $0x20] sm:$0xff] %vm601_vm1, %v463_v14  ;;  %622 = vst.msk [vmem:[%s1181_s28 + $0xa0] sm:$0xff] %vm601_vm1, %v543_v15  ;;  %v841_v20 = vpop.f32.mrb[6].mxu0  ;;  %v865_v21 = vpop.f32.mrb[6].mxu1 }
 0x109   : > { %v478_v22 = vadd.f32 %v841_v20, %v254_v16  ;;  %v558_v23 = vadd.f32 %v865_v21, %v270_v17  ;;  %v472_v24 = vpop.f32.mrb[7].mxu0  ;;  %v552_v25 = vpop.f32.mrb[7].mxu1 }
 0x10a   : > { %v473_v26 = vadd.f32 %v472_v24, %v253_v18  ;;  %v553_v27 = vadd.f32 %v552_v25, %v269_v19 }
 0x10b   : > { %609 = vst.msk [vmem:[%s1181_s28 + $0x38] sm:$0xff] %vm601_vm1, %v478_v22  ;;  %625 = vst.msk [vmem:[%s1181_s28 + $0xb8] sm:$0xff] %vm601_vm1, %v558_v23 }
 0x10c   : > { %608 = vst.msk [vmem:[%s1181_s28 + $0x30] sm:$0xff] %vm601_vm1, %v473_v26  ;;  %624 = vst.msk [vmem:[%s1181_s28 + $0xb0] sm:$0xff] %vm601_vm1, %v553_v27  ;;  %v844_v32 = vpop.f32.mrb[8].mxu0  ;;  %v868_v33 = vpop.f32.mrb[8].mxu1 }
 0x10d   : > { %v488_v34 = vadd.f32 %v844_v32, %v256_v28  ;;  %v568_v35 = vadd.f32 %v868_v33, %v272_v29  ;;  %v482_v36 = vpop.f32.mrb[9].mxu0  ;;  %v562_v37 = vpop.f32.mrb[9].mxu1 }
 0x10e   : > { %v483_v38 = vadd.f32 %v482_v36, %v255_v30  ;;  %v563_v39 = vadd.f32 %v562_v37, %v271_v31 }
 0x10f   : > { %611 = vst.msk [vmem:[%s1181_s28 + $0x48] sm:$0xff] %vm601_vm1, %v488_v34  ;;  %627 = vst.msk [vmem:[%s1181_s28 + $0xc8] sm:$0xff] %vm601_vm1, %v568_v35 }
 0x110   : > { %610 = vst.msk [vmem:[%s1181_s28 + $0x40] sm:$0xff] %vm601_vm1, %v483_v38  ;;  %626 = vst.msk [vmem:[%s1181_s28 + $0xc0] sm:$0xff] %vm601_vm1, %v563_v39  ;;  %v847_v44 = vpop.f32.mrb[10].mxu0  ;;  %v871_v45 = vpop.f32.mrb[10].mxu1 }
 0x111   : > { %v498_v46 = vadd.f32 %v847_v44, %v258_v40  ;;  %v578_v47 = vadd.f32 %v871_v45, %v274_v41  ;;  %v492_v48 = vpop.f32.mrb[11].mxu0  ;;  %v572_v49 = vpop.f32.mrb[11].mxu1 }
 0x112   : > { %v493_v50 = vadd.f32 %v492_v48, %v257_v42  ;;  %v573_v51 = vadd.f32 %v572_v49, %v273_v43 }
 0x113   : > { %613 = vst.msk [vmem:[%s1181_s28 + $0x58] sm:$0xff] %vm601_vm1, %v498_v46  ;;  %629 = vst.msk [vmem:[%s1181_s28 + $0xd8] sm:$0xff] %vm601_vm1, %v578_v47 }
 0x114   : > { %612 = vst.msk [vmem:[%s1181_s28 + $0x50] sm:$0xff] %vm601_vm1, %v493_v50  ;;  %628 = vst.msk [vmem:[%s1181_s28 + $0xd0] sm:$0xff] %vm601_vm1, %v573_v51  ;;  %v850_v56 = vpop.f32.mrb[12].mxu0  ;;  %v874_v57 = vpop.f32.mrb[12].mxu1 }
 0x115   : > { %v508_v58 = vadd.f32 %v850_v56, %v260_v52  ;;  %v588_v59 = vadd.f32 %v874_v57, %v276_v53  ;;  %v502_v60 = vpop.f32.mrb[13].mxu0  ;;  %v582_v61 = vpop.f32.mrb[13].mxu1 }
 0x116   : > { %v503_v62 = vadd.f32 %v502_v60, %v259_v54  ;;  %v583_v63 = vadd.f32 %v582_v61, %v275_v55 }
 0x117   : > { %615 = vst.msk [vmem:[%s1181_s28 + $0x68] sm:$0xff] %vm601_vm1, %v508_v58  ;;  %631 = vst.msk [vmem:[%s1181_s28 + $0xe8] sm:$0xff] %vm601_vm1, %v588_v59 }
 0x118   : > { %614 = vst.msk [vmem:[%s1181_s28 + $0x60] sm:$0xff] %vm601_vm1, %v503_v62  ;;  %630 = vst.msk [vmem:[%s1181_s28 + $0xe0] sm:$0xff] %vm601_vm1, %v583_v63  ;;  %v853_v4 = vpop.f32.mrb[14].mxu0  ;;  %v877_v5 = vpop.f32.mrb[14].mxu1 }
 0x119   : > { %v518_v6 = vadd.f32 %v853_v4, %v262_v0  ;;  %v598_v7 = vadd.f32 %v877_v5, %v278_v1  ;;  %v512_v8 = vpop.f32.mrb[15].mxu0  ;;  %v592_v9 = vpop.f32.mrb[15].mxu1 }
 0x11a   : > { %v513_v10 = vadd.f32 %v512_v8, %v261_v2  ;;  %v593_v11 = vadd.f32 %v592_v9, %v277_v3 }
 0x11b   : > { %617 = vst.msk [vmem:[%s1181_s28 + $0x78] sm:$0xff] %vm601_vm1, %v518_v6  ;;  %633 = vst.msk [vmem:[%s1181_s28 + $0xf8] sm:$0xff] %vm601_vm1, %v598_v7 }
 0x11c   : > { %616 = vst.msk [vmem:[%s1181_s28 + $0x70] sm:$0xff] %vm601_vm1, %v513_v10  ;;  %632 = vst.msk [vmem:[%s1181_s28 + $0xf0] sm:$0xff] %vm601_vm1, %v593_v11 }
 0x11d PF: > { %s13_s16 = sadd.s32 1, %s980_s16   ;;  %s1350_s12 = smov %s972_s14 }
 0x11e   : > { %p10_p7 = scmp.ge.s32.totalorder %s13_s16, 6   ;;  %s1351_s13 = smov %s976_s15 }
 0x11f   : > { %s1352_s14 = smov %s1355_s17  ;;  %s1353_s15 = smov %s1359_s18 }
 0x120   :  { %12 = sbr.rel (!%p10_p7) target bundleno = 3 (0x3), region = 62 }

// kernel: tile.28
= control target key start
LH: loop header
LB: loop body
LE: loop exit
PB: predicated region body
PF: predicated region fallthrough
CT: control target
= control target key end

     0   :  { %s22_s0 = inlined_call_operand.vmem [shape: f32[16], index: 0, kind: input, shape index: {}]   ;;  %s23_s1 = inlined_call_operand.vmem [shape: f32[8,16], index: 1, kind: output, shape index: {}]  }
   0x1   :  { %v4_v0 = vld [vmem:[%s22_s0] ss:$0 sm:$0xff] }
   0x2   :  { %5 = vst [vmem:[%s23_s1] sm:$0xff] %v4_v0 }

// kernel: tile.1
= control target key start
LH: loop header
LB: loop body
LE: loop exit
PB: predicated region body
PF: predicated region fallthrough
CT: control target
= control target key end

     0   :  { %vm3_vm0 = vcmask 7168   ;;  %s264_s8 = smov 125   ;;  %s265_s17 = smov 126   ;;  %s547_s0 = inlined_call_operand.vmem [shape: f32[8,16], index: 0, kind: input, shape index: {}]   ;;  %s548_s1 = inlined_call_operand.vmem [shape: f32[128,1], index: 1, kind: output, shape index: {}]  }
   0x1   :  { %v8_v0 = vld [vmem:[%s547_s0] sm:$0xff]   ;;  %s263_s0 = smov 127   ;;  %s266_s18 = smov 124  }
   0x2   :  { %9 = vrot.lane.b32.xlu0 %v8_v0, %s263_s0  ;;  %33 = vrot.lane.b32.xlu1 %v8_v0, %s264_s8  ;;  %4 = vst.msk [vmem:[%s548_s1] ss:$16 sm:$0x3] %vm3_vm0, %v8_v0   ;;  %5 = vst.msk [vmem:[%s548_s1] ss:$16 sm:$0xc] %vm3_vm0, %v8_v0  }
   0x3   :  { %6 = vst.msk [vmem:[%s548_s1] ss:$16 sm:$0x30] %vm3_vm0, %v8_v0   ;;  %7 = vst.msk [vmem:[%s548_s1] ss:$16 sm:$0xc0] %vm3_vm0, %v8_v0  }
   0x4   :  { %s267_s19 = smov 123   ;;  %s268_s20 = smov 122  }
   0x5   :  { %s269_s21 = smov 121   ;;  %s270_s22 = smov 120  }
   0x6   :  { %21 = vrot.lane.b32.xlu0 %v8_v0, %s265_s17  ;;  %45 = vrot.lane.b32.xlu1 %v8_v0, %s266_s18  ;;  %s271_s23 = smov 119   ;;  %s272_s24 = smov 118  }
   0x7   :  { %s273_s25 = smov 117   ;;  %s274_s26 = smov 116  }
   0x8   :  { %s275_s27 = smov 115   ;;  %s276_s28 = smov 114  }
   0x9   :  { %s277_s29 = smov 113  }
   0xa   :  { %57 = vrot.lane.b32.xlu0 %v8_v0, %s267_s19  ;;  %69 = vrot.lane.b32.xlu1 %v8_v0, %s268_s20 }
   0xe   :  { %81 = vrot.lane.b32.xlu0 %v8_v0, %s269_s21  ;;  %93 = vrot.lane.b32.xlu1 %v8_v0, %s270_s22 }
  0x12   :  { %105 = vrot.lane.b32.xlu0 %v8_v0, %s271_s23  ;;  %117 = vrot.lane.b32.xlu1 %v8_v0, %s272_s24 }
  0x16   :  { %129 = vrot.lane.b32.xlu0 %v8_v0, %s273_s25  ;;  %141 = vrot.lane.b32.xlu1 %v8_v0, %s274_s26 }
  0x1a   :  { %153 = vrot.lane.b32.xlu0 %v8_v0, %s275_s27  ;;  %165 = vrot.lane.b32.xlu1 %v8_v0, %s276_s28 }
  0x1e   :  { %177 = vrot.lane.b32.xlu0 %v8_v0, %s277_s29 }
  0x74   :  { %v10_v1 = vpop.permute.xlu0 %9   ;;  %v34_v2 = vpop.permute.xlu1 %33  }
  0x75   :  { %188 = vst.msk [vmem:[%s548_s1 + $0x1] ss:$16 sm:$0x3] %vm3_vm0, %v10_v1   ;;  %189 = vst.msk [vmem:[%s548_s1 + $0x1] ss:$16 sm:$0xc] %vm3_vm0, %v10_v1  }
  0x76   :  { %190 = vst.msk [vmem:[%s548_s1 + $0x1] ss:$16 sm:$0x30] %vm3_vm0, %v10_v1   ;;  %191 = vst.msk [vmem:[%s548_s1 + $0x1] ss:$16 sm:$0xc0] %vm3_vm0, %v10_v1  }
  0x77   :  { %196 = vst.msk [vmem:[%s548_s1 + $0x3] ss:$16 sm:$0x3] %vm3_vm0, %v34_v2   ;;  %197 = vst.msk [vmem:[%s548_s1 + $0x3] ss:$16 sm:$0xc] %vm3_vm0, %v34_v2  }
  0x78   :  { %198 = vst.msk [vmem:[%s548_s1 + $0x3] ss:$16 sm:$0x30] %vm3_vm0, %v34_v2   ;;  %199 = vst.msk [vmem:[%s548_s1 + $0x3] ss:$16 sm:$0xc0] %vm3_vm0, %v34_v2   ;;  %v22_v3 = vpop.permute.xlu0 %21   ;;  %v46_v4 = vpop.permute.xlu1 %45  }
  0x79   :  { %192 = vst.msk [vmem:[%s548_s1 + $0x2] ss:$16 sm:$0x3] %vm3_vm0, %v22_v3   ;;  %193 = vst.msk [vmem:[%s548_s1 + $0x2] ss:$16 sm:$0xc] %vm3_vm0, %v22_v3  }
  0x7a   :  { %194 = vst.msk [vmem:[%s548_s1 + $0x2] ss:$16 sm:$0x30] %vm3_vm0, %v22_v3   ;;  %195 = vst.msk [vmem:[%s548_s1 + $0x2] ss:$16 sm:$0xc0] %vm3_vm0, %v22_v3  }
  0x7b   :  { %200 = vst.msk [vmem:[%s548_s1 + $0x4] ss:$16 sm:$0x3] %vm3_vm0, %v46_v4   ;;  %201 = vst.msk [vmem:[%s548_s1 + $0x4] ss:$16 sm:$0xc] %vm3_vm0, %v46_v4  }
  0x7c   :  { %202 = vst.msk [vmem:[%s548_s1 + $0x4] ss:$16 sm:$0x30] %vm3_vm0, %v46_v4   ;;  %203 = vst.msk [vmem:[%s548_s1 + $0x4] ss:$16 sm:$0xc0] %vm3_vm0, %v46_v4   ;;  %v58_v5 = vpop.permute.xlu0 %57   ;;  %v70_v6 = vpop.permute.xlu1 %69  }
  0x7d   :  { %204 = vst.msk [vmem:[%s548_s1 + $0x5] ss:$16 sm:$0x3] %vm3_vm0, %v58_v5   ;;  %205 = vst.msk [vmem:[%s548_s1 + $0x5] ss:$16 sm:$0xc] %vm3_vm0, %v58_v5  }
  0x7e   :  { %206 = vst.msk [vmem:[%s548_s1 + $0x5] ss:$16 sm:$0x30] %vm3_vm0, %v58_v5   ;;  %207 = vst.msk [vmem:[%s548_s1 + $0x5] ss:$16 sm:$0xc0] %vm3_vm0, %v58_v5  }
  0x7f   :  { %208 = vst.msk [vmem:[%s548_s1 + $0x6] ss:$16 sm:$0x3] %vm3_vm0, %v70_v6   ;;  %209 = vst.msk [vmem:[%s548_s1 + $0x6] ss:$16 sm:$0xc] %vm3_vm0, %v70_v6  }
  0x80   :  { %210 = vst.msk [vmem:[%s548_s1 + $0x6] ss:$16 sm:$0x30] %vm3_vm0, %v70_v6   ;;  %211 = vst.msk [vmem:[%s548_s1 + $0x6] ss:$16 sm:$0xc0] %vm3_vm0, %v70_v6   ;;  %v82_v7 = vpop.permute.xlu0 %81   ;;  %v94_v8 = vpop.permute.xlu1 %93  }
  0x81   :  { %212 = vst.msk [vmem:[%s548_s1 + $0x7] ss:$16 sm:$0x3] %vm3_vm0, %v82_v7   ;;  %213 = vst.msk [vmem:[%s548_s1 + $0x7] ss:$16 sm:$0xc] %vm3_vm0, %v82_v7  }
  0x82   :  { %214 = vst.msk [vmem:[%s548_s1 + $0x7] ss:$16 sm:$0x30] %vm3_vm0, %v82_v7   ;;  %215 = vst.msk [vmem:[%s548_s1 + $0x7] ss:$16 sm:$0xc0] %vm3_vm0, %v82_v7  }
  0x83   :  { %216 = vst.msk [vmem:[%s548_s1 + $0x8] ss:$16 sm:$0x3] %vm3_vm0, %v94_v8   ;;  %217 = vst.msk [vmem:[%s548_s1 + $0x8] ss:$16 sm:$0xc] %vm3_vm0, %v94_v8  }
  0x84   :  { %218 = vst.msk [vmem:[%s548_s1 + $0x8] ss:$16 sm:$0x30] %vm3_vm0, %v94_v8   ;;  %219 = vst.msk [vmem:[%s548_s1 + $0x8] ss:$16 sm:$0xc0] %vm3_vm0, %v94_v8   ;;  %v106_v9 = vpop.permute.xlu0 %105   ;;  %v118_v10 = vpop.permute.xlu1 %117  }
  0x85   :  { %220 = vst.msk [vmem:[%s548_s1 + $0x9] ss:$16 sm:$0x3] %vm3_vm0, %v106_v9   ;;  %221 = vst.msk [vmem:[%s548_s1 + $0x9] ss:$16 sm:$0xc] %vm3_vm0, %v106_v9  }
  0x86   :  { %222 = vst.msk [vmem:[%s548_s1 + $0x9] ss:$16 sm:$0x30] %vm3_vm0, %v106_v9   ;;  %223 = vst.msk [vmem:[%s548_s1 + $0x9] ss:$16 sm:$0xc0] %vm3_vm0, %v106_v9  }
  0x87   :  { %224 = vst.msk [vmem:[%s548_s1 + $0xa] ss:$16 sm:$0x3] %vm3_vm0, %v118_v10   ;;  %225 = vst.msk [vmem:[%s548_s1 + $0xa] ss:$16 sm:$0xc] %vm3_vm0, %v118_v10  }
  0x88   :  { %226 = vst.msk [vmem:[%s548_s1 + $0xa] ss:$16 sm:$0x30] %vm3_vm0, %v118_v10   ;;  %227 = vst.msk [vmem:[%s548_s1 + $0xa] ss:$16 sm:$0xc0] %vm3_vm0, %v118_v10   ;;  %v130_v11 = vpop.permute.xlu0 %129   ;;  %v142_v12 = vpop.permute.xlu1 %141  }
  0x89   :  { %228 = vst.msk [vmem:[%s548_s1 + $0xb] ss:$16 sm:$0x3] %vm3_vm0, %v130_v11   ;;  %229 = vst.msk [vmem:[%s548_s1 + $0xb] ss:$16 sm:$0xc] %vm3_vm0, %v130_v11  }
  0x8a   :  { %230 = vst.msk [vmem:[%s548_s1 + $0xb] ss:$16 sm:$0x30] %vm3_vm0, %v130_v11   ;;  %231 = vst.msk [vmem:[%s548_s1 + $0xb] ss:$16 sm:$0xc0] %vm3_vm0, %v130_v11  }
  0x8b   :  { %232 = vst.msk [vmem:[%s548_s1 + $0xc] ss:$16 sm:$0x3] %vm3_vm0, %v142_v12   ;;  %233 = vst.msk [vmem:[%s548_s1 + $0xc] ss:$16 sm:$0xc] %vm3_vm0, %v142_v12  }
  0x8c   :  { %234 = vst.msk [vmem:[%s548_s1 + $0xc] ss:$16 sm:$0x30] %vm3_vm0, %v142_v12   ;;  %235 = vst.msk [vmem:[%s548_s1 + $0xc] ss:$16 sm:$0xc0] %vm3_vm0, %v142_v12   ;;  %v154_v13 = vpop.permute.xlu0 %153   ;;  %v166_v14 = vpop.permute.xlu1 %165  }
  0x8d   :  { %236 = vst.msk [vmem:[%s548_s1 + $0xd] ss:$16 sm:$0x3] %vm3_vm0, %v154_v13   ;;  %237 = vst.msk [vmem:[%s548_s1 + $0xd] ss:$16 sm:$0xc] %vm3_vm0, %v154_v13  }
  0x8e   :  { %238 = vst.msk [vmem:[%s548_s1 + $0xd] ss:$16 sm:$0x30] %vm3_vm0, %v154_v13   ;;  %239 = vst.msk [vmem:[%s548_s1 + $0xd] ss:$16 sm:$0xc0] %vm3_vm0, %v154_v13  }
  0x8f   :  { %240 = vst.msk [vmem:[%s548_s1 + $0xe] ss:$16 sm:$0x3] %vm3_vm0, %v166_v14   ;;  %241 = vst.msk [vmem:[%s548_s1 + $0xe] ss:$16 sm:$0xc] %vm3_vm0, %v166_v14  }
  0x90   :  { %242 = vst.msk [vmem:[%s548_s1 + $0xe] ss:$16 sm:$0x30] %vm3_vm0, %v166_v14   ;;  %243 = vst.msk [vmem:[%s548_s1 + $0xe] ss:$16 sm:$0xc0] %vm3_vm0, %v166_v14   ;;  %v178_v15 = vpop.permute.xlu0 %177  }
  0x91   :  { %244 = vst.msk [vmem:[%s548_s1 + $0xf] ss:$16 sm:$0x3] %vm3_vm0, %v178_v15   ;;  %245 = vst.msk [vmem:[%s548_s1 + $0xf] ss:$16 sm:$0xc] %vm3_vm0, %v178_v15  }
  0x92   :  { %246 = vst.msk [vmem:[%s548_s1 + $0xf] ss:$16 sm:$0x30] %vm3_vm0, %v178_v15   ;;  %247 = vst.msk [vmem:[%s548_s1 + $0xf] ss:$16 sm:$0xc0] %vm3_vm0, %v178_v15  }

// kernel: hiformer_v3_forward.39
= control target key start
LH: loop header
LB: loop body
LE: loop exit
PB: predicated region body
PF: predicated region fallthrough
CT: control target
= control target key end

     0   :  { %s3384_s24 = smov 0   ;;  %s3386_s25 = smov 0   ;;  %s3808_s0 = inlined_call_operand.vmem [shape: f32[2,4,64,12], index: 0, kind: input, shape index: {}]   ;;  %s3809_s1 = inlined_call_operand.vmem [shape: f32[3,9,64,64], index: 1, kind: input, shape index: {}]   ;;  %s3810_s2 = inlined_call_operand.vmem [shape: f32[4,1,12], index: 2, kind: input, shape index: {}]   ;;  %s3811_s3 = inlined_call_operand.vmem [shape: f32[64,1], index: 3, kind: input, shape index: {}]   ;;  %s3812_s4 = inlined_call_operand.vmem [shape: f32[64,1], index: 4, kind: input, shape index: {}]   ;;  %s3813_s5 = inlined_call_operand.vmem [shape: f32[64,1], index: 5, kind: input, shape index: {}]   ;;  %s3814_s6 = inlined_call_operand.vmem [shape: f32[64,1], index: 6, kind: input, shape index: {}]   ;;  %s3815_s7 = inlined_call_operand.vmem [shape: f32[2,2,64,3], index: 7, kind: output, shape index: {}]  }
   0x1   :  { %s3388_s26 = smov 0   ;;  %s3390_s27 = smov 0  }
   0x2   :  { %s3392_s28 = smov 0   ;;  %s3394_s29 = smov 0  }
   0x3   :  { %s3396_s30 = smov 0  }
   0x4 LB: > { %s29_s8 = sadd.s32 1, %s3320_s27  ;;  %s32_s9 = sadd.s32 1, %s3324_s28  ;;  %s3332_s30 = sphi %s3396_s30, %s17_s30   ;;  %s3328_s29 = sphi %s3394_s29, %s3823_s29   ;;  %s3324_s28 = sphi %s3392_s28, %s3822_s28   ;;  %s3320_s27 = sphi %s3390_s27, %s3821_s27   ;;  %s3316_s26 = sphi %s3388_s26, %s3820_s26   ;;  %s3312_s25 = sphi %s3386_s25, %s3819_s25   ;;  %s3308_s24 = sphi %s3384_s24, %s3818_s24  }
   0x5   : > { %p30_p0 = scmp.ge.s32.totalorder %s29_s8, 3  ;;  %p2287_p1 = scmp.ge.s32.totalorder %s3332_s30, 1 }
   0x6   : > { %p290_p2 = scmp.lt.s32.totalorder %s3332_s30, 13  ;;  %s36_s10 = sadd.s32 1, %s3328_s29 }
   0x7   : > { %s3825_s8 = smov (%p30_p0, %s29_s8), 0  ;;  %s3827_s9 = smov (!%p30_p0, %s32_s9), %s3324_s28 }
   0x8   : > { %p291_p3 = pnand %p2287_p1, %p290_p2  ;;  %p34_p4 = scmp.ge.s32.totalorder %s3827_s9, 2 }
   0x9   : > { %v380_v0 = vld [vmem:[%s3811_s3 + $0x10] sm:$0xff] (!%p291_p3)  ;;  %v378_v1 = vld [vmem:[%s3811_s3] sm:$0xff] (!%p291_p3)  ;;  %v3334_v2 = vmov (!%p291_p3), 0   ;;  %p341_p6 = scmp.lt.s32.totalorder (!%p291_p3), %s3316_s26, 1  ;;  %v381_v3 = vld [vmem:[%s3811_s3 + $0x18] sm:$0xff] (!%p291_p3)  ;;  %p363_p7 = scmp.lt.s32.totalorder (!%p291_p3), %s3312_s25, 1 }
   0xa   : > { %s3829_s9 = smov (%p34_p4, %s3827_s9), 0  ;;  %s3831_s10 = smov (!%p34_p4, %s36_s10), %s3328_s29 }
   0xb   : > { %p38_p5 = scmp.ge.s32.totalorder %s3831_s10, 2  ;;  %294 = sbr.rel (%p291_p3) target bundleno = 730 (0x2da), region = 48  ;;  %3115 = vset.pattern.permute.xlu1 (!%p291_p3), %v3334_v2  ;;  %3114 = vset.pattern.permute.xlu0 (!%p291_p3), %v3334_v2  ;;  %v379_v4 = vld [vmem:[%s3811_s3 + $0x8] sm:$0xff] (!%p291_p3)  ;;  %v382_v6 = vld [vmem:[%s3811_s3 + $0x20] sm:$0xff] (!%p291_p3)  ;;  %v385_v7 = vld [vmem:[%s3811_s3 + $0x38] sm:$0xff] (!%p291_p3) }
   0xc   : > { %398 = vperm.xlu1 (!%p291_p3), %3115, %v380_v0   ;;  %388 = vperm.xlu0 (!%p291_p3), %3114, %v378_v1   ;;  %v383_v5 = vld [vmem:[%s3811_s3 + $0x28] sm:$0xff] (!%p291_p3)  ;;  %v384_v8 = vld [vmem:[%s3811_s3 + $0x30] sm:$0xff] (!%p291_p3)  ;;  %v434_v10 = vld [vmem:[%s3812_s4] sm:$0xff] (!%p291_p3)  ;;  %p351_p8 = scmp.lt.s32.totalorder (!%p291_p3), %s3308_s24, 2  ;;  %p2296_p10 = scmp.ne.s32.totalorder (!%p291_p3), %s3308_s24, 0 }
   0xd   : > { %s3833_s10 = smov (%p38_p5, %s3831_s10), 0  ;;  %v435_v9 = vld [vmem:[%s3812_s4 + $0x8] sm:$0xff] (!%p291_p3)  ;;  %v437_v11 = vld [vmem:[%s3812_s4 + $0x18] sm:$0xff] (!%p291_p3)  ;;  %v436_v12 = vld [vmem:[%s3812_s4 + $0x10] sm:$0xff] (!%p291_p3) }
   0xe   : > { %3816 = sst [smem:[#allocation2_spill]] %s3833_s10  ;;  %v439_v13 = vld [vmem:[%s3812_s4 + $0x28] sm:$0xff] (!%p291_p3)  ;;  %v438_v14 = vld [vmem:[%s3812_s4 + $0x20] sm:$0xff] (!%p291_p3)  ;;  %v441_v15 = vld [vmem:[%s3812_s4 + $0x38] sm:$0xff] (!%p291_p3) }
   0xf   : > { %v440_v16 = vld [vmem:[%s3812_s4 + $0x30] sm:$0xff] (!%p291_p3)  ;;  %v499_v17 = vld [vmem:[%s3813_s5 + $0x8] sm:$0xff] (!%p291_p3)  ;;  %v498_v18 = vld [vmem:[%s3813_s5] sm:$0xff] (!%p291_p3) }
  0x10   : > { %403 = vperm.xlu1 (!%p291_p3), %3115, %v381_v3   ;;  %393 = vperm.xlu0 (!%p291_p3), %3114, %v379_v4   ;;  %v501_v19 = vld [vmem:[%s3813_s5 + $0x18] sm:$0xff] (!%p291_p3)  ;;  %v500_v20 = vld [vmem:[%s3813_s5 + $0x10] sm:$0xff] (!%p291_p3)  ;;  %v503_v21 = vld [vmem:[%s3813_s5 + $0x28] sm:$0xff] (!%p291_p3) }
  0x11   : > { %v502_v22 = vld [vmem:[%s3813_s5 + $0x20] sm:$0xff] (!%p291_p3)  ;;  %v505_v23 = vld [vmem:[%s3813_s5 + $0x38] sm:$0xff] (!%p291_p3)  ;;  %v504_v24 = vld [vmem:[%s3813_s5 + $0x30] sm:$0xff] (!%p291_p3) }
  0x12   : > { %s3835_s26 = smov (!%p341_p6, %s3316_s26), 1  ;;  %vm629_vm8 = vcmask (!%p2296_p10), 23552  }
  0x13   : > { %s2293_s23 = sshll.u32 %s3835_s26, 4  ;;  %s2289_s20 = sshll.u32 %s3835_s26, 5 }
  0x14   : > { %s364_s11 = scalar_select %p363_p7, %s3312_s25, 1  ;;  %413 = vperm.xlu1 %3115, %v383_v5   ;;  %408 = vperm.xlu0 %3114, %v382_v6  }
  0x15   : > { %s352_s14 = scalar_select %p351_p8, %s3308_s24, 2 }
  0x16   : > { %s2292_s16 = sshll.u32 %s364_s11, 3 }
  0x17   : > { %s367_s17 = sadd.s32 %s2293_s23, %s2292_s16  ;;  %s3047_s15 = smul.u32 576, %s352_s14 }
  0x18   : > { %s2294_s18 = sshll.u32 %s367_s17, 3  ;;  %423 = vperm.xlu1 %3115, %v385_v7   ;;  %418 = vperm.xlu0 %3114, %v384_v8  }
  0x19   : > { %s3466_s21 = scalar_lea.vmem %s3815_s7, %s2294_s18  ;;  %s3521_s10 = scalar_lea.vmem %s3809_s1, %s3047_s15 }
  0x1a   : > { %s340_s18 = sadd.s32 %s3308_s24, %s3312_s25 }
  0x1b   : > { %p343_p9 = scmp.lt.s32.totalorder %s340_s18, 3 }
  0x1c   : > { %449 = vperm.xlu1 %3115, %v435_v9   ;;  %444 = vperm.xlu0 %3114, %v434_v10  }
  0x1d   : > { %s3837_s18 = smov (!%p343_p9, %s340_s18), 3 }
  0x1e   : > { %s2288_s19 = sshll.u32 %s3837_s18, 3  ;;  %s359_s14 = scalar_lea.vmem %s3810_s2, %s3837_s18 }
  0x1f   : > { %s347_s22 = sadd.s32 %s2289_s20, %s2288_s19  ;;  %v2295_v56 = vld [vmem:[%s359_s14] ss:$0 sm:$0xff] }
  0x20   : > { %459 = vperm.xlu1 %3115, %v437_v11   ;;  %454 = vperm.xlu0 %3114, %v436_v12   ;;  %s2290_s12 = sshll.u32 %s347_s22, 3 }
  0x21   : > { %s3532_s11 = scalar_lea.vmem %s3808_s0, %s2290_s12 }
  0x22   : > { %v370_v39 = vld [vmem:[%s3532_s11] sm:$0xff]  ;;  %v371_v40 = vld [vmem:[%s3532_s11 + $0x8] sm:$0xff]  ;;  %v372_v45 = vld [vmem:[%s3532_s11 + $0x10] sm:$0xff] }
  0x23   : > { %v373_v46 = vld [vmem:[%s3532_s11 + $0x18] sm:$0xff]  ;;  %v375_v53 = vld [vmem:[%s3532_s11 + $0x28] sm:$0xff]  ;;  %v374_v54 = vld [vmem:[%s3532_s11 + $0x20] sm:$0xff] }
  0x24   : > { %469 = vperm.xlu1 %3115, %v439_v13   ;;  %464 = vperm.xlu0 %3114, %v438_v14   ;;  %v377_v4 = vld [vmem:[%s3532_s11 + $0x38] sm:$0xff]  ;;  %v376_v5 = vld [vmem:[%s3532_s11 + $0x30] sm:$0xff] }
  0x28   : > { %479 = vperm.xlu1 %3115, %v441_v15   ;;  %474 = vperm.xlu0 %3114, %v440_v16  }
  0x2c   : > { %513 = vperm.xlu1 %3115, %v499_v17   ;;  %508 = vperm.xlu0 %3114, %v498_v18  }
  0x30   : > { %523 = vperm.xlu1 %3115, %v501_v19   ;;  %518 = vperm.xlu0 %3114, %v500_v20  }
  0x34   : > { %533 = vperm.xlu1 %3115, %v503_v21   ;;  %528 = vperm.xlu0 %3114, %v502_v22  }
  0x38   : > { %543 = vperm.xlu1 %3115, %v505_v23   ;;  %538 = vperm.xlu0 %3114, %v504_v24  }
  0x8b   : > { %v399_v25 = vpop.permute.xlu1 %398  ;;  %v389_v26 = vpop.permute.xlu0 %388 }
  0x8c   : > { %v426_v41 = vmul.f32 %v389_v26, %v370_v39  ;;  %v428_v49 = vmul.f32 %v399_v25, %v372_v45  ;;  %v586_v39 = vld [vmem:[%s3814_s6 + $0x28] sm:$0xff] (!%p2296_p10) }
  0x8f   : > { %v404_v27 = vpop.permute.xlu1 %403  ;;  %v394_v28 = vpop.permute.xlu0 %393 }
  0x90   : > { %v427_v42 = vmul.f32 %v394_v28, %v371_v40  ;;  %v429_v50 = vmul.f32 %v404_v27, %v373_v46  ;;  %v585_v40 = vld [vmem:[%s3814_s6 + $0x20] sm:$0xff] (!%p2296_p10) }
  0x93   : > { %v414_v29 = vpop.permute.xlu1 %413  ;;  %v409_v30 = vpop.permute.xlu0 %408 }
  0x94   : > { %v431_v62 = vmul.f32 %v414_v29, %v375_v53  ;;  %v430_v63 = vmul.f32 %v409_v30, %v374_v54 }
  0x97   : > { %v424_v31 = vpop.permute.xlu1 %423  ;;  %v419_v32 = vpop.permute.xlu0 %418 }
  0x98   : > { %v433_v12 = vmul.f32 %v424_v31, %v377_v4  ;;  %v432_v13 = vmul.f32 %v419_v32, %v376_v5 }
  0x9b   : > { %v450_v33 = vpop.permute.xlu1 %449  ;;  %v445_v34 = vpop.permute.xlu0 %444 }
  0x9c   : > { %v483_v47 = vadd.f32 %v450_v33, %v427_v42  ;;  %v482_v48 = vadd.f32 %v445_v34, %v426_v41  ;;  %v583_v34 = vld [vmem:[%s3814_s6 + $0x10] sm:$0xff] (!%p2296_p10)  ;;  %v588_v41 = vld [vmem:[%s3814_s6 + $0x38] sm:$0xff] (!%p2296_p10) }
  0x9d   : > { %v587_v42 = vld [vmem:[%s3814_s6 + $0x30] sm:$0xff] (!%p2296_p10) }
  0x9e   : > { %vm491_vm0 = vcmp.ge.f32.partialorder %v483_v47, 0.0  ;;  %vm490_vm1 = vcmp.ge.f32.partialorder %v482_v48, 0.0 }
  0x9f   : > { %v460_v35 = vpop.permute.xlu1 %459  ;;  %v455_v36 = vpop.permute.xlu0 %454 }
  0xa0   : > { %v485_v58 = vadd.f32 %v460_v35, %v429_v50  ;;  %v484_v59 = vadd.f32 %v455_v36, %v428_v49  ;;  %v581_v35 = vld [vmem:[%s3814_s6] sm:$0xff] (!%p2296_p10)  ;;  %v3335_v36 = vmov (!%p2296_p10), 0  }
  0xa1   : > { %3117 = vset.pattern.permute.xlu1 (!%p2296_p10), %v3335_v36  ;;  %3116 = vset.pattern.permute.xlu0 (!%p2296_p10), %v3335_v36 }
  0xa2   : > { %vm493_vm2 = vcmp.ge.f32.partialorder %v485_v58, 0.0  ;;  %vm492_vm3 = vcmp.ge.f32.partialorder %v484_v59, 0.0  ;;  %601 = vperm.xlu1 (!%p2296_p10), %3117, %v583_v34   ;;  %591 = vperm.xlu0 (!%p2296_p10), %3116, %v581_v35  }
  0xa3   : > { %v470_v37 = vpop.permute.xlu1 %469  ;;  %v465_v38 = vpop.permute.xlu0 %464 }
  0xa4   : > { %v487_v8 = vadd.f32 %v470_v37, %v431_v62  ;;  %v486_v9 = vadd.f32 %v465_v38, %v430_v63  ;;  %v584_v37 = vld [vmem:[%s3814_s6 + $0x18] sm:$0xff] (!%p2296_p10)  ;;  %v582_v38 = vld [vmem:[%s3814_s6 + $0x8] sm:$0xff] (!%p2296_p10) }
  0xa6   : > { %vm495_vm4 = vcmp.ge.f32.partialorder %v487_v8, 0.0  ;;  %vm494_vm5 = vcmp.ge.f32.partialorder %v486_v9, 0.0  ;;  %606 = vperm.xlu1 (!%p2296_p10), %3117, %v584_v37   ;;  %596 = vperm.xlu0 (!%p2296_p10), %3116, %v582_v38  }
  0xa7   : > { %v480_v43 = vpop.permute.xlu1 %479  ;;  %v475_v44 = vpop.permute.xlu0 %474 }
  0xa8   : > { %v489_v20 = vadd.f32 %v480_v43, %v433_v12  ;;  %v488_v21 = vadd.f32 %v475_v44, %v432_v13 }
  0xaa   : > { %vm497_vm6 = vcmp.ge.f32.partialorder %v489_v20, 0.0  ;;  %vm496_vm7 = vcmp.ge.f32.partialorder %v488_v21, 0.0  ;;  %616 = vperm.xlu1 (!%p2296_p10), %3117, %v586_v39   ;;  %611 = vperm.xlu0 (!%p2296_p10), %3116, %v585_v40  }
  0xab   : > { %v514_v51 = vpop.permute.xlu1 %513  ;;  %v509_v52 = vpop.permute.xlu0 %508 }
  0xac   : > { %v547_v55 = vmul.f32 %v514_v51, %v483_v47  ;;  %v546_v57 = vmul.f32 %v509_v52, %v482_v48 }
  0xae   : > { %v555_v60 = vsel %vm491_vm0, %v483_v47, %v547_v55  ;;  %v554_v61 = vsel %vm490_vm1, %v482_v48, %v546_v57  ;;  %626 = vperm.xlu1 (!%p2296_p10), %3117, %v588_v41   ;;  %621 = vperm.xlu0 (!%p2296_p10), %3116, %v587_v42  }
  0xaf   : > { %v3544_v0 = vmul.f32 %v2295_v56, %v555_v60  ;;  %v3546_v1 = vmul.f32 %v2295_v56, %v554_v61  ;;  %v524_v2 = vpop.permute.xlu1 %523  ;;  %v519_v3 = vpop.permute.xlu0 %518 }
  0xb0   : > { %v549_v6 = vmul.f32 %v524_v2, %v485_v58  ;;  %v548_v7 = vmul.f32 %v519_v3, %v484_v59 }
  0xb2   : > { %v557_v10 = vsel %vm493_vm2, %v485_v58, %v549_v6  ;;  %v556_v11 = vsel %vm492_vm3, %v484_v59, %v548_v7 }
  0xb3   : > { %v3550_v14 = vmul.f32 %v2295_v56, %v557_v10  ;;  %v3552_v15 = vmul.f32 %v2295_v56, %v556_v11  ;;  %v534_v16 = vpop.permute.xlu1 %533  ;;  %v529_v17 = vpop.permute.xlu0 %528 }
  0xb4   : > { %v551_v18 = vmul.f32 %v534_v16, %v487_v8  ;;  %v550_v19 = vmul.f32 %v529_v17, %v486_v9 }
  0xb5   : > { %580 = sbr.rel (%p2296_p10) target bundleno = 303 (0x12f), region = 52 }
  0xb6   : > { %v559_v22 = vsel %vm495_vm4, %v487_v8, %v551_v18  ;;  %v558_v23 = vsel %vm494_vm5, %v486_v9, %v550_v19 }
  0xb7   : > { %v3554_v24 = vmul.f32 %v2295_v56, %v559_v22  ;;  %v3556_v25 = vmul.f32 %v2295_v56, %v558_v23  ;;  %v544_v26 = vpop.permute.xlu1 %543  ;;  %v539_v27 = vpop.permute.xlu0 %538 }
  0xb8   : > { %v553_v28 = vmul.f32 %v544_v26, %v489_v20  ;;  %v552_v29 = vmul.f32 %v539_v27, %v488_v21 }
  0xba   : > { %v561_v30 = vsel %vm497_vm6, %v489_v20, %v553_v28  ;;  %v560_v31 = vsel %vm496_vm7, %v488_v21, %v552_v29 }
  0xbb   : > { %v3558_v32 = vmul.f32 %v2295_v56, %v561_v30  ;;  %v3560_v33 = vmul.f32 %v2295_v56, %v560_v31 }
 0x121   : > { %v602_v43 = vpop.permute.xlu1 %601  ;;  %v592_v44 = vpop.permute.xlu0 %591 }
 0x122   : > { %632 = vst.msk [vmem:[%s3466_s21 + $0x10] sm:$0xff] %vm629_vm8, %v602_v43  ;;  %630 = vst.msk [vmem:[%s3466_s21] sm:$0xff] %vm629_vm8, %v592_v44 }
 0x125   : > { %v607_v45 = vpop.permute.xlu1 %606  ;;  %v597_v46 = vpop.permute.xlu0 %596 }
 0x126   : > { %633 = vst.msk [vmem:[%s3466_s21 + $0x18] sm:$0xff] %vm629_vm8, %v607_v45  ;;  %631 = vst.msk [vmem:[%s3466_s21 + $0x8] sm:$0xff] %vm629_vm8, %v597_v46 }
 0x129   : > { %v617_v47 = vpop.permute.xlu1 %616  ;;  %v612_v48 = vpop.permute.xlu0 %611 }
 0x12a   : > { %635 = vst.msk [vmem:[%s3466_s21 + $0x28] sm:$0xff] %vm629_vm8, %v617_v47  ;;  %634 = vst.msk [vmem:[%s3466_s21 + $0x20] sm:$0xff] %vm629_vm8, %v612_v48 }
 0x12d   : > { %v627_v49 = vpop.permute.xlu1 %626  ;;  %v622_v50 = vpop.permute.xlu0 %621 }
 0x12e   : > { %637 = vst.msk [vmem:[%s3466_s21 + $0x38] sm:$0xff] %vm629_vm8, %v627_v49  ;;  %636 = vst.msk [vmem:[%s3466_s21 + $0x30] sm:$0xff] %vm629_vm8, %v622_v50 }
 0x12f PF: > { %v3118_v51 = vpack.i.bf16 %v3544_v0, %v3546_v1  ;;  %v3128_v52 = vpack.i.bf16 %v3550_v14, %v3552_v15  ;;  %s3336_s16 = smov 127   ;;  %s3337_s17 = smov 124   ;;  %v3138_v53 = vpack.i.bf16 %v3554_v24, %v3556_v25  ;;  %v2297_v54 = vld [vmem:[%s3521_s10 + $0x40] sm:$0xff]  ;;  %vm687_vm9 = vcmask 523264   ;;  %v2298_v38 = vld [vmem:[%s3521_s10 + $0x48] sm:$0xff]  ;;  %v2300_v44 = vld [vmem:[%s3521_s10 + $0x58] sm:$0xff] }
 0x130   : > { %2595 = vmatprep.mubr.msk.f32.mxu1 %vm687_vm9, %v2297_v54  ;;  %v3148_v55 = vpack.i.bf16 %v3558_v32, %v3560_v33  ;;  %v2353_v56 = vld [vmem:[%s3521_s10 + $0x100] sm:$0xff]  ;;  %s3338_s18 = smov 123   ;;  %s3339_s19 = smov 126   ;;  %v2847_v31 = vpack.c.bf16 %v3544_v0, %v3546_v1  ;;  %v2851_v39 = vpack.c.bf16 %v3550_v14, %v3552_v15  ;;  %v2299_v0 = vld [vmem:[%s3521_s10 + $0x50] sm:$0xff]  ;;  %v2354_v45 = vld [vmem:[%s3521_s10 + $0x108] sm:$0xff]  ;;  %v2855_v49 = vpack.c.bf16 %v3554_v24, %v3556_v25 }
 0x131   : > { %3119 = vrot.lane.b32.xlu0 %v3118_v51, %s3336_s16  ;;  %3129 = vrot.lane.b32.xlu1 %v3128_v52, %s3336_s16  ;;  %s3340_s20 = smov 122   ;;  %s3341_s24 = smov 125   ;;  %v2301_v47 = vld [vmem:[%s3521_s10 + $0x60] sm:$0xff]  ;;  %v2355_v48 = vld [vmem:[%s3521_s10 + $0x110] sm:$0xff]  ;;  %v2859_v24 = vpack.c.bf16 %v3558_v32, %v3560_v33  ;;  %vm2152_vm10 = vcmask 23552  }
 0x132   : > { %2707 = vmatprep.mubr.msk.f32.mxu0 %vm687_vm9, %v2353_v56  ;;  %s3342_s22 = smov 121   ;;  %s3343_s12 = smov 120   ;;  %v2304_v32 = vld [vmem:[%s3521_s10 + $0x78] sm:$0xff]  ;;  %v2358_v33 = vld [vmem:[%s3521_s10 + $0x128] sm:$0xff] }
 0x135   : > { %3124 = vrot.lane.b32.xlu0 %v3118_v51, %s3337_s17  ;;  %3134 = vrot.lane.b32.xlu1 %v3128_v52, %s3337_s17 }
 0x139   : > { %3139 = vrot.lane.b32.xlu0 %v3138_v53, %s3336_s16  ;;  %3144 = vrot.lane.b32.xlu1 %v3138_v53, %s3337_s17 }
 0x13d   : > { %3149 = vrot.lane.b32.xlu0 %v3148_v55, %s3336_s16  ;;  %3154 = vrot.lane.b32.xlu1 %v3148_v55, %s3337_s17 }
 0x141   : > { %3159 = vrot.lane.b32.xlu0 %v3118_v51, %s3338_s18  ;;  %3164 = vrot.lane.b32.xlu1 %v3128_v52, %s3338_s18 }
 0x145   : > { %3169 = vrot.lane.b32.xlu0 %v3138_v53, %s3338_s18  ;;  %3174 = vrot.lane.b32.xlu1 %v3148_v55, %s3338_s18 }
 0x149   : > { %3179 = vrot.lane.b32.xlu0 %v3118_v51, %s3339_s19  ;;  %3184 = vrot.lane.b32.xlu1 %v3118_v51, %s3340_s20 }
 0x14d   : > { %3189 = vrot.lane.b32.xlu0 %v3128_v52, %s3339_s19  ;;  %3194 = vrot.lane.b32.xlu1 %v3128_v52, %s3340_s20 }
 0x151   : > { %3199 = vrot.lane.b32.xlu0 %v3138_v53, %s3339_s19  ;;  %3204 = vrot.lane.b32.xlu1 %v3138_v53, %s3340_s20 }
 0x155   : > { %3209 = vrot.lane.b32.xlu0 %v3148_v55, %s3339_s19  ;;  %3214 = vrot.lane.b32.xlu1 %v3148_v55, %s3340_s20 }
 0x159   : > { %3219 = vrot.lane.b32.xlu0 %v3118_v51, %s3341_s24  ;;  %3224 = vrot.lane.b32.xlu1 %v3118_v51, %s3342_s22 }
 0x15d   : > { %3229 = vrot.lane.b32.xlu0 %v3128_v52, %s3341_s24  ;;  %3234 = vrot.lane.b32.xlu1 %v3128_v52, %s3342_s22 }
 0x161   : > { %3239 = vrot.lane.b32.xlu0 %v3138_v53, %s3341_s24  ;;  %3244 = vrot.lane.b32.xlu1 %v3138_v53, %s3342_s22 }
 0x165   : > { %3249 = vrot.lane.b32.xlu0 %v3148_v55, %s3341_s24  ;;  %3254 = vrot.lane.b32.xlu1 %v3148_v55, %s3342_s22 }
 0x169   : > { %3259 = vrot.lane.b32.xlu0 %v3118_v51, %s3343_s12  ;;  %3264 = vrot.lane.b32.xlu1 %v3128_v52, %s3343_s12  ;;  %v2302_v52 = vld [vmem:[%s3521_s10 + $0x68] sm:$0xff] }
 0x16d   : > { %3269 = vrot.lane.b32.xlu0 %v3138_v53, %s3343_s12  ;;  %3274 = vrot.lane.b32.xlu1 %v3148_v55, %s3343_s12  ;;  %v2356_v53 = vld [vmem:[%s3521_s10 + $0x118] sm:$0xff] }
 0x1a3   : > { %v3120_v57 = vpop.permute.xlu0 %3119  ;;  %v3130_v58 = vpop.permute.xlu1 %3129 }
 0x1a4   : > { %v3122_v59 = vunpack.i.h.bf16 %v3120_v57  ;;  %v3121_v60 = vunpack.i.l.bf16 %v3120_v57  ;;  %v3132_v61 = vunpack.i.h.bf16 %v3130_v58  ;;  %v3131_v62 = vunpack.i.l.bf16 %v3130_v58  ;;  %v2303_v58 = vld [vmem:[%s3521_s10 + $0x70] sm:$0xff] }
 0x1a6   : > { %v2835_v63 = vpack.c.bf16 %v3132_v61, %v3131_v62  ;;  %v2831_v2 = vpack.c.bf16 %v3122_v59, %v3121_v60  ;;  %v2357_v59 = vld [vmem:[%s3521_s10 + $0x120] sm:$0xff] }
 0x1a7   : > { %v3125_v3 = vpop.permute.xlu0 %3124  ;;  %v3135_v4 = vpop.permute.xlu1 %3134 }
 0x1a8   : > { %v3127_v5 = vunpack.i.h.bf16 %v3125_v3  ;;  %v3126_v6 = vunpack.i.l.bf16 %v3125_v3  ;;  %2832 = vmatprep.subr.bf16.mxu1 %v2831_v2  ;;  %v3137_v7 = vunpack.i.h.bf16 %v3135_v4  ;;  %v3136_v8 = vunpack.i.l.bf16 %v3135_v4 }
 0x1a9   : > { %2834 = vmatpush3.bf16.msra.mxu1 %v2831_v2 }
 0x1aa   : > { %v2899_v9 = vpack.c.bf16 %v3137_v7, %v3136_v8  ;;  %2836 = vmatprep.subr.bf16.mxu1 %v2835_v63  ;;  %v2895_v10 = vpack.c.bf16 %v3127_v5, %v3126_v6  ;;  %v638_v6 = vld [vmem:[%s3521_s10] sm:$0xff]  ;;  %v2359_v7 = vld [vmem:[%s3521_s10 + $0x130] sm:$0xff] }
 0x1ab   : > { %v3140_v11 = vpop.permute.xlu0 %3139  ;;  %v3145_v12 = vpop.permute.xlu1 %3144 }
 0x1ac   : > { %v3142_v13 = vunpack.i.h.bf16 %v3140_v11  ;;  %v3141_v16 = vunpack.i.l.bf16 %v3140_v11  ;;  %2896 = vmatprep.subr.bf16.mxu0 %v2895_v10  ;;  %v3147_v17 = vunpack.i.h.bf16 %v3145_v12  ;;  %v3146_v18 = vunpack.i.l.bf16 %v3145_v12  ;;  %v2360_v11 = vld [vmem:[%s3521_s10 + $0x138] sm:$0xff] }
 0x1ad   : > { %2838 = vmatpush3.bf16.msra.mxu1 %v2835_v63  ;;  %2898 = vmatpush3.bf16.msra.mxu0 %v2895_v10  ;;  %v639_v10 = vld [vmem:[%s3521_s10 + $0x8] sm:$0xff] }
 0x1ae   : > { %v2839_v19 = vpack.c.bf16 %v3142_v13, %v3141_v16  ;;  %v2903_v20 = vpack.c.bf16 %v3147_v17, %v3146_v18  ;;  %2900 = vmatprep.subr.bf16.mxu0 %v2899_v9 }
 0x1af   : > { %v3150_v21 = vpop.permute.xlu0 %3149  ;;  %v3155_v22 = vpop.permute.xlu1 %3154 }
 0x1b0   : > { %v3152_v23 = vunpack.i.h.bf16 %v3150_v21  ;;  %v3151_v26 = vunpack.i.l.bf16 %v3150_v21  ;;  %2840 = vmatprep.subr.bf16.mxu1 %v2839_v19  ;;  %v3157_v27 = vunpack.i.h.bf16 %v3155_v22  ;;  %v3156_v28 = vunpack.i.l.bf16 %v3155_v22  ;;  %v2369_v21 = vld [vmem:[%s3521_s10 + $0x140] sm:$0xff] }
 0x1b1   : > { %2842 = vmatpush3.bf16.msra.mxu1 %v2839_v19  ;;  %2902 = vmatpush3.bf16.msra.mxu0 %v2899_v9 }
 0x1b2   : > { %v2843_v29 = vpack.c.bf16 %v3152_v23, %v3151_v26  ;;  %v2907_v30 = vpack.c.bf16 %v3157_v27, %v3156_v28  ;;  %2904 = vmatprep.subr.bf16.mxu0 %v2903_v20  ;;  %v641_v26 = vld [vmem:[%s3521_s10 + $0x18] sm:$0xff]  ;;  %v2370_v27 = vld [vmem:[%s3521_s10 + $0x148] sm:$0xff] }
 0x1b3   : > { %v3160_v34 = vpop.permute.xlu0 %3159  ;;  %v3165_v35 = vpop.permute.xlu1 %3164 }
 0x1b4   : > { %2844 = vmatprep.subr.bf16.mxu1 %v2843_v29  ;;  %v3162_v36 = vunpack.i.h.bf16 %v3160_v34  ;;  %v3161_v37 = vunpack.i.l.bf16 %v3160_v34  ;;  %v3167_v41 = vunpack.i.h.bf16 %v3165_v35  ;;  %v3166_v42 = vunpack.i.l.bf16 %v3165_v35 }
 0x1b5   : > { %2846 = vmatpush3.bf16.msra.mxu1 %v2843_v29  ;;  %2906 = vmatpush3.bf16.msra.mxu0 %v2903_v20  ;;  %v640_v20 = vld [vmem:[%s3521_s10 + $0x10] sm:$0xff] }
 0x1b6   : > { %2848 = vmatprep.subr.bf16.mxu1 %v2847_v31  ;;  %2908 = vmatprep.subr.bf16.mxu0 %v2907_v30  ;;  %v2911_v40 = vpack.c.bf16 %v3162_v36, %v3161_v37  ;;  %v2915_v14 = vpack.c.bf16 %v3167_v41, %v3166_v42  ;;  %v642_v36 = vld [vmem:[%s3521_s10 + $0x20] sm:$0xff]  ;;  %v2371_v37 = vld [vmem:[%s3521_s10 + $0x150] sm:$0xff]  ;;  %v2372_v41 = vld [vmem:[%s3521_s10 + $0x158] sm:$0xff] }
 0x1b7   : > { %v3170_v1 = vpop.permute.xlu0 %3169  ;;  %v3175_v43 = vpop.permute.xlu1 %3174 }
 0x1b8   : > { %2596 = vmatmul.mubr.msk.f32.vlgmr.msra.gmra.mrb[0].mxu1 %vm687_vm9, %v2298_v38  ;;  %v3172_v15 = vunpack.i.h.bf16 %v3170_v1  ;;  %v3171_v46 = vunpack.i.l.bf16 %v3170_v1  ;;  %v3177_v54 = vunpack.i.h.bf16 %v3175_v43  ;;  %v3176_v55 = vunpack.i.l.bf16 %v3175_v43 }
 0x1b9   : > { %2850 = vmatpush3.bf16.msra.mxu1 %v2847_v31  ;;  %2910 = vmatpush3.bf16.msra.mxu0 %v2907_v30 }
 0x1ba   : > { %2598 = vmatprep.mubr.msk.f32.mxu1 %vm687_vm9, %v2299_v0  ;;  %2852 = vmatprep.subr.bf16.mxu1 %v2851_v39  ;;  %v2919_v25 = vpack.c.bf16 %v3172_v15, %v3171_v46  ;;  %v2923_v2 = vpack.c.bf16 %v3177_v54, %v3176_v55  ;;  %v2373_v15 = vld [vmem:[%s3521_s10 + $0x160] sm:$0xff]  ;;  %v2375_v55 = vld [vmem:[%s3521_s10 + $0x170] sm:$0xff] }
 0x1bb   : > { %2912 = vmatprep.subr.bf16.mxu0 %v2911_v40  ;;  %v3180_v50 = vpop.permute.xlu0 %3179  ;;  %v3185_v51 = vpop.permute.xlu1 %3184 }
 0x1bc   : > { %2599 = vmatmul.mubr.msk.f32.gmra.mrb[2].mxu1 %vm687_vm9, %v2300_v44  ;;  %2708 = vmatmul.mubr.msk.f32.vlgmr.msra.gmra.mrb[0].mxu0 %vm687_vm9, %v2354_v45  ;;  %v3182_v56 = vunpack.i.h.bf16 %v3180_v50  ;;  %v3181_v57 = vunpack.i.l.bf16 %v3180_v50  ;;  %v3187_v62 = vunpack.i.h.bf16 %v3185_v51  ;;  %v3186_v63 = vunpack.i.l.bf16 %v3185_v51 }
 0x1bd   : > { %2854 = vmatpush3.bf16.msra.mxu1 %v2851_v39  ;;  %2914 = vmatpush3.bf16.msra.mxu0 %v2911_v40  ;;  %v643_v40 = vld [vmem:[%s3521_s10 + $0x28] sm:$0xff] }
 0x1be   : > { %2601 = vmatprep.mubr.msk.f32.mxu1 %vm687_vm9, %v2301_v47  ;;  %2710 = vmatprep.mubr.msk.f32.mxu0 %vm687_vm9, %v2355_v48  ;;  %v2863_v3 = vpack.c.bf16 %v3182_v56, %v3181_v57  ;;  %v2927_v12 = vpack.c.bf16 %v3187_v62, %v3186_v63  ;;  %v645_v48 = vld [vmem:[%s3521_s10 + $0x38] sm:$0xff] }
 0x1bf   : > { %2856 = vmatprep.subr.bf16.mxu1 %v2855_v49  ;;  %2916 = vmatprep.subr.bf16.mxu0 %v2915_v14  ;;  %v3190_v60 = vpop.permute.xlu0 %3189  ;;  %v3195_v61 = vpop.permute.xlu1 %3194 }
 0x1c0   : > { %2602 = vmatmul.mubr.msk.f32.gmra.mrb[4].mxu1 %vm687_vm9, %v2302_v52  ;;  %2711 = vmatmul.mubr.msk.f32.gmra.mrb[2].mxu0 %vm687_vm9, %v2356_v53  ;;  %v3192_v4 = vunpack.i.h.bf16 %v3190_v60  ;;  %v3191_v5 = vunpack.i.l.bf16 %v3190_v60  ;;  %v3197_v13 = vunpack.i.h.bf16 %v3195_v61  ;;  %v3196_v17 = vunpack.i.l.bf16 %v3195_v61 }
 0x1c1   : > { %2858 = vmatpush3.bf16.msra.mxu1 %v2855_v49  ;;  %2918 = vmatpush3.bf16.msra.mxu0 %v2915_v14  ;;  %v644_v14 = vld [vmem:[%s3521_s10 + $0x30] sm:$0xff]  ;;  %v2374_v49 = vld [vmem:[%s3521_s10 + $0x168] sm:$0xff] }
 0x1c2   : > { %2604 = vmatprep.mubr.msk.f32.mxu1 %vm687_vm9, %v2303_v58  ;;  %2713 = vmatprep.mubr.msk.f32.mxu0 %vm687_vm9, %v2357_v59  ;;  %v2867_v16 = vpack.c.bf16 %v3192_v4, %v3191_v5  ;;  %v2931_v30 = vpack.c.bf16 %v3197_v13, %v3196_v17  ;;  %v2322_v58 = vld [vmem:[%s3521_s10 + $0x88] sm:$0xff]  ;;  %v2376_v59 = vld [vmem:[%s3521_s10 + $0x178] sm:$0xff]  ;;  %v2387_v17 = vld [vmem:[%s3521_s10 + $0x190] sm:$0xff] }
 0x1c3   : > { %2860 = vmatprep.subr.bf16.mxu1 %v2859_v24  ;;  %2920 = vmatprep.subr.bf16.mxu0 %v2919_v25  ;;  %v3200_v8 = vpop.permute.xlu0 %3199  ;;  %v3205_v9 = vpop.permute.xlu1 %3204  ;;  %v2324_v5 = vld [vmem:[%s3521_s10 + $0x98] sm:$0xff] }
 0x1c4   : > { %2605 = vmatmul.mubr.msk.f32.gmra.mrb[6].mxu1 %vm687_vm9, %v2304_v32  ;;  %2714 = vmatmul.mubr.msk.f32.gmra.mrb[4].mxu0 %vm687_vm9, %v2358_v33  ;;  %v3202_v18 = vunpack.i.h.bf16 %v3200_v8  ;;  %v3201_v19 = vunpack.i.l.bf16 %v3200_v8  ;;  %v3207_v28 = vunpack.i.h.bf16 %v3205_v9  ;;  %v3206_v29 = vunpack.i.l.bf16 %v3205_v9 }
 0x1c5   : > { %2862 = vmatpush3.bf16.msra.mxu1 %v2859_v24  ;;  %2922 = vmatpush3.bf16.msra.mxu0 %v2919_v25  ;;  %v2321_v25 = vld [vmem:[%s3521_s10 + $0x80] sm:$0xff] }
 0x1c6   : > { %2623 = vmatprep.mubr.msk.f32.mxu1 %vm687_vm9, %v638_v6  ;;  %2716 = vmatprep.mubr.msk.f32.mxu0 %vm687_vm9, %v2359_v7  ;;  %v2871_v31 = vpack.c.bf16 %v3202_v18, %v3201_v19  ;;  %v2935_v42 = vpack.c.bf16 %v3207_v28, %v3206_v29  ;;  %v2386_v6 = vld [vmem:[%s3521_s10 + $0x188] sm:$0xff]  ;;  %v2327_v29 = vld [vmem:[%s3521_s10 + $0xb0] sm:$0xff] }
 0x1c7   : > { %2864 = vmatprep.subr.bf16.mxu1 %v2863_v3  ;;  %2924 = vmatprep.subr.bf16.mxu0 %v2923_v2  ;;  %v3210_v22 = vpop.permute.xlu0 %3209  ;;  %v3215_v23 = vpop.permute.xlu1 %3214  ;;  %v2326_v19 = vld [vmem:[%s3521_s10 + $0xa8] sm:$0xff] }
 0x1c8   : > { %2624 = vmatmul.mubr.msk.f32.vlgmr.msra.gmra.mrb[0].mxu1 %vm687_vm9, %v639_v10  ;;  %2717 = vmatmul.mubr.msk.f32.gmra.mrb[6].mxu0 %vm687_vm9, %v2360_v11  ;;  %v3212_v34 = vunpack.i.h.bf16 %v3210_v22  ;;  %v3211_v35 = vunpack.i.l.bf16 %v3210_v22  ;;  %v3217_v0 = vunpack.i.h.bf16 %v3215_v23  ;;  %v3216_v43 = vunpack.i.l.bf16 %v3215_v23 }
 0x1c9   : > { %2866 = vmatpush3.bf16.msra.mxu1 %v2863_v3  ;;  %2926 = vmatpush3.bf16.msra.mxu0 %v2923_v2  ;;  %v2323_v2 = vld [vmem:[%s3521_s10 + $0x90] sm:$0xff]  ;;  %v2385_v3 = vld [vmem:[%s3521_s10 + $0x180] sm:$0xff] }
 0x1ca   : > { %2626 = vmatprep.mubr.msk.f32.mxu1 %vm687_vm9, %v640_v20  ;;  %2735 = vmatprep.mubr.msk.f32.mxu0 %vm687_vm9, %v2369_v21  ;;  %v2875_v1 = vpack.c.bf16 %v3212_v34, %v3211_v35  ;;  %v2939_v52 = vpack.c.bf16 %v3217_v0, %v3216_v43  ;;  %v2388_v20 = vld [vmem:[%s3521_s10 + $0x198] sm:$0xff]  ;;  %v2390_v35 = vld [vmem:[%s3521_s10 + $0x1a8] sm:$0xff] }
 0x1cb   : > { %2868 = vmatprep.subr.bf16.mxu1 %v2867_v16  ;;  %2928 = vmatprep.subr.bf16.mxu0 %v2927_v12  ;;  %v3220_v38 = vpop.permute.xlu0 %3219  ;;  %v3225_v39 = vpop.permute.xlu1 %3224  ;;  %v2328_v34 = vld [vmem:[%s3521_s10 + $0xb8] sm:$0xff]  ;;  %v2338_v0 = vld [vmem:[%s3521_s10 + $0xc8] sm:$0xff] }
 0x1cc   : > { %2627 = vmatmul.mubr.msk.f32.gmra.mrb[2].mxu1 %vm687_vm9, %v641_v26  ;;  %2736 = vmatmul.mubr.msk.f32.vlgmr.msra.gmra.mrb[0].mxu0 %vm687_vm9, %v2370_v27  ;;  %v3222_v44 = vunpack.i.h.bf16 %v3220_v38  ;;  %v3221_v45 = vunpack.i.l.bf16 %v3220_v38  ;;  %v3227_v50 = vunpack.i.h.bf16 %v3225_v39  ;;  %v3226_v51 = vunpack.i.l.bf16 %v3225_v39 }
 0x1cd   : > { %2870 = vmatpush3.bf16.msra.mxu1 %v2867_v16  ;;  %2930 = vmatpush3.bf16.msra.mxu0 %v2927_v12  ;;  %v2325_v16 = vld [vmem:[%s3521_s10 + $0xa0] sm:$0xff] }
 0x1ce   : > { %2629 = vmatprep.mubr.msk.f32.mxu1 %vm687_vm9, %v642_v36  ;;  %2738 = vmatprep.mubr.msk.f32.mxu0 %vm687_vm9, %v2371_v37  ;;  %v2879_v53 = vpack.c.bf16 %v3222_v44, %v3221_v45  ;;  %v2943_v60 = vpack.c.bf16 %v3227_v50, %v3226_v51 }
 0x1cf   : > { %2872 = vmatprep.subr.bf16.mxu1 %v2871_v31  ;;  %2932 = vmatprep.subr.bf16.mxu0 %v2931_v30  ;;  %v3230_v46 = vpop.permute.xlu0 %3229  ;;  %v3235_v47 = vpop.permute.xlu1 %3234 }
 0x1d0   : > { %2630 = vmatmul.mubr.msk.f32.gmra.mrb[4].mxu1 %vm687_vm9, %v643_v40  ;;  %2739 = vmatmul.mubr.msk.f32.gmra.mrb[2].mxu0 %vm687_vm9, %v2372_v41  ;;  %v3232_v54 = vunpack.i.h.bf16 %v3230_v46  ;;  %v3231_v24 = vunpack.i.l.bf16 %v3230_v46  ;;  %v3237_v61 = vunpack.i.h.bf16 %v3235_v47  ;;  %v3236_v33 = vunpack.i.l.bf16 %v3235_v47  ;;  %v2337_v40 = vld [vmem:[%s3521_s10 + $0xc0] sm:$0xff]  ;;  %v2391_v41 = vld [vmem:[%s3521_s10 + $0x1b0] sm:$0xff]  ;;  %v2340_v47 = vld [vmem:[%s3521_s10 + $0xd8] sm:$0xff] }
 0x1d1   : > { %2874 = vmatpush3.bf16.msra.mxu1 %v2871_v31  ;;  %2934 = vmatpush3.bf16.msra.mxu0 %v2931_v30  ;;  %v2389_v30 = vld [vmem:[%s3521_s10 + $0x1a0] sm:$0xff] }
 0x1d2   : > { %2632 = vmatprep.mubr.msk.f32.mxu1 %vm687_vm9, %v644_v14  ;;  %2741 = vmatprep.mubr.msk.f32.mxu0 %vm687_vm9, %v2373_v15  ;;  %v2883_v32 = vpack.c.bf16 %v3232_v54, %v3231_v24  ;;  %v2947_v10 = vpack.c.bf16 %v3237_v61, %v3236_v33  ;;  %v2339_v14 = vld [vmem:[%s3521_s10 + $0xd0] sm:$0xff]  ;;  %v2401_v15 = vld [vmem:[%s3521_s10 + $0x1c0] sm:$0xff]  ;;  %v2342_v54 = vld [vmem:[%s3521_s10 + $0xe8] sm:$0xff] }
 0x1d3   : > { %2876 = vmatprep.subr.bf16.mxu1 %v2875_v1  ;;  %2936 = vmatprep.subr.bf16.mxu0 %v2935_v42  ;;  %v3240_v56 = vpop.permute.xlu0 %3239  ;;  %v3245_v57 = vpop.permute.xlu1 %3244  ;;  %v2404_v24 = vld [vmem:[%s3521_s10 + $0x1d8] sm:$0xff]  ;;  %v2417_v33 = vld [vmem:[%s3521_s10 + $0x200] sm:$0xff] }
 0x1d4   : > { %2633 = vmatmul.mubr.msk.f32.gmra.mrb[6].mxu1 %vm687_vm9, %v645_v48  ;;  %2742 = vmatmul.mubr.msk.f32.gmra.mrb[4].mxu0 %vm687_vm9, %v2374_v49  ;;  %v3242_v62 = vunpack.i.h.bf16 %v3240_v56  ;;  %v3241_v63 = vunpack.i.l.bf16 %v3240_v56  ;;  %v3247_v7 = vunpack.i.h.bf16 %v3245_v57  ;;  %v3246_v8 = vunpack.i.l.bf16 %v3245_v57  ;;  %v2402_v48 = vld [vmem:[%s3521_s10 + $0x1c8] sm:$0xff]  ;;  %v2405_v56 = vld [vmem:[%s3521_s10 + $0x1e0] sm:$0xff]  ;;  %v2344_v57 = vld [vmem:[%s3521_s10 + $0xf8] sm:$0xff] }
 0x1d5   : > { %2878 = vmatpush3.bf16.msra.mxu1 %v2875_v1  ;;  %2938 = vmatpush3.bf16.msra.mxu0 %v2935_v42  ;;  %v2392_v1 = vld [vmem:[%s3521_s10 + $0x1b8] sm:$0xff] }
 0x1d6   : > { %2651 = vmatprep.mubr.msk.f32.mxu1 %vm687_vm9, %v2321_v25  ;;  %2744 = vmatprep.mubr.msk.f32.mxu0 %vm687_vm9, %v2375_v55  ;;  %v2887_v11 = vpack.c.bf16 %v3242_v62, %v3241_v63  ;;  %v2951_v21 = vpack.c.bf16 %v3247_v7, %v3246_v8  ;;  %v2343_v55 = vld [vmem:[%s3521_s10 + $0xf0] sm:$0xff]  ;;  %v2408_v61 = vld [vmem:[%s3521_s10 + $0x1f8] sm:$0xff]  ;;  %v2418_v63 = vld [vmem:[%s3521_s10 + $0x208] sm:$0xff] }
 0x1d7   : > { %2880 = vmatprep.subr.bf16.mxu1 %v2879_v53  ;;  %2940 = vmatprep.subr.bf16.mxu0 %v2939_v52  ;;  %v3250_v4 = vpop.permute.xlu0 %3249  ;;  %v3255_v9 = vpop.permute.xlu1 %3254  ;;  %v2423_v62 = vld [vmem:[%s3521_s10 + $0x230] sm:$0xff] }
 0x1d8   : > { %2652 = vmatmul.mubr.msk.f32.vlgmr.msra.gmra.mrb[0].mxu1 %vm687_vm9, %v2322_v58  ;;  %2745 = vmatmul.mubr.msk.f32.gmra.mrb[6].mxu0 %vm687_vm9, %v2376_v59  ;;  %v3252_v12 = vunpack.i.h.bf16 %v3250_v4  ;;  %v3251_v13 = vunpack.i.l.bf16 %v3250_v4  ;;  %v3257_v22 = vunpack.i.h.bf16 %v3255_v9  ;;  %v3256_v26 = vunpack.i.l.bf16 %v3255_v9  ;;  %v2406_v58 = vld [vmem:[%s3521_s10 + $0x1e8] sm:$0xff]  ;;  %v2407_v59 = vld [vmem:[%s3521_s10 + $0x1f0] sm:$0xff]  ;;  %v2420_v4 = vld [vmem:[%s3521_s10 + $0x218] sm:$0xff] }
 0x1d9   : > { %2882 = vmatpush3.bf16.msra.mxu1 %v2879_v53  ;;  %2942 = vmatpush3.bf16.msra.mxu0 %v2939_v52  ;;  %v2341_v52 = vld [vmem:[%s3521_s10 + $0xe0] sm:$0xff]  ;;  %v2403_v53 = vld [vmem:[%s3521_s10 + $0x1d0] sm:$0xff] }
 0x1da   : > { %2654 = vmatprep.mubr.msk.f32.mxu1 %vm687_vm9, %v2323_v2  ;;  %2763 = vmatprep.mubr.msk.f32.mxu0 %vm687_vm9, %v2385_v3  ;;  %v2891_v23 = vpack.c.bf16 %v3252_v12, %v3251_v13  ;;  %v2955_v36 = vpack.c.bf16 %v3257_v22, %v3256_v26  ;;  %v2424_v2 = vld [vmem:[%s3521_s10 + $0x238] sm:$0xff]  ;;  %v2419_v3 = vld [vmem:[%s3521_s10 + $0x210] sm:$0xff] }
 0x1db   : > { %2884 = vmatprep.subr.bf16.mxu1 %v2883_v32  ;;  %2944 = vmatprep.subr.bf16.mxu0 %v2943_v60  ;;  %v3260_v18 = vpop.permute.xlu0 %3259  ;;  %v3265_v31 = vpop.permute.xlu1 %3264 }
 0x1dc   : > { %2655 = vmatmul.mubr.msk.f32.gmra.mrb[2].mxu1 %vm687_vm9, %v2324_v5  ;;  %2764 = vmatmul.mubr.msk.f32.vlgmr.msra.gmra.mrb[0].mxu0 %vm687_vm9, %v2386_v6  ;;  %v3262_v27 = vunpack.i.h.bf16 %v3260_v18  ;;  %v3261_v28 = vunpack.i.l.bf16 %v3260_v18  ;;  %v3267_v38 = vunpack.i.h.bf16 %v3265_v31  ;;  %v3266_v39 = vunpack.i.l.bf16 %v3265_v31 }
 0x1dd   : > { %2886 = vmatpush3.bf16.msra.mxu1 %v2883_v32  ;;  %2946 = vmatpush3.bf16.msra.mxu0 %v2943_v60  ;;  %v2421_v60 = vld [vmem:[%s3521_s10 + $0x220] sm:$0xff]  ;;  %v2422_v32 = vld [vmem:[%s3521_s10 + $0x228] sm:$0xff] }
 0x1de   : > { %2657 = vmatprep.mubr.msk.f32.mxu1 %vm687_vm9, %v2325_v16  ;;  %2766 = vmatprep.mubr.msk.f32.mxu0 %vm687_vm9, %v2387_v17  ;;  %v2959_v37 = vpack.c.bf16 %v3262_v27, %v3261_v28  ;;  %v2963_v43 = vpack.c.bf16 %v3267_v38, %v3266_v39  ;;  %v2140_v28 = vld [vmem:[%s3466_s21 + $0x20] sm:$0xff]  ;;  %v2143_v38 = vld [vmem:[%s3466_s21 + $0x38] sm:$0xff] }
 0x1df   : > { %2888 = vmatprep.subr.bf16.mxu1 %v2887_v11  ;;  %2948 = vmatprep.subr.bf16.mxu0 %v2947_v10  ;;  %v3270_v42 = vpop.permute.xlu0 %3269  ;;  %v3275_v46 = vpop.permute.xlu1 %3274 }
 0x1e0   : > { %2658 = vmatmul.mubr.msk.f32.gmra.mrb[4].mxu1 %vm687_vm9, %v2326_v19  ;;  %2767 = vmatmul.mubr.msk.f32.gmra.mrb[2].mxu0 %vm687_vm9, %v2388_v20  ;;  %v3272_v44 = vunpack.i.h.bf16 %v3270_v42  ;;  %v3271_v45 = vunpack.i.l.bf16 %v3270_v42  ;;  %v3277_v50 = vunpack.i.h.bf16 %v3275_v46  ;;  %v3276_v51 = vunpack.i.l.bf16 %v3275_v46  ;;  %v2136_v42 = vld [vmem:[%s3466_s21] sm:$0xff] }
 0x1e1   : > { %2890 = vmatpush3.bf16.msra.mxu1 %v2887_v11  ;;  %2950 = vmatpush3.bf16.msra.mxu0 %v2947_v10 }
 0x1e2   : > { %2660 = vmatprep.mubr.msk.f32.mxu1 %vm687_vm9, %v2327_v29  ;;  %2769 = vmatprep.mubr.msk.f32.mxu0 %vm687_vm9, %v2389_v30  ;;  %v2967_v49 = vpack.c.bf16 %v3272_v44, %v3271_v45  ;;  %v2971_v25 = vpack.c.bf16 %v3277_v50, %v3276_v51  ;;  %v2138_v51 = vld [vmem:[%s3466_s21 + $0x10] sm:$0xff] }
 0x1e3   : > { %2892 = vmatprep.subr.bf16.mxu1 %v2891_v23  ;;  %2952 = vmatprep.subr.bf16.mxu0 %v2951_v21 }
 0x1e4   : > { %2661 = vmatmul.mubr.msk.f32.gmra.mrb[6].mxu1 %vm687_vm9, %v2328_v34  ;;  %2770 = vmatmul.mubr.msk.f32.gmra.mrb[4].mxu0 %vm687_vm9, %v2390_v35 }
 0x1e5   : > { %2894 = vmatpush3.bf16.msra.mxu1 %v2891_v23  ;;  %2954 = vmatpush3.bf16.msra.mxu0 %v2951_v21  ;;  %v2141_v21 = vld [vmem:[%s3466_s21 + $0x28] sm:$0xff] }
 0x1e6   : > { %2679 = vmatprep.mubr.msk.f32.mxu1 %vm687_vm9, %v2337_v40  ;;  %2772 = vmatprep.mubr.msk.f32.mxu0 %vm687_vm9, %v2391_v41 }
 0x1e7   : > { %2956 = vmatprep.subr.bf16.mxu0 %v2955_v36  ;;  %2975 = vmatprep.subr.bf16.mxu1 %v2959_v37 }
 0x1e8   : > { %2680 = vmatmul.mubr.msk.f32.vlgmr.msra.gmra.mrb[0].mxu1 %vm687_vm9, %v2338_v0  ;;  %2773 = vmatmul.mubr.msk.f32.gmra.mrb[6].mxu0 %vm687_vm9, %v2392_v1  ;;  %v2142_v1 = vld [vmem:[%s3466_s21 + $0x30] sm:$0xff] }
 0x1e9   : > { %2958 = vmatpush3.bf16.msra.mxu0 %v2955_v36  ;;  %2979 = vmatpush3.bf16.msra.mxu1 %v2959_v37  ;;  %v2137_v36 = vld [vmem:[%s3466_s21 + $0x8] sm:$0xff] }
 0x1ea   : > { %2682 = vmatprep.mubr.msk.f32.mxu1 %vm687_vm9, %v2339_v14  ;;  %2791 = vmatprep.mubr.msk.f32.mxu0 %vm687_vm9, %v2401_v15 }
 0x1eb   : > { %2960 = vmatprep.subr.bf16.mxu0 %v2959_v37  ;;  %2976 = vmatprep.subr.bf16.mxu1 %v2963_v43 }
 0x1ec   : > { %2683 = vmatmul.mubr.msk.f32.gmra.mrb[2].mxu1 %vm687_vm9, %v2340_v47  ;;  %2792 = vmatmul.mubr.msk.f32.vlgmr.msra.gmra.mrb[0].mxu0 %vm687_vm9, %v2402_v48  ;;  %v2139_v48 = vld [vmem:[%s3466_s21 + $0x18] sm:$0xff] }
 0x1ed   : > { %2962 = vmatpush3.bf16.msra.mxu0 %v2959_v37  ;;  %2980 = vmatpush3.bf16.msra.mxu1 %v2963_v43 }
 0x1ee   : > { %2685 = vmatprep.mubr.msk.f32.mxu1 %vm687_vm9, %v2341_v52  ;;  %2794 = vmatprep.mubr.msk.f32.mxu0 %vm687_vm9, %v2403_v53 }
 0x1ef   : > { %2964 = vmatprep.subr.bf16.mxu0 %v2963_v43  ;;  %2977 = vmatprep.subr.bf16.mxu1 %v2967_v49 }
 0x1f0   : > { %2686 = vmatmul.mubr.msk.f32.gmra.mrb[4].mxu1 %vm687_vm9, %v2342_v54  ;;  %2795 = vmatmul.mubr.msk.f32.gmra.mrb[2].mxu0 %vm687_vm9, %v2404_v24 }
 0x1f1   : > { %2966 = vmatpush3.bf16.msra.mxu0 %v2963_v43  ;;  %2981 = vmatpush3.bf16.msra.mxu1 %v2967_v49 }
 0x1f2   : > { %2688 = vmatprep.mubr.msk.f32.mxu1 %vm687_vm9, %v2343_v55  ;;  %2797 = vmatprep.mubr.msk.f32.mxu0 %vm687_vm9, %v2405_v56 }
 0x1f3   : > { %2968 = vmatprep.subr.bf16.mxu0 %v2967_v49  ;;  %2978 = vmatprep.subr.bf16.mxu1 %v2971_v25 }
 0x1f4   : > { %2689 = vmatmul.mubr.msk.f32.gmra.mrb[6].mxu1 %vm687_vm9, %v2344_v57  ;;  %2798 = vmatmul.mubr.msk.f32.gmra.mrb[4].mxu0 %vm687_vm9, %v2406_v58 }
 0x1f5   : > { %2970 = vmatpush3.bf16.msra.mxu0 %v2967_v49  ;;  %2982 = vmatpush3.bf16.msra.mxu1 %v2971_v25 }
 0x1f6   : > { %2800 = vmatprep.mubr.msk.f32.mxu0 %vm687_vm9, %v2407_v59  ;;  %2825 = vmatprep.mubr.msk.f32.mxu1 %vm687_vm9, %v2421_v60 }
 0x1f7   : > { %2972 = vmatprep.subr.bf16.mxu0 %v2971_v25 }
 0x1f8   : > { %2801 = vmatmul.mubr.msk.f32.gmra.mrb[6].mxu0 %vm687_vm9, %v2408_v61  ;;  %2826 = vmatmul.mubr.msk.f32.vlgmr.msra.gmra.mrb[8].mxu1 %vm687_vm9, %v2422_v32 }
 0x1f9   : > { %2974 = vmatpush3.bf16.msra.mxu0 %v2971_v25  ;;  %2819 = vmatprep.mubr.msk.f32.mxu0 %vm687_vm9, %v2417_v33 }
 0x1fa   : > { %2828 = vmatprep.mubr.msk.f32.mxu1 %vm687_vm9, %v2423_v62 }
 0x1fc   : > { %2820 = vmatmul.mubr.msk.f32.vlgmr.msra.gmra.mrb[0].mxu0 %vm687_vm9, %v2418_v63  ;;  %2829 = vmatmul.mubr.msk.f32.gmra.mrb[10].mxu1 %vm687_vm9, %v2424_v2 }
 0x1fd   : > { %2822 = vmatprep.mubr.msk.f32.mxu0 %vm687_vm9, %v2419_v3 }
 0x200   : > { %2823 = vmatmul.mubr.msk.f32.gmra.mrb[2].mxu0 %vm687_vm9, %v2420_v4 }
 0x2bb   : > { %v2681_v5 = vpop.f32.mrb[0].mxu1 }
 0x2bc   : > { %v1239_v6 = vpop.f32.mrb[1].mxu1 }
 0x2bf   : > { %v2684_v7 = vpop.f32.mrb[2].mxu1 }
 0x2c0   : > { %v1249_v8 = vpop.f32.mrb[3].mxu1 }
 0x2c3   : > { %v2687_v9 = vpop.f32.mrb[4].mxu1 }
 0x2c4   : > { %v1259_v10 = vpop.f32.mrb[5].mxu1 }
 0x2c7   : > { %v2690_v11 = vpop.f32.mrb[6].mxu1  ;;  %v2799_v12 = vpop.f32.mrb[4].mxu0 }
 0x2c8   : > { %v2987_v13 = vadd.f32 %v2799_v12, %v2687_v9  ;;  %v1269_v16 = vpop.f32.mrb[7].mxu1  ;;  %v1939_v17 = vpop.f32.mrb[5].mxu0 }
 0x2c9   : > { %v2989_v18 = vadd.f32 %v1939_v17, %v1259_v10 }
 0x2cb   : > { %v2802_v19 = vpop.f32.mrb[6].mxu0  ;;  %v2827_v20 = vpop.f32.mrb[8].mxu1 }
 0x2cc   : > { %v2991_v22 = vadd.f32 %v2802_v19, %v2690_v11  ;;  %v2988_v23 = vadd.f32 %v2987_v13, %v2827_v20  ;;  %v1949_v26 = vpop.f32.mrb[7].mxu0  ;;  %v2109_v27 = vpop.f32.mrb[9].mxu1 }
 0x2cd   : > { %v2993_v29 = vadd.f32 %v1949_v26, %v1269_v16  ;;  %v2990_v30 = vadd.f32 %v2989_v18, %v2109_v27 }
 0x2ce   : > { %v2149_v31 = vadd.f32 %v2988_v23, %v2141_v21 }
 0x2cf   : > { %v2148_v34 = vadd.f32 %v2990_v30, %v2140_v28  ;;  %v2821_v35 = vpop.f32.mrb[0].mxu0  ;;  %v2830_v37 = vpop.f32.mrb[10].mxu1 }
 0x2d0   : > { %2158 = vst.msk [vmem:[%s3466_s21 + $0x28] sm:$0xff] %vm2152_vm10, %v2149_v31  ;;  %v2983_v39 = vadd.f32 %v2821_v35, %v2681_v5  ;;  %v2992_v40 = vadd.f32 %v2991_v22, %v2830_v37  ;;  %v2089_v41 = vpop.f32.mrb[1].mxu0  ;;  %v2119_v0 = vpop.f32.mrb[11].mxu1 }
 0x2d1   : > { %2157 = vst.msk [vmem:[%s3466_s21 + $0x20] sm:$0xff] %vm2152_vm10, %v2148_v34  ;;  %v2984_v43 = vadd.f32 %v2089_v41, %v1239_v6  ;;  %v2994_v44 = vadd.f32 %v2993_v29, %v2119_v0 }
 0x2d2   : > { %v2145_v45 = vadd.f32 %v2983_v39, %v2137_v36  ;;  %v2151_v14 = vadd.f32 %v2992_v40, %v2143_v38 }
 0x2d3   : > { %v2144_v15 = vadd.f32 %v2984_v43, %v2136_v42  ;;  %v2150_v46 = vadd.f32 %v2994_v44, %v2142_v1  ;;  %v2824_v47 = vpop.f32.mrb[2].mxu0 }
 0x2d4   : > { %2154 = vst.msk [vmem:[%s3466_s21 + $0x8] sm:$0xff] %vm2152_vm10, %v2145_v45  ;;  %2160 = vst.msk [vmem:[%s3466_s21 + $0x38] sm:$0xff] %vm2152_vm10, %v2151_v14  ;;  %v2985_v49 = vadd.f32 %v2824_v47, %v2684_v7  ;;  %v2099_v50 = vpop.f32.mrb[3].mxu0 }
 0x2d5   : > { %2153 = vst.msk [vmem:[%s3466_s21] sm:$0xff] %vm2152_vm10, %v2144_v15  ;;  %2159 = vst.msk [vmem:[%s3466_s21 + $0x30] sm:$0xff] %vm2152_vm10, %v2150_v46  ;;  %v2986_v52 = vadd.f32 %v2099_v50, %v1249_v8 }
 0x2d6   : > { %v2147_v53 = vadd.f32 %v2985_v49, %v2139_v48 }
 0x2d7   : > { %v2146_v54 = vadd.f32 %v2986_v52, %v2138_v51 }
 0x2d8   : > { %2156 = vst.msk [vmem:[%s3466_s21 + $0x18] sm:$0xff] %vm2152_vm10, %v2147_v53 }
 0x2d9   : > { %2155 = vst.msk [vmem:[%s3466_s21 + $0x10] sm:$0xff] %vm2152_vm10, %v2146_v54 }
 0x2da PF: > { %s17_s30 = sadd.s32 1, %s3332_s30   ;;  %s3817_s10 = sld [smem:[#allocation2_spill]] }
 0x2db   : > { %p14_p11 = scmp.ge.s32.totalorder %s17_s30, 14   ;;  %s3818_s24 = smov %s3320_s27 }
 0x2dc   : > { %s3819_s25 = smov %s3324_s28  ;;  %s3820_s26 = smov %s3328_s29 }
 0x2dd   : > { %s3821_s27 = smov %s3825_s8  ;;  %s3822_s28 = smov %s3829_s9 }
 0x2de   :  { %16 = sbr.rel (!%p14_p11) target bundleno = 4 (0x4), region = 96 }
 0x2e0   : > { %s3823_s29 = smov %s3817_s10 }

// kernel: hiformer_v3_forward.45
= control target key start
LH: loop header
LB: loop body
LE: loop exit
PB: predicated region body
PF: predicated region fallthrough
CT: control target
= control target key end

     0   :  { %s826_s12 = smov 0   ;;  %s828_s13 = smov 0   ;;  %s1026_s0 = inlined_call_operand.vmem [shape: f32[2,4,32,4], index: 0, kind: input, shape index: {}]   ;;  %s1027_s1 = inlined_call_operand.vmem [shape: f32[128,32], index: 1, kind: input, shape index: {}]   ;;  %s1028_s2 = inlined_call_operand.vmem [shape: f32[128,1], index: 2, kind: input, shape index: {}]   ;;  %s1029_s3 = inlined_call_operand.vmem [shape: f32[2,4,128,4], index: 3, kind: output, shape index: {}]  }
   0x1   :  { %s830_s14 = smov 0   ;;  %s832_s15 = smov 0  }
   0x2   :  { %s834_s16 = smov 0  }
   0x3 LB: > { %s22_s17 = sadd.s32 1, %s795_s14  ;;  %s25_s18 = sadd.s32 1, %s799_s15  ;;  %s803_s16 = sphi %s834_s16, %s13_s16   ;;  %s799_s15 = sphi %s832_s15, %s1033_s15   ;;  %s795_s14 = sphi %s830_s14, %s1032_s14   ;;  %s791_s13 = sphi %s828_s13, %s1031_s13   ;;  %s787_s12 = sphi %s826_s12, %s1030_s12  }
   0x4   : > { %p23_p0 = scmp.ge.s32.totalorder %s22_s17, 4  ;;  %p633_p1 = scmp.ge.s32.totalorder %s803_s16, 1 }
   0x5   : > { %p157_p2 = scmp.lt.s32.totalorder %s803_s16, 9 }
   0x6   : > { %s1035_s17 = smov (%p23_p0, %s22_s17), 0  ;;  %s1037_s18 = smov (!%p23_p0, %s25_s18), %s799_s15 }
   0x7   : > { %p158_p3 = pnand %p633_p1, %p157_p2  ;;  %p27_p4 = scmp.ge.s32.totalorder %s1037_s18, 2 }
   0x8   : > { %p189_p5 = scmp.lt.s32.totalorder (!%p158_p3), %s791_s13, 1  ;;  %p191_p6 = scmp.lt.s32.totalorder (!%p158_p3), %s787_s12, 3  ;;  %v207_v0 = vld [vmem:[%s1027_s1] sm:$0xff] (!%p158_p3)  ;;  %vm323_vm0 = vcmask (!%p158_p3), 261120   ;;  %v805_v2 = vmov (!%p158_p3), 0   ;;  %v229_v3 = vld [vmem:[%s1028_s2 + $0x10] sm:$0xff] (!%p158_p3) }
   0x9   : > { %s1039_s18 = smov (%p27_p4, %s1037_s18), 0  ;;  %161 = sbr.rel (%p158_p3) target bundleno = 261 (0x105), region = 32 }
   0xa   : > { %v215_v1 = vld [vmem:[%s1027_s1 + $0x40] sm:$0xff] (!%p158_p3)  ;;  %686 = vmatprep.mubr.msk.f32.mxu0 (!%p158_p3), %vm323_vm0, %v207_v0  ;;  %764 = vset.pattern.permute.xlu1 (!%p158_p3), %v805_v2  ;;  %v230_v5 = vld [vmem:[%s1028_s2 + $0x18] sm:$0xff] (!%p158_p3)  ;;  %v228_v6 = vld [vmem:[%s1028_s2 + $0x8] sm:$0xff] (!%p158_p3)  ;;  %vm517_vm1 = vcmask (!%p158_p3), 31744  }
   0xb   : > { %698 = vmatprep.mubr.msk.f32.mxu1 (!%p158_p3), %vm323_vm0, %v215_v1  ;;  %763 = vset.pattern.permute.xlu0 (!%p158_p3), %v805_v2  ;;  %v227_v4 = vld [vmem:[%s1028_s2] sm:$0xff] (!%p158_p3)  ;;  %v232_v13 = vld [vmem:[%s1028_s2 + $0x28] sm:$0xff] (!%p158_p3)  ;;  %v234_v15 = vld [vmem:[%s1028_s2 + $0x38] sm:$0xff] (!%p158_p3) }
   0xc   : > { %255 = vperm.xlu1 (!%p158_p3), %764, %v229_v3   ;;  %245 = vperm.xlu0 (!%p158_p3), %763, %v227_v4   ;;  %v231_v14 = vld [vmem:[%s1028_s2 + $0x20] sm:$0xff] (!%p158_p3)  ;;  %v233_v16 = vld [vmem:[%s1028_s2 + $0x30] sm:$0xff] (!%p158_p3)  ;;  %v208_v17 = vld [vmem:[%s1027_s1 + $0x8] sm:$0xff] (!%p158_p3) }
   0xd   : > { %v216_v18 = vld [vmem:[%s1027_s1 + $0x48] sm:$0xff] (!%p158_p3)  ;;  %v209_v19 = vld [vmem:[%s1027_s1 + $0x10] sm:$0xff] (!%p158_p3)  ;;  %v235_v22 = vld [vmem:[%s1028_s2 + $0x40] sm:$0xff] (!%p158_p3) }
   0xe   : > { %v217_v20 = vld [vmem:[%s1027_s1 + $0x50] sm:$0xff] (!%p158_p3)  ;;  %v236_v21 = vld [vmem:[%s1028_s2 + $0x48] sm:$0xff] (!%p158_p3)  ;;  %v210_v23 = vld [vmem:[%s1027_s1 + $0x18] sm:$0xff] (!%p158_p3) }
   0xf   : > { %v218_v24 = vld [vmem:[%s1027_s1 + $0x58] sm:$0xff] (!%p158_p3)  ;;  %v211_v25 = vld [vmem:[%s1027_s1 + $0x20] sm:$0xff] (!%p158_p3)  ;;  %v237_v28 = vld [vmem:[%s1028_s2 + $0x50] sm:$0xff] (!%p158_p3) }
  0x10   : > { %s1041_s13 = smov (!%p189_p5, %s791_s13), 1  ;;  %s1043_s12 = smov (!%p191_p6, %s787_s12), 3  ;;  %260 = vperm.xlu1 %764, %v230_v5   ;;  %250 = vperm.xlu0 %763, %v228_v6   ;;  %v219_v26 = vld [vmem:[%s1027_s1 + $0x60] sm:$0xff]  ;;  %v238_v27 = vld [vmem:[%s1028_s2 + $0x58] sm:$0xff]  ;;  %v212_v29 = vld [vmem:[%s1027_s1 + $0x28] sm:$0xff] }
  0x11   : > { %s635_s23 = sshll.u32 %s1041_s13, 4  ;;  %s638_s24 = sshll.u32 %s1041_s13, 6  ;;  %v220_v30 = vld [vmem:[%s1027_s1 + $0x68] sm:$0xff]  ;;  %v213_v31 = vld [vmem:[%s1027_s1 + $0x30] sm:$0xff]  ;;  %v239_v34 = vld [vmem:[%s1028_s2 + $0x60] sm:$0xff] }
  0x12   : > { %s634_s25 = sshll.u32 %s1043_s12, 2  ;;  %s637_s26 = sshll.u32 %s1043_s12, 4  ;;  %v221_v32 = vld [vmem:[%s1027_s1 + $0x70] sm:$0xff]  ;;  %v240_v33 = vld [vmem:[%s1028_s2 + $0x68] sm:$0xff]  ;;  %v214_v35 = vld [vmem:[%s1027_s1 + $0x38] sm:$0xff] }
  0x13   : > { %s195_s4 = sadd.s32 %s635_s23, %s634_s25  ;;  %s870_s5 = sadd.s32 %s638_s24, %s637_s26  ;;  %v222_v36 = vld [vmem:[%s1027_s1 + $0x78] sm:$0xff]  ;;  %v241_v38 = vld [vmem:[%s1028_s2 + $0x70] sm:$0xff] }
  0x14   : > { %s636_s6 = sshll.u32 %s195_s4, 3  ;;  %270 = vperm.xlu1 %764, %v232_v13   ;;  %265 = vperm.xlu0 %763, %v231_v14   ;;  %v242_v37 = vld [vmem:[%s1028_s2 + $0x78] sm:$0xff]  ;;  %s639_s29 = sshll.u32 %s870_s5, 3 }
  0x15   : > { %s197_s13 = scalar_lea.vmem %s1026_s0, %s636_s6  ;;  %s977_s6 = scalar_lea.vmem %s1029_s3, %s639_s29 }
  0x16   : > { %v223_v7 = vld [vmem:[%s197_s13] sm:$0xff]  ;;  %v224_v8 = vld [vmem:[%s197_s13 + $0x8] sm:$0xff]  ;;  %v225_v9 = vld [vmem:[%s197_s13 + $0x10] sm:$0xff] }
  0x17   : > { %v710_v10 = vpack.c.bf16 %v224_v8, %v223_v7  ;;  %v226_v11 = vld [vmem:[%s197_s13 + $0x18] sm:$0xff] }
  0x18   : > { %v714_v12 = vpack.c.bf16 %v226_v11, %v225_v9  ;;  %280 = vperm.xlu1 %764, %v234_v15   ;;  %275 = vperm.xlu0 %763, %v233_v16  }
  0x19   : > { %711 = vmatprep.subr.bf16.mxu0 %v710_v10  ;;  %718 = vmatprep.subr.bf16.mxu1 %v710_v10 }
  0x1a   : > { %713 = vmatpush3.bf16.msra.mxu0 %v710_v10  ;;  %720 = vmatpush3.bf16.msra.mxu1 %v710_v10 }
  0x1b   : > { %715 = vmatprep.subr.bf16.mxu0 %v714_v12  ;;  %719 = vmatprep.subr.bf16.mxu1 %v714_v12 }
  0x1c   : > { %290 = vperm.xlu1 %764, %v236_v21   ;;  %285 = vperm.xlu0 %763, %v235_v22  }
  0x1e   : > { %717 = vmatpush3.bf16.msra.mxu0 %v714_v12  ;;  %721 = vmatpush3.bf16.msra.mxu1 %v714_v12 }
  0x20   : > { %300 = vperm.xlu1 %764, %v238_v27   ;;  %295 = vperm.xlu0 %763, %v237_v28  }
  0x21   : > { %687 = vmatmul.mubr.msk.f32.vlgmr.msra.gmra.mrb[0].mxu0 %vm323_vm0, %v208_v17  ;;  %699 = vmatmul.mubr.msk.f32.vlgmr.msra.gmra.mrb[0].mxu1 %vm323_vm0, %v216_v18 }
  0x22   : > { %689 = vmatprep.mubr.msk.f32.mxu0 %vm323_vm0, %v209_v19  ;;  %701 = vmatprep.mubr.msk.f32.mxu1 %vm323_vm0, %v217_v20 }
  0x24   : > { %310 = vperm.xlu1 %764, %v240_v33   ;;  %305 = vperm.xlu0 %763, %v239_v34  }
  0x25   : > { %690 = vmatmul.mubr.msk.f32.gmra.mrb[2].mxu0 %vm323_vm0, %v210_v23  ;;  %702 = vmatmul.mubr.msk.f32.gmra.mrb[2].mxu1 %vm323_vm0, %v218_v24 }
  0x26   : > { %692 = vmatprep.mubr.msk.f32.mxu0 %vm323_vm0, %v211_v25  ;;  %704 = vmatprep.mubr.msk.f32.mxu1 %vm323_vm0, %v219_v26 }
  0x28   : > { %320 = vperm.xlu1 %764, %v242_v37   ;;  %315 = vperm.xlu0 %763, %v241_v38  }
  0x29   : > { %693 = vmatmul.mubr.msk.f32.gmra.mrb[4].mxu0 %vm323_vm0, %v212_v29  ;;  %705 = vmatmul.mubr.msk.f32.gmra.mrb[4].mxu1 %vm323_vm0, %v220_v30 }
  0x2a   : > { %695 = vmatprep.mubr.msk.f32.mxu0 %vm323_vm0, %v213_v31  ;;  %707 = vmatprep.mubr.msk.f32.mxu1 %vm323_vm0, %v221_v32 }
  0x2d   : > { %696 = vmatmul.mubr.msk.f32.gmra.mrb[6].mxu0 %vm323_vm0, %v214_v35  ;;  %708 = vmatmul.mubr.msk.f32.gmra.mrb[6].mxu1 %vm323_vm0, %v222_v36 }
  0x8b   : > { %v256_v39 = vpop.permute.xlu1 %255  ;;  %v246_v40 = vpop.permute.xlu0 %245 }
  0x8f   : > { %v261_v41 = vpop.permute.xlu1 %260  ;;  %v251_v42 = vpop.permute.xlu0 %250 }
  0x93   : > { %v271_v43 = vpop.permute.xlu1 %270  ;;  %v266_v44 = vpop.permute.xlu0 %265 }
  0x97   : > { %v281_v45 = vpop.permute.xlu1 %280  ;;  %v276_v46 = vpop.permute.xlu0 %275 }
  0x9b   : > { %v291_v47 = vpop.permute.xlu1 %290  ;;  %v286_v48 = vpop.permute.xlu0 %285 }
  0x9f   : > { %v301_v49 = vpop.permute.xlu1 %300  ;;  %v296_v50 = vpop.permute.xlu0 %295 }
  0xa3   : > { %v311_v59 = vpop.permute.xlu1 %310  ;;  %v306_v60 = vpop.permute.xlu0 %305 }
  0xa7   : > { %v321_v13 = vpop.permute.xlu1 %320  ;;  %v316_v14 = vpop.permute.xlu0 %315 }
  0xf4   : > { %v688_v51 = vpop.f32.mrb[0].mxu0  ;;  %v700_v52 = vpop.f32.mrb[0].mxu1 }
  0xf5   : > { %v444_v53 = vadd.f32 %v688_v51, %v251_v42  ;;  %v484_v54 = vadd.f32 %v700_v52, %v291_v47  ;;  %v438_v55 = vpop.f32.mrb[1].mxu0  ;;  %v478_v56 = vpop.f32.mrb[1].mxu1 }
  0xf6   : > { %v439_v57 = vadd.f32 %v438_v55, %v246_v40  ;;  %v479_v58 = vadd.f32 %v478_v56, %v286_v48 }
  0xf7   : > { %519 = vst.msk [vmem:[%s977_s6 + $0x8] sm:$0xff] %vm517_vm1, %v444_v53  ;;  %527 = vst.msk [vmem:[%s977_s6 + $0x48] sm:$0xff] %vm517_vm1, %v484_v54 }
  0xf8   : > { %518 = vst.msk [vmem:[%s977_s6] sm:$0xff] %vm517_vm1, %v439_v57  ;;  %526 = vst.msk [vmem:[%s977_s6 + $0x40] sm:$0xff] %vm517_vm1, %v479_v58  ;;  %v691_v61 = vpop.f32.mrb[2].mxu0  ;;  %v703_v62 = vpop.f32.mrb[2].mxu1 }
  0xf9   : > { %v454_v63 = vadd.f32 %v691_v61, %v261_v41  ;;  %v494_v0 = vadd.f32 %v703_v62, %v301_v49  ;;  %v448_v1 = vpop.f32.mrb[3].mxu0  ;;  %v488_v2 = vpop.f32.mrb[3].mxu1 }
  0xfa   : > { %v449_v3 = vadd.f32 %v448_v1, %v256_v39  ;;  %v489_v4 = vadd.f32 %v488_v2, %v296_v50 }
  0xfb   : > { %521 = vst.msk [vmem:[%s977_s6 + $0x18] sm:$0xff] %vm517_vm1, %v454_v63  ;;  %529 = vst.msk [vmem:[%s977_s6 + $0x58] sm:$0xff] %vm517_vm1, %v494_v0 }
  0xfc   : > { %520 = vst.msk [vmem:[%s977_s6 + $0x10] sm:$0xff] %vm517_vm1, %v449_v3  ;;  %528 = vst.msk [vmem:[%s977_s6 + $0x50] sm:$0xff] %vm517_vm1, %v489_v4  ;;  %v694_v5 = vpop.f32.mrb[4].mxu0  ;;  %v706_v6 = vpop.f32.mrb[4].mxu1 }
  0xfd   : > { %v464_v7 = vadd.f32 %v694_v5, %v271_v43  ;;  %v504_v8 = vadd.f32 %v706_v6, %v311_v59  ;;  %v458_v9 = vpop.f32.mrb[5].mxu0  ;;  %v498_v10 = vpop.f32.mrb[5].mxu1 }
  0xfe   : > { %v459_v11 = vadd.f32 %v458_v9, %v266_v44  ;;  %v499_v12 = vadd.f32 %v498_v10, %v306_v60 }
  0xff   : > { %523 = vst.msk [vmem:[%s977_s6 + $0x28] sm:$0xff] %vm517_vm1, %v464_v7  ;;  %531 = vst.msk [vmem:[%s977_s6 + $0x68] sm:$0xff] %vm517_vm1, %v504_v8 }
 0x100   : > { %522 = vst.msk [vmem:[%s977_s6 + $0x20] sm:$0xff] %vm517_vm1, %v459_v11  ;;  %530 = vst.msk [vmem:[%s977_s6 + $0x60] sm:$0xff] %vm517_vm1, %v499_v12  ;;  %v697_v15 = vpop.f32.mrb[6].mxu0  ;;  %v709_v16 = vpop.f32.mrb[6].mxu1 }
 0x101   : > { %v474_v17 = vadd.f32 %v697_v15, %v281_v45  ;;  %v514_v18 = vadd.f32 %v709_v16, %v321_v13  ;;  %v468_v19 = vpop.f32.mrb[7].mxu0  ;;  %v508_v20 = vpop.f32.mrb[7].mxu1 }
 0x102   : > { %v469_v21 = vadd.f32 %v468_v19, %v276_v46  ;;  %v509_v22 = vadd.f32 %v508_v20, %v316_v14 }
 0x103   : > { %525 = vst.msk [vmem:[%s977_s6 + $0x38] sm:$0xff] %vm517_vm1, %v474_v17  ;;  %533 = vst.msk [vmem:[%s977_s6 + $0x78] sm:$0xff] %vm517_vm1, %v514_v18 }
 0x104   : > { %524 = vst.msk [vmem:[%s977_s6 + $0x30] sm:$0xff] %vm517_vm1, %v469_v21  ;;  %532 = vst.msk [vmem:[%s977_s6 + $0x70] sm:$0xff] %vm517_vm1, %v509_v22 }
 0x105 PF: > { %s13_s16 = sadd.s32 1, %s803_s16   ;;  %s1030_s12 = smov %s795_s14 }
 0x106   : > { %p10_p7 = scmp.ge.s32.totalorder %s13_s16, 10   ;;  %s1031_s13 = smov %s799_s15 }
 0x107   : > { %s1032_s14 = smov %s1035_s17  ;;  %s1033_s15 = smov %s1039_s18 }
 0x108   :  { %12 = sbr.rel (!%p10_p7) target bundleno = 3 (0x3), region = 62 }

// kernel: hiformer_v3_forward.42
= control target key start
LH: loop header
LB: loop body
LE: loop exit
PB: predicated region body
PF: predicated region fallthrough
CT: control target
= control target key end

     0   :  { %s2802_s24 = smov 0   ;;  %s2804_s25 = smov 0   ;;  %s3114_s0 = inlined_call_operand.vmem [shape: f32[2,6,64,20], index: 0, kind: input, shape index: {}]   ;;  %s3115_s1 = inlined_call_operand.vmem [shape: f32[3,9,32,64], index: 1, kind: input, shape index: {}]   ;;  %s3116_s2 = inlined_call_operand.vmem [shape: f32[6,1,20], index: 2, kind: input, shape index: {}]   ;;  %s3117_s3 = inlined_call_operand.vmem [shape: f32[64,1], index: 3, kind: input, shape index: {}]   ;;  %s3118_s4 = inlined_call_operand.vmem [shape: f32[64,1], index: 4, kind: input, shape index: {}]   ;;  %s3119_s5 = inlined_call_operand.vmem [shape: f32[64,1], index: 5, kind: input, shape index: {}]   ;;  %s3120_s6 = inlined_call_operand.vmem [shape: f32[32,1], index: 6, kind: input, shape index: {}]   ;;  %s3121_s7 = inlined_call_operand.vmem [shape: f32[2,4,32,8], index: 7, kind: output, shape index: {}]  }
   0x1   :  { %s2806_s26 = smov 0   ;;  %s2808_s27 = smov 0  }
   0x2   :  { %s2810_s28 = smov 0   ;;  %s2812_s29 = smov 0  }
   0x3   :  { %s2814_s30 = smov 0  }
   0x4 LB: > { %s29_s8 = sadd.s32 1, %s2738_s27  ;;  %s32_s9 = sadd.s32 1, %s2742_s28  ;;  %s2750_s30 = sphi %s2814_s30, %s17_s30   ;;  %s2746_s29 = sphi %s2812_s29, %s3129_s29   ;;  %s2742_s28 = sphi %s2810_s28, %s3128_s28   ;;  %s2738_s27 = sphi %s2808_s27, %s3127_s27   ;;  %s2734_s26 = sphi %s2806_s26, %s3126_s26   ;;  %s2730_s25 = sphi %s2804_s25, %s3125_s25   ;;  %s2726_s24 = sphi %s2802_s24, %s3124_s24  }
   0x5   : > { %p30_p0 = scmp.ge.s32.totalorder %s29_s8, 3  ;;  %p1895_p1 = scmp.ge.s32.totalorder %s2750_s30, 1 }
   0x6   : > { %p290_p2 = scmp.lt.s32.totalorder %s2750_s30, 25  ;;  %s36_s10 = sadd.s32 1, %s2746_s29 }
   0x7   : > { %s3131_s8 = smov (%p30_p0, %s29_s8), 0  ;;  %s3133_s9 = smov (!%p30_p0, %s32_s9), %s2742_s28 }
   0x8   : > { %p291_p3 = pnand %p1895_p1, %p290_p2  ;;  %p34_p4 = scmp.ge.s32.totalorder %s3133_s9, 4 }
   0x9   : > { %v380_v0 = vld [vmem:[%s3117_s3 + $0x10] sm:$0xff] (!%p291_p3)  ;;  %v378_v1 = vld [vmem:[%s3117_s3] sm:$0xff] (!%p291_p3)  ;;  %v2752_v2 = vmov (!%p291_p3), 0   ;;  %p341_p6 = scmp.lt.s32.totalorder (!%p291_p3), %s2734_s26, 1  ;;  %v381_v3 = vld [vmem:[%s3117_s3 + $0x18] sm:$0xff] (!%p291_p3)  ;;  %p363_p7 = scmp.lt.s32.totalorder (!%p291_p3), %s2730_s25, 3 }
   0xa   : > { %s3135_s9 = smov (%p34_p4, %s3133_s9), 0  ;;  %s3137_s10 = smov (!%p34_p4, %s36_s10), %s2746_s29 }
   0xb   : > { %p38_p5 = scmp.ge.s32.totalorder %s3137_s10, 2  ;;  %294 = sbr.rel (%p291_p3) target bundleno = 718 (0x2ce), region = 48  ;;  %2533 = vset.pattern.permute.xlu1 (!%p291_p3), %v2752_v2  ;;  %2532 = vset.pattern.permute.xlu0 (!%p291_p3), %v2752_v2  ;;  %v379_v4 = vld [vmem:[%s3117_s3 + $0x8] sm:$0xff] (!%p291_p3)  ;;  %v382_v6 = vld [vmem:[%s3117_s3 + $0x20] sm:$0xff] (!%p291_p3)  ;;  %v385_v7 = vld [vmem:[%s3117_s3 + $0x38] sm:$0xff] (!%p291_p3) }
   0xc   : > { %398 = vperm.xlu1 (!%p291_p3), %2533, %v380_v0   ;;  %388 = vperm.xlu0 (!%p291_p3), %2532, %v378_v1   ;;  %v383_v5 = vld [vmem:[%s3117_s3 + $0x28] sm:$0xff] (!%p291_p3)  ;;  %v384_v8 = vld [vmem:[%s3117_s3 + $0x30] sm:$0xff] (!%p291_p3)  ;;  %v434_v10 = vld [vmem:[%s3118_s4] sm:$0xff] (!%p291_p3)  ;;  %p351_p8 = scmp.lt.s32.totalorder (!%p291_p3), %s2726_s24, 2  ;;  %p1903_p10 = scmp.ne.s32.totalorder (!%p291_p3), %s2726_s24, 0 }
   0xd   : > { %s3139_s10 = smov (%p38_p5, %s3137_s10), 0  ;;  %v435_v9 = vld [vmem:[%s3118_s4 + $0x8] sm:$0xff] (!%p291_p3)  ;;  %v437_v11 = vld [vmem:[%s3118_s4 + $0x18] sm:$0xff] (!%p291_p3)  ;;  %v436_v12 = vld [vmem:[%s3118_s4 + $0x10] sm:$0xff] (!%p291_p3) }
   0xe   : > { %3122 = sst [smem:[#allocation2_spill]] %s3139_s10  ;;  %v439_v13 = vld [vmem:[%s3118_s4 + $0x28] sm:$0xff] (!%p291_p3)  ;;  %v438_v14 = vld [vmem:[%s3118_s4 + $0x20] sm:$0xff] (!%p291_p3)  ;;  %v441_v15 = vld [vmem:[%s3118_s4 + $0x38] sm:$0xff] (!%p291_p3) }
   0xf   : > { %v440_v16 = vld [vmem:[%s3118_s4 + $0x30] sm:$0xff] (!%p291_p3)  ;;  %v499_v17 = vld [vmem:[%s3119_s5 + $0x8] sm:$0xff] (!%p291_p3)  ;;  %v498_v18 = vld [vmem:[%s3119_s5] sm:$0xff] (!%p291_p3) }
  0x10   : > { %403 = vperm.xlu1 (!%p291_p3), %2533, %v381_v3   ;;  %393 = vperm.xlu0 (!%p291_p3), %2532, %v379_v4   ;;  %v501_v19 = vld [vmem:[%s3119_s5 + $0x18] sm:$0xff] (!%p291_p3)  ;;  %v500_v20 = vld [vmem:[%s3119_s5 + $0x10] sm:$0xff] (!%p291_p3)  ;;  %v503_v21 = vld [vmem:[%s3119_s5 + $0x28] sm:$0xff] (!%p291_p3) }
  0x11   : > { %v502_v22 = vld [vmem:[%s3119_s5 + $0x20] sm:$0xff] (!%p291_p3)  ;;  %v505_v23 = vld [vmem:[%s3119_s5 + $0x38] sm:$0xff] (!%p291_p3)  ;;  %v504_v24 = vld [vmem:[%s3119_s5 + $0x30] sm:$0xff] (!%p291_p3) }
  0x12   : > { %s3141_s26 = smov (!%p341_p6, %s2734_s26), 1  ;;  %vm605_vm8 = vcmask (!%p1903_p10), 64512  }
  0x13   : > { %s1900_s23 = sshll.u32 %s3141_s26, 4  ;;  %s2464_s19 = smul.u32 48, %s3141_s26 }
  0x14   : > { %s364_s11 = scalar_select %p363_p7, %s2730_s25, 3  ;;  %413 = vperm.xlu1 %2533, %v383_v5   ;;  %408 = vperm.xlu0 %2532, %v382_v6  }
  0x15   : > { %s352_s14 = scalar_select %p351_p8, %s2726_s24, 2 }
  0x16   : > { %s1899_s16 = sshll.u32 %s364_s11, 2 }
  0x17   : > { %s367_s17 = sadd.s32 %s1900_s23, %s1899_s16  ;;  %s2465_s15 = smul.u32 288, %s352_s14 }
  0x18   : > { %s1901_s18 = sshll.u32 %s367_s17, 3  ;;  %423 = vperm.xlu1 %2533, %v385_v7   ;;  %418 = vperm.xlu0 %2532, %v384_v8  }
  0x19   : > { %s2884_s21 = scalar_lea.vmem %s3121_s7, %s1901_s18  ;;  %s2939_s10 = scalar_lea.vmem %s3115_s1, %s2465_s15 }
  0x1a   : > { %s340_s18 = sadd.s32 %s2726_s24, %s2730_s25 }
  0x1b   : > { %p343_p9 = scmp.lt.s32.totalorder %s340_s18, 5 }
  0x1c   : > { %449 = vperm.xlu1 %2533, %v435_v9   ;;  %444 = vperm.xlu0 %2532, %v434_v10  }
  0x1d   : > { %s3143_s18 = smov (!%p343_p9, %s340_s18), 5 }
  0x1e   : > { %s1896_s20 = sshll.u32 %s3143_s18, 3  ;;  %s359_s14 = scalar_lea.vmem %s3116_s2, %s3143_s18 }
  0x1f   : > { %s347_s22 = sadd.s32 %s2464_s19, %s1896_s20  ;;  %v1902_v56 = vld [vmem:[%s359_s14] ss:$0 sm:$0xff] }
  0x20   : > { %459 = vperm.xlu1 %2533, %v437_v11   ;;  %454 = vperm.xlu0 %2532, %v436_v12   ;;  %s1897_s12 = sshll.u32 %s347_s22, 3 }
  0x21   : > { %s2950_s11 = scalar_lea.vmem %s3114_s0, %s1897_s12 }
  0x22   : > { %v370_v39 = vld [vmem:[%s2950_s11] sm:$0xff]  ;;  %v371_v40 = vld [vmem:[%s2950_s11 + $0x8] sm:$0xff]  ;;  %v372_v45 = vld [vmem:[%s2950_s11 + $0x10] sm:$0xff] }
  0x23   : > { %v373_v46 = vld [vmem:[%s2950_s11 + $0x18] sm:$0xff]  ;;  %v375_v53 = vld [vmem:[%s2950_s11 + $0x28] sm:$0xff]  ;;  %v374_v54 = vld [vmem:[%s2950_s11 + $0x20] sm:$0xff] }
  0x24   : > { %469 = vperm.xlu1 %2533, %v439_v13   ;;  %464 = vperm.xlu0 %2532, %v438_v14   ;;  %v377_v4 = vld [vmem:[%s2950_s11 + $0x38] sm:$0xff]  ;;  %v376_v5 = vld [vmem:[%s2950_s11 + $0x30] sm:$0xff] }
  0x28   : > { %479 = vperm.xlu1 %2533, %v441_v15   ;;  %474 = vperm.xlu0 %2532, %v440_v16  }
  0x2c   : > { %513 = vperm.xlu1 %2533, %v499_v17   ;;  %508 = vperm.xlu0 %2532, %v498_v18  }
  0x30   : > { %523 = vperm.xlu1 %2533, %v501_v19   ;;  %518 = vperm.xlu0 %2532, %v500_v20  }
  0x34   : > { %533 = vperm.xlu1 %2533, %v503_v21   ;;  %528 = vperm.xlu0 %2532, %v502_v22  }
  0x38   : > { %543 = vperm.xlu1 %2533, %v505_v23   ;;  %538 = vperm.xlu0 %2532, %v504_v24  }
  0x8b   : > { %v399_v25 = vpop.permute.xlu1 %398  ;;  %v389_v26 = vpop.permute.xlu0 %388 }
  0x8c   : > { %v426_v41 = vmul.f32 %v389_v26, %v370_v39  ;;  %v428_v49 = vmul.f32 %v399_v25, %v372_v45 }
  0x8f   : > { %v404_v27 = vpop.permute.xlu1 %403  ;;  %v394_v28 = vpop.permute.xlu0 %393 }
  0x90   : > { %v427_v42 = vmul.f32 %v394_v28, %v371_v40  ;;  %v429_v50 = vmul.f32 %v404_v27, %v373_v46 }
  0x93   : > { %v414_v29 = vpop.permute.xlu1 %413  ;;  %v409_v30 = vpop.permute.xlu0 %408 }
  0x94   : > { %v431_v62 = vmul.f32 %v414_v29, %v375_v53  ;;  %v430_v63 = vmul.f32 %v409_v30, %v374_v54 }
  0x97   : > { %v424_v31 = vpop.permute.xlu1 %423  ;;  %v419_v32 = vpop.permute.xlu0 %418 }
  0x98   : > { %v433_v12 = vmul.f32 %v424_v31, %v377_v4  ;;  %v432_v13 = vmul.f32 %v419_v32, %v376_v5 }
  0x9b   : > { %v450_v33 = vpop.permute.xlu1 %449  ;;  %v445_v34 = vpop.permute.xlu0 %444 }
  0x9c   : > { %v483_v47 = vadd.f32 %v450_v33, %v427_v42  ;;  %v482_v48 = vadd.f32 %v445_v34, %v426_v41  ;;  %v583_v34 = vld [vmem:[%s3120_s6 + $0x10] sm:$0xff] (!%p1903_p10) }
  0x9e   : > { %vm491_vm0 = vcmp.ge.f32.partialorder %v483_v47, 0.0  ;;  %vm490_vm1 = vcmp.ge.f32.partialorder %v482_v48, 0.0 }
  0x9f   : > { %v460_v35 = vpop.permute.xlu1 %459  ;;  %v455_v36 = vpop.permute.xlu0 %454 }
  0xa0   : > { %v485_v58 = vadd.f32 %v460_v35, %v429_v50  ;;  %v484_v59 = vadd.f32 %v455_v36, %v428_v49  ;;  %v581_v35 = vld [vmem:[%s3120_s6] sm:$0xff] (!%p1903_p10)  ;;  %v2753_v36 = vmov (!%p1903_p10), 0  }
  0xa1   : > { %2535 = vset.pattern.permute.xlu1 (!%p1903_p10), %v2753_v36  ;;  %2534 = vset.pattern.permute.xlu0 (!%p1903_p10), %v2753_v36 }
  0xa2   : > { %vm493_vm2 = vcmp.ge.f32.partialorder %v485_v58, 0.0  ;;  %vm492_vm3 = vcmp.ge.f32.partialorder %v484_v59, 0.0  ;;  %597 = vperm.xlu1 (!%p1903_p10), %2535, %v583_v34   ;;  %587 = vperm.xlu0 (!%p1903_p10), %2534, %v581_v35  }
  0xa3   : > { %v470_v37 = vpop.permute.xlu1 %469  ;;  %v465_v38 = vpop.permute.xlu0 %464 }
  0xa4   : > { %v487_v8 = vadd.f32 %v470_v37, %v431_v62  ;;  %v486_v9 = vadd.f32 %v465_v38, %v430_v63  ;;  %v584_v37 = vld [vmem:[%s3120_s6 + $0x18] sm:$0xff] (!%p1903_p10)  ;;  %v582_v38 = vld [vmem:[%s3120_s6 + $0x8] sm:$0xff] (!%p1903_p10) }
  0xa6   : > { %vm495_vm4 = vcmp.ge.f32.partialorder %v487_v8, 0.0  ;;  %vm494_vm5 = vcmp.ge.f32.partialorder %v486_v9, 0.0  ;;  %602 = vperm.xlu1 (!%p1903_p10), %2535, %v584_v37   ;;  %592 = vperm.xlu0 (!%p1903_p10), %2534, %v582_v38  }
  0xa7   : > { %v480_v43 = vpop.permute.xlu1 %479  ;;  %v475_v44 = vpop.permute.xlu0 %474 }
  0xa8   : > { %v489_v20 = vadd.f32 %v480_v43, %v433_v12  ;;  %v488_v21 = vadd.f32 %v475_v44, %v432_v13 }
  0xaa   : > { %vm497_vm6 = vcmp.ge.f32.partialorder %v489_v20, 0.0  ;;  %vm496_vm7 = vcmp.ge.f32.partialorder %v488_v21, 0.0 }
  0xab   : > { %v514_v51 = vpop.permute.xlu1 %513  ;;  %v509_v52 = vpop.permute.xlu0 %508 }
  0xac   : > { %v547_v55 = vmul.f32 %v514_v51, %v483_v47  ;;  %v546_v57 = vmul.f32 %v509_v52, %v482_v48 }
  0xae   : > { %v555_v60 = vsel %vm491_vm0, %v483_v47, %v547_v55  ;;  %v554_v61 = vsel %vm490_vm1, %v482_v48, %v546_v57 }
  0xaf   : > { %v2962_v0 = vmul.f32 %v1902_v56, %v555_v60  ;;  %v2964_v1 = vmul.f32 %v1902_v56, %v554_v61  ;;  %v524_v2 = vpop.permute.xlu1 %523  ;;  %v519_v3 = vpop.permute.xlu0 %518 }
  0xb0   : > { %v549_v6 = vmul.f32 %v524_v2, %v485_v58  ;;  %v548_v7 = vmul.f32 %v519_v3, %v484_v59 }
  0xb2   : > { %v557_v10 = vsel %vm493_vm2, %v485_v58, %v549_v6  ;;  %v556_v11 = vsel %vm492_vm3, %v484_v59, %v548_v7 }
  0xb3   : > { %v2968_v14 = vmul.f32 %v1902_v56, %v557_v10  ;;  %v2970_v15 = vmul.f32 %v1902_v56, %v556_v11  ;;  %v534_v16 = vpop.permute.xlu1 %533  ;;  %v529_v17 = vpop.permute.xlu0 %528 }
  0xb4   : > { %v551_v18 = vmul.f32 %v534_v16, %v487_v8  ;;  %v550_v19 = vmul.f32 %v529_v17, %v486_v9 }
  0xb5   : > { %580 = sbr.rel (%p1903_p10) target bundleno = 295 (0x127), region = 52 }
  0xb6   : > { %v559_v22 = vsel %vm495_vm4, %v487_v8, %v551_v18  ;;  %v558_v23 = vsel %vm494_vm5, %v486_v9, %v550_v19 }
  0xb7   : > { %v2972_v24 = vmul.f32 %v1902_v56, %v559_v22  ;;  %v2974_v25 = vmul.f32 %v1902_v56, %v558_v23  ;;  %v544_v26 = vpop.permute.xlu1 %543  ;;  %v539_v27 = vpop.permute.xlu0 %538 }
  0xb8   : > { %v553_v28 = vmul.f32 %v544_v26, %v489_v20  ;;  %v552_v29 = vmul.f32 %v539_v27, %v488_v21 }
  0xba   : > { %v561_v30 = vsel %vm497_vm6, %v489_v20, %v553_v28  ;;  %v560_v31 = vsel %vm496_vm7, %v488_v21, %v552_v29 }
  0xbb   : > { %v2976_v32 = vmul.f32 %v1902_v56, %v561_v30  ;;  %v2978_v33 = vmul.f32 %v1902_v56, %v560_v31 }
 0x121   : > { %v598_v39 = vpop.permute.xlu1 %597  ;;  %v588_v40 = vpop.permute.xlu0 %587 }
 0x122   : > { %608 = vst.msk [vmem:[%s2884_s21 + $0x10] sm:$0xff] %vm605_vm8, %v598_v39  ;;  %606 = vst.msk [vmem:[%s2884_s21] sm:$0xff] %vm605_vm8, %v588_v40 }
 0x125   : > { %v603_v41 = vpop.permute.xlu1 %602  ;;  %v593_v42 = vpop.permute.xlu0 %592 }
 0x126   : > { %609 = vst.msk [vmem:[%s2884_s21 + $0x18] sm:$0xff] %vm605_vm8, %v603_v41  ;;  %607 = vst.msk [vmem:[%s2884_s21 + $0x8] sm:$0xff] %vm605_vm8, %v593_v42 }
 0x127 PF: > { %v2536_v43 = vpack.i.bf16 %v2962_v0, %v2964_v1  ;;  %v2546_v44 = vpack.i.bf16 %v2968_v14, %v2970_v15  ;;  %s2754_s12 = smov 127   ;;  %s2755_s25 = smov 123   ;;  %v2556_v45 = vpack.i.bf16 %v2972_v24, %v2974_v25  ;;  %v1904_v46 = vld [vmem:[%s2939_s10 + $0x20] sm:$0xff]  ;;  %vm651_vm9 = vcmask 523264   ;;  %v1905_v28 = vld [vmem:[%s2939_s10 + $0x28] sm:$0xff]  ;;  %v1906_v35 = vld [vmem:[%s2939_s10 + $0x30] sm:$0xff] }
 0x128   : > { %2098 = vmatprep.mubr.msk.f32.mxu1 %vm651_vm9, %v1904_v46  ;;  %v2566_v47 = vpack.i.bf16 %v2976_v32, %v2978_v33  ;;  %v1932_v48 = vld [vmem:[%s2939_s10 + $0x80] sm:$0xff]  ;;  %s2756_s13 = smov 122   ;;  %s2757_s11 = smov 126   ;;  %v2296_v21 = vpack.c.bf16 %v2962_v0, %v2964_v1  ;;  %v2300_v34 = vpack.c.bf16 %v2968_v14, %v2970_v15  ;;  %v1933_v36 = vld [vmem:[%s2939_s10 + $0x88] sm:$0xff]  ;;  %v1907_v37 = vld [vmem:[%s2939_s10 + $0x38] sm:$0xff]  ;;  %v2304_v14 = vpack.c.bf16 %v2972_v24, %v2974_v25 }
 0x129   : > { %2537 = vrot.lane.b32.xlu0 %v2536_v43, %s2754_s12  ;;  %2547 = vrot.lane.b32.xlu1 %v2546_v44, %s2754_s12  ;;  %s2758_s26 = smov 120   ;;  %s2759_s23 = smov 124   ;;  %v610_v42 = vld [vmem:[%s2939_s10] sm:$0xff]  ;;  %v1935_v46 = vld [vmem:[%s2939_s10 + $0x98] sm:$0xff]  ;;  %vm1764_vm10 = vcmask 64512  }
 0x12a   : > { %2186 = vmatprep.mubr.msk.f32.mxu0 %vm651_vm9, %v1932_v48  ;;  %s2760_s14 = smov 119   ;;  %s2761_s15 = smov 118  }
 0x12d   : > { %2542 = vrot.lane.b32.xlu0 %v2536_v43, %s2755_s25  ;;  %2552 = vrot.lane.b32.xlu1 %v2546_v44, %s2755_s25 }
 0x131   : > { %2557 = vrot.lane.b32.xlu0 %v2556_v45, %s2754_s12  ;;  %2562 = vrot.lane.b32.xlu1 %v2556_v45, %s2755_s25 }
 0x135   : > { %2567 = vrot.lane.b32.xlu0 %v2566_v47, %s2754_s12  ;;  %2572 = vrot.lane.b32.xlu1 %v2566_v47, %s2755_s25 }
 0x139   : > { %2577 = vrot.lane.b32.xlu0 %v2536_v43, %s2756_s13  ;;  %2582 = vrot.lane.b32.xlu1 %v2546_v44, %s2756_s13 }
 0x13d   : > { %2587 = vrot.lane.b32.xlu0 %v2556_v45, %s2756_s13  ;;  %2592 = vrot.lane.b32.xlu1 %v2566_v47, %s2756_s13 }
 0x141   : > { %2597 = vrot.lane.b32.xlu0 %v2536_v43, %s2757_s11  ;;  %2602 = vrot.lane.b32.xlu1 %v2536_v43, %s2758_s26 }
 0x145   : > { %2607 = vrot.lane.b32.xlu0 %v2546_v44, %s2757_s11  ;;  %2612 = vrot.lane.b32.xlu1 %v2546_v44, %s2758_s26 }
 0x149   : > { %2617 = vrot.lane.b32.xlu0 %v2556_v45, %s2757_s11  ;;  %2622 = vrot.lane.b32.xlu1 %v2556_v45, %s2758_s26 }
 0x14d   : > { %2627 = vrot.lane.b32.xlu0 %v2566_v47, %s2757_s11  ;;  %2632 = vrot.lane.b32.xlu1 %v2566_v47, %s2758_s26 }
 0x151   : > { %2637 = vrot.lane.b32.xlu0 %v2536_v43, %s2759_s23  ;;  %2642 = vrot.lane.b32.xlu1 %v2536_v43, %s2760_s14 }
 0x155   : > { %2647 = vrot.lane.b32.xlu0 %v2546_v44, %s2759_s23  ;;  %2652 = vrot.lane.b32.xlu1 %v2546_v44, %s2760_s14 }
 0x159   : > { %2657 = vrot.lane.b32.xlu0 %v2556_v45, %s2759_s23  ;;  %2662 = vrot.lane.b32.xlu1 %v2556_v45, %s2760_s14 }
 0x15d   : > { %2667 = vrot.lane.b32.xlu0 %v2566_v47, %s2759_s23  ;;  %2672 = vrot.lane.b32.xlu1 %v2566_v47, %s2760_s14 }
 0x161   : > { %2677 = vrot.lane.b32.xlu0 %v2536_v43, %s2761_s15  ;;  %2682 = vrot.lane.b32.xlu1 %v2546_v44, %s2761_s15  ;;  %v1934_v43 = vld [vmem:[%s2939_s10 + $0x90] sm:$0xff] }
 0x165   : > { %2687 = vrot.lane.b32.xlu0 %v2556_v45, %s2761_s15  ;;  %2692 = vrot.lane.b32.xlu1 %v2566_v47, %s2761_s15  ;;  %v2308_v45 = vpack.c.bf16 %v2976_v32, %v2978_v33 }
 0x19b   : > { %v2538_v49 = vpop.permute.xlu0 %2537  ;;  %v2548_v50 = vpop.permute.xlu1 %2547 }
 0x19c   : > { %v2540_v51 = vunpack.i.h.bf16 %v2538_v49  ;;  %v2539_v52 = vunpack.i.l.bf16 %v2538_v49  ;;  %v2550_v53 = vunpack.i.h.bf16 %v2548_v50  ;;  %v2549_v54 = vunpack.i.l.bf16 %v2548_v50 }
 0x19e   : > { %v2284_v55 = vpack.c.bf16 %v2550_v53, %v2549_v54  ;;  %v2280_v56 = vpack.c.bf16 %v2540_v51, %v2539_v52  ;;  %v1940_v51 = vld [vmem:[%s2939_s10 + $0xa0] sm:$0xff] }
 0x19f   : > { %v2543_v57 = vpop.permute.xlu0 %2542  ;;  %v2553_v58 = vpop.permute.xlu1 %2552 }
 0x1a0   : > { %v2545_v59 = vunpack.i.h.bf16 %v2543_v57  ;;  %v2544_v60 = vunpack.i.l.bf16 %v2543_v57  ;;  %2281 = vmatprep.subr.bf16.mxu1 %v2280_v56  ;;  %v2555_v61 = vunpack.i.h.bf16 %v2553_v58  ;;  %v2554_v62 = vunpack.i.l.bf16 %v2553_v58 }
 0x1a1   : > { %2283 = vmatpush3.bf16.msra.mxu1 %v2280_v56 }
 0x1a2   : > { %v2348_v63 = vpack.c.bf16 %v2555_v61, %v2554_v62  ;;  %2285 = vmatprep.subr.bf16.mxu1 %v2284_v55  ;;  %v2344_v2 = vpack.c.bf16 %v2545_v59, %v2544_v60  ;;  %v611_v59 = vld [vmem:[%s2939_s10 + $0x8] sm:$0xff] }
 0x1a3   : > { %v2558_v3 = vpop.permute.xlu0 %2557  ;;  %v2563_v4 = vpop.permute.xlu1 %2562 }
 0x1a4   : > { %v2560_v5 = vunpack.i.h.bf16 %v2558_v3  ;;  %v2559_v6 = vunpack.i.l.bf16 %v2558_v3  ;;  %2345 = vmatprep.subr.bf16.mxu0 %v2344_v2  ;;  %v2565_v7 = vunpack.i.h.bf16 %v2563_v4  ;;  %v2564_v8 = vunpack.i.l.bf16 %v2563_v4 }
 0x1a5   : > { %2287 = vmatpush3.bf16.msra.mxu1 %v2284_v55  ;;  %2347 = vmatpush3.bf16.msra.mxu0 %v2344_v2 }
 0x1a6   : > { %v2288_v9 = vpack.c.bf16 %v2560_v5, %v2559_v6  ;;  %v2352_v10 = vpack.c.bf16 %v2565_v7, %v2564_v8  ;;  %2349 = vmatprep.subr.bf16.mxu0 %v2348_v63  ;;  %v612_v5 = vld [vmem:[%s2939_s10 + $0x10] sm:$0xff]  ;;  %v1941_v6 = vld [vmem:[%s2939_s10 + $0xa8] sm:$0xff] }
 0x1a7   : > { %v2568_v11 = vpop.permute.xlu0 %2567  ;;  %v2573_v12 = vpop.permute.xlu1 %2572 }
 0x1a8   : > { %v2570_v13 = vunpack.i.h.bf16 %v2568_v11  ;;  %v2569_v16 = vunpack.i.l.bf16 %v2568_v11  ;;  %2289 = vmatprep.subr.bf16.mxu1 %v2288_v9  ;;  %v2575_v17 = vunpack.i.h.bf16 %v2573_v12  ;;  %v2574_v18 = vunpack.i.l.bf16 %v2573_v12 }
 0x1a9   : > { %2291 = vmatpush3.bf16.msra.mxu1 %v2288_v9  ;;  %2351 = vmatpush3.bf16.msra.mxu0 %v2348_v63  ;;  %v613_v9 = vld [vmem:[%s2939_s10 + $0x18] sm:$0xff] }
 0x1aa   : > { %v2292_v19 = vpack.c.bf16 %v2570_v13, %v2569_v16  ;;  %v2356_v20 = vpack.c.bf16 %v2575_v17, %v2574_v18  ;;  %2353 = vmatprep.subr.bf16.mxu0 %v2352_v10  ;;  %v1916_v18 = vld [vmem:[%s2939_s10 + $0x40] sm:$0xff] }
 0x1ab   : > { %v2578_v22 = vpop.permute.xlu0 %2577  ;;  %v2583_v23 = vpop.permute.xlu1 %2582 }
 0x1ac   : > { %2293 = vmatprep.subr.bf16.mxu1 %v2292_v19  ;;  %v2580_v26 = vunpack.i.h.bf16 %v2578_v22  ;;  %v2579_v27 = vunpack.i.l.bf16 %v2578_v22  ;;  %v2585_v30 = vunpack.i.h.bf16 %v2583_v23  ;;  %v2584_v31 = vunpack.i.l.bf16 %v2583_v23  ;;  %v1943_v22 = vld [vmem:[%s2939_s10 + $0xb8] sm:$0xff] }
 0x1ad   : > { %2295 = vmatpush3.bf16.msra.mxu1 %v2292_v19  ;;  %2355 = vmatpush3.bf16.msra.mxu0 %v2352_v10  ;;  %v1942_v19 = vld [vmem:[%s2939_s10 + $0xb0] sm:$0xff] }
 0x1ae   : > { %v2360_v29 = vpack.c.bf16 %v2580_v26, %v2579_v27  ;;  %2297 = vmatprep.subr.bf16.mxu1 %v2296_v21  ;;  %2357 = vmatprep.subr.bf16.mxu0 %v2356_v20  ;;  %v2364_v38 = vpack.c.bf16 %v2585_v30, %v2584_v31  ;;  %v1948_v31 = vld [vmem:[%s2939_s10 + $0xc0] sm:$0xff] }
 0x1af   : > { %v2588_v0 = vpop.permute.xlu0 %2587  ;;  %v2593_v1 = vpop.permute.xlu1 %2592 }
 0x1b0   : > { %2099 = vmatmul.mubr.msk.f32.vlgmr.msra.gmra.mrb[0].mxu1 %vm651_vm9, %v1905_v28  ;;  %v2590_v39 = vunpack.i.h.bf16 %v2588_v0  ;;  %v2589_v40 = vunpack.i.l.bf16 %v2588_v0  ;;  %v2595_v44 = vunpack.i.h.bf16 %v2593_v1  ;;  %v2594_v24 = vunpack.i.l.bf16 %v2593_v1 }
 0x1b1   : > { %2299 = vmatpush3.bf16.msra.mxu1 %v2296_v21  ;;  %2359 = vmatpush3.bf16.msra.mxu0 %v2356_v20 }
 0x1b2   : > { %2301 = vmatprep.subr.bf16.mxu1 %v2300_v34  ;;  %2361 = vmatprep.subr.bf16.mxu0 %v2360_v29  ;;  %v2368_v47 = vpack.c.bf16 %v2590_v39, %v2589_v40  ;;  %v2372_v52 = vpack.c.bf16 %v2595_v44, %v2594_v24 }
 0x1b3   : > { %v2598_v15 = vpop.permute.xlu0 %2597  ;;  %2101 = vmatprep.mubr.msk.f32.mxu1 %vm651_vm9, %v1906_v35  ;;  %v2603_v41 = vpop.permute.xlu1 %2602 }
 0x1b4   : > { %2187 = vmatmul.mubr.msk.f32.vlgmr.msra.gmra.mrb[0].mxu0 %vm651_vm9, %v1933_v36  ;;  %2102 = vmatmul.mubr.msk.f32.gmra.mrb[2].mxu1 %vm651_vm9, %v1907_v37  ;;  %v2600_v25 = vunpack.i.h.bf16 %v2598_v15  ;;  %v2599_v48 = vunpack.i.l.bf16 %v2598_v15  ;;  %v2605_v32 = vunpack.i.h.bf16 %v2603_v41  ;;  %v2604_v33 = vunpack.i.l.bf16 %v2603_v41 }
 0x1b5   : > { %2303 = vmatpush3.bf16.msra.mxu1 %v2300_v34  ;;  %2363 = vmatpush3.bf16.msra.mxu0 %v2360_v29 }
 0x1b6   : > { %2305 = vmatprep.subr.bf16.mxu1 %v2304_v14  ;;  %2365 = vmatprep.subr.bf16.mxu0 %v2364_v38  ;;  %v2312_v53 = vpack.c.bf16 %v2600_v25, %v2599_v48  ;;  %v2376_v58 = vpack.c.bf16 %v2605_v32, %v2604_v33  ;;  %v1919_v48 = vld [vmem:[%s2939_s10 + $0x58] sm:$0xff] }
 0x1b7   : > { %v2608_v49 = vpop.permute.xlu0 %2607  ;;  %2120 = vmatprep.mubr.msk.f32.mxu1 %vm651_vm9, %v610_v42  ;;  %2189 = vmatprep.mubr.msk.f32.mxu0 %vm651_vm9, %v1934_v43  ;;  %v2613_v50 = vpop.permute.xlu1 %2612 }
 0x1b8   : > { %2190 = vmatmul.mubr.msk.f32.gmra.mrb[2].mxu0 %vm651_vm9, %v1935_v46  ;;  %v2610_v54 = vunpack.i.h.bf16 %v2608_v49  ;;  %v2609_v55 = vunpack.i.l.bf16 %v2608_v49  ;;  %v2615_v60 = vunpack.i.h.bf16 %v2613_v50  ;;  %v2614_v62 = vunpack.i.l.bf16 %v2613_v50  ;;  %v1918_v46 = vld [vmem:[%s2939_s10 + $0x50] sm:$0xff] }
 0x1b9   : > { %2307 = vmatpush3.bf16.msra.mxu1 %v2304_v14  ;;  %2367 = vmatpush3.bf16.msra.mxu0 %v2364_v38  ;;  %v1917_v14 = vld [vmem:[%s2939_s10 + $0x48] sm:$0xff] }
 0x1ba   : > { %2309 = vmatprep.subr.bf16.mxu1 %v2308_v45  ;;  %2369 = vmatprep.subr.bf16.mxu0 %v2368_v47  ;;  %v2316_v61 = vpack.c.bf16 %v2610_v54, %v2609_v55  ;;  %v2380_v10 = vpack.c.bf16 %v2615_v60, %v2614_v62  ;;  %v1950_v54 = vld [vmem:[%s2939_s10 + $0xd0] sm:$0xff] }
 0x1bb   : > { %v2618_v56 = vpop.permute.xlu0 %2617  ;;  %2208 = vmatprep.mubr.msk.f32.mxu0 %vm651_vm9, %v1940_v51  ;;  %v2623_v57 = vpop.permute.xlu1 %2622 }
 0x1bc   : > { %v2620_v63 = vunpack.i.h.bf16 %v2618_v56  ;;  %v2619_v2 = vunpack.i.l.bf16 %v2618_v56  ;;  %v2625_v7 = vunpack.i.h.bf16 %v2623_v57  ;;  %v2624_v8 = vunpack.i.l.bf16 %v2623_v57  ;;  %v1951_v57 = vld [vmem:[%s2939_s10 + $0xd8] sm:$0xff] }
 0x1bd   : > { %2311 = vmatpush3.bf16.msra.mxu1 %v2308_v45  ;;  %2371 = vmatpush3.bf16.msra.mxu0 %v2368_v47  ;;  %v1949_v47 = vld [vmem:[%s2939_s10 + $0xc8] sm:$0xff] }
 0x1be   : > { %2313 = vmatprep.subr.bf16.mxu1 %v2312_v53  ;;  %2373 = vmatprep.subr.bf16.mxu0 %v2372_v52  ;;  %v2320_v11 = vpack.c.bf16 %v2620_v63, %v2619_v2  ;;  %v2384_v20 = vpack.c.bf16 %v2625_v7, %v2624_v8  ;;  %v1956_v63 = vld [vmem:[%s2939_s10 + $0xe0] sm:$0xff]  ;;  %v1925_v7 = vld [vmem:[%s2939_s10 + $0x68] sm:$0xff] }
 0x1bf   : > { %v2628_v3 = vpop.permute.xlu0 %2627  ;;  %v2633_v4 = vpop.permute.xlu1 %2632 }
 0x1c0   : > { %2121 = vmatmul.mubr.msk.f32.vlgmr.msra.gmra.mrb[0].mxu1 %vm651_vm9, %v611_v59  ;;  %v2630_v12 = vunpack.i.h.bf16 %v2628_v3  ;;  %v2629_v13 = vunpack.i.l.bf16 %v2628_v3  ;;  %v2635_v21 = vunpack.i.h.bf16 %v2633_v4  ;;  %v2634_v26 = vunpack.i.l.bf16 %v2633_v4 }
 0x1c1   : > { %2315 = vmatpush3.bf16.msra.mxu1 %v2312_v53  ;;  %2375 = vmatpush3.bf16.msra.mxu0 %v2372_v52  ;;  %v1924_v53 = vld [vmem:[%s2939_s10 + $0x60] sm:$0xff] }
 0x1c2   : > { %2317 = vmatprep.subr.bf16.mxu1 %v2316_v61  ;;  %2377 = vmatprep.subr.bf16.mxu0 %v2376_v58  ;;  %v2324_v23 = vpack.c.bf16 %v2630_v12, %v2629_v13  ;;  %v2388_v1 = vpack.c.bf16 %v2635_v21, %v2634_v26  ;;  %v1927_v13 = vld [vmem:[%s2939_s10 + $0x78] sm:$0xff]  ;;  %v1966_v21 = vld [vmem:[%s2939_s10 + $0x110] sm:$0xff]  ;;  %v1964_v26 = vld [vmem:[%s2939_s10 + $0x100] sm:$0xff] }
 0x1c3   : > { %v2638_v16 = vpop.permute.xlu0 %2637  ;;  %2123 = vmatprep.mubr.msk.f32.mxu1 %vm651_vm9, %v612_v5  ;;  %v2643_v17 = vpop.permute.xlu1 %2642 }
 0x1c4   : > { %2209 = vmatmul.mubr.msk.f32.vlgmr.msra.gmra.mrb[0].mxu0 %vm651_vm9, %v1941_v6  ;;  %2124 = vmatmul.mubr.msk.f32.gmra.mrb[2].mxu1 %vm651_vm9, %v613_v9  ;;  %v2640_v27 = vunpack.i.h.bf16 %v2638_v16  ;;  %v2639_v28 = vunpack.i.l.bf16 %v2638_v16  ;;  %v2645_v34 = vunpack.i.h.bf16 %v2643_v17  ;;  %v2644_v0 = vunpack.i.l.bf16 %v2643_v17  ;;  %v1957_v16 = vld [vmem:[%s2939_s10 + $0xe8] sm:$0xff] }
 0x1c5   : > { %2319 = vmatpush3.bf16.msra.mxu1 %v2316_v61  ;;  %2379 = vmatpush3.bf16.msra.mxu0 %v2376_v58 }
 0x1c6   : > { %2321 = vmatprep.subr.bf16.mxu1 %v2320_v11  ;;  %2381 = vmatprep.subr.bf16.mxu0 %v2380_v10  ;;  %v2328_v35 = vpack.c.bf16 %v2640_v27, %v2639_v28  ;;  %v2392_v40 = vpack.c.bf16 %v2645_v34, %v2644_v0  ;;  %v1967_v27 = vld [vmem:[%s2939_s10 + $0x118] sm:$0xff]  ;;  %v1965_v28 = vld [vmem:[%s2939_s10 + $0x108] sm:$0xff] }
 0x1c7   : > { %v2648_v29 = vpop.permute.xlu0 %2647  ;;  %2142 = vmatprep.mubr.msk.f32.mxu1 %vm651_vm9, %v1916_v18  ;;  %2211 = vmatprep.mubr.msk.f32.mxu0 %vm651_vm9, %v1942_v19  ;;  %v2653_v30 = vpop.permute.xlu1 %2652 }
 0x1c8   : > { %2212 = vmatmul.mubr.msk.f32.gmra.mrb[2].mxu0 %vm651_vm9, %v1943_v22  ;;  %v2650_v36 = vunpack.i.h.bf16 %v2648_v29  ;;  %v2649_v37 = vunpack.i.l.bf16 %v2648_v29  ;;  %v2655_v15 = vunpack.i.h.bf16 %v2653_v30  ;;  %v2654_v42 = vunpack.i.l.bf16 %v2653_v30  ;;  %v1959_v22 = vld [vmem:[%s2939_s10 + $0xf8] sm:$0xff] }
 0x1c9   : > { %2323 = vmatpush3.bf16.msra.mxu1 %v2320_v11  ;;  %2383 = vmatpush3.bf16.msra.mxu0 %v2380_v10  ;;  %v1926_v11 = vld [vmem:[%s2939_s10 + $0x70] sm:$0xff] }
 0x1ca   : > { %2325 = vmatprep.subr.bf16.mxu1 %v2324_v23  ;;  %2385 = vmatprep.subr.bf16.mxu0 %v2384_v20  ;;  %v2332_v41 = vpack.c.bf16 %v2650_v36, %v2649_v37  ;;  %v2396_v49 = vpack.c.bf16 %v2655_v15, %v2654_v42 }
 0x1cb   : > { %v2658_v38 = vpop.permute.xlu0 %2657  ;;  %2230 = vmatprep.mubr.msk.f32.mxu0 %vm651_vm9, %v1948_v31  ;;  %v2663_v39 = vpop.permute.xlu1 %2662 }
 0x1cc   : > { %v2660_v43 = vunpack.i.h.bf16 %v2658_v38  ;;  %v2659_v44 = vunpack.i.l.bf16 %v2658_v38  ;;  %v2665_v24 = vunpack.i.h.bf16 %v2663_v39  ;;  %v2664_v25 = vunpack.i.l.bf16 %v2663_v39  ;;  %v1759_v38 = vld [vmem:[%s2884_s21 + $0x18] sm:$0xff] }
 0x1cd   : > { %2327 = vmatpush3.bf16.msra.mxu1 %v2324_v23  ;;  %2387 = vmatpush3.bf16.msra.mxu0 %v2384_v20  ;;  %v1958_v20 = vld [vmem:[%s2939_s10 + $0xf0] sm:$0xff] }
 0x1ce   : > { %2329 = vmatprep.subr.bf16.mxu1 %v2328_v35  ;;  %2389 = vmatprep.subr.bf16.mxu0 %v2388_v1  ;;  %v2336_v50 = vpack.c.bf16 %v2660_v43, %v2659_v44  ;;  %v2400_v55 = vpack.c.bf16 %v2665_v24, %v2664_v25  ;;  %v1757_v44 = vld [vmem:[%s2884_s21 + $0x8] sm:$0xff] }
 0x1cf   : > { %v2668_v45 = vpop.permute.xlu0 %2667  ;;  %v2673_v33 = vpop.permute.xlu1 %2672 }
 0x1d0   : > { %2143 = vmatmul.mubr.msk.f32.vlgmr.msra.gmra.mrb[0].mxu1 %vm651_vm9, %v1917_v14  ;;  %v2670_v51 = vunpack.i.h.bf16 %v2668_v45  ;;  %v2669_v32 = vunpack.i.l.bf16 %v2668_v45  ;;  %v2675_v56 = vunpack.i.h.bf16 %v2673_v33  ;;  %v2674_v59 = vunpack.i.l.bf16 %v2673_v33  ;;  %v1758_v14 = vld [vmem:[%s2884_s21 + $0x10] sm:$0xff] }
 0x1d1   : > { %2331 = vmatpush3.bf16.msra.mxu1 %v2328_v35  ;;  %2391 = vmatpush3.bf16.msra.mxu0 %v2388_v1 }
 0x1d2   : > { %2333 = vmatprep.subr.bf16.mxu1 %v2332_v41  ;;  %2393 = vmatprep.subr.bf16.mxu0 %v2392_v40  ;;  %v2340_v58 = vpack.c.bf16 %v2670_v51, %v2669_v32  ;;  %v2404_v2 = vpack.c.bf16 %v2675_v56, %v2674_v59 }
 0x1d3   : > { %v2678_v52 = vpop.permute.xlu0 %2677  ;;  %2145 = vmatprep.mubr.msk.f32.mxu1 %vm651_vm9, %v1918_v46  ;;  %v2683_v62 = vpop.permute.xlu1 %2682 }
 0x1d4   : > { %2231 = vmatmul.mubr.msk.f32.vlgmr.msra.gmra.mrb[0].mxu0 %vm651_vm9, %v1949_v47  ;;  %2146 = vmatmul.mubr.msk.f32.gmra.mrb[2].mxu1 %vm651_vm9, %v1919_v48  ;;  %v2680_v60 = vunpack.i.h.bf16 %v2678_v52  ;;  %v2679_v61 = vunpack.i.l.bf16 %v2678_v52  ;;  %v2685_v4 = vunpack.i.h.bf16 %v2683_v62  ;;  %v2684_v5 = vunpack.i.l.bf16 %v2683_v62  ;;  %v1756_v47 = vld [vmem:[%s2884_s21] sm:$0xff] }
 0x1d5   : > { %2335 = vmatpush3.bf16.msra.mxu1 %v2332_v41  ;;  %2395 = vmatpush3.bf16.msra.mxu0 %v2392_v40 }
 0x1d6   : > { %2337 = vmatprep.subr.bf16.mxu1 %v2336_v50  ;;  %2397 = vmatprep.subr.bf16.mxu0 %v2396_v49  ;;  %v2408_v3 = vpack.c.bf16 %v2680_v60, %v2679_v61  ;;  %v2412_v8 = vpack.c.bf16 %v2685_v4, %v2684_v5 }
 0x1d7   : > { %2164 = vmatprep.mubr.msk.f32.mxu1 %vm651_vm9, %v1924_v53  ;;  %2233 = vmatprep.mubr.msk.f32.mxu0 %vm651_vm9, %v1950_v54  ;;  %v2688_v6 = vpop.permute.xlu0 %2687  ;;  %v2693_v12 = vpop.permute.xlu1 %2692 }
 0x1d8   : > { %2234 = vmatmul.mubr.msk.f32.gmra.mrb[2].mxu0 %vm651_vm9, %v1951_v57  ;;  %v2690_v9 = vunpack.i.h.bf16 %v2688_v6  ;;  %v2689_v10 = vunpack.i.l.bf16 %v2688_v6  ;;  %v2695_v17 = vunpack.i.h.bf16 %v2693_v12  ;;  %v2694_v18 = vunpack.i.l.bf16 %v2693_v12 }
 0x1d9   : > { %2339 = vmatpush3.bf16.msra.mxu1 %v2336_v50  ;;  %2399 = vmatpush3.bf16.msra.mxu0 %v2396_v49 }
 0x1da   : > { %2341 = vmatprep.subr.bf16.mxu1 %v2340_v58  ;;  %2401 = vmatprep.subr.bf16.mxu0 %v2400_v55  ;;  %v2416_v19 = vpack.c.bf16 %v2690_v9, %v2689_v10  ;;  %v2420_v23 = vpack.c.bf16 %v2695_v17, %v2694_v18 }
 0x1db   : > { %2252 = vmatprep.mubr.msk.f32.mxu0 %vm651_vm9, %v1956_v63 }
 0x1dd   : > { %2343 = vmatpush3.bf16.msra.mxu1 %v2340_v58  ;;  %2403 = vmatpush3.bf16.msra.mxu0 %v2400_v55 }
 0x1de   : > { %2405 = vmatprep.subr.bf16.mxu0 %v2404_v2  ;;  %2424 = vmatprep.subr.bf16.mxu1 %v2408_v3 }
 0x1e0   : > { %2165 = vmatmul.mubr.msk.f32.vlgmr.msra.gmra.mrb[0].mxu1 %vm651_vm9, %v1925_v7 }
 0x1e1   : > { %2407 = vmatpush3.bf16.msra.mxu0 %v2404_v2  ;;  %2428 = vmatpush3.bf16.msra.mxu1 %v2408_v3 }
 0x1e2   : > { %2167 = vmatprep.mubr.msk.f32.mxu1 %vm651_vm9, %v1926_v11  ;;  %2409 = vmatprep.subr.bf16.mxu0 %v2408_v3 }
 0x1e3   : > { %2425 = vmatprep.subr.bf16.mxu1 %v2412_v8 }
 0x1e4   : > { %2168 = vmatmul.mubr.msk.f32.gmra.mrb[2].mxu1 %vm651_vm9, %v1927_v13  ;;  %2253 = vmatmul.mubr.msk.f32.vlgmr.msra.gmra.mrb[0].mxu0 %vm651_vm9, %v1957_v16 }
 0x1e5   : > { %2411 = vmatpush3.bf16.msra.mxu0 %v2408_v3  ;;  %2429 = vmatpush3.bf16.msra.mxu1 %v2412_v8 }
 0x1e6   : > { %2255 = vmatprep.mubr.msk.f32.mxu0 %vm651_vm9, %v1958_v20  ;;  %2413 = vmatprep.subr.bf16.mxu0 %v2412_v8 }
 0x1e7   : > { %2426 = vmatprep.subr.bf16.mxu1 %v2416_v19  ;;  %2277 = vmatprep.mubr.msk.f32.mxu1 %vm651_vm9, %v1966_v21 }
 0x1e8   : > { %2256 = vmatmul.mubr.msk.f32.gmra.mrb[2].mxu0 %vm651_vm9, %v1959_v22 }
 0x1e9   : > { %2415 = vmatpush3.bf16.msra.mxu0 %v2412_v8  ;;  %2430 = vmatpush3.bf16.msra.mxu1 %v2416_v19 }
 0x1ea   : > { %2417 = vmatprep.subr.bf16.mxu0 %v2416_v19  ;;  %2427 = vmatprep.subr.bf16.mxu1 %v2420_v23 }
 0x1eb   : > { %2274 = vmatprep.mubr.msk.f32.mxu0 %vm651_vm9, %v1964_v26 }
 0x1ed   : > { %2419 = vmatpush3.bf16.msra.mxu0 %v2416_v19  ;;  %2431 = vmatpush3.bf16.msra.mxu1 %v2420_v23 }
 0x1ee   : > { %2421 = vmatprep.subr.bf16.mxu0 %v2420_v23 }
 0x1f0   : > { %2278 = vmatmul.mubr.msk.f32.vlgmr.msra.gmra.mrb[4].mxu1 %vm651_vm9, %v1967_v27 }
 0x1f1   : > { %2423 = vmatpush3.bf16.msra.mxu0 %v2420_v23 }
 0x1f4   : > { %2275 = vmatmul.mubr.msk.f32.vlgmr.msra.gmra.mrb[0].mxu0 %vm651_vm9, %v1965_v28 }
 0x2b3   : > { %v2166_v29 = vpop.f32.mrb[0].mxu1 }
 0x2b4   : > { %v1083_v30 = vpop.f32.mrb[1].mxu1 }
 0x2b7   : > { %v2169_v31 = vpop.f32.mrb[2].mxu1 }
 0x2b8   : > { %v1093_v34 = vpop.f32.mrb[3].mxu1 }
 0x2bb   : > { %v2257_v0 = vpop.f32.mrb[2].mxu0 }
 0x2bc   : > { %v2434_v1 = vadd.f32 %v2257_v0, %v2169_v31  ;;  %v1613_v35 = vpop.f32.mrb[3].mxu0 }
 0x2bd   : > { %v2436_v36 = vadd.f32 %v1613_v35, %v1093_v34 }
 0x2c3   : > { %v2279_v37 = vpop.f32.mrb[4].mxu1 }
 0x2c4   : > { %v2435_v39 = vadd.f32 %v2434_v1, %v2279_v37  ;;  %v1743_v40 = vpop.f32.mrb[5].mxu1 }
 0x2c5   : > { %v2437_v15 = vadd.f32 %v2436_v36, %v1743_v40 }
 0x2c6   : > { %v1763_v41 = vadd.f32 %v2435_v39, %v1759_v38 }
 0x2c7   : > { %v1762_v42 = vadd.f32 %v2437_v15, %v1758_v14  ;;  %v2276_v43 = vpop.f32.mrb[0].mxu0 }
 0x2c8   : > { %1768 = vst.msk [vmem:[%s2884_s21 + $0x18] sm:$0xff] %vm1764_vm10, %v1763_v41  ;;  %v2432_v45 = vadd.f32 %v2276_v43, %v2166_v29  ;;  %v1733_v46 = vpop.f32.mrb[1].mxu0 }
 0x2c9   : > { %1767 = vst.msk [vmem:[%s2884_s21 + $0x10] sm:$0xff] %vm1764_vm10, %v1762_v42  ;;  %v2433_v24 = vadd.f32 %v1733_v46, %v1083_v30 }
 0x2ca   : > { %v1761_v25 = vadd.f32 %v2432_v45, %v1757_v44 }
 0x2cb   : > { %v1760_v48 = vadd.f32 %v2433_v24, %v1756_v47 }
 0x2cc   : > { %1766 = vst.msk [vmem:[%s2884_s21 + $0x8] sm:$0xff] %vm1764_vm10, %v1761_v25 }
 0x2cd   : > { %1765 = vst.msk [vmem:[%s2884_s21] sm:$0xff] %vm1764_vm10, %v1760_v48 }
 0x2ce PF: > { %s17_s30 = sadd.s32 1, %s2750_s30   ;;  %s3123_s10 = sld [smem:[#allocation2_spill]] }
 0x2cf   : > { %p14_p11 = scmp.ge.s32.totalorder %s17_s30, 26   ;;  %s3124_s24 = smov %s2738_s27 }
 0x2d0   : > { %s3125_s25 = smov %s2742_s28  ;;  %s3126_s26 = smov %s2746_s29 }
 0x2d1   : > { %s3127_s27 = smov %s3131_s8  ;;  %s3128_s28 = smov %s3135_s9 }
 0x2d2   :  { %16 = sbr.rel (!%p14_p11) target bundleno = 4 (0x4), region = 96 }
 0x2d4   : > { %s3129_s29 = smov %s3123_s10 }

// kernel: tile.33
= control target key start
LH: loop header
LB: loop body
LE: loop exit
PB: predicated region body
PF: predicated region fallthrough
CT: control target
= control target key end

     0   :  { %s22_s0 = inlined_call_operand.vmem [shape: f32[8], index: 0, kind: input, shape index: {}]   ;;  %s23_s1 = inlined_call_operand.vmem [shape: f32[4,8], index: 1, kind: output, shape index: {}]  }
   0x1   :  { %v4_v0 = vld [vmem:[%s22_s0] ss:$0 sm:$0xff] }
   0x2   :  { %5 = vst [vmem:[%s23_s1] sm:$0xf] %v4_v0 }

// kernel: tile.2
= control target key start
LH: loop header
LB: loop body
LE: loop exit
PB: predicated region body
PF: predicated region fallthrough
CT: control target
= control target key end

     0   :  { %s66_s8 = smov 125   ;;  %vm7_vm0 = vcmask 7168   ;;  %s67_s11 = smov 126   ;;  %s117_s0 = inlined_call_operand.vmem [shape: f32[4,8], index: 0, kind: input, shape index: {}]   ;;  %s118_s1 = inlined_call_operand.vmem [shape: f32[32,1], index: 1, kind: output, shape index: {}]  }
   0x1   :  { %v4_v0 = vld [vmem:[%s117_s0] sm:$0xf]  ;;  %s65_s0 = smov 127   ;;  %s68_s12 = smov 124  }
   0x2   :  { %5 = vst [vmem:[#allocation0] sm:$0xf] %v4_v0  ;;  %s69_s13 = smov 123   ;;  %s70_s14 = smov 122  }
   0x3   :  { %s71_s15 = smov 121  }
   0x9   :  { %v9_v1 = vld [vmem:[#allocation0] sm:$0xf]  }
   0xa   :  { %v21_v2 = vld [vmem:[#allocation0] sm:$0xf]   ;;  %10 = vrot.lane.b32.xlu0 %v9_v1, %s65_s0 }
   0xb   :  { %22 = vrot.lane.b32.xlu1 %v21_v2, %s66_s8  ;;  %v15_v3 = vld [vmem:[#allocation0] sm:$0xf]  }
   0xc   :  { %v27_v4 = vld [vmem:[#allocation0] sm:$0xf]  }
   0xd   :  { %v6_v5 = vld [vmem:[#allocation0] sm:$0xf]  }
   0xe   :  { %8 = vst.msk [vmem:[%s118_s1] ss:$8 sm:$0xf] %vm7_vm0, %v6_v5   ;;  %16 = vrot.lane.b32.xlu0 %v15_v3, %s67_s11  ;;  %v33_v6 = vld [vmem:[#allocation0] sm:$0xf]  }
   0xf   :  { %28 = vrot.lane.b32.xlu1 %v27_v4, %s68_s12  ;;  %v39_v7 = vld [vmem:[#allocation0] sm:$0xf]  }
  0x10   :  { %v45_v8 = vld [vmem:[#allocation0] sm:$0xf]  }
  0x12   :  { %34 = vrot.lane.b32.xlu0 %v33_v6, %s69_s13 }
  0x13   :  { %40 = vrot.lane.b32.xlu1 %v39_v7, %s70_s14 }
  0x16   :  { %46 = vrot.lane.b32.xlu0 %v45_v8, %s71_s15 }
  0x7c   :  { %v11_v9 = vpop.permute.xlu0 %10  }
  0x7d   :  { %v23_v10 = vpop.permute.xlu1 %22   ;;  %51 = vst.msk [vmem:[%s118_s1 + $0x1] ss:$8 sm:$0xf] %vm7_vm0, %v11_v9  }
  0x7e   :  { %53 = vst.msk [vmem:[%s118_s1 + $0x3] ss:$8 sm:$0xf] %vm7_vm0, %v23_v10  }
  0x80   :  { %v17_v11 = vpop.permute.xlu0 %16  }
  0x81   :  { %v29_v12 = vpop.permute.xlu1 %28   ;;  %52 = vst.msk [vmem:[%s118_s1 + $0x2] ss:$8 sm:$0xf] %vm7_vm0, %v17_v11  }
  0x82   :  { %54 = vst.msk [vmem:[%s118_s1 + $0x4] ss:$8 sm:$0xf] %vm7_vm0, %v29_v12  }
  0x84   :  { %v35_v13 = vpop.permute.xlu0 %34  }
  0x85   :  { %v41_v14 = vpop.permute.xlu1 %40   ;;  %55 = vst.msk [vmem:[%s118_s1 + $0x5] ss:$8 sm:$0xf] %vm7_vm0, %v35_v13  }
  0x86   :  { %56 = vst.msk [vmem:[%s118_s1 + $0x6] ss:$8 sm:$0xf] %vm7_vm0, %v41_v14  }
  0x88   :  { %v47_v15 = vpop.permute.xlu0 %46  }
  0x89   :  { %57 = vst.msk [vmem:[%s118_s1 + $0x7] ss:$8 sm:$0xf] %vm7_vm0, %v47_v15  }

// kernel: hiformer_v3_forward.46
= control target key start
LH: loop header
LB: loop body
LE: loop exit
PB: predicated region body
PF: predicated region fallthrough
CT: control target
= control target key end

     0   :  { %s2042_s24 = smov 0   ;;  %s2044_s25 = smov 0   ;;  %s2240_s0 = inlined_call_operand.vmem [shape: f32[2,10,32,42], index: 0, kind: input, shape index: {}]   ;;  %s2241_s1 = inlined_call_operand.vmem [shape: f32[3,9,16,32], index: 1, kind: input, shape index: {}]   ;;  %s2242_s2 = inlined_call_operand.vmem [shape: f32[10,1,42], index: 2, kind: input, shape index: {}]   ;;  %s2243_s3 = inlined_call_operand.vmem [shape: f32[32,1], index: 3, kind: input, shape index: {}]   ;;  %s2244_s4 = inlined_call_operand.vmem [shape: f32[32,1], index: 4, kind: input, shape index: {}]   ;;  %s2245_s5 = inlined_call_operand.vmem [shape: f32[32,1], index: 5, kind: input, shape index: {}]   ;;  %s2246_s6 = inlined_call_operand.vmem [shape: f32[16,1], index: 6, kind: input, shape index: {}]   ;;  %s2247_s7 = inlined_call_operand.vmem [shape: f32[2,8,16,24], index: 7, kind: output, shape index: {}]  }
   0x1   :  { %s2046_s26 = smov 0   ;;  %s2048_s27 = smov 0  }
   0x2   :  { %s2050_s28 = smov 0   ;;  %s2052_s29 = smov 0  }
   0x3   :  { %s2054_s30 = smov 0  }
   0x4 LB: > { %s29_s8 = sadd.s32 1, %s1978_s27  ;;  %s32_s9 = sadd.s32 1, %s1982_s28  ;;  %s1990_s30 = sphi %s2054_s30, %s17_s30   ;;  %s1986_s29 = sphi %s2052_s29, %s2253_s29   ;;  %s1982_s28 = sphi %s2050_s28, %s2252_s28   ;;  %s1978_s27 = sphi %s2048_s27, %s2251_s27   ;;  %s1974_s26 = sphi %s2046_s26, %s2250_s26   ;;  %s1970_s25 = sphi %s2044_s25, %s2249_s25   ;;  %s1966_s24 = sphi %s2042_s24, %s2248_s24  }
   0x5   : > { %p30_p0 = scmp.ge.s32.totalorder %s29_s8, 3  ;;  %p1499_p1 = scmp.ge.s32.totalorder %s1990_s30, 1 }
   0x6   : > { %p290_p2 = scmp.lt.s32.totalorder %s1990_s30, 49  ;;  %s36_s10 = sadd.s32 1, %s1986_s29 }
   0x7   : > { %s2255_s8 = smov (%p30_p0, %s29_s8), 0  ;;  %s2257_s9 = smov (!%p30_p0, %s32_s9), %s1982_s28 }
   0x8   : > { %p291_p3 = pnand %p1499_p1, %p290_p2  ;;  %p34_p4 = scmp.ge.s32.totalorder %s2257_s9, 8 }
   0x9   : > { %v376_v0 = vld [vmem:[%s2243_s3 + $0x10] sm:$0xff] (!%p291_p3)  ;;  %v374_v1 = vld [vmem:[%s2243_s3] sm:$0xff] (!%p291_p3)  ;;  %v1992_v2 = vmov (!%p291_p3), 0   ;;  %p341_p6 = scmp.lt.s32.totalorder (!%p291_p3), %s1974_s26, 1  ;;  %v377_v3 = vld [vmem:[%s2243_s3 + $0x18] sm:$0xff] (!%p291_p3)  ;;  %p363_p7 = scmp.lt.s32.totalorder (!%p291_p3), %s1970_s25, 7 }
   0xa   : > { %s2259_s9 = smov (%p34_p4, %s2257_s9), 0  ;;  %s2261_s10 = smov (!%p34_p4, %s36_s10), %s1986_s29 }
   0xb   : > { %p38_p5 = scmp.ge.s32.totalorder %s2261_s10, 2  ;;  %294 = sbr.rel (%p291_p3) target bundleno = 549 (0x225), region = 48  ;;  %1854 = vset.pattern.permute.xlu1 (!%p291_p3), %v1992_v2  ;;  %1853 = vset.pattern.permute.xlu0 (!%p291_p3), %v1992_v2  ;;  %v375_v4 = vld [vmem:[%s2243_s3 + $0x8] sm:$0xff] (!%p291_p3)  ;;  %v402_v6 = vld [vmem:[%s2244_s4] sm:$0xff] (!%p291_p3)  ;;  %v405_v7 = vld [vmem:[%s2244_s4 + $0x18] sm:$0xff] (!%p291_p3) }
   0xc   : > { %390 = vperm.xlu1 (!%p291_p3), %1854, %v376_v0   ;;  %380 = vperm.xlu0 (!%p291_p3), %1853, %v374_v1   ;;  %v403_v5 = vld [vmem:[%s2244_s4 + $0x8] sm:$0xff] (!%p291_p3)  ;;  %v404_v8 = vld [vmem:[%s2244_s4 + $0x10] sm:$0xff] (!%p291_p3)  ;;  %v434_v10 = vld [vmem:[%s2245_s5] sm:$0xff] (!%p291_p3)  ;;  %p351_p8 = scmp.lt.s32.totalorder (!%p291_p3), %s1966_s24, 2  ;;  %s340_s12 = sadd.s32 (!%p291_p3), %s1966_s24, %s1970_s25 }
   0xd   : > { %s2263_s10 = smov (%p38_p5, %s2261_s10), 0  ;;  %v435_v9 = vld [vmem:[%s2245_s5 + $0x8] sm:$0xff] (!%p291_p3)  ;;  %v437_v11 = vld [vmem:[%s2245_s5 + $0x18] sm:$0xff] (!%p291_p3)  ;;  %v436_v12 = vld [vmem:[%s2245_s5 + $0x10] sm:$0xff] (!%p291_p3)  ;;  %p343_p9 = scmp.lt.s32.totalorder (!%p291_p3), %s340_s12, 9 }
   0xe   : > { %p1507_p10 = scmp.ne.s32.totalorder (!%p291_p3), %s1966_s24, 0 }
  0x10   : > { %395 = vperm.xlu1 (!%p291_p3), %1854, %v377_v3   ;;  %385 = vperm.xlu0 (!%p291_p3), %1853, %v375_v4  }
  0x12   : > { %s2265_s26 = smov (!%p341_p6, %s1974_s26), 1  ;;  %s2267_s12 = smov (!%p343_p9, %s340_s12), 9 }
  0x13   : > { %s1504_s23 = sshll.u32 %s2265_s26, 4  ;;  %s1785_s13 = smul.u32 40, %s2265_s26  ;;  %v481_v50 = vld [vmem:[%s2246_s6] sm:$0xff] (!%p1507_p10)  ;;  %v1993_v51 = vmov (!%p1507_p10), 0   ;;  %v482_v52 = vld [vmem:[%s2246_s6 + $0x8] sm:$0xff] (!%p1507_p10)  ;;  %vm493_vm4 = vcmask (!%p1507_p10), 195584  }
  0x14   : > { %s364_s11 = scalar_select %p363_p7, %s1970_s25, 7  ;;  %413 = vperm.xlu1 %1854, %v403_v5   ;;  %408 = vperm.xlu0 %1853, %v402_v6  }
  0x15   : > { %s1500_s14 = sshll.u32 %s2267_s12, 2 }
  0x16   : > { %s1503_s16 = sshll.u32 %s364_s11, 1 }
  0x17   : > { %s367_s17 = sadd.s32 %s1504_s23, %s1503_s16  ;;  %s347_s23 = sadd.s32 %s1785_s13, %s1500_s14 }
  0x18   : > { %s1505_s18 = sshll.u32 %s367_s17, 3  ;;  %423 = vperm.xlu1 %1854, %v405_v7   ;;  %418 = vperm.xlu0 %1853, %v404_v8   ;;  %s1501_s11 = sshll.u32 %s347_s23, 3 }
  0x19   : > { %s2124_s21 = scalar_lea.vmem %s2247_s7, %s1505_s18 }
  0x1a   : > { %s352_s17 = scalar_select %p351_p8, %s1966_s24, 2 }
  0x1c   : > { %445 = vperm.xlu1 %1854, %v435_v9   ;;  %440 = vperm.xlu0 %1853, %v434_v10   ;;  %s1786_s18 = smul.u32 144, %s352_s17  ;;  %s349_s17 = scalar_lea.vmem %s2240_s0, %s1501_s11 }
  0x1d   : > { %v370_v19 = vld [vmem:[%s349_s17] sm:$0xff]  ;;  %v371_v20 = vld [vmem:[%s349_s17 + $0x8] sm:$0xff]  ;;  %v372_v25 = vld [vmem:[%s349_s17 + $0x10] sm:$0xff] }
  0x1e   : > { %s2143_s22 = scalar_lea.vmem %s2241_s1, %s1786_s18  ;;  %v373_v26 = vld [vmem:[%s349_s17 + $0x18] sm:$0xff]  ;;  %s359_s18 = scalar_lea.vmem %s2242_s2, %s2267_s12 }
  0x1f   : > { %v1506_v34 = vld [vmem:[%s359_s18] ss:$0 sm:$0xff] }
  0x20   : > { %455 = vperm.xlu1 %1854, %v437_v11   ;;  %450 = vperm.xlu0 %1853, %v436_v12  }
  0x24   : > { %1855 = vset.pattern.permute.xlu0 (!%p1507_p10), %v1993_v51 }
  0x25   : > { %485 = vperm.xlu0 (!%p1507_p10), %1855, %v481_v50  }
  0x29   : > { %490 = vperm.xlu0 (!%p1507_p10), %1855, %v482_v52  }
  0x8b   : > { %v391_v13 = vpop.permute.xlu1 %390  ;;  %v381_v14 = vpop.permute.xlu0 %380 }
  0x8c   : > { %v398_v21 = vmul.f32 %v381_v14, %v370_v19  ;;  %v400_v29 = vmul.f32 %v391_v13, %v372_v25 }
  0x8f   : > { %v396_v15 = vpop.permute.xlu1 %395  ;;  %v386_v16 = vpop.permute.xlu0 %385 }
  0x90   : > { %v399_v22 = vmul.f32 %v386_v16, %v371_v20  ;;  %v401_v30 = vmul.f32 %v396_v15, %v373_v26 }
  0x93   : > { %v414_v17 = vpop.permute.xlu1 %413  ;;  %v409_v18 = vpop.permute.xlu0 %408 }
  0x94   : > { %v427_v27 = vadd.f32 %v414_v17, %v399_v22  ;;  %v426_v28 = vadd.f32 %v409_v18, %v398_v21 }
  0x96   : > { %vm431_vm0 = vcmp.ge.f32.partialorder %v427_v27, 0.0  ;;  %vm430_vm1 = vcmp.ge.f32.partialorder %v426_v28, 0.0 }
  0x97   : > { %v424_v23 = vpop.permute.xlu1 %423  ;;  %v419_v24 = vpop.permute.xlu0 %418 }
  0x98   : > { %v429_v36 = vadd.f32 %v424_v23, %v401_v30  ;;  %v428_v37 = vadd.f32 %v419_v24, %v400_v29 }
  0x9a   : > { %vm433_vm2 = vcmp.ge.f32.partialorder %v429_v36, 0.0  ;;  %vm432_vm3 = vcmp.ge.f32.partialorder %v428_v37, 0.0 }
  0x9b   : > { %v446_v31 = vpop.permute.xlu1 %445  ;;  %v441_v32 = vpop.permute.xlu0 %440 }
  0x9c   : > { %v459_v33 = vmul.f32 %v446_v31, %v427_v27  ;;  %v458_v35 = vmul.f32 %v441_v32, %v426_v28 }
  0x9d   : > { %480 = sbr.rel (%p1507_p10) target bundleno = 170 (0xaa), region = 52 }
  0x9e   : > { %v463_v38 = vsel %vm431_vm0, %v427_v27, %v459_v33  ;;  %v462_v39 = vsel %vm430_vm1, %v426_v28, %v458_v35 }
  0x9f   : > { %v2154_v40 = vmul.f32 %v1506_v34, %v463_v38  ;;  %v2156_v41 = vmul.f32 %v1506_v34, %v462_v39  ;;  %v456_v42 = vpop.permute.xlu1 %455  ;;  %v451_v43 = vpop.permute.xlu0 %450 }
  0xa0   : > { %v461_v44 = vmul.f32 %v456_v42, %v429_v36  ;;  %v460_v45 = vmul.f32 %v451_v43, %v428_v37 }
  0xa2   : > { %v465_v46 = vsel %vm433_vm2, %v429_v36, %v461_v44  ;;  %v464_v47 = vsel %vm432_vm3, %v428_v37, %v460_v45 }
  0xa3   : > { %v2158_v48 = vmul.f32 %v1506_v34, %v465_v46  ;;  %v2160_v49 = vmul.f32 %v1506_v34, %v464_v47 }
  0xa4   : > { %v486_v53 = vpop.permute.xlu0 %485 }
  0xa5   : > { %494 = vst.msk [vmem:[%s2124_s21] sm:$0xff] %vm493_vm4, %v486_v53 }
  0xa8   : > { %v491_v54 = vpop.permute.xlu0 %490 }
  0xa9   : > { %495 = vst.msk [vmem:[%s2124_s21 + $0x8] sm:$0xff] %vm493_vm4, %v491_v54 }
  0xaa PF: > { %v1856_v55 = vpack.i.bf16 %v2154_v40, %v2156_v41  ;;  %v1522_v56 = vld [vmem:[%s2143_s22 + $0x40] sm:$0xff]  ;;  %s1994_s24 = smov 121   ;;  %s1995_s14 = smov 127   ;;  %v1861_v57 = vpack.i.bf16 %v2158_v48, %v2160_v49  ;;  %vm517_vm5 = vcmask 261120   ;;  %v1508_v58 = vld [vmem:[%s2143_s22 + $0x10] sm:$0xff]  ;;  %v1523_v17 = vld [vmem:[%s2143_s22 + $0x48] sm:$0xff]  ;;  %v1705_v20 = vpack.c.bf16 %v2154_v40, %v2156_v41 }
  0xab   : > { %1650 = vmatprep.mubr.msk.f32.mxu0 %vm517_vm5, %v1522_v56  ;;  %1606 = vmatprep.mubr.msk.f32.mxu1 %vm517_vm5, %v1508_v58  ;;  %s1996_s23 = smov 120   ;;  %s1997_s11 = smov 116   ;;  %v1526_v25 = vld [vmem:[%s2143_s22 + $0x50] sm:$0xff]  ;;  %v1509_v26 = vld [vmem:[%s2143_s22 + $0x18] sm:$0xff]  ;;  %v1709_v30 = vpack.c.bf16 %v2158_v48, %v2160_v49  ;;  %v496_v35 = vld [vmem:[%s2143_s22] sm:$0xff]  ;;  %vm1370_vm6 = vcmask 195584  }
  0xac   : > { %1857 = vrot.lane.b32.xlu0 %v1856_v55, %s1994_s24  ;;  %1867 = vrot.lane.b32.xlu1 %v1856_v55, %s1995_s14  ;;  %s1998_s15 = smov 126   ;;  %s1999_s16 = smov 115   ;;  %v1527_v36 = vld [vmem:[%s2143_s22 + $0x58] sm:$0xff]  ;;  %v1530_v45 = vld [vmem:[%s2143_s22 + $0x60] sm:$0xff] }
  0xad   : > { %s2000_s17 = smov 122   ;;  %s2001_s25 = smov 114   ;;  %v497_v46 = vld [vmem:[%s2143_s22 + $0x8] sm:$0xff] }
  0xae   : > { %v1531_v56 = vld [vmem:[%s2143_s22 + $0x68] sm:$0xff] }
  0xb0   : > { %1862 = vrot.lane.b32.xlu0 %v1861_v57, %s1994_s24  ;;  %1872 = vrot.lane.b32.xlu1 %v1856_v55, %s1996_s23 }
  0xb4   : > { %1877 = vrot.lane.b32.xlu0 %v1861_v57, %s1995_s14  ;;  %1882 = vrot.lane.b32.xlu1 %v1861_v57, %s1996_s23 }
  0xb8   : > { %1887 = vrot.lane.b32.xlu0 %v1856_v55, %s1997_s11  ;;  %1892 = vrot.lane.b32.xlu1 %v1861_v57, %s1997_s11 }
  0xbc   : > { %1897 = vrot.lane.b32.xlu0 %v1856_v55, %s1998_s15  ;;  %1902 = vrot.lane.b32.xlu1 %v1856_v55, %s1999_s16 }
  0xc0   : > { %1907 = vrot.lane.b32.xlu0 %v1861_v57, %s1998_s15  ;;  %1912 = vrot.lane.b32.xlu1 %v1861_v57, %s1999_s16 }
  0xc4   : > { %1917 = vrot.lane.b32.xlu0 %v1856_v55, %s2000_s17  ;;  %1922 = vrot.lane.b32.xlu1 %v1856_v55, %s2001_s25  ;;  %v1514_v55 = vld [vmem:[%s2143_s22 + $0x20] sm:$0xff] }
  0xc8   : > { %1927 = vrot.lane.b32.xlu0 %v1861_v57, %s2000_s17  ;;  %1932 = vrot.lane.b32.xlu1 %v1861_v57, %s2001_s25 }
 0x11e   : > { %v1858_v59 = vpop.permute.xlu0 %1857  ;;  %v1868_v60 = vpop.permute.xlu1 %1867 }
 0x11f   : > { %v1860_v61 = vunpack.i.h.bf16 %v1858_v59  ;;  %v1859_v62 = vunpack.i.l.bf16 %v1858_v59  ;;  %v1870_v63 = vunpack.i.h.bf16 %v1868_v60  ;;  %v1869_v0 = vunpack.i.l.bf16 %v1868_v60 }
 0x121   : > { %v1729_v1 = vpack.c.bf16 %v1860_v61, %v1859_v62  ;;  %v1697_v2 = vpack.c.bf16 %v1870_v63, %v1869_v0 }
 0x122   : > { %v1863_v3 = vpop.permute.xlu0 %1862  ;;  %v1873_v4 = vpop.permute.xlu1 %1872 }
 0x123   : > { %v1865_v5 = vunpack.i.h.bf16 %v1863_v3  ;;  %v1864_v6 = vunpack.i.l.bf16 %v1863_v3  ;;  %1730 = vmatprep.subr.bf16.mxu0 %v1729_v1  ;;  %v1875_v7 = vunpack.i.h.bf16 %v1873_v4  ;;  %v1874_v8 = vunpack.i.l.bf16 %v1873_v4  ;;  %1698 = vmatprep.subr.bf16.mxu1 %v1697_v2 }
 0x124   : > { %1732 = vmatpush3.bf16.msra.mxu0 %v1729_v1  ;;  %1700 = vmatpush3.bf16.msra.mxu1 %v1697_v2  ;;  %v1534_v1 = vld [vmem:[%s2143_s22 + $0x70] sm:$0xff]  ;;  %v1515_v2 = vld [vmem:[%s2143_s22 + $0x28] sm:$0xff] }
 0x125   : > { %v1733_v9 = vpack.c.bf16 %v1865_v5, %v1864_v6  ;;  %v1737_v10 = vpack.c.bf16 %v1875_v7, %v1874_v8  ;;  %v1518_v7 = vld [vmem:[%s2143_s22 + $0x30] sm:$0xff]  ;;  %v1535_v8 = vld [vmem:[%s2143_s22 + $0x78] sm:$0xff] }
 0x126   : > { %v1878_v11 = vpop.permute.xlu0 %1877  ;;  %v1883_v12 = vpop.permute.xlu1 %1882 }
 0x127   : > { %v1880_v13 = vunpack.i.h.bf16 %v1878_v11  ;;  %v1879_v14 = vunpack.i.l.bf16 %v1878_v11  ;;  %1734 = vmatprep.subr.bf16.mxu0 %v1733_v9  ;;  %v1885_v15 = vunpack.i.h.bf16 %v1883_v12  ;;  %v1884_v16 = vunpack.i.l.bf16 %v1883_v12  ;;  %v1519_v11 = vld [vmem:[%s2143_s22 + $0x38] sm:$0xff]  ;;  %v1539_v12 = vld [vmem:[%s2143_s22 + $0x88] sm:$0xff] }
 0x128   : > { %1736 = vmatpush3.bf16.msra.mxu0 %v1733_v9 }
 0x129   : > { %v1701_v18 = vpack.c.bf16 %v1880_v13, %v1879_v14  ;;  %v1741_v19 = vpack.c.bf16 %v1885_v15, %v1884_v16  ;;  %1738 = vmatprep.subr.bf16.mxu0 %v1737_v10  ;;  %v1367_v16 = vld [vmem:[%s2124_s21 + $0x8] sm:$0xff] }
 0x12a   : > { %v1888_v21 = vpop.permute.xlu0 %1887  ;;  %v1893_v22 = vpop.permute.xlu1 %1892 }
 0x12b   : > { %1702 = vmatprep.subr.bf16.mxu1 %v1701_v18  ;;  %1651 = vmatmul.mubr.msk.f32.vlgmr.msra.gmra.mrb[0].mxu0 %vm517_vm5, %v1523_v17  ;;  %v1890_v23 = vunpack.i.h.bf16 %v1888_v21  ;;  %v1889_v24 = vunpack.i.l.bf16 %v1888_v21  ;;  %v1895_v28 = vunpack.i.h.bf16 %v1893_v22  ;;  %v1894_v29 = vunpack.i.l.bf16 %v1893_v22 }
 0x12c   : > { %1704 = vmatpush3.bf16.msra.mxu1 %v1701_v18  ;;  %1740 = vmatpush3.bf16.msra.mxu0 %v1737_v10  ;;  %v1538_v10 = vld [vmem:[%s2143_s22 + $0x80] sm:$0xff] }
 0x12d   : > { %v1745_v27 = vpack.c.bf16 %v1890_v23, %v1889_v24  ;;  %1706 = vmatprep.subr.bf16.mxu1 %v1705_v20  ;;  %1742 = vmatprep.subr.bf16.mxu0 %v1741_v19  ;;  %v1749_v38 = vpack.c.bf16 %v1895_v28, %v1894_v29 }
 0x12e   : > { %1661 = vmatprep.mubr.msk.f32.mxu0 %vm517_vm5, %v1526_v25  ;;  %v1898_v31 = vpop.permute.xlu0 %1897  ;;  %v1903_v32 = vpop.permute.xlu1 %1902 }
 0x12f   : > { %1607 = vmatmul.mubr.msk.f32.vlgmr.msra.gmra.mrb[0].mxu1 %vm517_vm5, %v1509_v26  ;;  %v1900_v33 = vunpack.i.h.bf16 %v1898_v31  ;;  %v1899_v34 = vunpack.i.l.bf16 %v1898_v31  ;;  %v1905_v39 = vunpack.i.h.bf16 %v1903_v32  ;;  %v1904_v40 = vunpack.i.l.bf16 %v1903_v32 }
 0x130   : > { %1708 = vmatpush3.bf16.msra.mxu1 %v1705_v20  ;;  %1744 = vmatpush3.bf16.msra.mxu0 %v1741_v19  ;;  %v1366_v19 = vld [vmem:[%s2124_s21] sm:$0xff] }
 0x131   : > { %v1713_v37 = vpack.c.bf16 %v1900_v33, %v1899_v34  ;;  %1710 = vmatprep.subr.bf16.mxu1 %v1709_v30  ;;  %1746 = vmatprep.subr.bf16.mxu0 %v1745_v27  ;;  %v1753_v48 = vpack.c.bf16 %v1905_v39, %v1904_v40 }
 0x132   : > { %v1908_v41 = vpop.permute.xlu0 %1907  ;;  %1617 = vmatprep.mubr.msk.f32.mxu1 %vm517_vm5, %v496_v35  ;;  %v1913_v42 = vpop.permute.xlu1 %1912 }
 0x133   : > { %1662 = vmatmul.mubr.msk.f32.vlgmr.msra.gmra.mrb[0].mxu0 %vm517_vm5, %v1527_v36  ;;  %v1910_v43 = vunpack.i.h.bf16 %v1908_v41  ;;  %v1909_v44 = vunpack.i.l.bf16 %v1908_v41  ;;  %v1915_v49 = vunpack.i.h.bf16 %v1913_v42  ;;  %v1914_v50 = vunpack.i.l.bf16 %v1913_v42 }
 0x134   : > { %1712 = vmatpush3.bf16.msra.mxu1 %v1709_v30  ;;  %1748 = vmatpush3.bf16.msra.mxu0 %v1745_v27 }
 0x135   : > { %v1717_v47 = vpack.c.bf16 %v1910_v43, %v1909_v44  ;;  %1714 = vmatprep.subr.bf16.mxu1 %v1713_v37  ;;  %1750 = vmatprep.subr.bf16.mxu0 %v1749_v38  ;;  %v1757_v58 = vpack.c.bf16 %v1915_v49, %v1914_v50 }
 0x136   : > { %v1918_v51 = vpop.permute.xlu0 %1917  ;;  %1672 = vmatprep.mubr.msk.f32.mxu0 %vm517_vm5, %v1530_v45  ;;  %v1923_v52 = vpop.permute.xlu1 %1922 }
 0x137   : > { %1618 = vmatmul.mubr.msk.f32.vlgmr.msra.gmra.mrb[0].mxu1 %vm517_vm5, %v497_v46  ;;  %v1920_v53 = vunpack.i.h.bf16 %v1918_v51  ;;  %v1919_v54 = vunpack.i.l.bf16 %v1918_v51  ;;  %v1925_v59 = vunpack.i.h.bf16 %v1923_v52  ;;  %v1924_v60 = vunpack.i.l.bf16 %v1923_v52 }
 0x138   : > { %1716 = vmatpush3.bf16.msra.mxu1 %v1713_v37  ;;  %1752 = vmatpush3.bf16.msra.mxu0 %v1749_v38 }
 0x139   : > { %v1721_v57 = vpack.c.bf16 %v1920_v53, %v1919_v54  ;;  %1718 = vmatprep.subr.bf16.mxu1 %v1717_v47  ;;  %1754 = vmatprep.subr.bf16.mxu0 %v1753_v48  ;;  %v1761_v4 = vpack.c.bf16 %v1925_v59, %v1924_v60 }
 0x13a   : > { %v1928_v61 = vpop.permute.xlu0 %1927  ;;  %1628 = vmatprep.mubr.msk.f32.mxu1 %vm517_vm5, %v1514_v55  ;;  %v1933_v62 = vpop.permute.xlu1 %1932 }
 0x13b   : > { %1673 = vmatmul.mubr.msk.f32.vlgmr.msra.gmra.mrb[0].mxu0 %vm517_vm5, %v1531_v56  ;;  %v1930_v63 = vunpack.i.h.bf16 %v1928_v61  ;;  %v1929_v0 = vunpack.i.l.bf16 %v1928_v61  ;;  %v1935_v5 = vunpack.i.h.bf16 %v1933_v62  ;;  %v1934_v6 = vunpack.i.l.bf16 %v1933_v62 }
 0x13c   : > { %1720 = vmatpush3.bf16.msra.mxu1 %v1717_v47  ;;  %1756 = vmatpush3.bf16.msra.mxu0 %v1753_v48 }
 0x13d   : > { %v1725_v3 = vpack.c.bf16 %v1930_v63, %v1929_v0  ;;  %1722 = vmatprep.subr.bf16.mxu1 %v1721_v57  ;;  %1758 = vmatprep.subr.bf16.mxu0 %v1757_v58  ;;  %v1765_v9 = vpack.c.bf16 %v1935_v5, %v1934_v6 }
 0x13e   : > { %1683 = vmatprep.mubr.msk.f32.mxu0 %vm517_vm5, %v1534_v1 }
 0x13f   : > { %1629 = vmatmul.mubr.msk.f32.vlgmr.msra.gmra.mrb[0].mxu1 %vm517_vm5, %v1515_v2 }
 0x140   : > { %1724 = vmatpush3.bf16.msra.mxu1 %v1721_v57  ;;  %1760 = vmatpush3.bf16.msra.mxu0 %v1757_v58 }
 0x141   : > { %1726 = vmatprep.subr.bf16.mxu1 %v1725_v3  ;;  %1762 = vmatprep.subr.bf16.mxu0 %v1761_v4 }
 0x142   : > { %1639 = vmatprep.mubr.msk.f32.mxu1 %vm517_vm5, %v1518_v7 }
 0x143   : > { %1684 = vmatmul.mubr.msk.f32.vlgmr.msra.gmra.mrb[0].mxu0 %vm517_vm5, %v1535_v8 }
 0x144   : > { %1728 = vmatpush3.bf16.msra.mxu1 %v1725_v3  ;;  %1764 = vmatpush3.bf16.msra.mxu0 %v1761_v4 }
 0x145   : > { %1766 = vmatprep.subr.bf16.mxu0 %v1765_v9  ;;  %1694 = vmatprep.mubr.msk.f32.mxu0 %vm517_vm5, %v1538_v10 }
 0x147   : > { %1640 = vmatmul.mubr.msk.f32.vlgmr.msra.gmra.mrb[0].mxu1 %vm517_vm5, %v1519_v11 }
 0x148   : > { %1768 = vmatpush3.bf16.msra.mxu0 %v1765_v9 }
 0x14b   : > { %1695 = vmatmul.mubr.msk.f32.vlgmr.msra.gmra.mrb[0].mxu0 %vm517_vm5, %v1539_v12 }
 0x21a   : > { %v1641_v13 = vpop.f32.mrb[0].mxu1 }
 0x21b   : > { %v865_v14 = vpop.f32.mrb[1].mxu1 }
 0x21e   : > { %v1696_v15 = vpop.f32.mrb[0].mxu0 }
 0x21f   : > { %v1769_v17 = vadd.f32 %v1696_v15, %v1641_v13  ;;  %v1355_v18 = vpop.f32.mrb[1].mxu0 }
 0x220   : > { %v1770_v20 = vadd.f32 %v1355_v18, %v865_v14 }
 0x221   : > { %v1369_v21 = vadd.f32 %v1769_v17, %v1367_v16 }
 0x222   : > { %v1368_v22 = vadd.f32 %v1770_v20, %v1366_v19 }
 0x223   : > { %1372 = vst.msk [vmem:[%s2124_s21 + $0x8] sm:$0xff] %vm1370_vm6, %v1369_v21 }
 0x224   : > { %1371 = vst.msk [vmem:[%s2124_s21] sm:$0xff] %vm1370_vm6, %v1368_v22 }
 0x225 PF: > { %s17_s30 = sadd.s32 1, %s1990_s30   ;;  %s2248_s24 = smov %s1978_s27 }
 0x226   : > { %p14_p11 = scmp.ge.s32.totalorder %s17_s30, 50   ;;  %s2249_s25 = smov %s1982_s28 }
 0x227   : > { %s2250_s26 = smov %s1986_s29  ;;  %s2251_s27 = smov %s2255_s8 }
 0x228   : > { %s2252_s28 = smov %s2259_s9  ;;  %s2253_s29 = smov %s2263_s10 }
 0x229   :  { %16 = sbr.rel (!%p14_p11) target bundleno = 4 (0x4), region = 96 }

// kernel: hiformer_v3_forward.49
= control target key start
LH: loop header
LB: loop body
LE: loop exit
PB: predicated region body
PF: predicated region fallthrough
CT: control target
= control target key end

     0   :  { %s577_s12 = smov 0   ;;  %s579_s13 = smov 0   ;;  %s660_s0 = inlined_call_operand.vmem [shape: f32[2,8,16,16], index: 0, kind: input, shape index: {}]   ;;  %s661_s1 = inlined_call_operand.vmem [shape: f32[32,16], index: 1, kind: input, shape index: {}]   ;;  %s662_s2 = inlined_call_operand.vmem [shape: f32[32,1], index: 2, kind: input, shape index: {}]   ;;  %s663_s3 = inlined_call_operand.vmem [shape: f32[2,8,32,16], index: 3, kind: output, shape index: {}]  }
   0x1   :  { %s581_s14 = smov 0   ;;  %s583_s15 = smov 0  }
   0x2   :  { %s585_s16 = smov 0  }
   0x3 LB: > { %s22_s17 = sadd.s32 1, %s546_s14  ;;  %s25_s18 = sadd.s32 1, %s550_s15  ;;  %s554_s16 = sphi %s585_s16, %s13_s16   ;;  %s550_s15 = sphi %s583_s15, %s667_s15   ;;  %s546_s14 = sphi %s581_s14, %s666_s14   ;;  %s542_s13 = sphi %s579_s13, %s665_s13   ;;  %s538_s12 = sphi %s577_s12, %s664_s12  }
   0x4   : > { %p23_p0 = scmp.ge.s32.totalorder %s22_s17, 8  ;;  %p438_p1 = scmp.ge.s32.totalorder %s554_s16, 1 }
   0x5   : > { %p157_p2 = scmp.lt.s32.totalorder %s554_s16, 17 }
   0x6   : > { %s669_s17 = smov (%p23_p0, %s22_s17), 0  ;;  %s671_s18 = smov (!%p23_p0, %s25_s18), %s550_s15 }
   0x7   : > { %p158_p3 = pnand %p438_p1, %p157_p2  ;;  %p27_p4 = scmp.ge.s32.totalorder %s671_s18, 2 }
   0x8   : > { %p189_p5 = scmp.lt.s32.totalorder (!%p158_p3), %s542_s13, 1  ;;  %p191_p6 = scmp.lt.s32.totalorder (!%p158_p3), %s538_s12, 7  ;;  %v207_v0 = vld [vmem:[%s661_s1] sm:$0xff] (!%p158_p3)  ;;  %vm237_vm0 = vcmask (!%p158_p3), 130048   ;;  %v209_v1 = vld [vmem:[%s661_s1 + $0x10] sm:$0xff] (!%p158_p3)  ;;  %v556_v4 = vmov (!%p158_p3), 0  }
   0x9   : > { %s673_s18 = smov (%p27_p4, %s671_s18), 0  ;;  %161 = sbr.rel (%p158_p3) target bundleno = 244 (0xf4), region = 32 }
   0xa   : > { %461 = vmatprep.mubr.msk.f32.mxu0 (!%p158_p3), %vm237_vm0, %v207_v0  ;;  %464 = vmatprep.mubr.msk.f32.mxu1 (!%p158_p3), %vm237_vm0, %v209_v1  ;;  %v215_v2 = vld [vmem:[%s662_s2 + $0x10] sm:$0xff] (!%p158_p3)  ;;  %v213_v3 = vld [vmem:[%s662_s2] sm:$0xff] (!%p158_p3)  ;;  %v216_v5 = vld [vmem:[%s662_s2 + $0x18] sm:$0xff] (!%p158_p3) }
   0xb   : > { %515 = vset.pattern.permute.xlu1 (!%p158_p3), %v556_v4  ;;  %514 = vset.pattern.permute.xlu0 (!%p158_p3), %v556_v4  ;;  %v214_v6 = vld [vmem:[%s662_s2 + $0x8] sm:$0xff] (!%p158_p3)  ;;  %v210_v11 = vld [vmem:[%s661_s1 + $0x18] sm:$0xff] (!%p158_p3) }
   0xc   : > { %229 = vperm.xlu1 (!%p158_p3), %515, %v215_v2   ;;  %219 = vperm.xlu0 (!%p158_p3), %514, %v213_v3   ;;  %v208_v10 = vld [vmem:[%s661_s1 + $0x8] sm:$0xff] (!%p158_p3) }
  0x10   : > { %s675_s13 = smov (!%p189_p5, %s542_s13), 1  ;;  %s677_s12 = smov (!%p191_p6, %s538_s12), 7  ;;  %234 = vperm.xlu1 %515, %v216_v5   ;;  %224 = vperm.xlu0 %514, %v214_v6  }
  0x11   : > { %s440_s27 = sshll.u32 %s675_s13, 4  ;;  %s439_s5 = sshll.u32 %s677_s12, 1 }
  0x12   : > { %s195_s6 = sadd.s32 %s440_s27, %s439_s5  ;;  %s442_s7 = sshll.u32 %s677_s12, 2 }
  0x13   : > { %s441_s8 = sshll.u32 %s195_s6, 3  ;;  %s443_s9 = sshll.u32 %s675_s13, 5 }
  0x14   : > { %s197_s19 = scalar_lea.vmem %s660_s0, %s441_s8  ;;  %s204_s20 = sadd.s32 %s443_s9, %s442_s7 }
  0x15   : > { %v211_v7 = vld [vmem:[%s197_s19] sm:$0xff]  ;;  %v212_v8 = vld [vmem:[%s197_s19 + $0x8] sm:$0xff]  ;;  %s444_s13 = sshll.u32 %s204_s20, 3 }
  0x16   : > { %v467_v9 = vpack.c.bf16 %v212_v8, %v211_v7  ;;  %s206_s26 = scalar_lea.vmem %s663_s3, %s444_s13 }
  0x18   : > { %468 = vmatprep.subr.bf16.mxu0 %v467_v9  ;;  %471 = vmatprep.subr.bf16.mxu1 %v467_v9 }
  0x19   : > { %470 = vmatpush3.bf16.msra.mxu0 %v467_v9  ;;  %472 = vmatpush3.bf16.msra.mxu1 %v467_v9 }
  0x1c   : > { %462 = vmatmul.mubr.msk.f32.vlgmr.msra.gmra.mrb[0].mxu0 %vm237_vm0, %v208_v10  ;;  %465 = vmatmul.mubr.msk.f32.vlgmr.msra.gmra.mrb[0].mxu1 %vm237_vm0, %v210_v11 }
  0x8b   : > { %v230_v12 = vpop.permute.xlu1 %229  ;;  %v220_v13 = vpop.permute.xlu0 %219 }
  0x8f   : > { %v235_v14 = vpop.permute.xlu1 %234  ;;  %v225_v15 = vpop.permute.xlu0 %224 }
  0xef   : > { %v463_v16 = vpop.f32.mrb[0].mxu0  ;;  %v466_v17 = vpop.f32.mrb[0].mxu1 }
  0xf0   : > { %v322_v18 = vadd.f32 %v463_v16, %v225_v15  ;;  %v332_v19 = vadd.f32 %v466_v17, %v235_v14  ;;  %v316_v20 = vpop.f32.mrb[1].mxu0  ;;  %v326_v21 = vpop.f32.mrb[1].mxu1 }
  0xf1   : > { %v317_v22 = vadd.f32 %v316_v20, %v220_v13  ;;  %v327_v23 = vadd.f32 %v326_v21, %v230_v12 }
  0xf2   : > { %336 = vst.msk [vmem:[%s206_s26 + $0x8] sm:$0xff] %vm237_vm0, %v322_v18  ;;  %338 = vst.msk [vmem:[%s206_s26 + $0x18] sm:$0xff] %vm237_vm0, %v332_v19 }
  0xf3   : > { %335 = vst.msk [vmem:[%s206_s26] sm:$0xff] %vm237_vm0, %v317_v22  ;;  %337 = vst.msk [vmem:[%s206_s26 + $0x10] sm:$0xff] %vm237_vm0, %v327_v23 }
  0xf4 PF: > { %s13_s16 = sadd.s32 1, %s554_s16   ;;  %s664_s12 = smov %s546_s14 }
  0xf5   : > { %p10_p7 = scmp.ge.s32.totalorder %s13_s16, 18   ;;  %s665_s13 = smov %s550_s15 }
  0xf6   : > { %s666_s14 = smov %s669_s17  ;;  %s667_s15 = smov %s673_s18 }
  0xf7   :  { %12 = sbr.rel (!%p10_p7) target bundleno = 3 (0x3), region = 62 }

// kernel: tile.38
= control target key start
LH: loop header
LB: loop body
LE: loop exit
PB: predicated region body
PF: predicated region fallthrough
CT: control target
= control target key end

     0   :  { %s22_s0 = inlined_call_operand.vmem [shape: f32[2], index: 0, kind: input, shape index: {}]   ;;  %s23_s1 = inlined_call_operand.vmem [shape: f32[4,2], index: 1, kind: output, shape index: {}]  }
   0x1   :  { %v4_v0 = vld [vmem:[%s22_s0] ss:$0 sm:$0xff] }
   0x2   :  { %5 = vst [vmem:[%s23_s1] sm:$0xf] %v4_v0 }

// kernel: tile.3
= control target key start
LH: loop header
LB: loop body
LE: loop exit
PB: predicated region body
PF: predicated region fallthrough
CT: control target
= control target key end

     0   :  { %vm7_vm0 = vcmask 7168   ;;  %s37_s0 = inlined_call_operand.vmem [shape: f32[4,2], index: 0, kind: input, shape index: {}]   ;;  %s38_s1 = inlined_call_operand.vmem [shape: f32[8,1], index: 1, kind: output, shape index: {}]  }
   0x1   :  { %v4_v0 = vld [vmem:[%s37_s0] sm:$0xf]  ;;  %s17_s0 = smov 127  }
   0x2   :  { %5 = vst [vmem:[#allocation0] sm:$0xf] %v4_v0 }
   0x9   :  { %v9_v1 = vld [vmem:[#allocation0] sm:$0xf]  }
   0xa   :  { %v6_v2 = vld [vmem:[#allocation0] sm:$0xf]   ;;  %10 = vrot.lane.b32.xlu0 %v9_v1, %s17_s0 }
   0xb   :  { %8 = vst.msk [vmem:[%s38_s1] ss:$2 sm:$0xf] %vm7_vm0, %v6_v2  }
  0x7c   :  { %v11_v3 = vpop.permute.xlu0 %10  }
  0x7d   :  { %15 = vst.msk [vmem:[%s38_s1 + $0x1] ss:$2 sm:$0xf] %vm7_vm0, %v11_v3  }

// kernel: hiformer_v3_forward.53
= control target key start
LH: loop header
LB: loop body
LE: loop exit
PB: predicated region body
PF: predicated region fallthrough
CT: control target
= control target key end

     0   :  { %s498_s12 = smov 0   ;;  %s500_s13 = smov 0   ;;  %s555_s0 = inlined_call_operand.vmem [shape: f32[2,8,8,64], index: 0, kind: input, shape index: {}]   ;;  %s556_s1 = inlined_call_operand.vmem [shape: f32[8,8], index: 1, kind: input, shape index: {}]   ;;  %s557_s2 = inlined_call_operand.vmem [shape: f32[8,1], index: 2, kind: input, shape index: {}]   ;;  %s558_s3 = inlined_call_operand.vmem [shape: f32[2,8,8,64], index: 3, kind: output, shape index: {}]  }
   0x1   :  { %s502_s14 = smov 0   ;;  %s504_s15 = smov 0  }
   0x2   :  { %s506_s16 = smov 0  }
   0x3 LB: > { %s22_s17 = sadd.s32 1, %s465_s14  ;;  %s25_s18 = sadd.s32 1, %s469_s15  ;;  %s473_s16 = sphi %s506_s16, %s13_s16   ;;  %s469_s15 = sphi %s504_s15, %s562_s15   ;;  %s465_s14 = sphi %s502_s14, %s561_s14   ;;  %s461_s13 = sphi %s500_s13, %s560_s13   ;;  %s457_s12 = sphi %s498_s12, %s559_s12  }
   0x4   : > { %p23_p0 = scmp.ge.s32.totalorder %s22_s17, 8  ;;  %p376_p1 = scmp.ge.s32.totalorder %s473_s16, 1 }
   0x5   : > { %p156_p2 = scmp.lt.s32.totalorder %s473_s16, 17 }
   0x6   : > { %s564_s17 = smov (%p23_p0, %s22_s17), 0  ;;  %s566_s18 = smov (!%p23_p0, %s25_s18), %s469_s15 }
   0x7   : > { %p157_p3 = pnand %p376_p1, %p156_p2  ;;  %p27_p4 = scmp.ge.s32.totalorder %s566_s18, 2 }
   0x8   : > { %p186_p5 = scmp.lt.s32.totalorder (!%p157_p3), %s461_s13, 1  ;;  %p188_p6 = scmp.lt.s32.totalorder (!%p157_p3), %s457_s12, 7  ;;  %v475_v0 = vmov (!%p157_p3), 0.0   ;;  %vm476_vm0 = vmmov (!%p157_p3), 0   ;;  %v204_v1 = vld [vmem:[%s557_s2] sm:$0xff] (!%p157_p3)  ;;  %v477_v2 = vmov (!%p157_p3), 0  }
   0x9   : > { %s568_s18 = smov (%p27_p4, %s566_s18), 0  ;;  %160 = sbr.rel (%p157_p3) target bundleno = 238 (0xee), region = 32 }
   0xa   : > { %386 = vmatprep.subr.mxu0 (!%p157_p3), %v475_v0  ;;  %388 = vmatprep.mubr.msk.f32.mxu0 (!%p157_p3), %vm476_vm0, %v475_v0  ;;  %v202_v3 = vld [vmem:[%s556_s1] sm:$0xff] (!%p157_p3)  ;;  %vm210_vm1 = vcmask (!%p157_p3), 64512   ;;  %vm284_vm2 = vcmask (!%p157_p3), 523264  }
   0xb   : > { %434 = vset.pattern.permute.xlu0 (!%p157_p3), %v477_v2 }
   0xc   : > { %207 = vperm.xlu0 (!%p157_p3), %434, %v204_v1  }
  0x10   : > { %s570_s13 = smov (!%p186_p5, %s461_s13), 1  ;;  %s572_s12 = smov (!%p188_p6, %s457_s12), 7 }
  0x11   : > { %s377_s21 = sshll.u32 %s570_s13, 3 }
  0x12   : > { %s191_s22 = sadd.s32 %s377_s21, %s572_s12 }
  0x13   : > { %s378_s23 = sshll.u32 %s191_s22, 3 }
  0x14   : > { %s193_s26 = scalar_lea.vmem %s555_s0, %s378_s23  ;;  %s201_s4 = scalar_lea.vmem %s558_s3, %s378_s23 }
  0x15   : > { %v203_v4 = vld [vmem:[%s193_s26] sm:$0xff] }
  0x16   : > { %387 = vmatpush3.msra.mxu0 %v203_v4 }
  0x17   : > { %389 = vmatmul.mubr.msk.f32.vlgmr.msra.gmra.mrb[0].mxu0 %vm210_vm1, %v202_v3 }
  0x8b   : > { %v208_v5 = vpop.permute.xlu0 %207 }
  0xea   : > { %v280_v6 = vpop.f32.mrb[0].mxu0 }
  0xeb   : > { %v281_v7 = vadd.f32 %v280_v6, %v208_v5  ;;  %v390_v8 = vpop.f32.mrb[1].mxu0 }
  0xed   : > { %285 = vst.msk [vmem:[%s201_s4] sm:$0xff] %vm284_vm2, %v281_v7 }
  0xee PF: > { %s13_s16 = sadd.s32 1, %s473_s16   ;;  %s559_s12 = smov %s465_s14 }
  0xef   : > { %p10_p7 = scmp.ge.s32.totalorder %s13_s16, 18   ;;  %s560_s13 = smov %s469_s15 }
  0xf0   : > { %s561_s14 = smov %s564_s17  ;;  %s562_s15 = smov %s568_s18 }
  0xf1   :  { %12 = sbr.rel (!%p10_p7) target bundleno = 3 (0x3), region = 62 }

// kernel: hiformer_v3_forward.50
= control target key start
LH: loop header
LB: loop body
LE: loop exit
PB: predicated region body
PF: predicated region fallthrough
CT: control target
= control target key end

     0   :  { %s1624_s24 = smov 0   ;;  %s1626_s25 = smov 0   ;;  %s1786_s0 = inlined_call_operand.vmem [shape: f32[2,8,16,110], index: 0, kind: input, shape index: {}]   ;;  %s1787_s1 = inlined_call_operand.vmem [shape: f32[1,9,8,16], index: 1, kind: input, shape index: {}]   ;;  %s1788_s2 = inlined_call_operand.vmem [shape: f32[8,1,110], index: 2, kind: input, shape index: {}]   ;;  %s1789_s3 = inlined_call_operand.vmem [shape: f32[16,1], index: 3, kind: input, shape index: {}]   ;;  %s1790_s4 = inlined_call_operand.vmem [shape: f32[16,1], index: 4, kind: input, shape index: {}]   ;;  %s1791_s5 = inlined_call_operand.vmem [shape: f32[16,1], index: 5, kind: input, shape index: {}]   ;;  %s1792_s6 = inlined_call_operand.vmem [shape: f32[8,1], index: 6, kind: input, shape index: {}]   ;;  %s1793_s7 = inlined_call_operand.vmem [shape: f32[2,8,8,80], index: 7, kind: output, shape index: {}]  }
   0x1   :  { %s1628_s26 = smov 0   ;;  %s1630_s27 = smov 0  }
   0x2   :  { %s1632_s28 = smov 0  }
   0x3 LB: > { %s32_s29 = sadd.s32 1, %s1562_s26  ;;  %s36_s30 = sadd.s32 1, %s1566_s27  ;;  %s1570_s28 = sphi %s1632_s28, %s17_s28   ;;  %s1566_s27 = sphi %s1630_s27, %s1797_s27   ;;  %s1562_s26 = sphi %s1628_s26, %s1796_s26   ;;  %s1558_s25 = sphi %s1626_s25, %s1795_s25   ;;  %s1554_s24 = sphi %s1624_s24, %s1794_s24  }
   0x4   : > { %p34_p0 = scmp.ge.s32.totalorder %s32_s29, 8  ;;  %p1295_p1 = scmp.ge.s32.totalorder %s1570_s28, 1 }
   0x5   : > { %p290_p2 = scmp.lt.s32.totalorder %s1570_s28, 17 }
   0x6   : > { %s1799_s29 = smov (%p34_p0, %s32_s29), 0  ;;  %s1801_s30 = smov (!%p34_p0, %s36_s30), %s1566_s27 }
   0x7   : > { %p291_p3 = pnand %p1295_p1, %p290_p2  ;;  %p38_p4 = scmp.ge.s32.totalorder %s1801_s30, 2 }
   0x8   : > { %v384_v0 = vld [vmem:[%s1790_s4] sm:$0xff] (!%p291_p3)  ;;  %v1572_v2 = vmov (!%p291_p3), 0   ;;  %v385_v3 = vld [vmem:[%s1790_s4 + $0x8] sm:$0xff] (!%p291_p3)  ;;  %v1573_v7 = vmov (!%p291_p3), 0.0|0.0   ;;  %p340_p5 = scmp.lt.s32.totalorder (!%p291_p3), %s1558_s25, 1  ;;  %p342_p6 = scmp.lt.s32.totalorder (!%p291_p3), %s1554_s24, 7 }
   0x9   : > { %s1803_s30 = smov (%p38_p4, %s1801_s30), 0  ;;  %294 = sbr.rel (%p291_p3) target bundleno = 509 (0x1fd), region = 48 }
   0xa   : > { %v370_v1 = vld [vmem:[%s1789_s3] sm:$0xff] (!%p291_p3)  ;;  %1491 = vset.pattern.permute.xlu1 (!%p291_p3), %v1572_v2  ;;  %1490 = vset.pattern.permute.xlu0 (!%p291_p3), %v1572_v2  ;;  %v371_v4 = vld [vmem:[%s1789_s3 + $0x8] sm:$0xff] (!%p291_p3)  ;;  %vm1574_vm2 = vmmov (!%p291_p3), 0   ;;  %v1575_v25 = vmov (!%p291_p3), 0.0   ;;  %s1576_s14 = smov (!%p291_p3), 126   ;;  %s1577_s15 = smov (!%p291_p3), 127  }
   0xb   : > { %388 = vperm.xlu1 (!%p291_p3), %1491, %v384_v0   ;;  %374 = vperm.xlu0 (!%p291_p3), %1490, %v370_v1   ;;  %v401_v5 = vld [vmem:[%s1791_s5 + $0x8] sm:$0xff] (!%p291_p3)  ;;  %v400_v6 = vld [vmem:[%s1791_s5] sm:$0xff] (!%p291_p3)  ;;  %vm448_vm3 = vcmask (!%p291_p3), 130048   ;;  %s1578_s18 = smov (!%p291_p3), 117   ;;  %s1579_s19 = smov (!%p291_p3), 118   ;;  %v1305_v52 = vld [vmem:[%s1787_s1 + $0x10] sm:$0xff] (!%p291_p3) }
   0xc   : > { %1414 = vmatprep.subr.bf16.mxu1 (!%p291_p3), %v1573_v7  ;;  %1411 = vmatprep.subr.bf16.mxu0 (!%p291_p3), %v1573_v7  ;;  %v437_v30 = vld [vmem:[%s1787_s1] sm:$0xff] (!%p291_p3)  ;;  %v1302_v43 = vld [vmem:[%s1787_s1 + $0x8] sm:$0xff] (!%p291_p3)  ;;  %v1307_v53 = vld [vmem:[%s1787_s1 + $0x18] sm:$0xff] (!%p291_p3)  ;;  %vm435_vm4 = vcmask (!%p291_p3), 654336  }
   0xd   : > { %1352 = vmatprep.mubr.msk.f32.mxu0 (!%p291_p3), %vm1574_vm2, %v1575_v25  ;;  %1359 = vmatprep.mubr.msk.f32.mxu1 (!%p291_p3), %vm1574_vm2, %v1575_v25  ;;  %v429_v31 = vld [vmem:[%s1792_s6] sm:$0xff] (!%p291_p3)  ;;  %v1311_v63 = vld [vmem:[%s1787_s1 + $0x28] sm:$0xff] (!%p291_p3) }
   0xe   : > { %v1309_v62 = vld [vmem:[%s1787_s1 + $0x20] sm:$0xff] (!%p291_p3) }
   0xf   : > { %393 = vperm.xlu1 (!%p291_p3), %1491, %v385_v3   ;;  %379 = vperm.xlu0 (!%p291_p3), %1490, %v371_v4   ;;  %v1313_v4 = vld [vmem:[%s1787_s1 + $0x30] sm:$0xff] (!%p291_p3) }
  0x10   : > { %s1805_s25 = smov (!%p340_p5, %s1558_s25), 1  ;;  %s1807_s24 = smov (!%p342_p6, %s1554_s24), 7 }
  0x11   : > { %s1296_s20 = sshll.u32 %s1807_s24, 1  ;;  %s1297_s21 = sshll.u32 %s1805_s25, 4 }
  0x12   : > { %s346_s22 = sadd.s32 %s1297_s21, %s1296_s20  ;;  %s358_s13 = scalar_lea.vmem %s1788_s2, %s1807_s24 }
  0x13   : > { %409 = vperm.xlu1 %1491, %v401_v5   ;;  %404 = vperm.xlu0 %1490, %v400_v6   ;;  %s1298_s23 = sshll.u32 %s346_s22, 3  ;;  %v1301_v21 = vld [vmem:[%s358_s13] ss:$0 sm:$0xff]  ;;  %s1580_s20 = smov 108   ;;  %v1315_v5 = vld [vmem:[%s1787_s1 + $0x38] sm:$0xff] }
  0x14   : > { %s348_s10 = scalar_lea.vmem %s1786_s0, %s1298_s23  ;;  %s1581_s21 = smov 116  }
  0x15   : > { %v368_v8 = vld [vmem:[%s348_s10] sm:$0xff]  ;;  %v369_v12 = vld [vmem:[%s348_s10 + $0x8] sm:$0xff]  ;;  %s1582_s22 = smov 106   ;;  %s1583_s23 = smov 107  }
  0x16   : > { %s1299_s8 = sshll.u32 %s1805_s25, 3 }
  0x17   : > { %s365_s11 = sadd.s32 %s1299_s8, %s1807_s24 }
  0x18   : > { %s1300_s25 = sshll.u32 %s365_s11, 3 }
  0x8a   : > { %v389_v9 = vpop.permute.xlu1 %388  ;;  %v375_v10 = vpop.permute.xlu0 %374 }
  0x8b   : > { %v382_v11 = vmul.f32 %v375_v10, %v368_v8  ;;  %v1317_v8 = vld [vmem:[%s1787_s1 + $0x40] sm:$0xff] }
  0x8d   : > { %v396_v16 = vadd.f32 %v389_v9, %v382_v11 }
  0x8e   : > { %v394_v13 = vpop.permute.xlu1 %393  ;;  %v380_v14 = vpop.permute.xlu0 %379 }
  0x8f   : > { %v383_v15 = vmul.f32 %v380_v14, %v369_v12  ;;  %vm398_vm1 = vcmp.ge.f32.partialorder %v396_v16, 0.0 }
  0x91   : > { %v397_v17 = vadd.f32 %v394_v13, %v383_v15 }
  0x92   : > { %v410_v18 = vpop.permute.xlu1 %409  ;;  %v405_v19 = vpop.permute.xlu0 %404 }
  0x93   : > { %vm399_vm0 = vcmp.ge.f32.partialorder %v397_v17, 0.0  ;;  %v413_v20 = vmul.f32 %v410_v18, %v397_v17  ;;  %v412_v22 = vmul.f32 %v405_v19, %v396_v16 }
  0x95   : > { %v415_v23 = vsel %vm399_vm0, %v397_v17, %v413_v20  ;;  %v414_v24 = vsel %vm398_vm1, %v396_v16, %v412_v22 }
  0x96   : > { %v424_v26 = vmul.f32 %v1301_v21, %v415_v23  ;;  %v423_v27 = vmul.f32 %v1301_v21, %v414_v24 }
  0x98   : > { %v1497_v28 = vpack.i.bf16 %v424_v26, %v423_v27  ;;  %v1415_v29 = vpack.c.bf16 %v424_v26, %v423_v27 }
  0x9a   : > { %1498 = vrot.lane.b32.xlu1 %v1497_v28, %s1576_s14  ;;  %1493 = vrot.lane.b32.xlu0 %v1497_v28, %s1577_s15  ;;  %s1764_s14 = scalar_lea.vmem %s1793_s7, %s1300_s25 }
  0x9b   : > { %1416 = vmatpush3.bf16.msra.mxu1 %v1415_v29 }
  0x9c   : > { %1420 = vmatprep.subr.bf16.mxu1 %v1573_v7 }
  0x9e   : > { %1508 = vrot.lane.b32.xlu1 %v1497_v28, %s1578_s18  ;;  %1503 = vrot.lane.b32.xlu0 %v1497_v28, %s1579_s19 }
  0x9f   : > { %1360 = vmatmul.mubr.msk.f32.vlgmr.msra.gmra.mrb[0].mxu1 %vm448_vm3, %v437_v30 }
  0xa0   : > { %1373 = vmatprep.mubr.msk.f32.mxu1 %vm1574_vm2, %v1575_v25 }
  0xa2   : > { %1518 = vrot.lane.b32.xlu1 %v1497_v28, %s1580_s20  ;;  %1513 = vrot.lane.b32.xlu0 %v1497_v28, %s1581_s21 }
  0xa6   : > { %1528 = vrot.lane.b32.xlu1 %v1497_v28, %s1582_s22  ;;  %1523 = vrot.lane.b32.xlu0 %v1497_v28, %s1583_s23 }
  0xaa   : > { %432 = vperm.xlu0 %1490, %v429_v31  }
 0x10c   : > { %v1499_v32 = vpop.permute.xlu1 %1498  ;;  %v1494_v33 = vpop.permute.xlu0 %1493 }
 0x10d   : > { %v1496_v34 = vunpack.i.h.bf16 %v1494_v33  ;;  %v1495_v35 = vunpack.i.l.bf16 %v1494_v33  ;;  %v1501_v36 = vunpack.i.h.bf16 %v1499_v32  ;;  %v1500_v37 = vunpack.i.l.bf16 %v1499_v32 }
 0x10f   : > { %v1412_v38 = vpack.c.bf16 %v1496_v34, %v1495_v35  ;;  %v1418_v44 = vpack.c.bf16 %v1501_v36, %v1500_v37 }
 0x110   : > { %v1509_v39 = vpop.permute.xlu1 %1508  ;;  %v1504_v40 = vpop.permute.xlu0 %1503 }
 0x111   : > { %v1506_v41 = vunpack.i.h.bf16 %v1504_v40  ;;  %v1505_v42 = vunpack.i.l.bf16 %v1504_v40  ;;  %1413 = vmatpush3.bf16.msra.mxu0 %v1412_v38  ;;  %v1511_v45 = vunpack.i.h.bf16 %v1509_v39  ;;  %v1510_v46 = vunpack.i.l.bf16 %v1509_v39 }
 0x112   : > { %1417 = vmatprep.subr.bf16.mxu0 %v1573_v7 }
 0x113   : > { %v1421_v47 = vpack.c.bf16 %v1506_v41, %v1505_v42  ;;  %v1424_v54 = vpack.c.bf16 %v1511_v45, %v1510_v46 }
 0x114   : > { %v1519_v48 = vpop.permute.xlu1 %1518  ;;  %v1514_v49 = vpop.permute.xlu0 %1513  ;;  %1353 = vmatmul.mubr.msk.f32.vlgmr.msra.gmra.mrb[0].mxu0 %vm448_vm3, %v1302_v43 }
 0x115   : > { %v1516_v50 = vunpack.i.h.bf16 %v1514_v49  ;;  %v1515_v51 = vunpack.i.l.bf16 %v1514_v49  ;;  %1419 = vmatpush3.bf16.msra.mxu0 %v1418_v44  ;;  %1422 = vmatpush3.bf16.msra.mxu1 %v1421_v47  ;;  %v1521_v55 = vunpack.i.h.bf16 %v1519_v48  ;;  %v1520_v56 = vunpack.i.l.bf16 %v1519_v48 }
 0x116   : > { %1366 = vmatprep.mubr.msk.f32.mxu0 %vm1574_vm2, %v1575_v25  ;;  %1423 = vmatprep.subr.bf16.mxu0 %v1573_v7 }
 0x117   : > { %v1427_v57 = vpack.c.bf16 %v1516_v50, %v1515_v51  ;;  %1426 = vmatprep.subr.bf16.mxu1 %v1573_v7  ;;  %v1430_v0 = vpack.c.bf16 %v1521_v55, %v1520_v56 }
 0x118   : > { %v1529_v58 = vpop.permute.xlu1 %1528  ;;  %v1524_v59 = vpop.permute.xlu0 %1523  ;;  %1367 = vmatmul.mubr.msk.f32.vlgmr.msra.gmra.mrb[2].mxu0 %vm448_vm3, %v1305_v52  ;;  %1374 = vmatmul.mubr.msk.f32.vlgmr.msra.gmra.mrb[2].mxu1 %vm448_vm3, %v1307_v53 }
 0x119   : > { %v1526_v60 = vunpack.i.h.bf16 %v1524_v59  ;;  %v1525_v61 = vunpack.i.l.bf16 %v1524_v59  ;;  %1425 = vmatpush3.bf16.msra.mxu0 %v1424_v54  ;;  %1428 = vmatpush3.bf16.msra.mxu1 %v1427_v57  ;;  %v1531_v1 = vunpack.i.h.bf16 %v1529_v58  ;;  %v1530_v2 = vunpack.i.l.bf16 %v1529_v58 }
 0x11a   : > { %1380 = vmatprep.mubr.msk.f32.mxu0 %vm1574_vm2, %v1575_v25  ;;  %1387 = vmatprep.mubr.msk.f32.mxu1 %vm1574_vm2, %v1575_v25 }
 0x11b   : > { %v1433_v3 = vpack.c.bf16 %v1526_v60, %v1525_v61  ;;  %1429 = vmatprep.subr.bf16.mxu0 %v1573_v7  ;;  %1432 = vmatprep.subr.bf16.mxu1 %v1573_v7  ;;  %v1436_v6 = vpack.c.bf16 %v1531_v1, %v1530_v2 }
 0x11c   : > { %1381 = vmatmul.mubr.msk.f32.vlgmr.msra.gmra.mrb[4].mxu0 %vm448_vm3, %v1309_v62  ;;  %1388 = vmatmul.mubr.msk.f32.vlgmr.msra.gmra.mrb[4].mxu1 %vm448_vm3, %v1311_v63 }
 0x11d   : > { %1431 = vmatpush3.bf16.msra.mxu0 %v1430_v0  ;;  %1434 = vmatpush3.bf16.msra.mxu1 %v1433_v3 }
 0x11e   : > { %1394 = vmatprep.mubr.msk.f32.mxu0 %vm1574_vm2, %v1575_v25  ;;  %1435 = vmatprep.subr.bf16.mxu0 %v1573_v7 }
 0x11f   : > { %1401 = vmatprep.mubr.msk.f32.mxu1 %vm1574_vm2, %v1575_v25 }
 0x120   : > { %1395 = vmatmul.mubr.msk.f32.vlgmr.msra.gmra.mrb[6].mxu0 %vm448_vm3, %v1313_v4  ;;  %1402 = vmatmul.mubr.msk.f32.vlgmr.msra.gmra.mrb[6].mxu1 %vm448_vm3, %v1315_v5 }
 0x121   : > { %1437 = vmatpush3.bf16.msra.mxu0 %v1436_v6  ;;  %1408 = vmatprep.mubr.msk.f32.mxu0 %vm1574_vm2, %v1575_v25 }
 0x124   : > { %1409 = vmatmul.mubr.msk.f32.vlgmr.msra.gmra.mrb[8].mxu0 %vm448_vm3, %v1317_v8 }
 0x129   : > { %v433_v7 = vpop.permute.xlu0 %432 }
 0x12a   : > { %436 = vst.msk [vmem:[%s1764_s14] sm:$0xff] %vm435_vm4, %v433_v7 }
 0x131   : > { %v1169_v35 = vld [vmem:[%s1764_s14] sm:$0xff] }
 0x172   : > { %v591_v9 = vpop.f32.mrb[0].mxu1 }
 0x173   : > { %v1361_v10 = vpop.f32.mrb[1].mxu1 }
 0x1e7   : > { %v518_v11 = vpop.f32.mrb[0].mxu0 }
 0x1e8   : > { %v1354_v12 = vpop.f32.mrb[1].mxu0  ;;  %v592_v13 = vadd.f32 %v591_v9, %v518_v11 }
 0x1eb   : > { %v672_v14 = vpop.f32.mrb[2].mxu0  ;;  %v754_v15 = vpop.f32.mrb[2].mxu1 }
 0x1ec   : > { %v676_v16 = vadd.f32 %v672_v14, %v592_v13  ;;  %v1368_v17 = vpop.f32.mrb[3].mxu0  ;;  %v1375_v18 = vpop.f32.mrb[3].mxu1 }
 0x1ee   : > { %v758_v19 = vadd.f32 %v754_v15, %v676_v16 }
 0x1ef   : > { %v836_v20 = vpop.f32.mrb[4].mxu0  ;;  %v918_v21 = vpop.f32.mrb[4].mxu1 }
 0x1f0   : > { %v840_v22 = vadd.f32 %v836_v20, %v758_v19  ;;  %v1382_v23 = vpop.f32.mrb[5].mxu0  ;;  %v1389_v24 = vpop.f32.mrb[5].mxu1 }
 0x1f2   : > { %v922_v25 = vadd.f32 %v918_v21, %v840_v22 }
 0x1f3   : > { %v1000_v26 = vpop.f32.mrb[6].mxu0  ;;  %v1082_v27 = vpop.f32.mrb[6].mxu1 }
 0x1f4   : > { %v1004_v28 = vadd.f32 %v1000_v26, %v922_v25  ;;  %v1396_v29 = vpop.f32.mrb[7].mxu0  ;;  %v1403_v30 = vpop.f32.mrb[7].mxu1 }
 0x1f6   : > { %v1086_v31 = vadd.f32 %v1082_v27, %v1004_v28 }
 0x1f7   : > { %v1164_v32 = vpop.f32.mrb[8].mxu0 }
 0x1f8   : > { %v1168_v33 = vadd.f32 %v1164_v32, %v1086_v31  ;;  %v1410_v34 = vpop.f32.mrb[9].mxu0 }
 0x1fa   : > { %v1170_v36 = vadd.f32 %v1169_v35, %v1168_v33 }
 0x1fc   : > { %1172 = vst.msk [vmem:[%s1764_s14] sm:$0xff] %vm435_vm4, %v1170_v36 }
 0x1fd PF: > { %s17_s28 = sadd.s32 1, %s1570_s28   ;;  %s1794_s24 = smov %s1562_s26 }
 0x1fe   : > { %p14_p7 = scmp.ge.s32.totalorder %s17_s28, 18   ;;  %s1795_s25 = smov %s1566_s27 }
 0x1ff   : > { %s1796_s26 = smov %s1799_s29  ;;  %s1797_s27 = smov %s1803_s30 }
 0x200   :  { %16 = sbr.rel (!%p14_p7) target bundleno = 3 (0x3), region = 96 }

</bundles_post_ra>
